<compile_context>
chip_gen: v7x
topology: tpu7x:2x2x1
jax: 0.10.0
libtpu: 0.0.40
codegen_flags: <defaults>
</compile_context>

<pallas_src>
import numpy as np
import jax
import jax.numpy as jnp
from jax.experimental import pallas as pl
from jax.experimental.pallas import tpu as pltpu

SCALE = 32
TOTAL_BITS = 16
INPUT_INT_BITS = 8

STAGE_CFG = [  # (out_channels, num_blocks, first_stride)
    (max(1, 64 // SCALE), 2, 1),
    (max(1, 128 // SCALE), 2, 2),
    (max(1, 256 // SCALE), 2, 2),
    (max(1, 512 // SCALE), 2, 2),
]
STEM_C = max(1, 64 // SCALE)
FC_IN = max(1, 512 // SCALE)
NUM_CLASSES = 10
BN_EPS = 1e-5


# --------------------------------------------------------------------------- #
# Reference-semantics helpers
# --------------------------------------------------------------------------- #
def fixed_point_quantize(x, total_bits=TOTAL_BITS, int_bits=INPUT_INT_BITS):
    frac_bits = total_bits - int_bits
    delta = 2.0 ** (-frac_bits)
    max_q = 2 ** (total_bits - 1) - 1
    min_q = -(2 ** (total_bits - 1))
    return jnp.clip(jnp.round(x / delta), min_q, max_q) * delta


# --------------------------------------------------------------------------- #
# Deterministic synthetic parameters (no pretrained weights available)
# --------------------------------------------------------------------------- #
def _conv_w(key, cout, cin, kh, kw):
    fan_in = cin * kh * kw
    return jax.random.normal(key, (cout, cin, kh, kw), jnp.float32) / np.sqrt(fan_in)


def _bn_fold(key, c):
    k1, k2, k3, k4 = jax.random.split(key, 4)
    gamma = 1.0 + 0.1 * jax.random.normal(k1, (c,), jnp.float32)
    beta = 0.1 * jax.random.normal(k2, (c,), jnp.float32)
    mean = 0.1 * jax.random.normal(k3, (c,), jnp.float32)
    var = 1.0 + 0.1 * jnp.abs(jax.random.normal(k4, (c,), jnp.float32))
    scale = gamma / jnp.sqrt(var + BN_EPS)
    bias = beta - mean * scale
    return scale, bias


def make_params(key, input_channels=1):
    keys = iter(jax.random.split(key, 256))
    nk = lambda: next(keys)
    params = {
        "conv1_w": _conv_w(nk(), STEM_C, input_channels, 7, 7),
        "bn1": _bn_fold(nk(), STEM_C),
    }
    in_c = STEM_C
    for si, (c, nblocks, stride) in enumerate(STAGE_CFG):
        for bi in range(nblocks):
            s = stride if bi == 0 else 1
            blk = {
                "conv1_w": _conv_w(nk(), c, in_c, 3, 3),
                "bn1": _bn_fold(nk(), c),
                "conv2_w": _conv_w(nk(), c, c, 3, 3),
                "bn2": _bn_fold(nk(), c),
            }
            if s != 1 or in_c != c:
                blk["down_w"] = _conv_w(nk(), c, in_c, 1, 1)
                blk["down_bn"] = _bn_fold(nk(), c)
            params[f"layer{si + 1}_{bi}"] = blk
            in_c = c
    params["fc_w"] = jax.random.normal(nk(), (NUM_CLASSES, FC_IN), jnp.float32) / np.sqrt(FC_IN)
    params["fc_b"] = 0.01 * jax.random.normal(nk(), (NUM_CLASSES,), jnp.float32)
    return params


# --------------------------------------------------------------------------- #
# Host-side (numpy) construction of selection / weight-folded matrices
# --------------------------------------------------------------------------- #
def _out_hw(ih, iw, kh, kw, stride, pad):
    return (ih + 2 * pad - kh) // stride + 1, (iw + 2 * pad - kw) // stride + 1


def _build_conv_mats(w_oihw, bn_scale, n, ih, iw, stride, pad):
    """conv + BN-scale  ==  concat_i(tap_i) @ vstack_i(R_i)   on (H, N*W*C) layout,
    where tap_i[o, :] = X[o*stride + i - pad, :]  (zero rows when out of range)."""
    w = np.asarray(w_oihw, np.float32) * np.asarray(bn_scale, np.float32)[:, None, None, None]
    cout, cin, kh, kw = w.shape
    oh, ow = _out_hw(ih, iw, kh, kw, stride, pad)
    L = np.zeros((kh, oh, ih), np.float32)          # exact 0/1 row selection per tap
    for i in range(kh):
        for o in range(oh):
            r = o * stride + i - pad
            if 0 <= r < ih:
                L[i, o, r] = 1.0
    R = np.zeros((kh, n * iw * cin, n * ow * cout), np.float32)
    for i in range(kh):
        for b in range(n):
            for o in range(ow):
                for j in range(kw):
                    col = o * stride + j - pad
                    if 0 <= col < iw:
                        R[i,
                          (b * iw + col) * cin:(b * iw + col) * cin + cin,
                          (b * ow + o) * cout:(b * ow + o) * cout + cout] = w[:, :, i, j].T
    return L, R, oh, ow, cout


def _build_pool_sel(n, c, ih, iw, k=3, stride=2, pad=1):
    """MaxPool 3x3/s2/p1 as: (3x3 window max on the full grid) then select the
    window-center row / column.  Center = stride*o - pad + 1, always in range."""
    oh, ow = _out_hw(ih, iw, k, k, stride, pad)
    Lsel = np.zeros((oh, ih), np.float32)
    for o in range(oh):
        Lsel[o, o * stride - pad + 1] = 1.0
    lanes_in, lanes_out = n * iw * c, n * ow * c
    Ssel = np.zeros((lanes_in, lanes_out), np.float32)
    for b in range(n):
        for o in range(ow):
            col = o * stride - pad + 1
            for ch in range(c):
                Ssel[(b * iw + col) * c + ch, (b * ow + o) * c + ch] = 1.0
    # masks that zero lanes whose rolled neighbor crossed a batch/W boundary
    mask_l = np.ones((1, lanes_in), np.float32)     # for the "w-1" roll: zero w == 0
    mask_r = np.ones((1, lanes_in), np.float32)     # for the "w+1" roll: zero w == iw-1
    for b in range(n):
        for ch in range(c):
            mask_l[0, (b * iw + 0) * c + ch] = 0.0
            mask_r[0, (b * iw + iw - 1) * c + ch] = 0.0
    return Lsel, Ssel, mask_l, mask_r, oh, ow


def _build_head_mats(n, c, h, w, fc_w, fc_b):
    """Global avg-pool (over h,w) + FC folded into one lane-to-lane matrix."""
    fc_w = np.asarray(fc_w, np.float32)
    fc_b = np.asarray(fc_b, np.float32)
    ncls = fc_w.shape[0]
    M = np.zeros((n * w * c, n * ncls), np.float32)
    inv = 1.0 / float(h * w)
    for b in range(n):
        for ww in range(w):
            for ch in range(c):
                M[(b * w + ww) * c + ch, b * ncls:(b + 1) * ncls] = fc_w[:, ch] * inv
    bias = np.tile(fc_b, n).reshape(1, n * ncls)
    return M, bias


# --------------------------------------------------------------------------- #
# Fully fused forward pass (single pallas_call, grid over batch groups)
# --------------------------------------------------------------------------- #
def build_fused_forward(params, *, batch, in_ch, height, width, groups=2):
    assert batch % groups == 0, "batch must divide evenly into grid groups"
    gb = batch // groups                      # batch elements per grid step / TensorCore

    ops = []      # static per-op metadata, consumed in order by the kernel
    consts = []   # kernel operands (after the activation input), same order

    def add_conv(src, dst, w, bn, ih, iw, stride, pad, relu, residual=None):
        scale, bias = bn
        L, R, oh, ow, cout = _build_conv_mats(w, scale, gb, ih, iw, stride, pad)
        kh = L.shape[0]
        r_stack = R.reshape(kh * R.shape[1], R.shape[2])          # vstack over taps
        brow = np.tile(np.asarray(bias, np.float32), gb * ow).reshape(1, gb * ow * cout)
        use_slices = (stride == 1 and kh == 3 and pad == 1)       # taps by sublane slicing
        if not use_slices:
            consts.append(jnp.asarray(L, jnp.bfloat16))           # exact 0/1 row selection
        consts.append(jnp.asarray(r_stack, jnp.bfloat16))         # BN-folded weights, stacked K
        consts.append(jnp.asarray(brow, jnp.float32))             # BN bias per lane
        ops.append(dict(kind="conv", src=src, dst=dst, kh=kh, relu=relu,
                        residual=residual, use_slices=use_slices))
        return oh, ow, cout

    h, w_sp, c = height, width, in_ch

    # --- stem: conv 7x7 / stride 2 / pad 3 + BN + ReLU ---------------------- #
    h, w_sp, c = add_conv("x0", "stem", params["conv1_w"], params["bn1"],
                          h, w_sp, 2, 3, True)

    # --- maxpool 3x3 / stride 2 / pad 1 (post-ReLU, so 0-pad == -inf-pad) --- #
    ph, pw = h, w_sp
    Lsel, Ssel, mask_l, mask_r, h, w_sp = _build_pool_sel(gb, c, ph, pw)
    consts += [jnp.asarray(Lsel, jnp.bfloat16), jnp.asarray(Ssel, jnp.bfloat16),
               jnp.asarray(mask_l, jnp.float32), jnp.asarray(mask_r, jnp.float32)]
    ops.append(dict(kind="maxpool", src="stem", dst="pool", c=c, lanes=gb * pw * c))
    cur = "pool"

    # --- residual stages ----------------------------------------------------- #
    for si, (_, nblocks, stride) in enumerate(STAGE_CFG):
        for bi in range(nblocks):
            s = stride if bi == 0 else 1
            blk = params[f"layer{si + 1}_{bi}"]
            name = f"l{si + 1}_{bi}"
            ident = cur
            if "down_w" in blk:  # 1x1 stride-s downsample branch + BN (no ReLU)
                add_conv(cur, name + "_ds", blk["down_w"], blk["down_bn"],
                         h, w_sp, s, 0, False)
                ident = name + "_ds"
            oh, ow, _c1 = add_conv(cur, name + "_c1", blk["conv1_w"], blk["bn1"],
                                   h, w_sp, s, 1, True)
            oh, ow, c = add_conv(name + "_c1", name + "_out", blk["conv2_w"], blk["bn2"],
                                 oh, ow, 1, 1, True, residual=ident)
            cur, h, w_sp = name + "_out", oh, ow

    # --- global average pool + FC (folded into one matmul) ------------------- #
    M, fb = _build_head_mats(gb, c, h, w_sp, params["fc_w"], params["fc_b"])
    consts += [jnp.asarray(M, jnp.float32), jnp.asarray(fb, jnp.float32)]
    ops.append(dict(kind="head", src=cur))

    consts = tuple(consts)
    n_in = 1 + len(consts)
    group_lanes_in = gb * width * in_ch
    out_lanes = gb * NUM_CLASSES

    def kernel(*refs):
        out_ref = refs[n_in]
        it = iter(refs[1:n_in])
        vals = {"x0": refs[0][...]}
        for op in ops:
            kind = op["kind"]
            if kind == "conv":
                src = vals[op["src"]]
                xb = src.astype(jnp.bfloat16)
                if op["use_slices"]:
                    # stride-1 3x3: row taps by sublane slices of a zero-padded copy
                    r_ref, b_ref = next(it), next(it)
                    z = jnp.zeros((1, xb.shape[1]), jnp.bfloat16)
                    taps = jnp.concatenate(
                        [jnp.concatenate([z, xb[:-1]], axis=0),   # row o-1
                         xb,                                      # row o
                         jnp.concatenate([xb[1:], z], axis=0)],   # row o+1
                        axis=1)
                else:
                    # strided conv: bf16 0/1 row-selection matmuls (exact)
                    l_ref, r_ref, b_ref = next(it), next(it), next(it)
                    tap_list = [
                        jnp.dot(l_ref[i], xb,
                                preferred_element_type=jnp.float32).astype(jnp.bfloat16)
                        for i in range(op["kh"])]
                    taps = tap_list[0] if op["kh"] == 1 else jnp.concatenate(tap_list, axis=1)
                # single stacked-K bf16 matmul carries all KH taps + BN scale
                acc = jnp.dot(taps, r_ref[...], preferred_element_type=jnp.float32)
                acc = acc + b_ref[...]
                if op["residual"] is not None:
                    acc = acc + vals[op["residual"]]
                if op["relu"]:
                    acc = jnp.maximum(acc, 0.0)
                vals[op["dst"]] = acc
            elif kind == "maxpool":
                lsel_ref, ssel_ref, ml_ref, mr_ref = next(it), next(it), next(it), next(it)
                x = vals[op["src"]]                               # post-ReLU, >= 0
                z = jnp.zeros((1, x.shape[1]), x.dtype)
                hm = jnp.maximum(x, jnp.maximum(
                    jnp.concatenate([z, x[:-1]], axis=0),         # row r-1
                    jnp.concatenate([x[1:], z], axis=0)))         # row r+1
                cch, lanes = op["c"], op["lanes"]
                # pltpu.roll follows jnp.roll semantics: result[l] = x[l - shift]
                left = pltpu.roll(hm, shift=cch, axis=1) * ml_ref[...]            # col w-1
                right = pltpu.roll(hm, shift=lanes - cch, axis=1) * mr_ref[...]   # col w+1
                wm = jnp.maximum(hm, jnp.maximum(left, right)).astype(jnp.bfloat16)
                rows = jnp.dot(lsel_ref[...], wm,
                               preferred_element_type=jnp.float32).astype(jnp.bfloat16)
                vals[op["dst"]] = jnp.dot(rows, ssel_ref[...],
                                          preferred_element_type=jnp.float32)
            else:  # head: global avg-pool + fc + bias
                m_ref, b_ref = next(it), next(it)
                pooled = jnp.sum(vals[op["src"]], axis=0, keepdims=True)
                out_ref[0] = (jnp.dot(pooled, m_ref[...],
                                      preferred_element_type=jnp.float32) + b_ref[...])

    # One grid axis over batch groups: parallel across TensorCores on v7x,
    # plain sequential (identical per-step cost) on v5e/v6e.  All weight /
    # selection matrices are whole-array VMEM residents (~3 MiB total).
    const_specs = [pl.BlockSpec(memory_space=pltpu.MemorySpace.VMEM) for _ in consts]
    fused = pl.pallas_call(
        kernel,
        grid=(groups,),
        in_specs=[pl.BlockSpec((height, group_lanes_in), lambda g: (0, g))] + const_specs,
        out_specs=pl.BlockSpec((1, 1, out_lanes), lambda g: (g, 0, 0)),
        out_shape=jax.ShapeDtypeStruct((groups, 1, out_lanes), jnp.float32),
        compiler_params=pltpu.CompilerParams(
            dimension_semantics=("parallel",),
            vmem_limit_bytes=48 * 1024 * 1024),
    )

    def forward(x_nchw, weights):
        x = fixed_point_quantize(x_nchw.astype(jnp.float32))
        # NCHW -> (H, N*W*C): spatial rows on sublanes, batch*width*channels on lanes.
        x2d = jnp.transpose(x, (2, 0, 3, 1)).reshape(height, batch * width * in_ch)
        out = fused(x2d, *weights)                    # (groups, 1, gb*NUM_CLASSES)
        return out.reshape(batch, NUM_CLASSES)

    jitted = jax.jit(forward)
    return lambda x: jitted(x, consts)


# --------------------------------------------------------------------------- #
if __name__ == "__main__":
    key = jax.random.PRNGKey(0)
    pkey, xkey = jax.random.split(key)
    params = make_params(pkey, input_channels=1)

    # Small NCHW input consistent with the module (1 input channel).
    BATCH, H, W = 8, 64, 64
    x = jax.random.normal(xkey, (BATCH, 1, H, W), jnp.float32)

    fwd = build_fused_forward(params, batch=BATCH, in_ch=1, height=H, width=W, groups=2)
    out = jax.block_until_ready(fwd(x))
    assert out.shape == (BATCH, NUM_CLASSES), out.shape
    assert bool(jnp.all(jnp.isfinite(out)))
    print("KERNEL_OK")
</pallas_src>

<mosaic_0001>
module attributes {stable_mosaic.version = 11 : i64} {
  func.func @kernel(%arg0: i32, %arg1: memref<64x256xf32, #tpu.memory_space<vmem>>, %arg2: memref<7x32x64xbf16, #tpu.memory_space<vmem>>, %arg3: memref<1792x256xbf16, #tpu.memory_space<vmem>>, %arg4: memref<1x256xf32, #tpu.memory_space<vmem>>, %arg5: memref<16x32xbf16, #tpu.memory_space<vmem>>, %arg6: memref<256x128xbf16, #tpu.memory_space<vmem>>, %arg7: memref<1x256xf32, #tpu.memory_space<vmem>>, %arg8: memref<1x256xf32, #tpu.memory_space<vmem>>, %arg9: memref<384x128xbf16, #tpu.memory_space<vmem>>, %arg10: memref<1x128xf32, #tpu.memory_space<vmem>>, %arg11: memref<384x128xbf16, #tpu.memory_space<vmem>>, %arg12: memref<1x128xf32, #tpu.memory_space<vmem>>, %arg13: memref<384x128xbf16, #tpu.memory_space<vmem>>, %arg14: memref<1x128xf32, #tpu.memory_space<vmem>>, %arg15: memref<384x128xbf16, #tpu.memory_space<vmem>>, %arg16: memref<1x128xf32, #tpu.memory_space<vmem>>, %arg17: memref<1x8x16xbf16, #tpu.memory_space<vmem>>, %arg18: memref<128x128xbf16, #tpu.memory_space<vmem>>, %arg19: memref<1x128xf32, #tpu.memory_space<vmem>>, %arg20: memref<3x8x16xbf16, #tpu.memory_space<vmem>>, %arg21: memref<384x128xbf16, #tpu.memory_space<vmem>>, %arg22: memref<1x128xf32, #tpu.memory_space<vmem>>, %arg23: memref<384x128xbf16, #tpu.memory_space<vmem>>, %arg24: memref<1x128xf32, #tpu.memory_space<vmem>>, %arg25: memref<384x128xbf16, #tpu.memory_space<vmem>>, %arg26: memref<1x128xf32, #tpu.memory_space<vmem>>, %arg27: memref<384x128xbf16, #tpu.memory_space<vmem>>, %arg28: memref<1x128xf32, #tpu.memory_space<vmem>>, %arg29: memref<1x4x8xbf16, #tpu.memory_space<vmem>>, %arg30: memref<128x128xbf16, #tpu.memory_space<vmem>>, %arg31: memref<1x128xf32, #tpu.memory_space<vmem>>, %arg32: memref<3x4x8xbf16, #tpu.memory_space<vmem>>, %arg33: memref<384x128xbf16, #tpu.memory_space<vmem>>, %arg34: memref<1x128xf32, #tpu.memory_space<vmem>>, %arg35: memref<384x128xbf16, #tpu.memory_space<vmem>>, %arg36: memref<1x128xf32, #tpu.memory_space<vmem>>, %arg37: memref<384x128xbf16, #tpu.memory_space<vmem>>, %arg38: memref<1x128xf32, #tpu.memory_space<vmem>>, %arg39: memref<384x128xbf16, #tpu.memory_space<vmem>>, %arg40: memref<1x128xf32, #tpu.memory_space<vmem>>, %arg41: memref<1x2x4xbf16, #tpu.memory_space<vmem>>, %arg42: memref<128x128xbf16, #tpu.memory_space<vmem>>, %arg43: memref<1x128xf32, #tpu.memory_space<vmem>>, %arg44: memref<3x2x4xbf16, #tpu.memory_space<vmem>>, %arg45: memref<384x128xbf16, #tpu.memory_space<vmem>>, %arg46: memref<1x128xf32, #tpu.memory_space<vmem>>, %arg47: memref<384x128xbf16, #tpu.memory_space<vmem>>, %arg48: memref<1x128xf32, #tpu.memory_space<vmem>>, %arg49: memref<384x128xbf16, #tpu.memory_space<vmem>>, %arg50: memref<1x128xf32, #tpu.memory_space<vmem>>, %arg51: memref<384x128xbf16, #tpu.memory_space<vmem>>, %arg52: memref<1x128xf32, #tpu.memory_space<vmem>>, %arg53: memref<128x40xf32, #tpu.memory_space<vmem>>, %arg54: memref<1x40xf32, #tpu.memory_space<vmem>>, %arg55: memref<1x1x40xf32, #tpu.memory_space<vmem>>) attributes {dimension_semantics = [#tpu.dimension_semantics<parallel>], iteration_bounds = array<i64: 2>, scalar_prefetch = 0 : i64, scratch_operands = 0 : i64, tpu.core_type = #tpu.core_type<tc>, window_params = [{transform_indices = @transform_0, window_bounds = array<i64: 64, 256>}, {pipeline_mode = #tpu.pipeline_mode<synchronous>, transform_indices = @transform_1, window_bounds = array<i64: 7, 32, 64>}, {pipeline_mode = #tpu.pipeline_mode<synchronous>, transform_indices = @transform_2, window_bounds = array<i64: 1792, 256>}, {pipeline_mode = #tpu.pipeline_mode<synchronous>, transform_indices = @transform_3, window_bounds = array<i64: 1, 256>}, {pipeline_mode = #tpu.pipeline_mode<synchronous>, transform_indices = @transform_4, window_bounds = array<i64: 16, 32>}, {pipeline_mode = #tpu.pipeline_mode<synchronous>, transform_indices = @transform_5, window_bounds = array<i64: 256, 128>}, {pipeline_mode = #tpu.pipeline_mode<synchronous>, transform_indices = @transform_6, window_bounds = array<i64: 1, 256>}, {pipeline_mode = #tpu.pipeline_mode<synchronous>, transform_indices = @transform_7, window_bounds = array<i64: 1, 256>}, {pipeline_mode = #tpu.pipeline_mode<synchronous>, transform_indices = @transform_8, window_bounds = array<i64: 384, 128>}, {pipeline_mode = #tpu.pipeline_mode<synchronous>, transform_indices = @transform_9, window_bounds = array<i64: 1, 128>}, {pipeline_mode = #tpu.pipeline_mode<synchronous>, transform_indices = @transform_10, window_bounds = array<i64: 384, 128>}, {pipeline_mode = #tpu.pipeline_mode<synchronous>, transform_indices = @transform_11, window_bounds = array<i64: 1, 128>}, {pipeline_mode = #tpu.pipeline_mode<synchronous>, transform_indices = @transform_12, window_bounds = array<i64: 384, 128>}, {pipeline_mode = #tpu.pipeline_mode<synchronous>, transform_indices = @transform_13, window_bounds = array<i64: 1, 128>}, {pipeline_mode = #tpu.pipeline_mode<synchronous>, transform_indices = @transform_14, window_bounds = array<i64: 384, 128>}, {pipeline_mode = #tpu.pipeline_mode<synchronous>, transform_indices = @transform_15, window_bounds = array<i64: 1, 128>}, {pipeline_mode = #tpu.pipeline_mode<synchronous>, transform_indices = @transform_16, window_bounds = array<i64: 1, 8, 16>}, {pipeline_mode = #tpu.pipeline_mode<synchronous>, transform_indices = @transform_17, window_bounds = array<i64: 128, 128>}, {pipeline_mode = #tpu.pipeline_mode<synchronous>, transform_indices = @transform_18, window_bounds = array<i64: 1, 128>}, {pipeline_mode = #tpu.pipeline_mode<synchronous>, transform_indices = @transform_19, window_bounds = array<i64: 3, 8, 16>}, {pipeline_mode = #tpu.pipeline_mode<synchronous>, transform_indices = @transform_20, window_bounds = array<i64: 384, 128>}, {pipeline_mode = #tpu.pipeline_mode<synchronous>, transform_indices = @transform_21, window_bounds = array<i64: 1, 128>}, {pipeline_mode = #tpu.pipeline_mode<synchronous>, transform_indices = @transform_22, window_bounds = array<i64: 384, 128>}, {pipeline_mode = #tpu.pipeline_mode<synchronous>, transform_indices = @transform_23, window_bounds = array<i64: 1, 128>}, {pipeline_mode = #tpu.pipeline_mode<synchronous>, transform_indices = @transform_24, window_bounds = array<i64: 384, 128>}, {pipeline_mode = #tpu.pipeline_mode<synchronous>, transform_indices = @transform_25, window_bounds = array<i64: 1, 128>}, {pipeline_mode = #tpu.pipeline_mode<synchronous>, transform_indices = @transform_26, window_bounds = array<i64: 384, 128>}, {pipeline_mode = #tpu.pipeline_mode<synchronous>, transform_indices = @transform_27, window_bounds = array<i64: 1, 128>}, {pipeline_mode = #tpu.pipeline_mode<synchronous>, transform_indices = @transform_28, window_bounds = array<i64: 1, 4, 8>}, {pipeline_mode = #tpu.pipeline_mode<synchronous>, transform_indices = @transform_29, window_bounds = array<i64: 128, 128>}, {pipeline_mode = #tpu.pipeline_mode<synchronous>, transform_indices = @transform_30, window_bounds = array<i64: 1, 128>}, {pipeline_mode = #tpu.pipeline_mode<synchronous>, transform_indices = @transform_31, window_bounds = array<i64: 3, 4, 8>}, {pipeline_mode = #tpu.pipeline_mode<synchronous>, transform_indices = @transform_32, window_bounds = array<i64: 384, 128>}, {pipeline_mode = #tpu.pipeline_mode<synchronous>, transform_indices = @transform_33, window_bounds = array<i64: 1, 128>}, {pipeline_mode = #tpu.pipeline_mode<synchronous>, transform_indices = @transform_34, window_bounds = array<i64: 384, 128>}, {pipeline_mode = #tpu.pipeline_mode<synchronous>, transform_indices = @transform_35, window_bounds = array<i64: 1, 128>}, {pipeline_mode = #tpu.pipeline_mode<synchronous>, transform_indices = @transform_36, window_bounds = array<i64: 384, 128>}, {pipeline_mode = #tpu.pipeline_mode<synchronous>, transform_indices = @transform_37, window_bounds = array<i64: 1, 128>}, {pipeline_mode = #tpu.pipeline_mode<synchronous>, transform_indices = @transform_38, window_bounds = array<i64: 384, 128>}, {pipeline_mode = #tpu.pipeline_mode<synchronous>, transform_indices = @transform_39, window_bounds = array<i64: 1, 128>}, {pipeline_mode = #tpu.pipeline_mode<synchronous>, transform_indices = @transform_40, window_bounds = array<i64: 1, 2, 4>}, {pipeline_mode = #tpu.pipeline_mode<synchronous>, transform_indices = @transform_41, window_bounds = array<i64: 128, 128>}, {pipeline_mode = #tpu.pipeline_mode<synchronous>, transform_indices = @transform_42, window_bounds = array<i64: 1, 128>}, {pipeline_mode = #tpu.pipeline_mode<synchronous>, transform_indices = @transform_43, window_bounds = array<i64: 3, 2, 4>}, {pipeline_mode = #tpu.pipeline_mode<synchronous>, transform_indices = @transform_44, window_bounds = array<i64: 384, 128>}, {pipeline_mode = #tpu.pipeline_mode<synchronous>, transform_indices = @transform_45, window_bounds = array<i64: 1, 128>}, {pipeline_mode = #tpu.pipeline_mode<synchronous>, transform_indices = @transform_46, window_bounds = array<i64: 384, 128>}, {pipeline_mode = #tpu.pipeline_mode<synchronous>, transform_indices = @transform_47, window_bounds = array<i64: 1, 128>}, {pipeline_mode = #tpu.pipeline_mode<synchronous>, transform_indices = @transform_48, window_bounds = array<i64: 384, 128>}, {pipeline_mode = #tpu.pipeline_mode<synchronous>, transform_indices = @transform_49, window_bounds = array<i64: 1, 128>}, {pipeline_mode = #tpu.pipeline_mode<synchronous>, transform_indices = @transform_50, window_bounds = array<i64: 384, 128>}, {pipeline_mode = #tpu.pipeline_mode<synchronous>, transform_indices = @transform_51, window_bounds = array<i64: 1, 128>}, {pipeline_mode = #tpu.pipeline_mode<synchronous>, transform_indices = @transform_52, window_bounds = array<i64: 128, 40>}, {pipeline_mode = #tpu.pipeline_mode<synchronous>, transform_indices = @transform_53, window_bounds = array<i64: 1, 40>}, {transform_indices = @transform_54, window_bounds = array<i64: 1, 1, 40>}]} {
    %c0 = arith.constant 0 : index
    %c0_0 = arith.constant 0 : index
    %0 = vector.load %arg1[%c0, %c0_0] : memref<64x256xf32, #tpu.memory_space<vmem>>, vector<64x256xf32>
    %1 = arith.truncf %0 : vector<64x256xf32> to vector<64x256xbf16>
    %c0_1 = arith.constant 0 : index
    %c0_2 = arith.constant 0 : index
    %c0_3 = arith.constant 0 : index
    %2 = vector.load %arg2[%c0_1, %c0_2, %c0_3] : memref<7x32x64xbf16, #tpu.memory_space<vmem>>, vector<1x32x64xbf16>
    %3 = vector.shape_cast %2 : vector<1x32x64xbf16> to vector<32x64xbf16>
    %cst = arith.constant dense<0.000000e+00> : vector<32x256xf32>
    %4 = tpu.matmul %3, %1, %cst {dimension_numbers = #tpu.dot_dimension_numbers<[1], [0], [0], [1], [0, 0, 1, 1], [], []>} : vector<32x64xbf16>, vector<64x256xbf16>, vector<32x256xf32> -> vector<32x256xf32>
    %5 = arith.truncf %4 : vector<32x256xf32> to vector<32x256xbf16>
    %c1 = arith.constant 1 : index
    %c0_4 = arith.constant 0 : index
    %c0_5 = arith.constant 0 : index
    %6 = vector.load %arg2[%c1, %c0_4, %c0_5] : memref<7x32x64xbf16, #tpu.memory_space<vmem>>, vector<1x32x64xbf16>
    %7 = vector.shape_cast %6 : vector<1x32x64xbf16> to vector<32x64xbf16>
    %cst_6 = arith.constant dense<0.000000e+00> : vector<32x256xf32>
    %8 = tpu.matmul %7, %1, %cst_6 {dimension_numbers = #tpu.dot_dimension_numbers<[1], [0], [0], [1], [0, 0, 1, 1], [], []>} : vector<32x64xbf16>, vector<64x256xbf16>, vector<32x256xf32> -> vector<32x256xf32>
    %9 = arith.truncf %8 : vector<32x256xf32> to vector<32x256xbf16>
    %c2 = arith.constant 2 : index
    %c0_7 = arith.constant 0 : index
    %c0_8 = arith.constant 0 : index
    %10 = vector.load %arg2[%c2, %c0_7, %c0_8] : memref<7x32x64xbf16, #tpu.memory_space<vmem>>, vector<1x32x64xbf16>
    %11 = vector.shape_cast %10 : vector<1x32x64xbf16> to vector<32x64xbf16>
    %cst_9 = arith.constant dense<0.000000e+00> : vector<32x256xf32>
    %12 = tpu.matmul %11, %1, %cst_9 {dimension_numbers = #tpu.dot_dimension_numbers<[1], [0], [0], [1], [0, 0, 1, 1], [], []>} : vector<32x64xbf16>, vector<64x256xbf16>, vector<32x256xf32> -> vector<32x256xf32>
    %13 = arith.truncf %12 : vector<32x256xf32> to vector<32x256xbf16>
    %c3 = arith.constant 3 : index
    %c0_10 = arith.constant 0 : index
    %c0_11 = arith.constant 0 : index
    %14 = vector.load %arg2[%c3, %c0_10, %c0_11] : memref<7x32x64xbf16, #tpu.memory_space<vmem>>, vector<1x32x64xbf16>
    %15 = vector.shape_cast %14 : vector<1x32x64xbf16> to vector<32x64xbf16>
    %cst_12 = arith.constant dense<0.000000e+00> : vector<32x256xf32>
    %16 = tpu.matmul %15, %1, %cst_12 {dimension_numbers = #tpu.dot_dimension_numbers<[1], [0], [0], [1], [0, 0, 1, 1], [], []>} : vector<32x64xbf16>, vector<64x256xbf16>, vector<32x256xf32> -> vector<32x256xf32>
    %17 = arith.truncf %16 : vector<32x256xf32> to vector<32x256xbf16>
    %c4 = arith.constant 4 : index
    %c0_13 = arith.constant 0 : index
    %c0_14 = arith.constant 0 : index
    %18 = vector.load %arg2[%c4, %c0_13, %c0_14] : memref<7x32x64xbf16, #tpu.memory_space<vmem>>, vector<1x32x64xbf16>
    %19 = vector.shape_cast %18 : vector<1x32x64xbf16> to vector<32x64xbf16>
    %cst_15 = arith.constant dense<0.000000e+00> : vector<32x256xf32>
    %20 = tpu.matmul %19, %1, %cst_15 {dimension_numbers = #tpu.dot_dimension_numbers<[1], [0], [0], [1], [0, 0, 1, 1], [], []>} : vector<32x64xbf16>, vector<64x256xbf16>, vector<32x256xf32> -> vector<32x256xf32>
    %21 = arith.truncf %20 : vector<32x256xf32> to vector<32x256xbf16>
    %c5 = arith.constant 5 : index
    %c0_16 = arith.constant 0 : index
    %c0_17 = arith.constant 0 : index
    %22 = vector.load %arg2[%c5, %c0_16, %c0_17] : memref<7x32x64xbf16, #tpu.memory_space<vmem>>, vector<1x32x64xbf16>
    %23 = vector.shape_cast %22 : vector<1x32x64xbf16> to vector<32x64xbf16>
    %cst_18 = arith.constant dense<0.000000e+00> : vector<32x256xf32>
    %24 = tpu.matmul %23, %1, %cst_18 {dimension_numbers = #tpu.dot_dimension_numbers<[1], [0], [0], [1], [0, 0, 1, 1], [], []>} : vector<32x64xbf16>, vector<64x256xbf16>, vector<32x256xf32> -> vector<32x256xf32>
    %25 = arith.truncf %24 : vector<32x256xf32> to vector<32x256xbf16>
    %c6 = arith.constant 6 : index
    %c0_19 = arith.constant 0 : index
    %c0_20 = arith.constant 0 : index
    %26 = vector.load %arg2[%c6, %c0_19, %c0_20] : memref<7x32x64xbf16, #tpu.memory_space<vmem>>, vector<1x32x64xbf16>
    %27 = vector.shape_cast %26 : vector<1x32x64xbf16> to vector<32x64xbf16>
    %cst_21 = arith.constant dense<0.000000e+00> : vector<32x256xf32>
    %28 = tpu.matmul %27, %1, %cst_21 {dimension_numbers = #tpu.dot_dimension_numbers<[1], [0], [0], [1], [0, 0, 1, 1], [], []>} : vector<32x64xbf16>, vector<64x256xbf16>, vector<32x256xf32> -> vector<32x256xf32>
    %29 = arith.truncf %28 : vector<32x256xf32> to vector<32x256xbf16>
    %30 = tpu.concatenate %5, %9, %13, %17, %21, %25, %29 in 1 : vector<32x256xbf16>, vector<32x256xbf16>, vector<32x256xbf16>, vector<32x256xbf16>, vector<32x256xbf16>, vector<32x256xbf16>, vector<32x256xbf16> -> vector<32x1792xbf16>
    %c0_22 = arith.constant 0 : index
    %c0_23 = arith.constant 0 : index
    %31 = vector.load %arg3[%c0_22, %c0_23] : memref<1792x256xbf16, #tpu.memory_space<vmem>>, vector<1792x256xbf16>
    %cst_24 = arith.constant dense<0.000000e+00> : vector<32x256xf32>
    %32 = tpu.matmul %30, %31, %cst_24 {dimension_numbers = #tpu.dot_dimension_numbers<[1], [0], [0], [1], [0, 0, 1, 1], [], []>} : vector<32x1792xbf16>, vector<1792x256xbf16>, vector<32x256xf32> -> vector<32x256xf32>
    %c0_25 = arith.constant 0 : index
    %c0_26 = arith.constant 0 : index
    %33 = vector.load %arg4[%c0_25, %c0_26] : memref<1x256xf32, #tpu.memory_space<vmem>>, vector<1x256xf32>
    %34 = vector.broadcast %33 : vector<1x256xf32> to vector<32x256xf32>
    %35 = arith.addf %32, %34 : vector<32x256xf32>
    %cst_27 = arith.constant 0.000000e+00 : f32
    %36 = vector.broadcast %cst_27 : f32 to vector<32x256xf32>
    %37 = arith.maximumf %35, %36 : vector<32x256xf32>
    %cst_28 = arith.constant 0.000000e+00 : f32
    %38 = vector.broadcast %cst_28 : f32 to vector<1x256xf32>
    %39 = vector.extract_strided_slice %37 {offsets = [0, 0], sizes = [31, 256], strides = [1, 1]} : vector<32x256xf32> to vector<31x256xf32>
    %40 = tpu.concatenate %38, %39 in 0 : vector<1x256xf32>, vector<31x256xf32> -> vector<32x256xf32>
    %41 = vector.extract_strided_slice %37 {offsets = [1, 0], sizes = [31, 256], strides = [1, 1]} : vector<32x256xf32> to vector<31x256xf32>
    %42 = tpu.concatenate %41, %38 in 0 : vector<31x256xf32>, vector<1x256xf32> -> vector<32x256xf32>
    %43 = arith.maximumf %40, %42 : vector<32x256xf32>
    %44 = arith.maximumf %37, %43 : vector<32x256xf32>
    %c2_i32 = arith.constant 2 : i32
    %45 = tpu.dynamic_rotate %44 by %c2_i32 dim 1 : vector<32x256xf32>, i32 -> vector<32x256xf32>
    %c0_29 = arith.constant 0 : index
    %c0_30 = arith.constant 0 : index
    %46 = vector.load %arg7[%c0_29, %c0_30] : memref<1x256xf32, #tpu.memory_space<vmem>>, vector<1x256xf32>
    %47 = vector.broadcast %46 : vector<1x256xf32> to vector<32x256xf32>
    %48 = arith.mulf %45, %47 : vector<32x256xf32>
    %c254_i32 = arith.constant 254 : i32
    %49 = tpu.dynamic_rotate %44 by %c254_i32 dim 1 : vector<32x256xf32>, i32 -> vector<32x256xf32>
    %c0_31 = arith.constant 0 : index
    %c0_32 = arith.constant 0 : index
    %50 = vector.load %arg8[%c0_31, %c0_32] : memref<1x256xf32, #tpu.memory_space<vmem>>, vector<1x256xf32>
    %51 = vector.broadcast %50 : vector<1x256xf32> to vector<32x256xf32>
    %52 = arith.mulf %49, %51 : vector<32x256xf32>
    %53 = arith.maximumf %48, %52 : vector<32x256xf32>
    %54 = arith.maximumf %44, %53 : vector<32x256xf32>
    %55 = arith.truncf %54 : vector<32x256xf32> to vector<32x256xbf16>
    %c0_33 = arith.constant 0 : index
    %c0_34 = arith.constant 0 : index
    %56 = vector.load %arg5[%c0_33, %c0_34] : memref<16x32xbf16, #tpu.memory_space<vmem>>, vector<16x32xbf16>
    %cst_35 = arith.constant dense<0.000000e+00> : vector<16x256xf32>
    %57 = tpu.matmul %56, %55, %cst_35 {dimension_numbers = #tpu.dot_dimension_numbers<[1], [0], [0], [1], [0, 0, 1, 1], [], []>} : vector<16x32xbf16>, vector<32x256xbf16>, vector<16x256xf32> -> vector<16x256xf32>
    %58 = arith.truncf %57 : vector<16x256xf32> to vector<16x256xbf16>
    %c0_36 = arith.constant 0 : index
    %c0_37 = arith.constant 0 : index
    %59 = vector.load %arg6[%c0_36, %c0_37] : memref<256x128xbf16, #tpu.memory_space<vmem>>, vector<256x128xbf16>
    %cst_38 = arith.constant dense<0.000000e+00> : vector<16x128xf32>
    %60 = tpu.matmul %58, %59, %cst_38 {dimension_numbers = #tpu.dot_dimension_numbers<[1], [0], [0], [1], [0, 0, 1, 1], [], []>} : vector<16x256xbf16>, vector<256x128xbf16>, vector<16x128xf32> -> vector<16x128xf32>
    %61 = arith.truncf %60 : vector<16x128xf32> to vector<16x128xbf16>
    %cst_39 = arith.constant 0.000000e+00 : bf16
    %62 = vector.broadcast %cst_39 : bf16 to vector<1x128xbf16>
    %63 = vector.extract_strided_slice %61 {offsets = [0, 0], sizes = [15, 128], strides = [1, 1]} : vector<16x128xbf16> to vector<15x128xbf16>
    %64 = tpu.concatenate %62, %63 in 0 : vector<1x128xbf16>, vector<15x128xbf16> -> vector<16x128xbf16>
    %65 = vector.extract_strided_slice %61 {offsets = [1, 0], sizes = [15, 128], strides = [1, 1]} : vector<16x128xbf16> to vector<15x128xbf16>
    %66 = tpu.concatenate %65, %62 in 0 : vector<15x128xbf16>, vector<1x128xbf16> -> vector<16x128xbf16>
    %67 = tpu.concatenate %64, %61, %66 in 1 : vector<16x128xbf16>, vector<16x128xbf16>, vector<16x128xbf16> -> vector<16x384xbf16>
    %c0_40 = arith.constant 0 : index
    %c0_41 = arith.constant 0 : index
    %68 = vector.load %arg9[%c0_40, %c0_41] : memref<384x128xbf16, #tpu.memory_space<vmem>>, vector<384x128xbf16>
    %cst_42 = arith.constant dense<0.000000e+00> : vector<16x128xf32>
    %69 = tpu.matmul %67, %68, %cst_42 {dimension_numbers = #tpu.dot_dimension_numbers<[1], [0], [0], [1], [0, 0, 1, 1], [], []>} : vector<16x384xbf16>, vector<384x128xbf16>, vector<16x128xf32> -> vector<16x128xf32>
    %c0_43 = arith.constant 0 : index
    %c0_44 = arith.constant 0 : index
    %70 = vector.load %arg10[%c0_43, %c0_44] : memref<1x128xf32, #tpu.memory_space<vmem>>, vector<1x128xf32>
    %71 = vector.broadcast %70 : vector<1x128xf32> to vector<16x128xf32>
    %72 = arith.addf %69, %71 : vector<16x128xf32>
    %cst_45 = arith.constant 0.000000e+00 : f32
    %73 = vector.broadcast %cst_45 : f32 to vector<16x128xf32>
    %74 = arith.maximumf %72, %73 : vector<16x128xf32>
    %75 = arith.truncf %74 : vector<16x128xf32> to vector<16x128xbf16>
    %cst_46 = arith.constant 0.000000e+00 : bf16
    %76 = vector.broadcast %cst_46 : bf16 to vector<1x128xbf16>
    %77 = vector.extract_strided_slice %75 {offsets = [0, 0], sizes = [15, 128], strides = [1, 1]} : vector<16x128xbf16> to vector<15x128xbf16>
    %78 = tpu.concatenate %76, %77 in 0 : vector<1x128xbf16>, vector<15x128xbf16> -> vector<16x128xbf16>
    %79 = vector.extract_strided_slice %75 {offsets = [1, 0], sizes = [15, 128], strides = [1, 1]} : vector<16x128xbf16> to vector<15x128xbf16>
    %80 = tpu.concatenate %79, %76 in 0 : vector<15x128xbf16>, vector<1x128xbf16> -> vector<16x128xbf16>
    %81 = tpu.concatenate %78, %75, %80 in 1 : vector<16x128xbf16>, vector<16x128xbf16>, vector<16x128xbf16> -> vector<16x384xbf16>
    %c0_47 = arith.constant 0 : index
    %c0_48 = arith.constant 0 : index
    %82 = vector.load %arg11[%c0_47, %c0_48] : memref<384x128xbf16, #tpu.memory_space<vmem>>, vector<384x128xbf16>
    %cst_49 = arith.constant dense<0.000000e+00> : vector<16x128xf32>
    %83 = tpu.matmul %81, %82, %cst_49 {dimension_numbers = #tpu.dot_dimension_numbers<[1], [0], [0], [1], [0, 0, 1, 1], [], []>} : vector<16x384xbf16>, vector<384x128xbf16>, vector<16x128xf32> -> vector<16x128xf32>
    %c0_50 = arith.constant 0 : index
    %c0_51 = arith.constant 0 : index
    %84 = vector.load %arg12[%c0_50, %c0_51] : memref<1x128xf32, #tpu.memory_space<vmem>>, vector<1x128xf32>
    %85 = vector.broadcast %84 : vector<1x128xf32> to vector<16x128xf32>
    %86 = arith.addf %83, %85 : vector<16x128xf32>
    %87 = arith.addf %86, %60 : vector<16x128xf32>
    %cst_52 = arith.constant 0.000000e+00 : f32
    %88 = vector.broadcast %cst_52 : f32 to vector<16x128xf32>
    %89 = arith.maximumf %87, %88 : vector<16x128xf32>
    %90 = arith.truncf %89 : vector<16x128xf32> to vector<16x128xbf16>
    %cst_53 = arith.constant 0.000000e+00 : bf16
    %91 = vector.broadcast %cst_53 : bf16 to vector<1x128xbf16>
    %92 = vector.extract_strided_slice %90 {offsets = [0, 0], sizes = [15, 128], strides = [1, 1]} : vector<16x128xbf16> to vector<15x128xbf16>
    %93 = tpu.concatenate %91, %92 in 0 : vector<1x128xbf16>, vector<15x128xbf16> -> vector<16x128xbf16>
    %94 = vector.extract_strided_slice %90 {offsets = [1, 0], sizes = [15, 128], strides = [1, 1]} : vector<16x128xbf16> to vector<15x128xbf16>
    %95 = tpu.concatenate %94, %91 in 0 : vector<15x128xbf16>, vector<1x128xbf16> -> vector<16x128xbf16>
    %96 = tpu.concatenate %93, %90, %95 in 1 : vector<16x128xbf16>, vector<16x128xbf16>, vector<16x128xbf16> -> vector<16x384xbf16>
    %c0_54 = arith.constant 0 : index
    %c0_55 = arith.constant 0 : index
    %97 = vector.load %arg13[%c0_54, %c0_55] : memref<384x128xbf16, #tpu.memory_space<vmem>>, vector<384x128xbf16>
    %cst_56 = arith.constant dense<0.000000e+00> : vector<16x128xf32>
    %98 = tpu.matmul %96, %97, %cst_56 {dimension_numbers = #tpu.dot_dimension_numbers<[1], [0], [0], [1], [0, 0, 1, 1], [], []>} : vector<16x384xbf16>, vector<384x128xbf16>, vector<16x128xf32> -> vector<16x128xf32>
    %c0_57 = arith.constant 0 : index
    %c0_58 = arith.constant 0 : index
    %99 = vector.load %arg14[%c0_57, %c0_58] : memref<1x128xf32, #tpu.memory_space<vmem>>, vector<1x128xf32>
    %100 = vector.broadcast %99 : vector<1x128xf32> to vector<16x128xf32>
    %101 = arith.addf %98, %100 : vector<16x128xf32>
    %cst_59 = arith.constant 0.000000e+00 : f32
    %102 = vector.broadcast %cst_59 : f32 to vector<16x128xf32>
    %103 = arith.maximumf %101, %102 : vector<16x128xf32>
    %104 = arith.truncf %103 : vector<16x128xf32> to vector<16x128xbf16>
    %cst_60 = arith.constant 0.000000e+00 : bf16
    %105 = vector.broadcast %cst_60 : bf16 to vector<1x128xbf16>
    %106 = vector.extract_strided_slice %104 {offsets = [0, 0], sizes = [15, 128], strides = [1, 1]} : vector<16x128xbf16> to vector<15x128xbf16>
    %107 = tpu.concatenate %105, %106 in 0 : vector<1x128xbf16>, vector<15x128xbf16> -> vector<16x128xbf16>
    %108 = vector.extract_strided_slice %104 {offsets = [1, 0], sizes = [15, 128], strides = [1, 1]} : vector<16x128xbf16> to vector<15x128xbf16>
    %109 = tpu.concatenate %108, %105 in 0 : vector<15x128xbf16>, vector<1x128xbf16> -> vector<16x128xbf16>
    %110 = tpu.concatenate %107, %104, %109 in 1 : vector<16x128xbf16>, vector<16x128xbf16>, vector<16x128xbf16> -> vector<16x384xbf16>
    %c0_61 = arith.constant 0 : index
    %c0_62 = arith.constant 0 : index
    %111 = vector.load %arg15[%c0_61, %c0_62] : memref<384x128xbf16, #tpu.memory_space<vmem>>, vector<384x128xbf16>
    %cst_63 = arith.constant dense<0.000000e+00> : vector<16x128xf32>
    %112 = tpu.matmul %110, %111, %cst_63 {dimension_numbers = #tpu.dot_dimension_numbers<[1], [0], [0], [1], [0, 0, 1, 1], [], []>} : vector<16x384xbf16>, vector<384x128xbf16>, vector<16x128xf32> -> vector<16x128xf32>
    %c0_64 = arith.constant 0 : index
    %c0_65 = arith.constant 0 : index
    %113 = vector.load %arg16[%c0_64, %c0_65] : memref<1x128xf32, #tpu.memory_space<vmem>>, vector<1x128xf32>
    %114 = vector.broadcast %113 : vector<1x128xf32> to vector<16x128xf32>
    %115 = arith.addf %112, %114 : vector<16x128xf32>
    %116 = arith.addf %115, %89 : vector<16x128xf32>
    %cst_66 = arith.constant 0.000000e+00 : f32
    %117 = vector.broadcast %cst_66 : f32 to vector<16x128xf32>
    %118 = arith.maximumf %116, %117 : vector<16x128xf32>
    %119 = arith.truncf %118 : vector<16x128xf32> to vector<16x128xbf16>
    %c0_67 = arith.constant 0 : index
    %c0_68 = arith.constant 0 : index
    %c0_69 = arith.constant 0 : index
    %120 = vector.load %arg17[%c0_67, %c0_68, %c0_69] : memref<1x8x16xbf16, #tpu.memory_space<vmem>>, vector<1x8x16xbf16>
    %121 = vector.shape_cast %120 : vector<1x8x16xbf16> to vector<8x16xbf16>
    %cst_70 = arith.constant dense<0.000000e+00> : vector<8x128xf32>
    %122 = tpu.matmul %121, %119, %cst_70 {dimension_numbers = #tpu.dot_dimension_numbers<[1], [0], [0], [1], [0, 0, 1, 1], [], []>} : vector<8x16xbf16>, vector<16x128xbf16>, vector<8x128xf32> -> vector<8x128xf32>
    %123 = arith.truncf %122 : vector<8x128xf32> to vector<8x128xbf16>
    %c0_71 = arith.constant 0 : index
    %c0_72 = arith.constant 0 : index
    %124 = vector.load %arg18[%c0_71, %c0_72] : memref<128x128xbf16, #tpu.memory_space<vmem>>, vector<128x128xbf16>
    %cst_73 = arith.constant dense<0.000000e+00> : vector<8x128xf32>
    %125 = tpu.matmul %123, %124, %cst_73 {dimension_numbers = #tpu.dot_dimension_numbers<[1], [0], [0], [1], [0, 0, 1, 1], [], []>} : vector<8x128xbf16>, vector<128x128xbf16>, vector<8x128xf32> -> vector<8x128xf32>
    %c0_74 = arith.constant 0 : index
    %c0_75 = arith.constant 0 : index
    %126 = vector.load %arg19[%c0_74, %c0_75] : memref<1x128xf32, #tpu.memory_space<vmem>>, vector<1x128xf32>
    %127 = vector.broadcast %126 : vector<1x128xf32> to vector<8x128xf32>
    %128 = arith.addf %125, %127 : vector<8x128xf32>
    %129 = arith.truncf %118 : vector<16x128xf32> to vector<16x128xbf16>
    %c0_76 = arith.constant 0 : index
    %c0_77 = arith.constant 0 : index
    %c0_78 = arith.constant 0 : index
    %130 = vector.load %arg20[%c0_76, %c0_77, %c0_78] : memref<3x8x16xbf16, #tpu.memory_space<vmem>>, vector<1x8x16xbf16>
    %131 = vector.shape_cast %130 : vector<1x8x16xbf16> to vector<8x16xbf16>
    %cst_79 = arith.constant dense<0.000000e+00> : vector<8x128xf32>
    %132 = tpu.matmul %131, %129, %cst_79 {dimension_numbers = #tpu.dot_dimension_numbers<[1], [0], [0], [1], [0, 0, 1, 1], [], []>} : vector<8x16xbf16>, vector<16x128xbf16>, vector<8x128xf32> -> vector<8x128xf32>
    %133 = arith.truncf %132 : vector<8x128xf32> to vector<8x128xbf16>
    %c1_80 = arith.constant 1 : index
    %c0_81 = arith.constant 0 : index
    %c0_82 = arith.constant 0 : index
    %134 = vector.load %arg20[%c1_80, %c0_81, %c0_82] : memref<3x8x16xbf16, #tpu.memory_space<vmem>>, vector<1x8x16xbf16>
    %135 = vector.shape_cast %134 : vector<1x8x16xbf16> to vector<8x16xbf16>
    %cst_83 = arith.constant dense<0.000000e+00> : vector<8x128xf32>
    %136 = tpu.matmul %135, %129, %cst_83 {dimension_numbers = #tpu.dot_dimension_numbers<[1], [0], [0], [1], [0, 0, 1, 1], [], []>} : vector<8x16xbf16>, vector<16x128xbf16>, vector<8x128xf32> -> vector<8x128xf32>
    %137 = arith.truncf %136 : vector<8x128xf32> to vector<8x128xbf16>
    %c2_84 = arith.constant 2 : index
    %c0_85 = arith.constant 0 : index
    %c0_86 = arith.constant 0 : index
    %138 = vector.load %arg20[%c2_84, %c0_85, %c0_86] : memref<3x8x16xbf16, #tpu.memory_space<vmem>>, vector<1x8x16xbf16>
    %139 = vector.shape_cast %138 : vector<1x8x16xbf16> to vector<8x16xbf16>
    %cst_87 = arith.constant dense<0.000000e+00> : vector<8x128xf32>
    %140 = tpu.matmul %139, %129, %cst_87 {dimension_numbers = #tpu.dot_dimension_numbers<[1], [0], [0], [1], [0, 0, 1, 1], [], []>} : vector<8x16xbf16>, vector<16x128xbf16>, vector<8x128xf32> -> vector<8x128xf32>
    %141 = arith.truncf %140 : vector<8x128xf32> to vector<8x128xbf16>
    %142 = tpu.concatenate %133, %137, %141 in 1 : vector<8x128xbf16>, vector<8x128xbf16>, vector<8x128xbf16> -> vector<8x384xbf16>
    %c0_88 = arith.constant 0 : index
    %c0_89 = arith.constant 0 : index
    %143 = vector.load %arg21[%c0_88, %c0_89] : memref<384x128xbf16, #tpu.memory_space<vmem>>, vector<384x128xbf16>
    %cst_90 = arith.constant dense<0.000000e+00> : vector<8x128xf32>
    %144 = tpu.matmul %142, %143, %cst_90 {dimension_numbers = #tpu.dot_dimension_numbers<[1], [0], [0], [1], [0, 0, 1, 1], [], []>} : vector<8x384xbf16>, vector<384x128xbf16>, vector<8x128xf32> -> vector<8x128xf32>
    %c0_91 = arith.constant 0 : index
    %c0_92 = arith.constant 0 : index
    %145 = vector.load %arg22[%c0_91, %c0_92] : memref<1x128xf32, #tpu.memory_space<vmem>>, vector<1x128xf32>
    %146 = vector.broadcast %145 : vector<1x128xf32> to vector<8x128xf32>
    %147 = arith.addf %144, %146 : vector<8x128xf32>
    %cst_93 = arith.constant 0.000000e+00 : f32
    %148 = vector.broadcast %cst_93 : f32 to vector<8x128xf32>
    %149 = arith.maximumf %147, %148 : vector<8x128xf32>
    %150 = arith.truncf %149 : vector<8x128xf32> to vector<8x128xbf16>
    %cst_94 = arith.constant 0.000000e+00 : bf16
    %151 = vector.broadcast %cst_94 : bf16 to vector<1x128xbf16>
    %152 = vector.extract_strided_slice %150 {offsets = [0, 0], sizes = [7, 128], strides = [1, 1]} : vector<8x128xbf16> to vector<7x128xbf16>
    %153 = tpu.concatenate %151, %152 in 0 : vector<1x128xbf16>, vector<7x128xbf16> -> vector<8x128xbf16>
    %154 = vector.extract_strided_slice %150 {offsets = [1, 0], sizes = [7, 128], strides = [1, 1]} : vector<8x128xbf16> to vector<7x128xbf16>
    %155 = tpu.concatenate %154, %151 in 0 : vector<7x128xbf16>, vector<1x128xbf16> -> vector<8x128xbf16>
    %156 = tpu.concatenate %153, %150, %155 in 1 : vector<8x128xbf16>, vector<8x128xbf16>, vector<8x128xbf16> -> vector<8x384xbf16>
    %c0_95 = arith.constant 0 : index
    %c0_96 = arith.constant 0 : index
    %157 = vector.load %arg23[%c0_95, %c0_96] : memref<384x128xbf16, #tpu.memory_space<vmem>>, vector<384x128xbf16>
    %cst_97 = arith.constant dense<0.000000e+00> : vector<8x128xf32>
    %158 = tpu.matmul %156, %157, %cst_97 {dimension_numbers = #tpu.dot_dimension_numbers<[1], [0], [0], [1], [0, 0, 1, 1], [], []>} : vector<8x384xbf16>, vector<384x128xbf16>, vector<8x128xf32> -> vector<8x128xf32>
    %c0_98 = arith.constant 0 : index
    %c0_99 = arith.constant 0 : index
    %159 = vector.load %arg24[%c0_98, %c0_99] : memref<1x128xf32, #tpu.memory_space<vmem>>, vector<1x128xf32>
    %160 = vector.broadcast %159 : vector<1x128xf32> to vector<8x128xf32>
    %161 = arith.addf %158, %160 : vector<8x128xf32>
    %162 = arith.addf %161, %128 : vector<8x128xf32>
    %cst_100 = arith.constant 0.000000e+00 : f32
    %163 = vector.broadcast %cst_100 : f32 to vector<8x128xf32>
    %164 = arith.maximumf %162, %163 : vector<8x128xf32>
    %165 = arith.truncf %164 : vector<8x128xf32> to vector<8x128xbf16>
    %cst_101 = arith.constant 0.000000e+00 : bf16
    %166 = vector.broadcast %cst_101 : bf16 to vector<1x128xbf16>
    %167 = vector.extract_strided_slice %165 {offsets = [0, 0], sizes = [7, 128], strides = [1, 1]} : vector<8x128xbf16> to vector<7x128xbf16>
    %168 = tpu.concatenate %166, %167 in 0 : vector<1x128xbf16>, vector<7x128xbf16> -> vector<8x128xbf16>
    %169 = vector.extract_strided_slice %165 {offsets = [1, 0], sizes = [7, 128], strides = [1, 1]} : vector<8x128xbf16> to vector<7x128xbf16>
    %170 = tpu.concatenate %169, %166 in 0 : vector<7x128xbf16>, vector<1x128xbf16> -> vector<8x128xbf16>
    %171 = tpu.concatenate %168, %165, %170 in 1 : vector<8x128xbf16>, vector<8x128xbf16>, vector<8x128xbf16> -> vector<8x384xbf16>
    %c0_102 = arith.constant 0 : index
    %c0_103 = arith.constant 0 : index
    %172 = vector.load %arg25[%c0_102, %c0_103] : memref<384x128xbf16, #tpu.memory_space<vmem>>, vector<384x128xbf16>
    %cst_104 = arith.constant dense<0.000000e+00> : vector<8x128xf32>
    %173 = tpu.matmul %171, %172, %cst_104 {dimension_numbers = #tpu.dot_dimension_numbers<[1], [0], [0], [1], [0, 0, 1, 1], [], []>} : vector<8x384xbf16>, vector<384x128xbf16>, vector<8x128xf32> -> vector<8x128xf32>
    %c0_105 = arith.constant 0 : index
    %c0_106 = arith.constant 0 : index
    %174 = vector.load %arg26[%c0_105, %c0_106] : memref<1x128xf32, #tpu.memory_space<vmem>>, vector<1x128xf32>
    %175 = vector.broadcast %174 : vector<1x128xf32> to vector<8x128xf32>
    %176 = arith.addf %173, %175 : vector<8x128xf32>
    %cst_107 = arith.constant 0.000000e+00 : f32
    %177 = vector.broadcast %cst_107 : f32 to vector<8x128xf32>
    %178 = arith.maximumf %176, %177 : vector<8x128xf32>
    %179 = arith.truncf %178 : vector<8x128xf32> to vector<8x128xbf16>
    %cst_108 = arith.constant 0.000000e+00 : bf16
    %180 = vector.broadcast %cst_108 : bf16 to vector<1x128xbf16>
    %181 = vector.extract_strided_slice %179 {offsets = [0, 0], sizes = [7, 128], strides = [1, 1]} : vector<8x128xbf16> to vector<7x128xbf16>
    %182 = tpu.concatenate %180, %181 in 0 : vector<1x128xbf16>, vector<7x128xbf16> -> vector<8x128xbf16>
    %183 = vector.extract_strided_slice %179 {offsets = [1, 0], sizes = [7, 128], strides = [1, 1]} : vector<8x128xbf16> to vector<7x128xbf16>
    %184 = tpu.concatenate %183, %180 in 0 : vector<7x128xbf16>, vector<1x128xbf16> -> vector<8x128xbf16>
    %185 = tpu.concatenate %182, %179, %184 in 1 : vector<8x128xbf16>, vector<8x128xbf16>, vector<8x128xbf16> -> vector<8x384xbf16>
    %c0_109 = arith.constant 0 : index
    %c0_110 = arith.constant 0 : index
    %186 = vector.load %arg27[%c0_109, %c0_110] : memref<384x128xbf16, #tpu.memory_space<vmem>>, vector<384x128xbf16>
    %cst_111 = arith.constant dense<0.000000e+00> : vector<8x128xf32>
    %187 = tpu.matmul %185, %186, %cst_111 {dimension_numbers = #tpu.dot_dimension_numbers<[1], [0], [0], [1], [0, 0, 1, 1], [], []>} : vector<8x384xbf16>, vector<384x128xbf16>, vector<8x128xf32> -> vector<8x128xf32>
    %c0_112 = arith.constant 0 : index
    %c0_113 = arith.constant 0 : index
    %188 = vector.load %arg28[%c0_112, %c0_113] : memref<1x128xf32, #tpu.memory_space<vmem>>, vector<1x128xf32>
    %189 = vector.broadcast %188 : vector<1x128xf32> to vector<8x128xf32>
    %190 = arith.addf %187, %189 : vector<8x128xf32>
    %191 = arith.addf %190, %164 : vector<8x128xf32>
    %cst_114 = arith.constant 0.000000e+00 : f32
    %192 = vector.broadcast %cst_114 : f32 to vector<8x128xf32>
    %193 = arith.maximumf %191, %192 : vector<8x128xf32>
    %194 = arith.truncf %193 : vector<8x128xf32> to vector<8x128xbf16>
    %c0_115 = arith.constant 0 : index
    %c0_116 = arith.constant 0 : index
    %c0_117 = arith.constant 0 : index
    %195 = vector.load %arg29[%c0_115, %c0_116, %c0_117] : memref<1x4x8xbf16, #tpu.memory_space<vmem>>, vector<1x4x8xbf16>
    %196 = vector.shape_cast %195 : vector<1x4x8xbf16> to vector<4x8xbf16>
    %cst_118 = arith.constant dense<0.000000e+00> : vector<4x128xf32>
    %197 = tpu.matmul %196, %194, %cst_118 {dimension_numbers = #tpu.dot_dimension_numbers<[1], [0], [0], [1], [0, 0, 1, 1], [], []>} : vector<4x8xbf16>, vector<8x128xbf16>, vector<4x128xf32> -> vector<4x128xf32>
    %198 = arith.truncf %197 : vector<4x128xf32> to vector<4x128xbf16>
    %c0_119 = arith.constant 0 : index
    %c0_120 = arith.constant 0 : index
    %199 = vector.load %arg30[%c0_119, %c0_120] : memref<128x128xbf16, #tpu.memory_space<vmem>>, vector<128x128xbf16>
    %cst_121 = arith.constant dense<0.000000e+00> : vector<4x128xf32>
    %200 = tpu.matmul %198, %199, %cst_121 {dimension_numbers = #tpu.dot_dimension_numbers<[1], [0], [0], [1], [0, 0, 1, 1], [], []>} : vector<4x128xbf16>, vector<128x128xbf16>, vector<4x128xf32> -> vector<4x128xf32>
    %c0_122 = arith.constant 0 : index
    %c0_123 = arith.constant 0 : index
    %201 = vector.load %arg31[%c0_122, %c0_123] : memref<1x128xf32, #tpu.memory_space<vmem>>, vector<1x128xf32>
    %202 = vector.broadcast %201 : vector<1x128xf32> to vector<4x128xf32>
    %203 = arith.addf %200, %202 : vector<4x128xf32>
    %204 = arith.truncf %193 : vector<8x128xf32> to vector<8x128xbf16>
    %c0_124 = arith.constant 0 : index
    %c0_125 = arith.constant 0 : index
    %c0_126 = arith.constant 0 : index
    %205 = vector.load %arg32[%c0_124, %c0_125, %c0_126] : memref<3x4x8xbf16, #tpu.memory_space<vmem>>, vector<1x4x8xbf16>
    %206 = vector.shape_cast %205 : vector<1x4x8xbf16> to vector<4x8xbf16>
    %cst_127 = arith.constant dense<0.000000e+00> : vector<4x128xf32>
    %207 = tpu.matmul %206, %204, %cst_127 {dimension_numbers = #tpu.dot_dimension_numbers<[1], [0], [0], [1], [0, 0, 1, 1], [], []>} : vector<4x8xbf16>, vector<8x128xbf16>, vector<4x128xf32> -> vector<4x128xf32>
    %208 = arith.truncf %207 : vector<4x128xf32> to vector<4x128xbf16>
    %c1_128 = arith.constant 1 : index
    %c0_129 = arith.constant 0 : index
    %c0_130 = arith.constant 0 : index
    %209 = vector.load %arg32[%c1_128, %c0_129, %c0_130] : memref<3x4x8xbf16, #tpu.memory_space<vmem>>, vector<1x4x8xbf16>
    %210 = vector.shape_cast %209 : vector<1x4x8xbf16> to vector<4x8xbf16>
    %cst_131 = arith.constant dense<0.000000e+00> : vector<4x128xf32>
    %211 = tpu.matmul %210, %204, %cst_131 {dimension_numbers = #tpu.dot_dimension_numbers<[1], [0], [0], [1], [0, 0, 1, 1], [], []>} : vector<4x8xbf16>, vector<8x128xbf16>, vector<4x128xf32> -> vector<4x128xf32>
    %212 = arith.truncf %211 : vector<4x128xf32> to vector<4x128xbf16>
    %c2_132 = arith.constant 2 : index
    %c0_133 = arith.constant 0 : index
    %c0_134 = arith.constant 0 : index
    %213 = vector.load %arg32[%c2_132, %c0_133, %c0_134] : memref<3x4x8xbf16, #tpu.memory_space<vmem>>, vector<1x4x8xbf16>
    %214 = vector.shape_cast %213 : vector<1x4x8xbf16> to vector<4x8xbf16>
    %cst_135 = arith.constant dense<0.000000e+00> : vector<4x128xf32>
    %215 = tpu.matmul %214, %204, %cst_135 {dimension_numbers = #tpu.dot_dimension_numbers<[1], [0], [0], [1], [0, 0, 1, 1], [], []>} : vector<4x8xbf16>, vector<8x128xbf16>, vector<4x128xf32> -> vector<4x128xf32>
    %216 = arith.truncf %215 : vector<4x128xf32> to vector<4x128xbf16>
    %217 = tpu.concatenate %208, %212, %216 in 1 : vector<4x128xbf16>, vector<4x128xbf16>, vector<4x128xbf16> -> vector<4x384xbf16>
    %c0_136 = arith.constant 0 : index
    %c0_137 = arith.constant 0 : index
    %218 = vector.load %arg33[%c0_136, %c0_137] : memref<384x128xbf16, #tpu.memory_space<vmem>>, vector<384x128xbf16>
    %cst_138 = arith.constant dense<0.000000e+00> : vector<4x128xf32>
    %219 = tpu.matmul %217, %218, %cst_138 {dimension_numbers = #tpu.dot_dimension_numbers<[1], [0], [0], [1], [0, 0, 1, 1], [], []>} : vector<4x384xbf16>, vector<384x128xbf16>, vector<4x128xf32> -> vector<4x128xf32>
    %c0_139 = arith.constant 0 : index
    %c0_140 = arith.constant 0 : index
    %220 = vector.load %arg34[%c0_139, %c0_140] : memref<1x128xf32, #tpu.memory_space<vmem>>, vector<1x128xf32>
    %221 = vector.broadcast %220 : vector<1x128xf32> to vector<4x128xf32>
    %222 = arith.addf %219, %221 : vector<4x128xf32>
    %cst_141 = arith.constant 0.000000e+00 : f32
    %223 = vector.broadcast %cst_141 : f32 to vector<4x128xf32>
    %224 = arith.maximumf %222, %223 : vector<4x128xf32>
    %225 = arith.truncf %224 : vector<4x128xf32> to vector<4x128xbf16>
    %cst_142 = arith.constant 0.000000e+00 : bf16
    %226 = vector.broadcast %cst_142 : bf16 to vector<1x128xbf16>
    %227 = vector.extract_strided_slice %225 {offsets = [0, 0], sizes = [3, 128], strides = [1, 1]} : vector<4x128xbf16> to vector<3x128xbf16>
    %228 = tpu.concatenate %226, %227 in 0 : vector<1x128xbf16>, vector<3x128xbf16> -> vector<4x128xbf16>
    %229 = vector.extract_strided_slice %225 {offsets = [1, 0], sizes = [3, 128], strides = [1, 1]} : vector<4x128xbf16> to vector<3x128xbf16>
    %230 = tpu.concatenate %229, %226 in 0 : vector<3x128xbf16>, vector<1x128xbf16> -> vector<4x128xbf16>
    %231 = tpu.concatenate %228, %225, %230 in 1 : vector<4x128xbf16>, vector<4x128xbf16>, vector<4x128xbf16> -> vector<4x384xbf16>
    %c0_143 = arith.constant 0 : index
    %c0_144 = arith.constant 0 : index
    %232 = vector.load %arg35[%c0_143, %c0_144] : memref<384x128xbf16, #tpu.memory_space<vmem>>, vector<384x128xbf16>
    %cst_145 = arith.constant dense<0.000000e+00> : vector<4x128xf32>
    %233 = tpu.matmul %231, %232, %cst_145 {dimension_numbers = #tpu.dot_dimension_numbers<[1], [0], [0], [1], [0, 0, 1, 1], [], []>} : vector<4x384xbf16>, vector<384x128xbf16>, vector<4x128xf32> -> vector<4x128xf32>
    %c0_146 = arith.constant 0 : index
    %c0_147 = arith.constant 0 : index
    %234 = vector.load %arg36[%c0_146, %c0_147] : memref<1x128xf32, #tpu.memory_space<vmem>>, vector<1x128xf32>
    %235 = vector.broadcast %234 : vector<1x128xf32> to vector<4x128xf32>
    %236 = arith.addf %233, %235 : vector<4x128xf32>
    %237 = arith.addf %236, %203 : vector<4x128xf32>
    %cst_148 = arith.constant 0.000000e+00 : f32
    %238 = vector.broadcast %cst_148 : f32 to vector<4x128xf32>
    %239 = arith.maximumf %237, %238 : vector<4x128xf32>
    %240 = arith.truncf %239 : vector<4x128xf32> to vector<4x128xbf16>
    %cst_149 = arith.constant 0.000000e+00 : bf16
    %241 = vector.broadcast %cst_149 : bf16 to vector<1x128xbf16>
    %242 = vector.extract_strided_slice %240 {offsets = [0, 0], sizes = [3, 128], strides = [1, 1]} : vector<4x128xbf16> to vector<3x128xbf16>
    %243 = tpu.concatenate %241, %242 in 0 : vector<1x128xbf16>, vector<3x128xbf16> -> vector<4x128xbf16>
    %244 = vector.extract_strided_slice %240 {offsets = [1, 0], sizes = [3, 128], strides = [1, 1]} : vector<4x128xbf16> to vector<3x128xbf16>
    %245 = tpu.concatenate %244, %241 in 0 : vector<3x128xbf16>, vector<1x128xbf16> -> vector<4x128xbf16>
    %246 = tpu.concatenate %243, %240, %245 in 1 : vector<4x128xbf16>, vector<4x128xbf16>, vector<4x128xbf16> -> vector<4x384xbf16>
    %c0_150 = arith.constant 0 : index
    %c0_151 = arith.constant 0 : index
    %247 = vector.load %arg37[%c0_150, %c0_151] : memref<384x128xbf16, #tpu.memory_space<vmem>>, vector<384x128xbf16>
    %cst_152 = arith.constant dense<0.000000e+00> : vector<4x128xf32>
    %248 = tpu.matmul %246, %247, %cst_152 {dimension_numbers = #tpu.dot_dimension_numbers<[1], [0], [0], [1], [0, 0, 1, 1], [], []>} : vector<4x384xbf16>, vector<384x128xbf16>, vector<4x128xf32> -> vector<4x128xf32>
    %c0_153 = arith.constant 0 : index
    %c0_154 = arith.constant 0 : index
    %249 = vector.load %arg38[%c0_153, %c0_154] : memref<1x128xf32, #tpu.memory_space<vmem>>, vector<1x128xf32>
    %250 = vector.broadcast %249 : vector<1x128xf32> to vector<4x128xf32>
    %251 = arith.addf %248, %250 : vector<4x128xf32>
    %cst_155 = arith.constant 0.000000e+00 : f32
    %252 = vector.broadcast %cst_155 : f32 to vector<4x128xf32>
    %253 = arith.maximumf %251, %252 : vector<4x128xf32>
    %254 = arith.truncf %253 : vector<4x128xf32> to vector<4x128xbf16>
    %cst_156 = arith.constant 0.000000e+00 : bf16
    %255 = vector.broadcast %cst_156 : bf16 to vector<1x128xbf16>
    %256 = vector.extract_strided_slice %254 {offsets = [0, 0], sizes = [3, 128], strides = [1, 1]} : vector<4x128xbf16> to vector<3x128xbf16>
    %257 = tpu.concatenate %255, %256 in 0 : vector<1x128xbf16>, vector<3x128xbf16> -> vector<4x128xbf16>
    %258 = vector.extract_strided_slice %254 {offsets = [1, 0], sizes = [3, 128], strides = [1, 1]} : vector<4x128xbf16> to vector<3x128xbf16>
    %259 = tpu.concatenate %258, %255 in 0 : vector<3x128xbf16>, vector<1x128xbf16> -> vector<4x128xbf16>
    %260 = tpu.concatenate %257, %254, %259 in 1 : vector<4x128xbf16>, vector<4x128xbf16>, vector<4x128xbf16> -> vector<4x384xbf16>
    %c0_157 = arith.constant 0 : index
    %c0_158 = arith.constant 0 : index
    %261 = vector.load %arg39[%c0_157, %c0_158] : memref<384x128xbf16, #tpu.memory_space<vmem>>, vector<384x128xbf16>
    %cst_159 = arith.constant dense<0.000000e+00> : vector<4x128xf32>
    %262 = tpu.matmul %260, %261, %cst_159 {dimension_numbers = #tpu.dot_dimension_numbers<[1], [0], [0], [1], [0, 0, 1, 1], [], []>} : vector<4x384xbf16>, vector<384x128xbf16>, vector<4x128xf32> -> vector<4x128xf32>
    %c0_160 = arith.constant 0 : index
    %c0_161 = arith.constant 0 : index
    %263 = vector.load %arg40[%c0_160, %c0_161] : memref<1x128xf32, #tpu.memory_space<vmem>>, vector<1x128xf32>
    %264 = vector.broadcast %263 : vector<1x128xf32> to vector<4x128xf32>
    %265 = arith.addf %262, %264 : vector<4x128xf32>
    %266 = arith.addf %265, %239 : vector<4x128xf32>
    %cst_162 = arith.constant 0.000000e+00 : f32
    %267 = vector.broadcast %cst_162 : f32 to vector<4x128xf32>
    %268 = arith.maximumf %266, %267 : vector<4x128xf32>
    %269 = arith.truncf %268 : vector<4x128xf32> to vector<4x128xbf16>
    %c0_163 = arith.constant 0 : index
    %c0_164 = arith.constant 0 : index
    %c0_165 = arith.constant 0 : index
    %270 = vector.load %arg41[%c0_163, %c0_164, %c0_165] : memref<1x2x4xbf16, #tpu.memory_space<vmem>>, vector<1x2x4xbf16>
    %271 = vector.shape_cast %270 : vector<1x2x4xbf16> to vector<2x4xbf16>
    %cst_166 = arith.constant dense<0.000000e+00> : vector<2x128xf32>
    %272 = tpu.matmul %271, %269, %cst_166 {dimension_numbers = #tpu.dot_dimension_numbers<[1], [0], [0], [1], [0, 0, 1, 1], [], []>} : vector<2x4xbf16>, vector<4x128xbf16>, vector<2x128xf32> -> vector<2x128xf32>
    %273 = arith.truncf %272 : vector<2x128xf32> to vector<2x128xbf16>
    %c0_167 = arith.constant 0 : index
    %c0_168 = arith.constant 0 : index
    %274 = vector.load %arg42[%c0_167, %c0_168] : memref<128x128xbf16, #tpu.memory_space<vmem>>, vector<128x128xbf16>
    %cst_169 = arith.constant dense<0.000000e+00> : vector<2x128xf32>
    %275 = tpu.matmul %273, %274, %cst_169 {dimension_numbers = #tpu.dot_dimension_numbers<[1], [0], [0], [1], [0, 0, 1, 1], [], []>} : vector<2x128xbf16>, vector<128x128xbf16>, vector<2x128xf32> -> vector<2x128xf32>
    %c0_170 = arith.constant 0 : index
    %c0_171 = arith.constant 0 : index
    %276 = vector.load %arg43[%c0_170, %c0_171] : memref<1x128xf32, #tpu.memory_space<vmem>>, vector<1x128xf32>
    %277 = vector.broadcast %276 : vector<1x128xf32> to vector<2x128xf32>
    %278 = arith.addf %275, %277 : vector<2x128xf32>
    %279 = arith.truncf %268 : vector<4x128xf32> to vector<4x128xbf16>
    %c0_172 = arith.constant 0 : index
    %c0_173 = arith.constant 0 : index
    %c0_174 = arith.constant 0 : index
    %280 = vector.load %arg44[%c0_172, %c0_173, %c0_174] : memref<3x2x4xbf16, #tpu.memory_space<vmem>>, vector<1x2x4xbf16>
    %281 = vector.shape_cast %280 : vector<1x2x4xbf16> to vector<2x4xbf16>
    %cst_175 = arith.constant dense<0.000000e+00> : vector<2x128xf32>
    %282 = tpu.matmul %281, %279, %cst_175 {dimension_numbers = #tpu.dot_dimension_numbers<[1], [0], [0], [1], [0, 0, 1, 1], [], []>} : vector<2x4xbf16>, vector<4x128xbf16>, vector<2x128xf32> -> vector<2x128xf32>
    %283 = arith.truncf %282 : vector<2x128xf32> to vector<2x128xbf16>
    %c1_176 = arith.constant 1 : index
    %c0_177 = arith.constant 0 : index
    %c0_178 = arith.constant 0 : index
    %284 = vector.load %arg44[%c1_176, %c0_177, %c0_178] : memref<3x2x4xbf16, #tpu.memory_space<vmem>>, vector<1x2x4xbf16>
    %285 = vector.shape_cast %284 : vector<1x2x4xbf16> to vector<2x4xbf16>
    %cst_179 = arith.constant dense<0.000000e+00> : vector<2x128xf32>
    %286 = tpu.matmul %285, %279, %cst_179 {dimension_numbers = #tpu.dot_dimension_numbers<[1], [0], [0], [1], [0, 0, 1, 1], [], []>} : vector<2x4xbf16>, vector<4x128xbf16>, vector<2x128xf32> -> vector<2x128xf32>
    %287 = arith.truncf %286 : vector<2x128xf32> to vector<2x128xbf16>
    %c2_180 = arith.constant 2 : index
    %c0_181 = arith.constant 0 : index
    %c0_182 = arith.constant 0 : index
    %288 = vector.load %arg44[%c2_180, %c0_181, %c0_182] : memref<3x2x4xbf16, #tpu.memory_space<vmem>>, vector<1x2x4xbf16>
    %289 = vector.shape_cast %288 : vector<1x2x4xbf16> to vector<2x4xbf16>
    %cst_183 = arith.constant dense<0.000000e+00> : vector<2x128xf32>
    %290 = tpu.matmul %289, %279, %cst_183 {dimension_numbers = #tpu.dot_dimension_numbers<[1], [0], [0], [1], [0, 0, 1, 1], [], []>} : vector<2x4xbf16>, vector<4x128xbf16>, vector<2x128xf32> -> vector<2x128xf32>
    %291 = arith.truncf %290 : vector<2x128xf32> to vector<2x128xbf16>
    %292 = tpu.concatenate %283, %287, %291 in 1 : vector<2x128xbf16>, vector<2x128xbf16>, vector<2x128xbf16> -> vector<2x384xbf16>
    %c0_184 = arith.constant 0 : index
    %c0_185 = arith.constant 0 : index
    %293 = vector.load %arg45[%c0_184, %c0_185] : memref<384x128xbf16, #tpu.memory_space<vmem>>, vector<384x128xbf16>
    %cst_186 = arith.constant dense<0.000000e+00> : vector<2x128xf32>
    %294 = tpu.matmul %292, %293, %cst_186 {dimension_numbers = #tpu.dot_dimension_numbers<[1], [0], [0], [1], [0, 0, 1, 1], [], []>} : vector<2x384xbf16>, vector<384x128xbf16>, vector<2x128xf32> -> vector<2x128xf32>
    %c0_187 = arith.constant 0 : index
    %c0_188 = arith.constant 0 : index
    %295 = vector.load %arg46[%c0_187, %c0_188] : memref<1x128xf32, #tpu.memory_space<vmem>>, vector<1x128xf32>
    %296 = vector.broadcast %295 : vector<1x128xf32> to vector<2x128xf32>
    %297 = arith.addf %294, %296 : vector<2x128xf32>
    %cst_189 = arith.constant 0.000000e+00 : f32
    %298 = vector.broadcast %cst_189 : f32 to vector<2x128xf32>
    %299 = arith.maximumf %297, %298 : vector<2x128xf32>
    %300 = arith.truncf %299 : vector<2x128xf32> to vector<2x128xbf16>
    %cst_190 = arith.constant 0.000000e+00 : bf16
    %301 = vector.broadcast %cst_190 : bf16 to vector<1x128xbf16>
    %302 = vector.extract_strided_slice %300 {offsets = [0, 0], sizes = [1, 128], strides = [1, 1]} : vector<2x128xbf16> to vector<1x128xbf16>
    %303 = tpu.concatenate %301, %302 in 0 : vector<1x128xbf16>, vector<1x128xbf16> -> vector<2x128xbf16>
    %304 = vector.extract_strided_slice %300 {offsets = [1, 0], sizes = [1, 128], strides = [1, 1]} : vector<2x128xbf16> to vector<1x128xbf16>
    %305 = tpu.concatenate %304, %301 in 0 : vector<1x128xbf16>, vector<1x128xbf16> -> vector<2x128xbf16>
    %306 = tpu.concatenate %303, %300, %305 in 1 : vector<2x128xbf16>, vector<2x128xbf16>, vector<2x128xbf16> -> vector<2x384xbf16>
    %c0_191 = arith.constant 0 : index
    %c0_192 = arith.constant 0 : index
    %307 = vector.load %arg47[%c0_191, %c0_192] : memref<384x128xbf16, #tpu.memory_space<vmem>>, vector<384x128xbf16>
    %cst_193 = arith.constant dense<0.000000e+00> : vector<2x128xf32>
    %308 = tpu.matmul %306, %307, %cst_193 {dimension_numbers = #tpu.dot_dimension_numbers<[1], [0], [0], [1], [0, 0, 1, 1], [], []>} : vector<2x384xbf16>, vector<384x128xbf16>, vector<2x128xf32> -> vector<2x128xf32>
    %c0_194 = arith.constant 0 : index
    %c0_195 = arith.constant 0 : index
    %309 = vector.load %arg48[%c0_194, %c0_195] : memref<1x128xf32, #tpu.memory_space<vmem>>, vector<1x128xf32>
    %310 = vector.broadcast %309 : vector<1x128xf32> to vector<2x128xf32>
    %311 = arith.addf %308, %310 : vector<2x128xf32>
    %312 = arith.addf %311, %278 : vector<2x128xf32>
    %cst_196 = arith.constant 0.000000e+00 : f32
    %313 = vector.broadcast %cst_196 : f32 to vector<2x128xf32>
    %314 = arith.maximumf %312, %313 : vector<2x128xf32>
    %315 = arith.truncf %314 : vector<2x128xf32> to vector<2x128xbf16>
    %cst_197 = arith.constant 0.000000e+00 : bf16
    %316 = vector.broadcast %cst_197 : bf16 to vector<1x128xbf16>
    %317 = vector.extract_strided_slice %315 {offsets = [0, 0], sizes = [1, 128], strides = [1, 1]} : vector<2x128xbf16> to vector<1x128xbf16>
    %318 = tpu.concatenate %316, %317 in 0 : vector<1x128xbf16>, vector<1x128xbf16> -> vector<2x128xbf16>
    %319 = vector.extract_strided_slice %315 {offsets = [1, 0], sizes = [1, 128], strides = [1, 1]} : vector<2x128xbf16> to vector<1x128xbf16>
    %320 = tpu.concatenate %319, %316 in 0 : vector<1x128xbf16>, vector<1x128xbf16> -> vector<2x128xbf16>
    %321 = tpu.concatenate %318, %315, %320 in 1 : vector<2x128xbf16>, vector<2x128xbf16>, vector<2x128xbf16> -> vector<2x384xbf16>
    %c0_198 = arith.constant 0 : index
    %c0_199 = arith.constant 0 : index
    %322 = vector.load %arg49[%c0_198, %c0_199] : memref<384x128xbf16, #tpu.memory_space<vmem>>, vector<384x128xbf16>
    %cst_200 = arith.constant dense<0.000000e+00> : vector<2x128xf32>
    %323 = tpu.matmul %321, %322, %cst_200 {dimension_numbers = #tpu.dot_dimension_numbers<[1], [0], [0], [1], [0, 0, 1, 1], [], []>} : vector<2x384xbf16>, vector<384x128xbf16>, vector<2x128xf32> -> vector<2x128xf32>
    %c0_201 = arith.constant 0 : index
    %c0_202 = arith.constant 0 : index
    %324 = vector.load %arg50[%c0_201, %c0_202] : memref<1x128xf32, #tpu.memory_space<vmem>>, vector<1x128xf32>
    %325 = vector.broadcast %324 : vector<1x128xf32> to vector<2x128xf32>
    %326 = arith.addf %323, %325 : vector<2x128xf32>
    %cst_203 = arith.constant 0.000000e+00 : f32
    %327 = vector.broadcast %cst_203 : f32 to vector<2x128xf32>
    %328 = arith.maximumf %326, %327 : vector<2x128xf32>
    %329 = arith.truncf %328 : vector<2x128xf32> to vector<2x128xbf16>
    %cst_204 = arith.constant 0.000000e+00 : bf16
    %330 = vector.broadcast %cst_204 : bf16 to vector<1x128xbf16>
    %331 = vector.extract_strided_slice %329 {offsets = [0, 0], sizes = [1, 128], strides = [1, 1]} : vector<2x128xbf16> to vector<1x128xbf16>
    %332 = tpu.concatenate %330, %331 in 0 : vector<1x128xbf16>, vector<1x128xbf16> -> vector<2x128xbf16>
    %333 = vector.extract_strided_slice %329 {offsets = [1, 0], sizes = [1, 128], strides = [1, 1]} : vector<2x128xbf16> to vector<1x128xbf16>
    %334 = tpu.concatenate %333, %330 in 0 : vector<1x128xbf16>, vector<1x128xbf16> -> vector<2x128xbf16>
    %335 = tpu.concatenate %332, %329, %334 in 1 : vector<2x128xbf16>, vector<2x128xbf16>, vector<2x128xbf16> -> vector<2x384xbf16>
    %c0_205 = arith.constant 0 : index
    %c0_206 = arith.constant 0 : index
    %336 = vector.load %arg51[%c0_205, %c0_206] : memref<384x128xbf16, #tpu.memory_space<vmem>>, vector<384x128xbf16>
    %cst_207 = arith.constant dense<0.000000e+00> : vector<2x128xf32>
    %337 = tpu.matmul %335, %336, %cst_207 {dimension_numbers = #tpu.dot_dimension_numbers<[1], [0], [0], [1], [0, 0, 1, 1], [], []>} : vector<2x384xbf16>, vector<384x128xbf16>, vector<2x128xf32> -> vector<2x128xf32>
    %c0_208 = arith.constant 0 : index
    %c0_209 = arith.constant 0 : index
    %338 = vector.load %arg52[%c0_208, %c0_209] : memref<1x128xf32, #tpu.memory_space<vmem>>, vector<1x128xf32>
    %339 = vector.broadcast %338 : vector<1x128xf32> to vector<2x128xf32>
    %340 = arith.addf %337, %339 : vector<2x128xf32>
    %341 = arith.addf %340, %314 : vector<2x128xf32>
    %cst_210 = arith.constant 0.000000e+00 : f32
    %342 = vector.broadcast %cst_210 : f32 to vector<2x128xf32>
    %343 = arith.maximumf %341, %342 : vector<2x128xf32>
    %cst_211 = arith.constant dense<0.000000e+00> : vector<128xf32>
    %344 = vector.multi_reduction <add>, %343, %cst_211 [0] : vector<2x128xf32> to vector<128xf32>
    %345 = vector.shape_cast %344 : vector<128xf32> to vector<1x128xf32>
    %c0_212 = arith.constant 0 : index
    %c0_213 = arith.constant 0 : index
    %346 = vector.load %arg53[%c0_212, %c0_213] : memref<128x40xf32, #tpu.memory_space<vmem>>, vector<128x40xf32>
    %cst_214 = arith.constant dense<0.000000e+00> : vector<1x40xf32>
    %347 = tpu.matmul %345, %346, %cst_214 {dimension_numbers = #tpu.dot_dimension_numbers<[1], [0], [0], [1], [0, 0, 1, 1], [], []>} : vector<1x128xf32>, vector<128x40xf32>, vector<1x40xf32> -> vector<1x40xf32>
    %c0_215 = arith.constant 0 : index
    %c0_216 = arith.constant 0 : index
    %348 = vector.load %arg54[%c0_215, %c0_216] : memref<1x40xf32, #tpu.memory_space<vmem>>, vector<1x40xf32>
    %349 = arith.addf %347, %348 : vector<1x40xf32>
    %c0_217 = arith.constant 0 : index
    %c0_218 = arith.constant 0 : index
    %c0_219 = arith.constant 0 : index
    %350 = vector.load %arg55[%c0_217, %c0_218, %c0_219] : memref<1x1x40xf32, #tpu.memory_space<vmem>>, vector<1x1x40xf32>
    %351 = vector.shape_cast %350 : vector<1x1x40xf32> to vector<1x40xf32>
    %352 = vector.shape_cast %349 : vector<1x40xf32> to vector<1x1x40xf32>
    tpu.vector_store %arg55[%c0_217, %c0_218, %c0_219], %352 {strides = array<i32>} : memref<1x1x40xf32, #tpu.memory_space<vmem>>, vector<1x1x40xf32>,
    return
  }
  func.func @transform_0(%arg0: i32) -> (i32, i32) {
    %c0_i32 = arith.constant 0 : i32
    %c0_i32_0 = arith.constant 0 : i32
    return %c0_i32, %arg0 : i32, i32
  }
  func.func @transform_1(%arg0: i32) -> (i32, i32, i32) {
    %c0_i32 = arith.constant 0 : i32
    %c0_i32_0 = arith.constant 0 : i32
    %c0_i32_1 = arith.constant 0 : i32
    %c0_i32_2 = arith.constant 0 : i32
    return %c0_i32, %c0_i32_0, %c0_i32_1 : i32, i32, i32
  }
  func.func @transform_2(%arg0: i32) -> (i32, i32) {
    %c0_i32 = arith.constant 0 : i32
    %c0_i32_0 = arith.constant 0 : i32
    %c0_i32_1 = arith.constant 0 : i32
    return %c0_i32, %c0_i32_0 : i32, i32
  }
  func.func @transform_3(%arg0: i32) -> (i32, i32) {
    %c0_i32 = arith.constant 0 : i32
    %c0_i32_0 = arith.constant 0 : i32
    %c0_i32_1 = arith.constant 0 : i32
    return %c0_i32, %c0_i32_0 : i32, i32
  }
  func.func @transform_4(%arg0: i32) -> (i32, i32) {
    %c0_i32 = arith.constant 0 : i32
    %c0_i32_0 = arith.constant 0 : i32
    %c0_i32_1 = arith.constant 0 : i32
    return %c0_i32, %c0_i32_0 : i32, i32
  }
  func.func @transform_5(%arg0: i32) -> (i32, i32) {
    %c0_i32 = arith.constant 0 : i32
    %c0_i32_0 = arith.constant 0 : i32
    %c0_i32_1 = arith.constant 0 : i32
    return %c0_i32, %c0_i32_0 : i32, i32
  }
  func.func @transform_6(%arg0: i32) -> (i32, i32) {
    %c0_i32 = arith.constant 0 : i32
    %c0_i32_0 = arith.constant 0 : i32
    %c0_i32_1 = arith.constant 0 : i32
    return %c0_i32, %c0_i32_0 : i32, i32
  }
  func.func @transform_7(%arg0: i32) -> (i32, i32) {
    %c0_i32 = arith.constant 0 : i32
    %c0_i32_0 = arith.constant 0 : i32
    %c0_i32_1 = arith.constant 0 : i32
    return %c0_i32, %c0_i32_0 : i32, i32
  }
  func.func @transform_8(%arg0: i32) -> (i32, i32) {
    %c0_i32 = arith.constant 0 : i32
    %c0_i32_0 = arith.constant 0 : i32
    %c0_i32_1 = arith.constant 0 : i32
    return %c0_i32, %c0_i32_0 : i32, i32
  }
  func.func @transform_9(%arg0: i32) -> (i32, i32) {
    %c0_i32 = arith.constant 0 : i32
    %c0_i32_0 = arith.constant 0 : i32
    %c0_i32_1 = arith.constant 0 : i32
    return %c0_i32, %c0_i32_0 : i32, i32
  }
  func.func @transform_10(%arg0: i32) -> (i32, i32) {
    %c0_i32 = arith.constant 0 : i32
    %c0_i32_0 = arith.constant 0 : i32
    %c0_i32_1 = arith.constant 0 : i32
    return %c0_i32, %c0_i32_0 : i32, i32
  }
  func.func @transform_11(%arg0: i32) -> (i32, i32) {
    %c0_i32 = arith.constant 0 : i32
    %c0_i32_0 = arith.constant 0 : i32
    %c0_i32_1 = arith.constant 0 : i32
    return %c0_i32, %c0_i32_0 : i32, i32
  }
  func.func @transform_12(%arg0: i32) -> (i32, i32) {
    %c0_i32 = arith.constant 0 : i32
    %c0_i32_0 = arith.constant 0 : i32
    %c0_i32_1 = arith.constant 0 : i32
    return %c0_i32, %c0_i32_0 : i32, i32
  }
  func.func @transform_13(%arg0: i32) -> (i32, i32) {
    %c0_i32 = arith.constant 0 : i32
    %c0_i32_0 = arith.constant 0 : i32
    %c0_i32_1 = arith.constant 0 : i32
    return %c0_i32, %c0_i32_0 : i32, i32
  }
  func.func @transform_14(%arg0: i32) -> (i32, i32) {
    %c0_i32 = arith.constant 0 : i32
    %c0_i32_0 = arith.constant 0 : i32
    %c0_i32_1 = arith.constant 0 : i32
    return %c0_i32, %c0_i32_0 : i32, i32
  }
  func.func @transform_15(%arg0: i32) -> (i32, i32) {
    %c0_i32 = arith.constant 0 : i32
    %c0_i32_0 = arith.constant 0 : i32
    %c0_i32_1 = arith.constant 0 : i32
    return %c0_i32, %c0_i32_0 : i32, i32
  }
  func.func @transform_16(%arg0: i32) -> (i32, i32, i32) {
    %c0_i32 = arith.constant 0 : i32
    %c0_i32_0 = arith.constant 0 : i32
    %c0_i32_1 = arith.constant 0 : i32
    %c0_i32_2 = arith.constant 0 : i32
    return %c0_i32, %c0_i32_0, %c0_i32_1 : i32, i32, i32
  }
  func.func @transform_17(%arg0: i32) -> (i32, i32) {
    %c0_i32 = arith.constant 0 : i32
    %c0_i32_0 = arith.constant 0 : i32
    %c0_i32_1 = arith.constant 0 : i32
    return %c0_i32, %c0_i32_0 : i32, i32
  }
  func.func @transform_18(%arg0: i32) -> (i32, i32) {
    %c0_i32 = arith.constant 0 : i32
    %c0_i32_0 = arith.constant 0 : i32
    %c0_i32_1 = arith.constant 0 : i32
    return %c0_i32, %c0_i32_0 : i32, i32
  }
  func.func @transform_19(%arg0: i32) -> (i32, i32, i32) {
    %c0_i32 = arith.constant 0 : i32
    %c0_i32_0 = arith.constant 0 : i32
    %c0_i32_1 = arith.constant 0 : i32
    %c0_i32_2 = arith.constant 0 : i32
    return %c0_i32, %c0_i32_0, %c0_i32_1 : i32, i32, i32
  }
  func.func @transform_20(%arg0: i32) -> (i32, i32) {
    %c0_i32 = arith.constant 0 : i32
    %c0_i32_0 = arith.constant 0 : i32
    %c0_i32_1 = arith.constant 0 : i32
    return %c0_i32, %c0_i32_0 : i32, i32
  }
  func.func @transform_21(%arg0: i32) -> (i32, i32) {
    %c0_i32 = arith.constant 0 : i32
    %c0_i32_0 = arith.constant 0 : i32
    %c0_i32_1 = arith.constant 0 : i32
    return %c0_i32, %c0_i32_0 : i32, i32
  }
  func.func @transform_22(%arg0: i32) -> (i32, i32) {
    %c0_i32 = arith.constant 0 : i32
    %c0_i32_0 = arith.constant 0 : i32
    %c0_i32_1 = arith.constant 0 : i32
    return %c0_i32, %c0_i32_0 : i32, i32
  }
  func.func @transform_23(%arg0: i32) -> (i32, i32) {
    %c0_i32 = arith.constant 0 : i32
    %c0_i32_0 = arith.constant 0 : i32
    %c0_i32_1 = arith.constant 0 : i32
    return %c0_i32, %c0_i32_0 : i32, i32
  }
  func.func @transform_24(%arg0: i32) -> (i32, i32) {
    %c0_i32 = arith.constant 0 : i32
    %c0_i32_0 = arith.constant 0 : i32
    %c0_i32_1 = arith.constant 0 : i32
    return %c0_i32, %c0_i32_0 : i32, i32
  }
  func.func @transform_25(%arg0: i32) -> (i32, i32) {
    %c0_i32 = arith.constant 0 : i32
    %c0_i32_0 = arith.constant 0 : i32
    %c0_i32_1 = arith.constant 0 : i32
    return %c0_i32, %c0_i32_0 : i32, i32
  }
  func.func @transform_26(%arg0: i32) -> (i32, i32) {
    %c0_i32 = arith.constant 0 : i32
    %c0_i32_0 = arith.constant 0 : i32
    %c0_i32_1 = arith.constant 0 : i32
    return %c0_i32, %c0_i32_0 : i32, i32
  }
  func.func @transform_27(%arg0: i32) -> (i32, i32) {
    %c0_i32 = arith.constant 0 : i32
    %c0_i32_0 = arith.constant 0 : i32
    %c0_i32_1 = arith.constant 0 : i32
    return %c0_i32, %c0_i32_0 : i32, i32
  }
  func.func @transform_28(%arg0: i32) -> (i32, i32, i32) {
    %c0_i32 = arith.constant 0 : i32
    %c0_i32_0 = arith.constant 0 : i32
    %c0_i32_1 = arith.constant 0 : i32
    %c0_i32_2 = arith.constant 0 : i32
    return %c0_i32, %c0_i32_0, %c0_i32_1 : i32, i32, i32
  }
  func.func @transform_29(%arg0: i32) -> (i32, i32) {
    %c0_i32 = arith.constant 0 : i32
    %c0_i32_0 = arith.constant 0 : i32
    %c0_i32_1 = arith.constant 0 : i32
    return %c0_i32, %c0_i32_0 : i32, i32
  }
  func.func @transform_30(%arg0: i32) -> (i32, i32) {
    %c0_i32 = arith.constant 0 : i32
    %c0_i32_0 = arith.constant 0 : i32
    %c0_i32_1 = arith.constant 0 : i32
    return %c0_i32, %c0_i32_0 : i32, i32
  }
  func.func @transform_31(%arg0: i32) -> (i32, i32, i32) {
    %c0_i32 = arith.constant 0 : i32
    %c0_i32_0 = arith.constant 0 : i32
    %c0_i32_1 = arith.constant 0 : i32
    %c0_i32_2 = arith.constant 0 : i32
    return %c0_i32, %c0_i32_0, %c0_i32_1 : i32, i32, i32
  }
  func.func @transform_32(%arg0: i32) -> (i32, i32) {
    %c0_i32 = arith.constant 0 : i32
    %c0_i32_0 = arith.constant 0 : i32
    %c0_i32_1 = arith.constant 0 : i32
    return %c0_i32, %c0_i32_0 : i32, i32
  }
  func.func @transform_33(%arg0: i32) -> (i32, i32) {
    %c0_i32 = arith.constant 0 : i32
    %c0_i32_0 = arith.constant 0 : i32
    %c0_i32_1 = arith.constant 0 : i32
    return %c0_i32, %c0_i32_0 : i32, i32
  }
  func.func @transform_34(%arg0: i32) -> (i32, i32) {
    %c0_i32 = arith.constant 0 : i32
    %c0_i32_0 = arith.constant 0 : i32
    %c0_i32_1 = arith.constant 0 : i32
    return %c0_i32, %c0_i32_0 : i32, i32
  }
  func.func @transform_35(%arg0: i32) -> (i32, i32) {
    %c0_i32 = arith.constant 0 : i32
    %c0_i32_0 = arith.constant 0 : i32
    %c0_i32_1 = arith.constant 0 : i32
    return %c0_i32, %c0_i32_0 : i32, i32
  }
  func.func @transform_36(%arg0: i32) -> (i32, i32) {
    %c0_i32 = arith.constant 0 : i32
    %c0_i32_0 = arith.constant 0 : i32
    %c0_i32_1 = arith.constant 0 : i32
    return %c0_i32, %c0_i32_0 : i32, i32
  }
  func.func @transform_37(%arg0: i32) -> (i32, i32) {
    %c0_i32 = arith.constant 0 : i32
    %c0_i32_0 = arith.constant 0 : i32
    %c0_i32_1 = arith.constant 0 : i32
    return %c0_i32, %c0_i32_0 : i32, i32
  }
  func.func @transform_38(%arg0: i32) -> (i32, i32) {
    %c0_i32 = arith.constant 0 : i32
    %c0_i32_0 = arith.constant 0 : i32
    %c0_i32_1 = arith.constant 0 : i32
    return %c0_i32, %c0_i32_0 : i32, i32
  }
  func.func @transform_39(%arg0: i32) -> (i32, i32) {
    %c0_i32 = arith.constant 0 : i32
    %c0_i32_0 = arith.constant 0 : i32
    %c0_i32_1 = arith.constant 0 : i32
    return %c0_i32, %c0_i32_0 : i32, i32
  }
  func.func @transform_40(%arg0: i32) -> (i32, i32, i32) {
    %c0_i32 = arith.constant 0 : i32
    %c0_i32_0 = arith.constant 0 : i32
    %c0_i32_1 = arith.constant 0 : i32
    %c0_i32_2 = arith.constant 0 : i32
    return %c0_i32, %c0_i32_0, %c0_i32_1 : i32, i32, i32
  }
  func.func @transform_41(%arg0: i32) -> (i32, i32) {
    %c0_i32 = arith.constant 0 : i32
    %c0_i32_0 = arith.constant 0 : i32
    %c0_i32_1 = arith.constant 0 : i32
    return %c0_i32, %c0_i32_0 : i32, i32
  }
  func.func @transform_42(%arg0: i32) -> (i32, i32) {
    %c0_i32 = arith.constant 0 : i32
    %c0_i32_0 = arith.constant 0 : i32
    %c0_i32_1 = arith.constant 0 : i32
    return %c0_i32, %c0_i32_0 : i32, i32
  }
  func.func @transform_43(%arg0: i32) -> (i32, i32, i32) {
    %c0_i32 = arith.constant 0 : i32
    %c0_i32_0 = arith.constant 0 : i32
    %c0_i32_1 = arith.constant 0 : i32
    %c0_i32_2 = arith.constant 0 : i32
    return %c0_i32, %c0_i32_0, %c0_i32_1 : i32, i32, i32
  }
  func.func @transform_44(%arg0: i32) -> (i32, i32) {
    %c0_i32 = arith.constant 0 : i32
    %c0_i32_0 = arith.constant 0 : i32
    %c0_i32_1 = arith.constant 0 : i32
    return %c0_i32, %c0_i32_0 : i32, i32
  }
  func.func @transform_45(%arg0: i32) -> (i32, i32) {
    %c0_i32 = arith.constant 0 : i32
    %c0_i32_0 = arith.constant 0 : i32
    %c0_i32_1 = arith.constant 0 : i32
    return %c0_i32, %c0_i32_0 : i32, i32
  }
  func.func @transform_46(%arg0: i32) -> (i32, i32) {
    %c0_i32 = arith.constant 0 : i32
    %c0_i32_0 = arith.constant 0 : i32
    %c0_i32_1 = arith.constant 0 : i32
    return %c0_i32, %c0_i32_0 : i32, i32
  }
  func.func @transform_47(%arg0: i32) -> (i32, i32) {
    %c0_i32 = arith.constant 0 : i32
    %c0_i32_0 = arith.constant 0 : i32
    %c0_i32_1 = arith.constant 0 : i32
    return %c0_i32, %c0_i32_0 : i32, i32
  }
  func.func @transform_48(%arg0: i32) -> (i32, i32) {
    %c0_i32 = arith.constant 0 : i32
    %c0_i32_0 = arith.constant 0 : i32
    %c0_i32_1 = arith.constant 0 : i32
    return %c0_i32, %c0_i32_0 : i32, i32
  }
  func.func @transform_49(%arg0: i32) -> (i32, i32) {
    %c0_i32 = arith.constant 0 : i32
    %c0_i32_0 = arith.constant 0 : i32
    %c0_i32_1 = arith.constant 0 : i32
    return %c0_i32, %c0_i32_0 : i32, i32
  }
  func.func @transform_50(%arg0: i32) -> (i32, i32) {
    %c0_i32 = arith.constant 0 : i32
    %c0_i32_0 = arith.constant 0 : i32
    %c0_i32_1 = arith.constant 0 : i32
    return %c0_i32, %c0_i32_0 : i32, i32
  }
  func.func @transform_51(%arg0: i32) -> (i32, i32) {
    %c0_i32 = arith.constant 0 : i32
    %c0_i32_0 = arith.constant 0 : i32
    %c0_i32_1 = arith.constant 0 : i32
    return %c0_i32, %c0_i32_0 : i32, i32
  }
  func.func @transform_52(%arg0: i32) -> (i32, i32) {
    %c0_i32 = arith.constant 0 : i32
    %c0_i32_0 = arith.constant 0 : i32
    %c0_i32_1 = arith.constant 0 : i32
    return %c0_i32, %c0_i32_0 : i32, i32
  }
  func.func @transform_53(%arg0: i32) -> (i32, i32) {
    %c0_i32 = arith.constant 0 : i32
    %c0_i32_0 = arith.constant 0 : i32
    %c0_i32_1 = arith.constant 0 : i32
    return %c0_i32, %c0_i32_0 : i32, i32
  }
  func.func @transform_54(%arg0: i32) -> (i32, i32, i32) {
    %c0_i32 = arith.constant 0 : i32
    %c0_i32_0 = arith.constant 0 : i32
    %c0_i32_1 = arith.constant 0 : i32
    return %arg0, %c0_i32, %c0_i32_0 : i32, i32, i32
  }
}

</mosaic_0001>

<bundles_post_ra>
// kernel: forward.1
= control target key start
LH: loop header
LB: loop body
LE: loop exit
PB: predicated region body
PF: predicated region fallthrough
CT: control target
= control target key end

     0   :  { %s15148_s6 = smov 1   ;;  %s15149_s10 = smov 2   ;;  %s17331_s0 = inlined_call_operand.smem [shape: u32[55], index: -1, kind: input, shape index: {}] }
   0x1   :  { %s15257_s5 = sld [smem:[%s17331_s0]]   ;;  %s15150_s14 = smov 3  }
   0x2   :  { %s15262_s9 = sld [smem:[%s17331_s0 + %s15148_s6]]   ;;  %s15151_s18 = smov 4  }
   0x3   :  { %s15267_s13 = sld [smem:[%s17331_s0 + %s15149_s10]]   ;;  %s15152_s22 = smov 5  }
   0x4   :  { %s15272_s17 = sld [smem:[%s17331_s0 + %s15150_s14]]   ;;  %s15153_s26 = smov 6  }
   0x5   :  { %s15277_s21 = sld [smem:[%s17331_s0 + %s15151_s18]]   ;;  %s15154_s30 = smov 7  }
   0x6   :  { %s15282_s25 = sld [smem:[%s17331_s0 + %s15152_s22]]   ;;  %s15155_s4 = smov 8  }
   0x7   :  { %17392 = sst [smem:[#allocation78_spill]] %s15257_s5  ;;  %s15156_s10 = smov 9  }
   0x8   :  { %17393 = sst [smem:[#allocation79_spill]] %s15262_s9  ;;  %s15157_s15 = smov 10  }
   0x9   :  { %17394 = sst [smem:[#allocation80_spill]] %s15267_s13  ;;  %s15158_s20 = smov 11  }
   0xa   :  { %17395 = sst [smem:[#allocation81_spill]] %s15272_s17  ;;  %s15160_s1 = smov 13  }
   0xb   :  { %17396 = sst [smem:[#allocation82_spill]] %s15277_s21  ;;  %s15161_s7 = smov 14  }
   0xc   :  { %17397 = sst [smem:[#allocation83_spill]] %s15282_s25  ;;  %s15163_s22 = smov 16  }
   0xd   :  { %s15287_s29 = sld [smem:[%s17331_s0 + %s15153_s26]]   ;;  %s15159_s26 = smov 12  }
   0xe   :  { %s15292_s3 = sld [smem:[%s17331_s0 + %s15154_s30]]   ;;  %s15164_s28 = smov 17  }
   0xf   :  { %s15297_s8 = sld [smem:[%s17331_s0 + %s15155_s4]]  }
  0x10   :  { %s15302_s14 = sld [smem:[%s17331_s0 + %s15156_s10]]  }
  0x11   :  { %s15307_s19 = sld [smem:[%s17331_s0 + %s15157_s15]]   ;;  %s15162_s15 = smov 15  }
  0x12   :  { %s15312_s24 = sld [smem:[%s17331_s0 + %s15158_s20]]  }
  0x13   :  { %17398 = sst [smem:[#allocation84_spill]] %s15287_s29 }
  0x14   :  { %17399 = sst [smem:[#allocation85_spill]] %s15292_s3 }
  0x15   :  { %17400 = sst [smem:[#allocation86_spill]] %s15297_s8 }
  0x16   :  { %17401 = sst [smem:[#allocation87_spill]] %s15302_s14 }
  0x17   :  { %17402 = sst [smem:[#allocation88_spill]] %s15307_s19 }
  0x18   :  { %17403 = sst [smem:[#allocation89_spill]] %s15312_s24 }
  0x19   :  { %s15317_s30 = sld [smem:[%s17331_s0 + %s15159_s26]]  }
  0x1a   :  { %s15322_s6 = sld [smem:[%s17331_s0 + %s15160_s1]]  }
  0x1b   :  { %s15327_s12 = sld [smem:[%s17331_s0 + %s15161_s7]]   ;;  %s15165_s7 = smov 18  }
  0x1c   :  { %s15332_s20 = sld [smem:[%s17331_s0 + %s15162_s15]]   ;;  %s15166_s15 = smov 19  }
  0x1d   :  { %s15337_s27 = sld [smem:[%s17331_s0 + %s15163_s22]]   ;;  %s15167_s22 = smov 20  }
  0x1e   :  { %s15342_s4 = sld [smem:[%s17331_s0 + %s15164_s28]]   ;;  %s15168_s28 = smov 21  }
  0x1f   :  { %17404 = sst [smem:[#allocation90_spill]] %s15317_s30 }
  0x20   :  { %17405 = sst [smem:[#allocation91_spill]] %s15322_s6 }
  0x21   :  { %17406 = sst [smem:[#allocation92_spill]] %s15327_s12 }
  0x22   :  { %17407 = sst [smem:[#allocation93_spill]] %s15332_s20 }
  0x23   :  { %17408 = sst [smem:[#allocation94_spill]] %s15337_s27 }
  0x24   :  { %17409 = sst [smem:[#allocation95_spill]] %s15342_s4 }
  0x25   :  { %s15347_s6 = sld [smem:[%s17331_s0 + %s15165_s7]]   ;;  %s15169_s7 = smov 22  }
  0x26   :  { %s15352_s20 = sld [smem:[%s17331_s0 + %s15166_s15]]   ;;  %s15170_s15 = smov 23  }
  0x27   :  { %s15357_s27 = sld [smem:[%s17331_s0 + %s15167_s22]]   ;;  %s15171_s22 = smov 24  }
  0x28   :  { %s15362_s12 = sld [smem:[%s17331_s0 + %s15168_s28]]   ;;  %s15172_s28 = smov 25  }
  0x29   :  { %s15367_s24 = sld [smem:[%s17331_s0 + %s15169_s7]]   ;;  %s15173_s7 = smov 26  }
  0x2a   :  { %s15382_s30 = sld [smem:[%s17331_s0 + %s15172_s28]]   ;;  %s15176_s28 = smov 29  }
  0x2b   :  { %17410 = sst [smem:[#allocation96_spill]] %s15347_s6 }
  0x2c   :  { %17411 = sst [smem:[#allocation97_spill]] %s15352_s20 }
  0x2d   :  { %17412 = sst [smem:[#allocation98_spill]] %s15357_s27 }
  0x2e   :  { %17413 = sst [smem:[#allocation99_spill]] %s15362_s12 }
  0x2f   :  { %17414 = sst [smem:[#allocation100_spill]] %s15367_s24 }
  0x30   :  { %s15372_s20 = sld [smem:[%s17331_s0 + %s15170_s15]]   ;;  %s15174_s15 = smov 27  }
  0x31   :  { %s15377_s27 = sld [smem:[%s17331_s0 + %s15171_s22]]   ;;  %s15175_s22 = smov 28  }
  0x32   :  { %17416 = sst [smem:[#allocation102_spill]] %s15382_s30 }
  0x33   :  { %s15387_s24 = sld [smem:[%s17331_s0 + %s15173_s7]]   ;;  %s15177_s7 = smov 30  }
  0x34   :  { %s15392_s19 = sld [smem:[%s17331_s0 + %s15174_s15]]   ;;  %s15178_s15 = smov 31  }
  0x35   :  { %s15397_s8 = sld [smem:[%s17331_s0 + %s15175_s22]]   ;;  %s15179_s22 = smov 32  }
  0x36   :  { %17415 = sst [smem:[#allocation101_spill]] %s15372_s20 }
  0x37   :  { %s15402_s21 = sld [smem:[%s17331_s0 + %s15176_s28]]   ;;  %s15180_s28 = smov 33  }
  0x38   :  { %s15407_s25 = sld [smem:[%s17331_s0 + %s15177_s7]]   ;;  %s15181_s7 = smov 34  }
  0x39   :  { %s15412_s13 = sld [smem:[%s17331_s0 + %s15178_s15]]   ;;  %s15182_s15 = smov 35  }
  0x3a   :  { %17417 = sst [smem:[#allocation103_spill]] %s15392_s19 }
  0x3b   :  { %17418 = sst [smem:[#allocation104_spill]] %s15397_s8 }
  0x3c   :  { %s15417_s5 = sld [smem:[%s17331_s0 + %s15179_s22]]   ;;  %s15183_s22 = smov 36  }
  0x3d   :  { %17419 = sst [smem:[#allocation105_spill]] %s15402_s21 }
  0x3e   :  { %s15422_s21 = sld [smem:[%s17331_s0 + %s15180_s28]]   ;;  %s15184_s28 = smov 37  }
  0x3f   :  { %17420 = sst [smem:[#allocation106_spill]] %s15412_s13 }
  0x40   :  { %s15427_s19 = sld [smem:[%s17331_s0 + %s15181_s7]]   ;;  %s15185_s7 = smov 38  }
  0x41   :  { %s15432_s13 = sld [smem:[%s17331_s0 + %s15182_s15]]   ;;  %s15186_s15 = smov 39  }
  0x42   :  { %17421 = sst [smem:[#allocation107_spill]] %s15417_s5 }
  0x43   :  { %s15437_s30 = sld [smem:[%s17331_s0 + %s15183_s22]]   ;;  %s15187_s22 = smov 40  }
  0x44   :  { %17422 = sst [smem:[#allocation108_spill]] %s15422_s21 }
  0x45   :  { %s15442_s21 = sld [smem:[%s17331_s0 + %s15184_s28]]   ;;  %s15188_s28 = smov 41  }
  0x46   :  { %s15447_s20 = sld [smem:[%s17331_s0 + %s15185_s7]]   ;;  %s15189_s7 = smov 42  }
  0x47   :  { %17423 = sst [smem:[#allocation109_spill]] %s15432_s13 }
  0x48   :  { %s15452_s13 = sld [smem:[%s17331_s0 + %s15186_s15]]   ;;  %s15190_s15 = smov 43  }
  0x49   :  { %s15457_s6 = sld [smem:[%s17331_s0 + %s15187_s22]]   ;;  %s15191_s22 = smov 44  }
  0x4a   :  { %s15467_s14 = sld [smem:[%s17331_s0 + %s15189_s7]]   ;;  %s15193_s7 = smov 46  }
  0x4b   :  { %17424 = sst [smem:[#allocation110_spill]] %s15442_s21 }
  0x4c   :  { %s15462_s21 = sld [smem:[%s17331_s0 + %s15188_s28]]   ;;  %s15192_s28 = smov 45  }
  0x4d   :  { %s15477_s29 = sld [smem:[%s17331_s0 + %s15191_s22]]   ;;  %s15195_s22 = smov 48  }
  0x4e   :  { %17425 = sst [smem:[#allocation111_spill]] %s15452_s13 }
  0x4f   :  { %17426 = sst [smem:[#allocation112_spill]] %s15457_s6 }
  0x50   :  { %17428 = sst [smem:[#allocation114_spill]] %s15467_s14 }
  0x51   :  { %s15472_s13 = sld [smem:[%s17331_s0 + %s15190_s15]]   ;;  %s15194_s15 = smov 47  }
  0x52   :  { %17427 = sst [smem:[#allocation113_spill]] %s15462_s21 }
  0x53   :  { %17430 = sst [smem:[#allocation116_spill]] %s15477_s29 }
  0x54   :  { %s15482_s21 = sld [smem:[%s17331_s0 + %s15192_s28]]   ;;  %s15196_s28 = smov 49  }
  0x55   :  { %s15487_s9 = sld [smem:[%s17331_s0 + %s15193_s7]]   ;;  %s15197_s7 = smov 50  }
  0x56   :  { %s15497_s29 = sld [smem:[%s17331_s0 + %s15195_s22]]   ;;  %s15199_s22 = smov 52  }
  0x57   :  { %17429 = sst [smem:[#allocation115_spill]] %s15472_s13 }
  0x58   :  { %s15492_s13 = sld [smem:[%s17331_s0 + %s15194_s15]]   ;;  %s15198_s15 = smov 51  }
  0x5a   :  { %17431 = sst [smem:[#allocation117_spill]] %s15482_s21 }
  0x5b   :  { %17432 = sst [smem:[#allocation118_spill]] %s15487_s9 }
  0x5c   :  { %17434 = sst [smem:[#allocation120_spill]] %s15497_s29 }
  0x5d   :  { %s15502_s21 = sld [smem:[%s17331_s0 + %s15196_s28]]   ;;  %s15200_s28 = smov 53  }
  0x5e   :  { %17433 = sst [smem:[#allocation119_spill]] %s15492_s13 }
  0x5f   :  { %s15507_s9 = sld [smem:[%s17331_s0 + %s15197_s7]]   ;;  %s15201_s7 = smov 54  }
  0x60   :  { %s15512_s13 = sld [smem:[%s17331_s0 + %s15198_s15]]  }
  0x61   :  { %s15517_s29 = sld [smem:[%s17331_s0 + %s15199_s22]]  }
  0x63   :  { %17435 = sst [smem:[#allocation121_spill]] %s15502_s21 }
  0x64   :  { %s15522_s21 = sld [smem:[%s17331_s0 + %s15200_s28]]  }
  0x65   :  { %17436 = sst [smem:[#allocation122_spill]] %s15507_s9 }
  0x66   :  { %17437 = sst [smem:[#allocation123_spill]] %s15512_s13 }
  0x67   :  { %s15527_s9 = sld [smem:[%s17331_s0 + %s15201_s7]]  }
  0x68   :  { %114 = vsyncpa [#allocation4], 0 }
  0x69   :  { %115 = vsyncpa [#allocation6], 0 }
  0x6a   :  { %116 = vsyncpa [#allocation9], 0 }
  0x6b   :  { %117 = vsyncpa [#allocation12], 0 }
  0x6c   :  { %118 = vsyncpa [#allocation15], 0 }
  0x6d   :  { %119 = vsyncpa [#allocation18], 0 }
  0x6e   :  { %120 = vsyncpa [#allocation21], 0 }
  0x6f   :  { %121 = vsyncpa [#allocation24], 0 }
  0x70   :  { %122 = vsyncpa [#allocation27], 0 }
  0x71   :  { %123 = vsyncpa [#allocation30], 0 }
  0x72   :  { %124 = vsyncpa [#allocation33], 0 }
  0x73   :  { %125 = vsyncpa [#allocation36], 0 }
  0x74   :  { %126 = vsyncpa [#allocation39], 0 }
  0x75   :  { %127 = vsyncpa [#allocation42], 0 }
  0x76   :  { %128 = vsyncpa [#allocation45], 0 }
  0x77   :  { %129 = vsyncpa [#allocation48], 0 }
  0x78   :  { %130 = vsyncpa [#allocation51], 0 }
  0x79   :  { %131 = vsyncpa [#allocation54], 0 }
  0x7a   :  { %132 = vsyncpa [#allocation57], 0  ;;  %s15529_s0 = smov 0   ;;  %s15531_s15 = smov 0  }
  0x7b   :  { %s15533_s16 = smov 0  }
  0x7c LB: > { %s17438_s14 = sld [smem:[#allocation114_spill]]  ;;  %s17439_s13 = sld [smem:[#allocation123_spill]]  ;;  %s15146_s16 = sphi %s15533_s16, %s17504_s16   ;;  %s15142_s15 = sphi %s15531_s15, %s17503_s15   ;;  %s15138_s0 = sphi %s15529_s0, %s17502_s0  }
  0x7d   : > { %s17440_s12 = sld [smem:[#allocation99_spill]]  ;;  %s17441_s6 = sld [smem:[#allocation112_spill]] }
  0x7e   : > { %s17442_s5 = sld [smem:[#allocation107_spill]]  ;;  %s17443_s8 = sld [smem:[#allocation104_spill]] }
  0x7f   : > { %s17444_s4 = sld [smem:[#allocation95_spill]]  ;;  %s17445_s3 = sld [smem:[#allocation85_spill]] }
  0x80   : > { %s17446_s17 = sld [smem:[#allocation81_spill]]  ;;  %s15545_s18 = sadd.s32 4294967295, %s15146_s16  }
  0x81   : > { %s15548_s22 = sadd.s32 1, %s15146_s16   ;;  %s145_s26 = sadd.s32 1, %s15142_s15 }
  0x82   : > { %s142_s23 = ssub.s32 %s15146_s16, %s15548_s22  ;;  %p152_p1 = scmp.ne.s32.totalorder %s15142_s15, %s15138_s0 }
  0x83   : > { %p143_p0 = scmp.eq.s32.totalorder %s142_s23, 0  ;;  %p153_p2 = scmp.eq.s32.totalorder %s15146_s16, 0 }
  0x84   : > { %p10996_p3 = scmp.ge.s32.totalorder %s15146_s16, 1  ;;  %p1308_p5 = scmp.lt.s32.totalorder %s15146_s16, 3 }
  0x85   : > { %s15558_s28 = scalar_select %p143_p0, %s15142_s15, %s145_s26  }
  0x86   : > { %p15560_p4 = por %p153_p2, %p152_p1  ;;  %p15565_p6 = pnand %p10996_p3, %p1308_p5 }
  0x87   : > { %17447 = sst [smem:[#allocation124_spill]] %s15558_s28  ;;  %p13112_p7 = scmp.eq.s32.totalorder (!%p15565_p6), %s15545_s18, 0 }
  0x88   : > { %s17449_s2 = scalar_select %p15565_p6, 1, 0 }
  0x89   : > { %1312 = sbr.rel (%p15565_p6) target bundleno = 1035 (0x40b), region = 12  ;;  %s15202_s7 = smov (!%p15565_p6), [#allocation5]  }
  0x8a   : > { %s1337_s10 = sshll.u32 (!%p15565_p6), %s15202_s7, 4  ;;  %s15203_s11 = smov (!%p15565_p6), [#allocation8]   ;;  %s1338_s10 = int_to_ptr.vmem [resolvable:$true] %s1337_s10 }
  0x8b   : > { %s1365_s23 = sshll.u32 (!%p15565_p6), %s15203_s11, 4  ;;  %s14086_s26 = scalar_lea.hbm (!%p15565_p6), %s17446_s17, 32  ;;  %s1366_s23 = int_to_ptr.vmem [resolvable:$true] %s1365_s23 }
  0x8c   : > { %p14087_p8 = scmp.ne.s32.totalorder (!%p15565_p6), %s17446_s17, %s14086_s26  ;;  %p14092_p11 = scmp.lt.u32.totalorder (!%p15565_p6), %s14086_s26, %s17446_s17 }
  0x8e   : > { %p14088_p9 = pnand (!%p15565_p6), %p14087_p8, %p13112_p7 }
  0x90   : > { %p14089_p10 = pneg %p14088_p9 }
  0x92   : > { %p14094_p12 = pnand %p14092_p11, %p14089_p10 }
  0x94   : > { %14097 = shalt.err (!%p14094_p12)
}
  0x95   : > { %s14098_s28 = scalar_lea.vmem %s1338_s10, 32  ;;  %p14105_p2 = scmp.lt.s32.totalorder %s1338_s10, %s1338_s10 }
  0x96   : > { %p14099_p13 = scmp.ne.s32.totalorder %s1338_s10, %s14098_s28  ;;  %p14106_p3 = scmp.lt.s32.totalorder %s14098_s28, %s14098_s28 }
  0x98   : > { %p14100_p0 = pnand %p14099_p13, %p13112_p7  ;;  %p14107_p5 = por %p14106_p3, %p14105_p2 }
  0x9a   : > { %p14101_p1 = pneg %p14100_p0 }
  0x9c   : > { %p14108_p6 = pnand %p14107_p5, %p14101_p1 }
  0x9e   : > { %14111 = shalt.err (!%p14108_p6)
}
  0x9f   : > { %12967 = dma.hbm_to_vmem [thread:$0]  (%p13112_p7), %s17446_s17, 32, %s1338_s10, [#allocation6]  }
  0xa0   : > { %s14112_s7 = scalar_lea.hbm %s17445_s3, 32 }
  0xa1   : > { %p14113_p8 = scmp.ne.s32.totalorder %s17445_s3, %s14112_s7  ;;  %p14118_p11 = scmp.lt.u32.totalorder %s14112_s7, %s17445_s3 }
  0xa3   : > { %p14114_p9 = pnand %p14113_p8, %p13112_p7 }
  0xa5   : > { %p14115_p10 = pneg %p14114_p9 }
  0xa7   : > { %p14120_p12 = pnand %p14118_p11, %p14115_p10 }
  0xa9   : > { %14123 = shalt.err (!%p14120_p12)
}
  0xaa   : > { %s14124_s28 = scalar_lea.vmem %s1366_s23, 32  ;;  %p14131_p1 = scmp.lt.s32.totalorder %s1366_s23, %s1366_s23 }
  0xab   : > { %p14125_p6 = scmp.ne.s32.totalorder %s1366_s23, %s14124_s28  ;;  %p14132_p2 = scmp.lt.s32.totalorder %s14124_s28, %s14124_s28 }
  0xad   : > { %p14126_p13 = pnand %p14125_p6, %p13112_p7  ;;  %p14133_p3 = por %p14132_p2, %p14131_p1 }
  0xaf   : > { %p14127_p0 = pneg %p14126_p13 }
  0xb1   : > { %p14134_p5 = pnand %p14133_p3, %p14127_p0 }
  0xb3   : > { %14137 = shalt.err (!%p14134_p5)
}
  0xb4   : > { %12971 = dma.hbm_to_vmem [thread:$0]  (%p13112_p7), %s17445_s3, 32, %s1366_s23, [#allocation9]  }
  0xb5   : > { %s15204_s10 = smov [#allocation11]   ;;  %s15205_s26 = smov [#allocation14]  }
  0xb6   : > { %s1410_s11 = sshll.u32 %s15204_s10, 4  ;;  %s1441_s7 = sshll.u32 %s15205_s26, 4  ;;  %s1411_s11 = int_to_ptr.vmem [resolvable:$true] %s1410_s11  ;;  %s1442_s7 = int_to_ptr.vmem [resolvable:$true] %s1441_s7 }
  0xb7   : > { %s14138_s17 = scalar_lea.hbm %s17444_s4, 1024 }
  0xb8   : > { %p14139_p8 = scmp.ne.s32.totalorder %s17444_s4, %s14138_s17  ;;  %p14144_p11 = scmp.lt.u32.totalorder %s14138_s17, %s17444_s4 }
  0xba   : > { %p14140_p9 = pnand %p14139_p8, %p13112_p7 }
  0xbc   : > { %p14141_p10 = pneg %p14140_p9 }
  0xbe   : > { %p14146_p12 = pnand %p14144_p11, %p14141_p10 }
  0xc0   : > { %14149 = shalt.err (!%p14146_p12)
}
  0xc1   : > { %s14150_s28 = scalar_lea.vmem %s1411_s11, 1024  ;;  %p14157_p1 = scmp.lt.s32.totalorder %s1411_s11, %s1411_s11 }
  0xc2   : > { %p14151_p6 = scmp.ne.s32.totalorder %s1411_s11, %s14150_s28  ;;  %p14158_p2 = scmp.lt.s32.totalorder %s14150_s28, %s14150_s28 }
  0xc4   : > { %p14152_p13 = pnand %p14151_p6, %p13112_p7  ;;  %p14159_p3 = por %p14158_p2, %p14157_p1 }
  0xc6   : > { %p14153_p0 = pneg %p14152_p13 }
  0xc8   : > { %p14160_p5 = pnand %p14159_p3, %p14153_p0 }
  0xca   : > { %14163 = shalt.err (!%p14160_p5)
}
  0xcb   : > { %s17365_s23 = smov 64   ;;  %s17367_s17 = smov 4  }
  0xcc   : > { %12975 = dma.hbm_to_vmem [thread:$0]  (%p13112_p7), %s17444_s4, 1024, %s1411_s11, [#allocation12], %s17365_s23, %s17365_s23, %s17367_s17  }
  0xcd   : > { %s14164_s10 = scalar_lea.hbm %s17440_s12, 16 }
  0xce   : > { %p14165_p8 = scmp.ne.s32.totalorder %s17440_s12, %s14164_s10  ;;  %p14170_p11 = scmp.lt.u32.totalorder %s14164_s10, %s17440_s12 }
  0xd0   : > { %p14166_p9 = pnand %p14165_p8, %p13112_p7 }
  0xd2   : > { %p14167_p10 = pneg %p14166_p9 }
  0xd4   : > { %p14172_p12 = pnand %p14170_p11, %p14167_p10 }
  0xd6   : > { %14175 = shalt.err (!%p14172_p12)
}
  0xd7   : > { %s14176_s26 = scalar_lea.vmem %s1442_s7, 16  ;;  %s14182_s28 = scalar_lea.vmem %s1442_s7, 32 }
  0xd8   : > { %p14177_p6 = scmp.ne.s32.totalorder %s1442_s7, %s14176_s26  ;;  %p14183_p1 = scmp.lt.s32.totalorder %s1442_s7, %s1442_s7 }
  0xd9   : > { %p14184_p2 = scmp.lt.s32.totalorder %s14182_s28, %s14176_s26 }
  0xda   : > { %p14178_p13 = pnand %p14177_p6, %p13112_p7 }
  0xdb   : > { %p14185_p3 = por %p14184_p2, %p14183_p1 }
  0xdc   : > { %p14179_p0 = pneg %p14178_p13 }
  0xde   : > { %p14186_p5 = pnand %p14185_p3, %p14179_p0 }
  0xe0   : > { %14189 = shalt.err (!%p14186_p5)
}
  0xe1   : > { %12979 = dma.hbm_to_vmem [thread:$0]  (%p13112_p7), %s17440_s12, 16, %s1442_s7, [#allocation15]  }
  0xe2   : > { %s15208_s11 = smov [#allocation17]   ;;  %s15209_s23 = smov [#allocation20]  }
  0xe3   : > { %s1465_s10 = sshll.u32 %s15208_s11, 4  ;;  %s1489_s17 = sshll.u32 %s15209_s23, 4  ;;  %s1466_s10 = int_to_ptr.vmem [resolvable:$true] %s1465_s10  ;;  %s1490_s17 = int_to_ptr.vmem [resolvable:$true] %s1489_s17 }
  0xe4   : > { %s14190_s3 = scalar_lea.hbm %s15377_s27, 3072 }
  0xe5   : > { %p14191_p8 = scmp.ne.s32.totalorder %s15377_s27, %s14190_s3  ;;  %p14196_p11 = scmp.lt.u32.totalorder %s14190_s3, %s15377_s27 }
  0xe7   : > { %p14192_p9 = pnand %p14191_p8, %p13112_p7 }
  0xe9   : > { %p14193_p10 = pneg %p14192_p9 }
  0xeb   : > { %p14198_p12 = pnand %p14196_p11, %p14193_p10 }
  0xed   : > { %14201 = shalt.err (!%p14198_p12)
}
  0xee   : > { %s14202_s26 = scalar_lea.vmem %s1466_s10, 3072  ;;  %p14209_p1 = scmp.lt.s32.totalorder %s1466_s10, %s1466_s10 }
  0xef   : > { %p14203_p6 = scmp.ne.s32.totalorder %s1466_s10, %s14202_s26  ;;  %p14210_p2 = scmp.lt.s32.totalorder %s14202_s26, %s14202_s26 }
  0xf1   : > { %p14204_p13 = pnand %p14203_p6, %p13112_p7  ;;  %p14211_p3 = por %p14210_p2, %p14209_p1 }
  0xf3   : > { %p14205_p0 = pneg %p14204_p13 }
  0xf5   : > { %p14212_p5 = pnand %p14211_p3, %p14205_p0 }
  0xf7   : > { %14215 = shalt.err (!%p14212_p5)
}
  0xf8   : > { %s17450_s7 = smov 4   ;;  %s17451_s23 = smov 64  }
  0xf9   : > { %12983 = dma.hbm_to_vmem [thread:$0]  (%p13112_p7), %s15377_s27, 3072, %s1466_s10, [#allocation18], %s17451_s23, %s17451_s23, %s17450_s7  }
  0xfa   : > { %s14216_s3 = scalar_lea.hbm %s15387_s24, 3072 }
  0xfb   : > { %p14217_p8 = scmp.ne.s32.totalorder %s15387_s24, %s14216_s3  ;;  %p14222_p11 = scmp.lt.u32.totalorder %s14216_s3, %s15387_s24 }
  0xfd   : > { %p14218_p9 = pnand %p14217_p8, %p13112_p7 }
  0xff   : > { %p14219_p10 = pneg %p14218_p9 }
 0x101   : > { %p14224_p12 = pnand %p14222_p11, %p14219_p10 }
 0x103   : > { %14227 = shalt.err (!%p14224_p12)
}
 0x104   : > { %s14228_s28 = scalar_lea.vmem %s1490_s17, 3072  ;;  %p14235_p1 = scmp.lt.s32.totalorder %s1490_s17, %s1490_s17 }
 0x105   : > { %p14229_p6 = scmp.ne.s32.totalorder %s1490_s17, %s14228_s28  ;;  %p14236_p2 = scmp.lt.s32.totalorder %s14228_s28, %s14228_s28 }
 0x107   : > { %p14230_p13 = pnand %p14229_p6, %p13112_p7  ;;  %p14237_p3 = por %p14236_p2, %p14235_p1 }
 0x109   : > { %p14231_p0 = pneg %p14230_p13 }
 0x10b   : > { %p14238_p5 = pnand %p14237_p3, %p14231_p0 }
 0x10d   : > { %14241 = shalt.err (!%p14238_p5)
}
 0x10e   : > { %12987 = dma.hbm_to_vmem [thread:$0]  (%p13112_p7), %s15387_s24, 3072, %s1490_s17, [#allocation21], %s17451_s23, %s17451_s23, %s17450_s7  }
 0x10f   : > { %s15210_s11 = smov [#allocation23]   ;;  %s15211_s26 = smov [#allocation26]  }
 0x110   : > { %s1514_s10 = sshll.u32 %s15210_s11, 4  ;;  %s1538_s3 = sshll.u32 %s15211_s26, 4  ;;  %s1515_s10 = int_to_ptr.vmem [resolvable:$true] %s1514_s10  ;;  %s1539_s3 = int_to_ptr.vmem [resolvable:$true] %s1538_s3 }
 0x111   : > { %s14242_s28 = scalar_lea.hbm %s17443_s8, 32 }
 0x112   : > { %p14243_p8 = scmp.ne.s32.totalorder %s17443_s8, %s14242_s28  ;;  %p14248_p11 = scmp.lt.u32.totalorder %s14242_s28, %s17443_s8 }
 0x114   : > { %p14244_p9 = pnand %p14243_p8, %p13112_p7 }
 0x116   : > { %p14245_p10 = pneg %p14244_p9 }
 0x118   : > { %p14250_p12 = pnand %p14248_p11, %p14245_p10 }
 0x11a   : > { %14253 = shalt.err (!%p14250_p12)
}
 0x11b   : > { %s14254_s4 = scalar_lea.vmem %s1515_s10, 32  ;;  %p14261_p1 = scmp.lt.s32.totalorder %s1515_s10, %s1515_s10 }
 0x11c   : > { %p14255_p6 = scmp.ne.s32.totalorder %s1515_s10, %s14254_s4  ;;  %p14262_p2 = scmp.lt.s32.totalorder %s14254_s4, %s14254_s4 }
 0x11e   : > { %p14256_p13 = pnand %p14255_p6, %p13112_p7  ;;  %p14263_p3 = por %p14262_p2, %p14261_p1 }
 0x120   : > { %p14257_p0 = pneg %p14256_p13 }
 0x122   : > { %p14264_p5 = pnand %p14263_p3, %p14257_p0 }
 0x124   : > { %14267 = shalt.err (!%p14264_p5)
}
 0x125   : > { %12991 = dma.hbm_to_vmem [thread:$0]  (%p13112_p7), %s17443_s8, 32, %s1515_s10, [#allocation24]  }
 0x126   : > { %s14268_s17 = scalar_lea.hbm %s15407_s25, 16 }
 0x127   : > { %p14269_p8 = scmp.ne.s32.totalorder %s15407_s25, %s14268_s17  ;;  %p14274_p11 = scmp.lt.u32.totalorder %s14268_s17, %s15407_s25 }
 0x129   : > { %p14270_p9 = pnand %p14269_p8, %p13112_p7 }
 0x12b   : > { %p14271_p10 = pneg %p14270_p9 }
 0x12d   : > { %p14276_p12 = pnand %p14274_p11, %p14271_p10 }
 0x12f   : > { %14279 = shalt.err (!%p14276_p12)
}
 0x130   : > { %s14280_s4 = scalar_lea.vmem %s1539_s3, 16  ;;  %s14286_s11 = scalar_lea.vmem %s1539_s3, 32 }
 0x131   : > { %p14281_p6 = scmp.ne.s32.totalorder %s1539_s3, %s14280_s4  ;;  %p14287_p1 = scmp.lt.s32.totalorder %s1539_s3, %s1539_s3 }
 0x132   : > { %p14288_p2 = scmp.lt.s32.totalorder %s14286_s11, %s14280_s4 }
 0x133   : > { %p14282_p13 = pnand %p14281_p6, %p13112_p7 }
 0x134   : > { %p14289_p3 = por %p14288_p2, %p14287_p1 }
 0x135   : > { %p14283_p0 = pneg %p14282_p13 }
 0x137   : > { %p14290_p5 = pnand %p14289_p3, %p14283_p0 }
 0x139   : > { %14293 = shalt.err (!%p14290_p5)
}
 0x13a   : > { %12995 = dma.hbm_to_vmem [thread:$0]  (%p13112_p7), %s15407_s25, 16, %s1539_s3, [#allocation27]  }
 0x13b   : > { %s15212_s10 = smov [#allocation29]   ;;  %s15213_s28 = smov [#allocation32]  }
 0x13c   : > { %s1561_s26 = sshll.u32 %s15212_s10, 4  ;;  %s1585_s17 = sshll.u32 %s15213_s28, 4  ;;  %s1562_s26 = int_to_ptr.vmem [resolvable:$true] %s1561_s26  ;;  %s1586_s17 = int_to_ptr.vmem [resolvable:$true] %s1585_s17 }
 0x13d   : > { %s14294_s8 = scalar_lea.hbm %s17442_s5, 3072 }
 0x13e   : > { %p14295_p8 = scmp.ne.s32.totalorder %s17442_s5, %s14294_s8  ;;  %p14300_p11 = scmp.lt.u32.totalorder %s14294_s8, %s17442_s5 }
 0x140   : > { %p14296_p9 = pnand %p14295_p8, %p13112_p7 }
 0x142   : > { %p14297_p10 = pneg %p14296_p9 }
 0x144   : > { %p14302_p12 = pnand %p14300_p11, %p14297_p10 }
 0x146   : > { %14305 = shalt.err (!%p14302_p12)
}
 0x147   : > { %s14306_s4 = scalar_lea.vmem %s1562_s26, 3072  ;;  %p14313_p1 = scmp.lt.s32.totalorder %s1562_s26, %s1562_s26 }
 0x148   : > { %p14307_p6 = scmp.ne.s32.totalorder %s1562_s26, %s14306_s4  ;;  %p14314_p2 = scmp.lt.s32.totalorder %s14306_s4, %s14306_s4 }
 0x14a   : > { %p14308_p13 = pnand %p14307_p6, %p13112_p7  ;;  %p14315_p3 = por %p14314_p2, %p14313_p1 }
 0x14c   : > { %p14309_p0 = pneg %p14308_p13 }
 0x14e   : > { %p14316_p5 = pnand %p14315_p3, %p14309_p0 }
 0x150   : > { %14319 = shalt.err (!%p14316_p5)
}
 0x151   : > { %12999 = dma.hbm_to_vmem [thread:$0]  (%p13112_p7), %s17442_s5, 3072, %s1562_s26, [#allocation30], %s17451_s23, %s17451_s23, %s17450_s7  }
 0x152   : > { %s14320_s8 = scalar_lea.hbm %s15427_s19, 3072 }
 0x153   : > { %p14321_p8 = scmp.ne.s32.totalorder %s15427_s19, %s14320_s8  ;;  %p14326_p11 = scmp.lt.u32.totalorder %s14320_s8, %s15427_s19 }
 0x155   : > { %p14322_p9 = pnand %p14321_p8, %p13112_p7 }
 0x157   : > { %p14323_p10 = pneg %p14322_p9 }
 0x159   : > { %p14328_p12 = pnand %p14326_p11, %p14323_p10 }
 0x15b   : > { %14331 = shalt.err (!%p14328_p12)
}
 0x15c   : > { %s14332_s3 = scalar_lea.vmem %s1586_s17, 3072  ;;  %p14339_p1 = scmp.lt.s32.totalorder %s1586_s17, %s1586_s17 }
 0x15d   : > { %p14333_p6 = scmp.ne.s32.totalorder %s1586_s17, %s14332_s3  ;;  %p14340_p2 = scmp.lt.s32.totalorder %s14332_s3, %s14332_s3 }
 0x15f   : > { %p14334_p13 = pnand %p14333_p6, %p13112_p7  ;;  %p14341_p3 = por %p14340_p2, %p14339_p1 }
 0x161   : > { %p14335_p0 = pneg %p14334_p13 }
 0x163   : > { %p14342_p5 = pnand %p14341_p3, %p14335_p0 }
 0x165   : > { %14345 = shalt.err (!%p14342_p5)
}
 0x166   : > { %13003 = dma.hbm_to_vmem [thread:$0]  (%p13112_p7), %s15427_s19, 3072, %s1586_s17, [#allocation33], %s17451_s23, %s17451_s23, %s17450_s7  }
 0x167   : > { %s15214_s11 = smov [#allocation35]   ;;  %s15215_s26 = smov [#allocation38]  }
 0x168   : > { %s1609_s10 = sshll.u32 %s15214_s11, 4  ;;  %s1633_s28 = sshll.u32 %s15215_s26, 4  ;;  %s1610_s10 = int_to_ptr.vmem [resolvable:$true] %s1609_s10  ;;  %s1634_s28 = int_to_ptr.vmem [resolvable:$true] %s1633_s28 }
 0x169   : > { %s14346_s4 = scalar_lea.hbm %s15437_s30, 3072 }
 0x16a   : > { %p14347_p8 = scmp.ne.s32.totalorder %s15437_s30, %s14346_s4  ;;  %p14352_p11 = scmp.lt.u32.totalorder %s14346_s4, %s15437_s30 }
 0x16c   : > { %p14348_p9 = pnand %p14347_p8, %p13112_p7 }
 0x16e   : > { %p14349_p10 = pneg %p14348_p9 }
 0x170   : > { %p14354_p12 = pnand %p14352_p11, %p14349_p10 }
 0x172   : > { %14357 = shalt.err (!%p14354_p12)
}
 0x173   : > { %s14358_s8 = scalar_lea.vmem %s1610_s10, 3072  ;;  %p14365_p1 = scmp.lt.s32.totalorder %s1610_s10, %s1610_s10 }
 0x174   : > { %p14359_p6 = scmp.ne.s32.totalorder %s1610_s10, %s14358_s8  ;;  %p14366_p2 = scmp.lt.s32.totalorder %s14358_s8, %s14358_s8 }
 0x176   : > { %p14360_p13 = pnand %p14359_p6, %p13112_p7  ;;  %p14367_p3 = por %p14366_p2, %p14365_p1 }
 0x178   : > { %p14361_p0 = pneg %p14360_p13 }
 0x17a   : > { %p14368_p5 = pnand %p14367_p3, %p14361_p0 }
 0x17c   : > { %14371 = shalt.err (!%p14368_p5)
}
 0x17d   : > { %13007 = dma.hbm_to_vmem [thread:$0]  (%p13112_p7), %s15437_s30, 3072, %s1610_s10, [#allocation36], %s17451_s23, %s17451_s23, %s17450_s7  }
 0x17e   : > { %s14372_s17 = scalar_lea.hbm %s15447_s20, 3072 }
 0x17f   : > { %p14373_p8 = scmp.ne.s32.totalorder %s15447_s20, %s14372_s17  ;;  %p14378_p11 = scmp.lt.u32.totalorder %s14372_s17, %s15447_s20 }
 0x181   : > { %p14374_p9 = pnand %p14373_p8, %p13112_p7 }
 0x183   : > { %p14375_p10 = pneg %p14374_p9 }
 0x185   : > { %p14380_p12 = pnand %p14378_p11, %p14375_p10 }
 0x187   : > { %14383 = shalt.err (!%p14380_p12)
}
 0x188   : > { %s14384_s3 = scalar_lea.vmem %s1634_s28, 3072  ;;  %p14391_p1 = scmp.lt.s32.totalorder %s1634_s28, %s1634_s28 }
 0x189   : > { %p14385_p6 = scmp.ne.s32.totalorder %s1634_s28, %s14384_s3  ;;  %p14392_p2 = scmp.lt.s32.totalorder %s14384_s3, %s14384_s3 }
 0x18b   : > { %p14386_p13 = pnand %p14385_p6, %p13112_p7  ;;  %p14393_p3 = por %p14392_p2, %p14391_p1 }
 0x18d   : > { %p14387_p0 = pneg %p14386_p13 }
 0x18f   : > { %p14394_p5 = pnand %p14393_p3, %p14387_p0 }
 0x191   : > { %14397 = shalt.err (!%p14394_p5)
}
 0x192   : > { %13011 = dma.hbm_to_vmem [thread:$0]  (%p13112_p7), %s15447_s20, 3072, %s1634_s28, [#allocation39], %s17451_s23, %s17451_s23, %s17450_s7  }
 0x193   : > { %s15216_s11 = smov [#allocation41]   ;;  %s15217_s26 = smov [#allocation44]  }
 0x194   : > { %s1658_s10 = sshll.u32 %s15216_s11, 4  ;;  %s1682_s4 = sshll.u32 %s15217_s26, 4  ;;  %s1659_s10 = int_to_ptr.vmem [resolvable:$true] %s1658_s10  ;;  %s1683_s4 = int_to_ptr.vmem [resolvable:$true] %s1682_s4 }
 0x195   : > { %s14398_s8 = scalar_lea.hbm %s17441_s6, 16 }
 0x196   : > { %p14399_p8 = scmp.ne.s32.totalorder %s17441_s6, %s14398_s8  ;;  %p14404_p11 = scmp.lt.u32.totalorder %s14398_s8, %s17441_s6 }
 0x198   : > { %p14400_p9 = pnand %p14399_p8, %p13112_p7 }
 0x19a   : > { %p14401_p10 = pneg %p14400_p9 }
 0x19c   : > { %p14406_p12 = pnand %p14404_p11, %p14401_p10 }
 0x19e   : > { %14409 = shalt.err (!%p14406_p12)
}
 0x19f   : > { %s14410_s17 = scalar_lea.vmem %s1659_s10, 16  ;;  %s14416_s28 = scalar_lea.vmem %s1659_s10, 32 }
 0x1a0   : > { %p14411_p6 = scmp.ne.s32.totalorder %s1659_s10, %s14410_s17  ;;  %p14417_p1 = scmp.lt.s32.totalorder %s1659_s10, %s1659_s10 }
 0x1a1   : > { %p14418_p2 = scmp.lt.s32.totalorder %s14416_s28, %s14410_s17 }
 0x1a2   : > { %p14412_p13 = pnand %p14411_p6, %p13112_p7 }
 0x1a3   : > { %p14419_p3 = por %p14418_p2, %p14417_p1 }
 0x1a4   : > { %p14413_p0 = pneg %p14412_p13 }
 0x1a6   : > { %p14420_p5 = pnand %p14419_p3, %p14413_p0 }
 0x1a8   : > { %14423 = shalt.err (!%p14420_p5)
}
 0x1a9   : > { %13015 = dma.hbm_to_vmem [thread:$0]  (%p13112_p7), %s17441_s6, 16, %s1659_s10, [#allocation42]  }
 0x1aa   : > { %s14424_s3 = scalar_lea.hbm %s17438_s14, 16 }
 0x1ab   : > { %p14425_p8 = scmp.ne.s32.totalorder %s17438_s14, %s14424_s3  ;;  %p14430_p11 = scmp.lt.u32.totalorder %s14424_s3, %s17438_s14 }
 0x1ad   : > { %p14426_p9 = pnand %p14425_p8, %p13112_p7 }
 0x1af   : > { %p14427_p10 = pneg %p14426_p9 }
 0x1b1   : > { %p14432_p12 = pnand %p14430_p11, %p14427_p10 }
 0x1b3   : > { %14435 = shalt.err (!%p14432_p12)
}
 0x1b4   : > { %s14436_s11 = scalar_lea.vmem %s1683_s4, 16  ;;  %s14442_s26 = scalar_lea.vmem %s1683_s4, 32 }
 0x1b5   : > { %p14437_p6 = scmp.ne.s32.totalorder %s1683_s4, %s14436_s11  ;;  %p14443_p1 = scmp.lt.s32.totalorder %s1683_s4, %s1683_s4 }
 0x1b6   : > { %p14444_p2 = scmp.lt.s32.totalorder %s14442_s26, %s14436_s11 }
 0x1b7   : > { %p14438_p13 = pnand %p14437_p6, %p13112_p7 }
 0x1b8   : > { %p14445_p3 = por %p14444_p2, %p14443_p1 }
 0x1b9   : > { %p14439_p0 = pneg %p14438_p13 }
 0x1bb   : > { %p14446_p5 = pnand %p14445_p3, %p14439_p0 }
 0x1bd   : > { %14449 = shalt.err (!%p14446_p5)
}
 0x1be   : > { %s17452_s10 = sld [smem:[#allocation117_spill]]  ;;  %s15218_s8 = smov [#allocation47]  }
 0x1bf   : > { %13019 = dma.hbm_to_vmem [thread:$0]  (%p13112_p7), %s17438_s14, 16, %s1683_s4, [#allocation45]  }
 0x1c0   : > { %s1709_s17 = sshll.u32 %s15218_s8, 4  ;;  %s15219_s28 = smov [#allocation50]   ;;  %s1710_s17 = int_to_ptr.vmem [resolvable:$true] %s1709_s17 }
 0x1c1   : > { %s1733_s3 = sshll.u32 %s15219_s28, 4  ;;  %s1734_s3 = int_to_ptr.vmem [resolvable:$true] %s1733_s3 }
 0x1c4   : > { %s14450_s5 = scalar_lea.hbm %s17452_s10, 16 }
 0x1c5   : > { %p14451_p8 = scmp.ne.s32.totalorder %s17452_s10, %s14450_s5  ;;  %p14456_p11 = scmp.lt.u32.totalorder %s14450_s5, %s17452_s10 }
 0x1c7   : > { %p14452_p9 = pnand %p14451_p8, %p13112_p7 }
 0x1c9   : > { %p14453_p10 = pneg %p14452_p9 }
 0x1cb   : > { %p14458_p12 = pnand %p14456_p11, %p14453_p10 }
 0x1cd   : > { %14461 = shalt.err (!%p14458_p12)
}
 0x1ce   : > { %s14462_s11 = scalar_lea.vmem %s1710_s17, 16  ;;  %s14468_s4 = scalar_lea.vmem %s1710_s17, 32 }
 0x1cf   : > { %p14463_p6 = scmp.ne.s32.totalorder %s1710_s17, %s14462_s11  ;;  %p14469_p1 = scmp.lt.s32.totalorder %s1710_s17, %s1710_s17 }
 0x1d0   : > { %p14470_p2 = scmp.lt.s32.totalorder %s14468_s4, %s14462_s11 }
 0x1d1   : > { %p14464_p13 = pnand %p14463_p6, %p13112_p7 }
 0x1d2   : > { %p14471_p3 = por %p14470_p2, %p14469_p1 }
 0x1d3   : > { %p14465_p0 = pneg %p14464_p13 }
 0x1d5   : > { %p14472_p5 = pnand %p14471_p3, %p14465_p0 }
 0x1d7   : > { %14475 = shalt.err (!%p14472_p5)
}
 0x1d8   : > { %s17453_s26 = sld [smem:[#allocation119_spill]] }
 0x1d9   : > { %13023 = dma.hbm_to_vmem [thread:$0]  (%p13112_p7), %s17452_s10, 16, %s1710_s17, [#allocation48]  }
 0x1de   : > { %s14476_s5 = scalar_lea.hbm %s17453_s26, 16 }
 0x1df   : > { %p14477_p8 = scmp.ne.s32.totalorder %s17453_s26, %s14476_s5  ;;  %p14482_p11 = scmp.lt.u32.totalorder %s14476_s5, %s17453_s26 }
 0x1e1   : > { %p14478_p9 = pnand %p14477_p8, %p13112_p7 }
 0x1e3   : > { %p14479_p10 = pneg %p14478_p9 }
 0x1e5   : > { %p14484_p12 = pnand %p14482_p11, %p14479_p10 }
 0x1e7   : > { %14487 = shalt.err (!%p14484_p12)
}
 0x1e8   : > { %s14488_s8 = scalar_lea.vmem %s1734_s3, 16  ;;  %s14494_s28 = scalar_lea.vmem %s1734_s3, 32 }
 0x1e9   : > { %p14489_p6 = scmp.ne.s32.totalorder %s1734_s3, %s14488_s8  ;;  %p14495_p1 = scmp.lt.s32.totalorder %s1734_s3, %s1734_s3 }
 0x1ea   : > { %p14496_p2 = scmp.lt.s32.totalorder %s14494_s28, %s14488_s8 }
 0x1eb   : > { %p14490_p13 = pnand %p14489_p6, %p13112_p7 }
 0x1ec   : > { %p14497_p3 = por %p14496_p2, %p14495_p1 }
 0x1ed   : > { %p14491_p0 = pneg %p14490_p13 }
 0x1ef   : > { %p14498_p5 = pnand %p14497_p3, %p14491_p0 }
 0x1f1   : > { %14501 = shalt.err (!%p14498_p5)
}
 0x1f2   : > { %s17454_s17 = sld [smem:[#allocation121_spill]]  ;;  %s15220_s11 = smov [#allocation53]  }
 0x1f3   : > { %13027 = dma.hbm_to_vmem [thread:$0]  (%p13112_p7), %s17453_s26, 16, %s1734_s3, [#allocation51]  }
 0x1f4   : > { %s1757_s4 = sshll.u32 %s15220_s11, 4  ;;  %s15221_s5 = smov [#allocation56]   ;;  %s1758_s4 = int_to_ptr.vmem [resolvable:$true] %s1757_s4 }
 0x1f5   : > { %s1781_s6 = sshll.u32 %s15221_s5, 4  ;;  %s1782_s6 = int_to_ptr.vmem [resolvable:$true] %s1781_s6 }
 0x1f8   : > { %s14502_s10 = scalar_lea.hbm %s17454_s17, 16 }
 0x1f9   : > { %p14503_p8 = scmp.ne.s32.totalorder %s17454_s17, %s14502_s10  ;;  %p14508_p11 = scmp.lt.u32.totalorder %s14502_s10, %s17454_s17 }
 0x1fb   : > { %p14504_p9 = pnand %p14503_p8, %p13112_p7 }
 0x1fd   : > { %p14505_p10 = pneg %p14504_p9 }
 0x1ff   : > { %p14510_p12 = pnand %p14508_p11, %p14505_p10 }
 0x201   : > { %14513 = shalt.err (!%p14510_p12)
}
 0x202   : > { %s14514_s8 = scalar_lea.vmem %s1758_s4, 16  ;;  %s14520_s3 = scalar_lea.vmem %s1758_s4, 32 }
 0x203   : > { %p14515_p6 = scmp.ne.s32.totalorder %s1758_s4, %s14514_s8  ;;  %p14521_p1 = scmp.lt.s32.totalorder %s1758_s4, %s1758_s4 }
 0x204   : > { %p14522_p2 = scmp.lt.s32.totalorder %s14520_s3, %s14514_s8 }
 0x205   : > { %p14516_p13 = pnand %p14515_p6, %p13112_p7 }
 0x206   : > { %p14523_p3 = por %p14522_p2, %p14521_p1 }
 0x207   : > { %p14517_p0 = pneg %p14516_p13 }
 0x209   : > { %p14524_p5 = pnand %p14523_p3, %p14517_p0 }
 0x20b   : > { %14527 = shalt.err (!%p14524_p5)
}
 0x20c   : > { %13031 = dma.hbm_to_vmem [thread:$0]  (%p13112_p7), %s17454_s17, 16, %s1758_s4, [#allocation54]  }
 0x20d   : > { %s14528_s10 = scalar_lea.hbm %s17439_s13, 16 }
 0x20e   : > { %p14529_p8 = scmp.ne.s32.totalorder %s17439_s13, %s14528_s10  ;;  %p14534_p11 = scmp.lt.u32.totalorder %s14528_s10, %s17439_s13 }
 0x210   : > { %p14530_p9 = pnand %p14529_p8, %p13112_p7 }
 0x212   : > { %p14531_p10 = pneg %p14530_p9 }
 0x214   : > { %p14536_p12 = pnand %p14534_p11, %p14531_p10 }
 0x216   : > { %14539 = shalt.err (!%p14536_p12)
}
 0x217   : > { %s14540_s28 = scalar_lea.vmem %s1782_s6, 16  ;;  %s14546_s11 = scalar_lea.vmem %s1782_s6, 32 }
 0x218   : > { %p14541_p6 = scmp.ne.s32.totalorder %s1782_s6, %s14540_s28  ;;  %p14547_p1 = scmp.lt.s32.totalorder %s1782_s6, %s1782_s6 }
 0x219   : > { %p14548_p2 = scmp.lt.s32.totalorder %s14546_s11, %s14540_s28 }
 0x21a   : > { %p14542_p13 = pnand %p14541_p6, %p13112_p7 }
 0x21b   : > { %p14549_p3 = por %p14548_p2, %p14547_p1 }
 0x21c   : > { %p14543_p0 = pneg %p14542_p13 }
 0x21e   : > { %p14550_p5 = pnand %p14549_p3, %p14543_p0 }
 0x220   : > { %14553 = shalt.err (!%p14550_p5)
}
 0x221   : > { %s17455_s4 = sld [smem:[#allocation79_spill]]  ;;  %s15222_s5 = smov [#allocation3]  }
 0x222   : > { %13035 = dma.hbm_to_vmem [thread:$0]  (%p13112_p7), %s17439_s13, 16, %s1782_s6, [#allocation57]  }
 0x223   : > { %s1320_s8 = sshll.u32 %s15222_s5, 4  ;;  %s15223_s3 = smov [#allocation7]   ;;  %s1321_s8 = int_to_ptr.vmem [resolvable:$true] %s1320_s8 }
 0x224   : > { %s1354_s10 = sshll.u32 %s15223_s3, 4  ;;  %s15773_s10 = int_to_ptr.vmem [resolvable:$true] %s1354_s10 }
 0x227   : > { %s14554_s12 = scalar_lea.hbm %s17455_s4, 1792 }
 0x228   : > { %p14555_p8 = scmp.ne.s32.totalorder %s17455_s4, %s14554_s12  ;;  %p14560_p11 = scmp.lt.u32.totalorder %s14554_s12, %s17455_s4 }
 0x22a   : > { %p14556_p9 = pnand %p14555_p8, %p13112_p7 }
 0x22c   : > { %p14557_p10 = pneg %p14556_p9 }
 0x22e   : > { %p14562_p12 = pnand %p14560_p11, %p14557_p10 }
 0x230   : > { %14565 = shalt.err (!%p14562_p12)
}
 0x231   : > { %s14566_s28 = scalar_lea.vmem %s1321_s8, 1792  ;;  %p14573_p1 = scmp.lt.s32.totalorder %s1321_s8, %s1321_s8 }
 0x232   : > { %p14567_p6 = scmp.ne.s32.totalorder %s1321_s8, %s14566_s28  ;;  %p14574_p2 = scmp.lt.s32.totalorder %s14566_s28, %s14566_s28 }
 0x234   : > { %p14568_p13 = pnand %p14567_p6, %p13112_p7  ;;  %p14575_p3 = por %p14574_p2, %p14573_p1 }
 0x236   : > { %p14569_p0 = pneg %p14568_p13 }
 0x238   : > { %p14576_p5 = pnand %p14575_p3, %p14569_p0 }
 0x23a   : > { %14579 = shalt.err (!%p14576_p5)
}
 0x23b   : > { %s17456_s6 = sld [smem:[#allocation84_spill]] }
 0x23c   : > { %12965 = dma.hbm_to_vmem [thread:$0]  (%p13112_p7), %s17455_s4, 1792, %s1321_s8, [#allocation4], %s17451_s23, %s17451_s23, %s17450_s7  }
 0x241   : > { %s14580_s12 = scalar_lea.hbm %s17456_s6, 32 }
 0x242   : > { %p14581_p8 = scmp.ne.s32.totalorder %s17456_s6, %s14580_s12  ;;  %p14586_p11 = scmp.lt.u32.totalorder %s14580_s12, %s17456_s6 }
 0x244   : > { %p14582_p9 = pnand %p14581_p8, %p13112_p7 }
 0x246   : > { %p14583_p10 = pneg %p14582_p9 }
 0x248   : > { %p14588_p12 = pnand %p14586_p11, %p14583_p10 }
 0x24a   : > { %14591 = shalt.err (!%p14588_p12)
}
 0x24b   : > { %s14592_s11 = scalar_lea.vmem %s15773_s10, 32  ;;  %p14599_p1 = scmp.lt.s32.totalorder %s15773_s10, %s15773_s10 }
 0x24c   : > { %p14593_p6 = scmp.ne.s32.totalorder %s15773_s10, %s14592_s11  ;;  %p14600_p2 = scmp.lt.s32.totalorder %s14592_s11, %s14592_s11 }
 0x24e   : > { %p14594_p13 = pnand %p14593_p6, %p13112_p7  ;;  %p14601_p3 = por %p14600_p2, %p14599_p1 }
 0x250   : > { %p14595_p0 = pneg %p14594_p13 }
 0x252   : > { %p14602_p5 = pnand %p14601_p3, %p14595_p0 }
 0x254   : > { %14605 = shalt.err (!%p14602_p5)
}
 0x255   : > { %s17457_s5 = sld [smem:[#allocation87_spill]]  ;;  %s15224_s8 = smov [#allocation10]  }
 0x256   : > { %12969 = dma.hbm_to_vmem [thread:$0]  (%p13112_p7), %s17456_s6, 32, %s15773_s10, [#allocation6]  }
 0x257   : > { %s1379_s3 = sshll.u32 %s15224_s8, 4  ;;  %s15225_s28 = smov [#allocation13]   ;;  %s1380_s3 = int_to_ptr.vmem [resolvable:$true] %s1379_s3 }
 0x258   : > { %s1424_s12 = sshll.u32 %s15225_s28, 4  ;;  %s15803_s12 = int_to_ptr.vmem [resolvable:$true] %s1424_s12 }
 0x25b   : > { %s14606_s11 = scalar_lea.hbm %s17457_s5, 16 }
 0x25c   : > { %p14607_p8 = scmp.ne.s32.totalorder %s17457_s5, %s14606_s11  ;;  %p14612_p11 = scmp.lt.u32.totalorder %s14606_s11, %s17457_s5 }
 0x25e   : > { %p14608_p9 = pnand %p14607_p8, %p13112_p7 }
 0x260   : > { %p14609_p10 = pneg %p14608_p9 }
 0x262   : > { %p14614_p12 = pnand %p14612_p11, %p14609_p10 }
 0x264   : > { %14617 = shalt.err (!%p14614_p12)
}
 0x265   : > { %s14618_s4 = scalar_lea.vmem %s1380_s3, 16  ;;  %s14624_s10 = scalar_lea.vmem %s1380_s3, 32 }
 0x266   : > { %p14619_p6 = scmp.ne.s32.totalorder %s1380_s3, %s14618_s4  ;;  %p14625_p1 = scmp.lt.s32.totalorder %s1380_s3, %s1380_s3 }
 0x267   : > { %p14626_p2 = scmp.lt.s32.totalorder %s14624_s10, %s14618_s4 }
 0x268   : > { %p14620_p13 = pnand %p14619_p6, %p13112_p7 }
 0x269   : > { %p14627_p3 = por %p14626_p2, %p14625_p1 }
 0x26a   : > { %p14621_p0 = pneg %p14620_p13 }
 0x26c   : > { %p14628_p5 = pnand %p14627_p3, %p14621_p0 }
 0x26e   : > { %14631 = shalt.err (!%p14628_p5)
}
 0x26f   : > { %s17458_s8 = sld [smem:[#allocation96_spill]] }
 0x270   : > { %12973 = dma.hbm_to_vmem [thread:$0]  (%p13112_p7), %s17457_s5, 16, %s1380_s3, [#allocation9]  }
 0x275   : > { %s14632_s28 = scalar_lea.hbm %s17458_s8, 16 }
 0x276   : > { %p14633_p8 = scmp.ne.s32.totalorder %s17458_s8, %s14632_s28  ;;  %p14638_p11 = scmp.lt.u32.totalorder %s14632_s28, %s17458_s8 }
 0x278   : > { %p14634_p9 = pnand %p14633_p8, %p13112_p7 }
 0x27a   : > { %p14635_p10 = pneg %p14634_p9 }
 0x27c   : > { %p14640_p12 = pnand %p14638_p11, %p14635_p10 }
 0x27e   : > { %14643 = shalt.err (!%p14640_p12)
}
 0x27f   : > { %s14644_s4 = scalar_lea.vmem %s15803_s12, 16  ;;  %s14650_s11 = scalar_lea.vmem %s15803_s12, 32 }
 0x280   : > { %p14645_p6 = scmp.ne.s32.totalorder %s15803_s12, %s14644_s4  ;;  %p14651_p1 = scmp.lt.s32.totalorder %s15803_s12, %s15803_s12 }
 0x281   : > { %p14652_p2 = scmp.lt.s32.totalorder %s14650_s11, %s14644_s4 }
 0x282   : > { %p14646_p13 = pnand %p14645_p6, %p13112_p7 }
 0x283   : > { %p14653_p3 = por %p14652_p2, %p14651_p1 }
 0x284   : > { %p14647_p0 = pneg %p14646_p13 }
 0x286   : > { %p14654_p5 = pnand %p14653_p3, %p14647_p0 }
 0x288   : > { %14657 = shalt.err (!%p14654_p5)
}
 0x289   : > { %s17459_s3 = sld [smem:[#allocation101_spill]]  ;;  %s15226_s10 = smov [#allocation16]  }
 0x28a   : > { %12977 = dma.hbm_to_vmem [thread:$0]  (%p13112_p7), %s17458_s8, 16, %s15803_s12, [#allocation12]  }
 0x28b   : > { %s1455_s28 = sshll.u32 %s15226_s10, 4  ;;  %s15227_s5 = smov [#allocation19]   ;;  %s1456_s28 = int_to_ptr.vmem [resolvable:$true] %s1455_s28 }
 0x28c   : > { %s1479_s6 = sshll.u32 %s15227_s5, 4  ;;  %s15831_s6 = int_to_ptr.vmem [resolvable:$true] %s1479_s6 }
 0x28f   : > { %s14658_s4 = scalar_lea.hbm %s17459_s3, 16 }
 0x290   : > { %p14659_p8 = scmp.ne.s32.totalorder %s17459_s3, %s14658_s4  ;;  %p14664_p11 = scmp.lt.u32.totalorder %s14658_s4, %s17459_s3 }
 0x292   : > { %p14660_p9 = pnand %p14659_p8, %p13112_p7 }
 0x294   : > { %p14661_p10 = pneg %p14660_p9 }
 0x296   : > { %p14666_p12 = pnand %p14664_p11, %p14661_p10 }
 0x298   : > { %14669 = shalt.err (!%p14666_p12)
}
 0x299   : > { %s14670_s11 = scalar_lea.vmem %s1456_s28, 16  ;;  %s14676_s12 = scalar_lea.vmem %s1456_s28, 32 }
 0x29a   : > { %p14671_p6 = scmp.ne.s32.totalorder %s1456_s28, %s14670_s11  ;;  %p14677_p1 = scmp.lt.s32.totalorder %s1456_s28, %s1456_s28 }
 0x29b   : > { %p14678_p2 = scmp.lt.s32.totalorder %s14676_s12, %s14670_s11 }
 0x29c   : > { %p14672_p13 = pnand %p14671_p6, %p13112_p7 }
 0x29d   : > { %p14679_p3 = por %p14678_p2, %p14677_p1 }
 0x29e   : > { %p14673_p0 = pneg %p14672_p13 }
 0x2a0   : > { %p14680_p5 = pnand %p14679_p3, %p14673_p0 }
 0x2a2   : > { %14683 = shalt.err (!%p14680_p5)
}
 0x2a3   : > { %s17460_s5 = sld [smem:[#allocation102_spill]] }
 0x2a4   : > { %12981 = dma.hbm_to_vmem [thread:$0]  (%p13112_p7), %s17459_s3, 16, %s1456_s28, [#allocation15]  }
 0x2a9   : > { %s14684_s10 = scalar_lea.hbm %s17460_s5, 16 }
 0x2aa   : > { %p14685_p8 = scmp.ne.s32.totalorder %s17460_s5, %s14684_s10  ;;  %p14690_p11 = scmp.lt.u32.totalorder %s14684_s10, %s17460_s5 }
 0x2ac   : > { %p14686_p9 = pnand %p14685_p8, %p13112_p7 }
 0x2ae   : > { %p14687_p10 = pneg %p14686_p9 }
 0x2b0   : > { %p14692_p12 = pnand %p14690_p11, %p14687_p10 }
 0x2b2   : > { %14695 = shalt.err (!%p14692_p12)
}
 0x2b3   : > { %s14696_s4 = scalar_lea.vmem %s15831_s6, 16  ;;  %s14702_s11 = scalar_lea.vmem %s15831_s6, 32 }
 0x2b4   : > { %p14697_p6 = scmp.ne.s32.totalorder %s15831_s6, %s14696_s4  ;;  %p14703_p1 = scmp.lt.s32.totalorder %s15831_s6, %s15831_s6 }
 0x2b5   : > { %p14704_p2 = scmp.lt.s32.totalorder %s14702_s11, %s14696_s4 }
 0x2b6   : > { %p14698_p13 = pnand %p14697_p6, %p13112_p7 }
 0x2b7   : > { %p14705_p3 = por %p14704_p2, %p14703_p1 }
 0x2b8   : > { %p14699_p0 = pneg %p14698_p13 }
 0x2ba   : > { %p14706_p5 = pnand %p14705_p3, %p14699_p0 }
 0x2bc   : > { %14709 = shalt.err (!%p14706_p5)
}
 0x2bd   : > { %s17461_s28 = sld [smem:[#allocation103_spill]]  ;;  %s15228_s12 = smov [#allocation22]  }
 0x2be   : > { %12985 = dma.hbm_to_vmem [thread:$0]  (%p13112_p7), %s17460_s5, 16, %s15831_s6, [#allocation18]  }
 0x2bf   : > { %s1503_s10 = sshll.u32 %s15228_s12, 4  ;;  %s15229_s3 = smov [#allocation25]   ;;  %s1504_s10 = int_to_ptr.vmem [resolvable:$true] %s1503_s10 }
 0x2c0   : > { %s1524_s8 = sshll.u32 %s15229_s3, 4  ;;  %s15859_s8 = int_to_ptr.vmem [resolvable:$true] %s1524_s8 }
 0x2c3   : > { %s14710_s4 = scalar_lea.hbm %s17461_s28, 16 }
 0x2c4   : > { %p14711_p8 = scmp.ne.s32.totalorder %s17461_s28, %s14710_s4  ;;  %p14716_p11 = scmp.lt.u32.totalorder %s14710_s4, %s17461_s28 }
 0x2c6   : > { %p14712_p9 = pnand %p14711_p8, %p13112_p7 }
 0x2c8   : > { %p14713_p10 = pneg %p14712_p9 }
 0x2ca   : > { %p14718_p12 = pnand %p14716_p11, %p14713_p10 }
 0x2cc   : > { %14721 = shalt.err (!%p14718_p12)
}
 0x2cd   : > { %s14722_s11 = scalar_lea.vmem %s1504_s10, 16  ;;  %s14728_s6 = scalar_lea.vmem %s1504_s10, 32 }
 0x2ce   : > { %p14723_p6 = scmp.ne.s32.totalorder %s1504_s10, %s14722_s11  ;;  %p14729_p1 = scmp.lt.s32.totalorder %s1504_s10, %s1504_s10 }
 0x2cf   : > { %p14730_p2 = scmp.lt.s32.totalorder %s14728_s6, %s14722_s11 }
 0x2d0   : > { %p14724_p13 = pnand %p14723_p6, %p13112_p7 }
 0x2d1   : > { %p14731_p3 = por %p14730_p2, %p14729_p1 }
 0x2d2   : > { %p14725_p0 = pneg %p14724_p13 }
 0x2d4   : > { %p14732_p5 = pnand %p14731_p3, %p14725_p0 }
 0x2d6   : > { %14735 = shalt.err (!%p14732_p5)
}
 0x2d7   : > { %s17462_s3 = sld [smem:[#allocation105_spill]] }
 0x2d8   : > { %12989 = dma.hbm_to_vmem [thread:$0]  (%p13112_p7), %s17461_s28, 16, %s1504_s10, [#allocation21]  }
 0x2dd   : > { %s14736_s12 = scalar_lea.hbm %s17462_s3, 1024 }
 0x2de   : > { %p14737_p8 = scmp.ne.s32.totalorder %s17462_s3, %s14736_s12  ;;  %p14742_p11 = scmp.lt.u32.totalorder %s14736_s12, %s17462_s3 }
 0x2e0   : > { %p14738_p9 = pnand %p14737_p8, %p13112_p7 }
 0x2e2   : > { %p14739_p10 = pneg %p14738_p9 }
 0x2e4   : > { %p14744_p12 = pnand %p14742_p11, %p14739_p10 }
 0x2e6   : > { %14747 = shalt.err (!%p14744_p12)
}
 0x2e7   : > { %s14748_s4 = scalar_lea.vmem %s15859_s8, 1024  ;;  %p14755_p1 = scmp.lt.s32.totalorder %s15859_s8, %s15859_s8 }
 0x2e8   : > { %p14749_p6 = scmp.ne.s32.totalorder %s15859_s8, %s14748_s4  ;;  %p14756_p2 = scmp.lt.s32.totalorder %s14748_s4, %s14748_s4 }
 0x2ea   : > { %p14750_p13 = pnand %p14749_p6, %p13112_p7  ;;  %p14757_p3 = por %p14756_p2, %p14755_p1 }
 0x2ec   : > { %p14751_p0 = pneg %p14750_p13 }
 0x2ee   : > { %p14758_p5 = pnand %p14757_p3, %p14751_p0 }
 0x2f0   : > { %14761 = shalt.err (!%p14758_p5)
}
 0x2f1   : > { %s17463_s10 = sld [smem:[#allocation106_spill]]  ;;  %s15230_s11 = smov [#allocation28]  }
 0x2f2   : > { %12993 = dma.hbm_to_vmem [thread:$0]  (%p13112_p7), %s17462_s3, 1024, %s15859_s8, [#allocation24], %s17451_s23, %s17451_s23, %s17450_s7  }
 0x2f3   : > { %s1548_s6 = sshll.u32 %s15230_s11, 4  ;;  %s1549_s6 = int_to_ptr.vmem [resolvable:$true] %s1548_s6 }
 0x2f7   : > { %s14762_s12 = scalar_lea.hbm %s17463_s10, 96 }
 0x2f8   : > { %p14763_p8 = scmp.ne.s32.totalorder %s17463_s10, %s14762_s12  ;;  %p14768_p11 = scmp.lt.u32.totalorder %s14762_s12, %s17463_s10 }
 0x2fa   : > { %p14764_p9 = pnand %p14763_p8, %p13112_p7 }
 0x2fc   : > { %p14765_p10 = pneg %p14764_p9 }
 0x2fe   : > { %p14770_p12 = pnand %p14768_p11, %p14765_p10 }
 0x300   : > { %14773 = shalt.err (!%p14770_p12)
}
 0x301   : > { %s14774_s4 = scalar_lea.vmem %s1549_s6, 96  ;;  %p14781_p1 = scmp.lt.s32.totalorder %s1549_s6, %s1549_s6 }
 0x302   : > { %p14775_p6 = scmp.ne.s32.totalorder %s1549_s6, %s14774_s4  ;;  %p14782_p2 = scmp.lt.s32.totalorder %s14774_s4, %s14774_s4 }
 0x304   : > { %p14776_p13 = pnand %p14775_p6, %p13112_p7  ;;  %p14783_p3 = por %p14782_p2, %p14781_p1 }
 0x306   : > { %p14777_p0 = pneg %p14776_p13 }
 0x308   : > { %p14784_p5 = pnand %p14783_p3, %p14777_p0 }
 0x30a   : > { %14787 = shalt.err (!%p14784_p5)
}
 0x30b   : > { %s15231_s8 = smov 32   ;;  %s17464_s11 = sld [smem:[#allocation108_spill]] }
 0x30c   : > { %s15232_s12 = smov 2   ;;  %s15233_s3 = smov [#allocation31]  }
 0x30d   : > { %12997 = dma.hbm_to_vmem [thread:$0]  (%p13112_p7), %s17463_s10, 96, %s1549_s6, [#allocation27], %s15231_s8, %s15231_s8, %s15232_s12  }
 0x30e   : > { %s1575_s5 = sshll.u32 %s15233_s3, 4  ;;  %s15234_s13 = smov [#allocation34]   ;;  %s1576_s5 = int_to_ptr.vmem [resolvable:$true] %s1575_s5 }
 0x30f   : > { %s1599_s14 = sshll.u32 %s15234_s13, 4  ;;  %s1600_s14 = int_to_ptr.vmem [resolvable:$true] %s1599_s14 }
 0x311   : > { %s14788_s17 = scalar_lea.hbm %s17464_s11, 16 }
 0x312   : > { %p14789_p8 = scmp.ne.s32.totalorder %s17464_s11, %s14788_s17  ;;  %p14794_p11 = scmp.lt.u32.totalorder %s14788_s17, %s17464_s11 }
 0x314   : > { %p14790_p9 = pnand %p14789_p8, %p13112_p7 }
 0x316   : > { %p14791_p10 = pneg %p14790_p9 }
 0x318   : > { %p14796_p12 = pnand %p14794_p11, %p14791_p10 }
 0x31a   : > { %14799 = shalt.err (!%p14796_p12)
}
 0x31b   : > { %s14800_s4 = scalar_lea.vmem %s1576_s5, 16  ;;  %s14806_s6 = scalar_lea.vmem %s1576_s5, 32 }
 0x31c   : > { %p14801_p6 = scmp.ne.s32.totalorder %s1576_s5, %s14800_s4  ;;  %p14807_p1 = scmp.lt.s32.totalorder %s1576_s5, %s1576_s5 }
 0x31d   : > { %p14808_p2 = scmp.lt.s32.totalorder %s14806_s6, %s14800_s4 }
 0x31e   : > { %p14802_p13 = pnand %p14801_p6, %p13112_p7 }
 0x31f   : > { %p14809_p3 = por %p14808_p2, %p14807_p1 }
 0x320   : > { %p14803_p0 = pneg %p14802_p13 }
 0x322   : > { %p14810_p5 = pnand %p14809_p3, %p14803_p0 }
 0x324   : > { %14813 = shalt.err (!%p14810_p5)
}
 0x325   : > { %s17465_s13 = sld [smem:[#allocation109_spill]] }
 0x326   : > { %13001 = dma.hbm_to_vmem [thread:$0]  (%p13112_p7), %s17464_s11, 16, %s1576_s5, [#allocation30]  }
 0x32b   : > { %s14814_s17 = scalar_lea.hbm %s17465_s13, 16 }
 0x32c   : > { %p14815_p8 = scmp.ne.s32.totalorder %s17465_s13, %s14814_s17  ;;  %p14820_p11 = scmp.lt.u32.totalorder %s14814_s17, %s17465_s13 }
 0x32e   : > { %p14816_p9 = pnand %p14815_p8, %p13112_p7 }
 0x330   : > { %p14817_p10 = pneg %p14816_p9 }
 0x332   : > { %p14822_p12 = pnand %p14820_p11, %p14817_p10 }
 0x334   : > { %14825 = shalt.err (!%p14822_p12)
}
 0x335   : > { %s14826_s3 = scalar_lea.vmem %s1600_s14, 16  ;;  %s14832_s8 = scalar_lea.vmem %s1600_s14, 32 }
 0x336   : > { %p14827_p6 = scmp.ne.s32.totalorder %s1600_s14, %s14826_s3  ;;  %p14833_p1 = scmp.lt.s32.totalorder %s1600_s14, %s1600_s14 }
 0x337   : > { %p14834_p2 = scmp.lt.s32.totalorder %s14832_s8, %s14826_s3 }
 0x338   : > { %p14828_p13 = pnand %p14827_p6, %p13112_p7 }
 0x339   : > { %p14835_p3 = por %p14834_p2, %p14833_p1 }
 0x33a   : > { %p14829_p0 = pneg %p14828_p13 }
 0x33c   : > { %p14836_p5 = pnand %p14835_p3, %p14829_p0 }
 0x33e   : > { %14839 = shalt.err (!%p14836_p5)
}
 0x33f   : > { %s17466_s5 = sld [smem:[#allocation110_spill]]  ;;  %s15235_s12 = smov [#allocation37]  }
 0x340   : > { %13005 = dma.hbm_to_vmem [thread:$0]  (%p13112_p7), %s17465_s13, 16, %s1600_s14, [#allocation33]  }
 0x341   : > { %s1623_s4 = sshll.u32 %s15235_s12, 4  ;;  %s15236_s6 = smov [#allocation40]   ;;  %s1624_s4 = int_to_ptr.vmem [resolvable:$true] %s1623_s4 }
 0x342   : > { %s1647_s17 = sshll.u32 %s15236_s6, 4  ;;  %s1648_s17 = int_to_ptr.vmem [resolvable:$true] %s1647_s17 }
 0x345   : > { %s14840_s10 = scalar_lea.hbm %s17466_s5, 16 }
 0x346   : > { %p14841_p8 = scmp.ne.s32.totalorder %s17466_s5, %s14840_s10  ;;  %p14846_p11 = scmp.lt.u32.totalorder %s14840_s10, %s17466_s5 }
 0x348   : > { %p14842_p9 = pnand %p14841_p8, %p13112_p7 }
 0x34a   : > { %p14843_p10 = pneg %p14842_p9 }
 0x34c   : > { %p14848_p12 = pnand %p14846_p11, %p14843_p10 }
 0x34e   : > { %14851 = shalt.err (!%p14848_p12)
}
 0x34f   : > { %s14852_s3 = scalar_lea.vmem %s1624_s4, 16  ;;  %s14858_s14 = scalar_lea.vmem %s1624_s4, 32 }
 0x350   : > { %p14853_p6 = scmp.ne.s32.totalorder %s1624_s4, %s14852_s3  ;;  %p14859_p1 = scmp.lt.s32.totalorder %s1624_s4, %s1624_s4 }
 0x351   : > { %p14860_p2 = scmp.lt.s32.totalorder %s14858_s14, %s14852_s3 }
 0x352   : > { %p14854_p13 = pnand %p14853_p6, %p13112_p7 }
 0x353   : > { %p14861_p3 = por %p14860_p2, %p14859_p1 }
 0x354   : > { %p14855_p0 = pneg %p14854_p13 }
 0x356   : > { %p14862_p5 = pnand %p14861_p3, %p14855_p0 }
 0x358   : > { %14865 = shalt.err (!%p14862_p5)
}
 0x359   : > { %s17467_s8 = sld [smem:[#allocation111_spill]] }
 0x35a   : > { %13009 = dma.hbm_to_vmem [thread:$0]  (%p13112_p7), %s17466_s5, 16, %s1624_s4, [#allocation36]  }
 0x35f   : > { %s14866_s10 = scalar_lea.hbm %s17467_s8, 16 }
 0x360   : > { %p14867_p8 = scmp.ne.s32.totalorder %s17467_s8, %s14866_s10  ;;  %p14872_p11 = scmp.lt.u32.totalorder %s14866_s10, %s17467_s8 }
 0x362   : > { %p14868_p9 = pnand %p14867_p8, %p13112_p7 }
 0x364   : > { %p14869_p10 = pneg %p14868_p9 }
 0x366   : > { %p14874_p12 = pnand %p14872_p11, %p14869_p10 }
 0x368   : > { %14877 = shalt.err (!%p14874_p12)
}
 0x369   : > { %s14878_s12 = scalar_lea.vmem %s1648_s17, 16  ;;  %s14884_s6 = scalar_lea.vmem %s1648_s17, 32 }
 0x36a   : > { %p14879_p6 = scmp.ne.s32.totalorder %s1648_s17, %s14878_s12  ;;  %p14885_p1 = scmp.lt.s32.totalorder %s1648_s17, %s1648_s17 }
 0x36b   : > { %p14886_p2 = scmp.lt.s32.totalorder %s14884_s6, %s14878_s12 }
 0x36c   : > { %p14880_p13 = pnand %p14879_p6, %p13112_p7 }
 0x36d   : > { %p14887_p3 = por %p14886_p2, %p14885_p1 }
 0x36e   : > { %p14881_p0 = pneg %p14880_p13 }
 0x370   : > { %p14888_p5 = pnand %p14887_p3, %p14881_p0 }
 0x372   : > { %14891 = shalt.err (!%p14888_p5)
}
 0x373   : > { %s17468_s4 = sld [smem:[#allocation113_spill]]  ;;  %s15237_s3 = smov [#allocation43]  }
 0x374   : > { %13013 = dma.hbm_to_vmem [thread:$0]  (%p13112_p7), %s17467_s8, 16, %s1648_s17, [#allocation39]  }
 0x375   : > { %s1668_s14 = sshll.u32 %s15237_s3, 4  ;;  %s15238_s10 = smov [#allocation46]   ;;  %s1669_s14 = int_to_ptr.vmem [resolvable:$true] %s1668_s14 }
 0x376   : > { %s1695_s5 = sshll.u32 %s15238_s10, 4  ;;  %s1696_s5 = int_to_ptr.vmem [resolvable:$true] %s1695_s5 }
 0x379   : > { %s14892_s11 = scalar_lea.hbm %s17468_s4, 1024 }
 0x37a   : > { %p14893_p8 = scmp.ne.s32.totalorder %s17468_s4, %s14892_s11  ;;  %p14898_p11 = scmp.lt.u32.totalorder %s14892_s11, %s17468_s4 }
 0x37c   : > { %p14894_p9 = pnand %p14893_p8, %p13112_p7 }
 0x37e   : > { %p14895_p10 = pneg %p14894_p9 }
 0x380   : > { %p14900_p12 = pnand %p14898_p11, %p14895_p10 }
 0x382   : > { %14903 = shalt.err (!%p14900_p12)
}
 0x383   : > { %s14904_s12 = scalar_lea.vmem %s1669_s14, 1024  ;;  %p14911_p1 = scmp.lt.s32.totalorder %s1669_s14, %s1669_s14 }
 0x384   : > { %p14905_p6 = scmp.ne.s32.totalorder %s1669_s14, %s14904_s12  ;;  %p14912_p2 = scmp.lt.s32.totalorder %s14904_s12, %s14904_s12 }
 0x386   : > { %p14906_p13 = pnand %p14905_p6, %p13112_p7  ;;  %p14913_p3 = por %p14912_p2, %p14911_p1 }
 0x388   : > { %p14907_p0 = pneg %p14906_p13 }
 0x38a   : > { %p14914_p5 = pnand %p14913_p3, %p14907_p0 }
 0x38c   : > { %14917 = shalt.err (!%p14914_p5)
}
 0x38d   : > { %s17469_s11 = sld [smem:[#allocation116_spill]] }
 0x38e   : > { %13017 = dma.hbm_to_vmem [thread:$0]  (%p13112_p7), %s17468_s4, 1024, %s1669_s14, [#allocation42], %s17451_s23, %s17451_s23, %s17450_s7  }
 0x393   : > { %s14918_s17 = scalar_lea.hbm %s17469_s11, 3072 }
 0x394   : > { %p14919_p8 = scmp.ne.s32.totalorder %s17469_s11, %s14918_s17  ;;  %p14924_p11 = scmp.lt.u32.totalorder %s14918_s17, %s17469_s11 }
 0x396   : > { %p14920_p9 = pnand %p14919_p8, %p13112_p7 }
 0x398   : > { %p14921_p10 = pneg %p14920_p9 }
 0x39a   : > { %p14926_p12 = pnand %p14924_p11, %p14921_p10 }
 0x39c   : > { %14929 = shalt.err (!%p14926_p12)
}
 0x39d   : > { %s14930_s6 = scalar_lea.vmem %s1696_s5, 3072  ;;  %p14937_p1 = scmp.lt.s32.totalorder %s1696_s5, %s1696_s5 }
 0x39e   : > { %p14931_p6 = scmp.ne.s32.totalorder %s1696_s5, %s14930_s6  ;;  %p14938_p2 = scmp.lt.s32.totalorder %s14930_s6, %s14930_s6 }
 0x3a0   : > { %p14932_p13 = pnand %p14931_p6, %p13112_p7  ;;  %p14939_p3 = por %p14938_p2, %p14937_p1 }
 0x3a2   : > { %p14933_p0 = pneg %p14932_p13 }
 0x3a4   : > { %p14940_p5 = pnand %p14939_p3, %p14933_p0 }
 0x3a6   : > { %14943 = shalt.err (!%p14940_p5)
}
 0x3a7   : > { %s17470_s3 = sld [smem:[#allocation118_spill]]  ;;  %s15239_s14 = smov [#allocation49]  }
 0x3a8   : > { %13021 = dma.hbm_to_vmem [thread:$0]  (%p13112_p7), %s17469_s11, 3072, %s1696_s5, [#allocation45], %s17451_s23, %s17451_s23, %s17450_s7  }
 0x3a9   : > { %s1719_s10 = sshll.u32 %s15239_s14, 4  ;;  %s15240_s12 = smov [#allocation52]   ;;  %s1720_s10 = int_to_ptr.vmem [resolvable:$true] %s1719_s10 }
 0x3aa   : > { %s1743_s17 = sshll.u32 %s15240_s12, 4  ;;  %s1744_s17 = int_to_ptr.vmem [resolvable:$true] %s1743_s17 }
 0x3ad   : > { %s14944_s6 = scalar_lea.hbm %s17470_s3, 3072 }
 0x3ae   : > { %p14945_p8 = scmp.ne.s32.totalorder %s17470_s3, %s14944_s6  ;;  %p14950_p11 = scmp.lt.u32.totalorder %s14944_s6, %s17470_s3 }
 0x3b0   : > { %p14946_p9 = pnand %p14945_p8, %p13112_p7 }
 0x3b2   : > { %p14947_p10 = pneg %p14946_p9 }
 0x3b4   : > { %p14952_p12 = pnand %p14950_p11, %p14947_p10 }
 0x3b6   : > { %14955 = shalt.err (!%p14952_p12)
}
 0x3b7   : > { %s14956_s4 = scalar_lea.vmem %s1720_s10, 3072  ;;  %p14963_p1 = scmp.lt.s32.totalorder %s1720_s10, %s1720_s10 }
 0x3b8   : > { %p14957_p6 = scmp.ne.s32.totalorder %s1720_s10, %s14956_s4  ;;  %p14964_p2 = scmp.lt.s32.totalorder %s14956_s4, %s14956_s4 }
 0x3ba   : > { %p14958_p13 = pnand %p14957_p6, %p13112_p7  ;;  %p14965_p3 = por %p14964_p2, %p14963_p1 }
 0x3bc   : > { %p14959_p0 = pneg %p14958_p13 }
 0x3be   : > { %p14966_p5 = pnand %p14965_p3, %p14959_p0 }
 0x3c0   : > { %14969 = shalt.err (!%p14966_p5)
}
 0x3c1   : > { %s17471_s5 = sld [smem:[#allocation120_spill]] }
 0x3c2   : > { %13025 = dma.hbm_to_vmem [thread:$0]  (%p13112_p7), %s17470_s3, 3072, %s1720_s10, [#allocation48], %s17451_s23, %s17451_s23, %s17450_s7  }
 0x3c7   : > { %s14970_s14 = scalar_lea.hbm %s17471_s5, 3072 }
 0x3c8   : > { %p14971_p8 = scmp.ne.s32.totalorder %s17471_s5, %s14970_s14  ;;  %p14976_p11 = scmp.lt.u32.totalorder %s14970_s14, %s17471_s5 }
 0x3ca   : > { %p14972_p9 = pnand %p14971_p8, %p13112_p7 }
 0x3cc   : > { %p14973_p10 = pneg %p14972_p9 }
 0x3ce   : > { %p14978_p12 = pnand %p14976_p11, %p14973_p10 }
 0x3d0   : > { %14981 = shalt.err (!%p14978_p12)
}
 0x3d1   : > { %s14982_s4 = scalar_lea.vmem %s1744_s17, 3072  ;;  %p14989_p1 = scmp.lt.s32.totalorder %s1744_s17, %s1744_s17 }
 0x3d2   : > { %p14983_p6 = scmp.ne.s32.totalorder %s1744_s17, %s14982_s4  ;;  %p14990_p2 = scmp.lt.s32.totalorder %s14982_s4, %s14982_s4 }
 0x3d4   : > { %p14984_p13 = pnand %p14983_p6, %p13112_p7  ;;  %p14991_p3 = por %p14990_p2, %p14989_p1 }
 0x3d6   : > { %p14985_p0 = pneg %p14984_p13 }
 0x3d8   : > { %p14992_p5 = pnand %p14991_p3, %p14985_p0 }
 0x3da   : > { %14995 = shalt.err (!%p14992_p5)
}
 0x3db   : > { %s17472_s10 = sld [smem:[#allocation122_spill]]  ;;  %s15241_s12 = smov [#allocation55]  }
 0x3dc   : > { %13029 = dma.hbm_to_vmem [thread:$0]  (%p13112_p7), %s17471_s5, 3072, %s1744_s17, [#allocation51], %s17451_s23, %s17451_s23, %s17450_s7  }
 0x3dd   : > { %s1767_s6 = sshll.u32 %s15241_s12, 4  ;;  %s15242_s14 = smov [#allocation58]   ;;  %s1768_s6 = int_to_ptr.vmem [resolvable:$true] %s1767_s6 }
 0x3de   : > { %s1795_s3 = sshll.u32 %s15242_s14, 4  ;;  %s1796_s3 = int_to_ptr.vmem [resolvable:$true] %s1795_s3 }
 0x3e1   : > { %s14996_s4 = scalar_lea.hbm %s17472_s10, 3072 }
 0x3e2   : > { %p14997_p8 = scmp.ne.s32.totalorder %s17472_s10, %s14996_s4  ;;  %p15002_p11 = scmp.lt.u32.totalorder %s14996_s4, %s17472_s10 }
 0x3e4   : > { %p14998_p9 = pnand %p14997_p8, %p13112_p7 }
 0x3e6   : > { %p14999_p10 = pneg %p14998_p9 }
 0x3e8   : > { %p15004_p12 = pnand %p15002_p11, %p14999_p10 }
 0x3ea   : > { %15007 = shalt.err (!%p15004_p12)
}
 0x3eb   : > { %s15008_s8 = scalar_lea.vmem %s1768_s6, 3072  ;;  %p15015_p1 = scmp.lt.s32.totalorder %s1768_s6, %s1768_s6 }
 0x3ec   : > { %p15009_p6 = scmp.ne.s32.totalorder %s1768_s6, %s15008_s8  ;;  %p15016_p2 = scmp.lt.s32.totalorder %s15008_s8, %s15008_s8 }
 0x3ee   : > { %p15010_p13 = pnand %p15009_p6, %p13112_p7  ;;  %p15017_p3 = por %p15016_p2, %p15015_p1 }
 0x3f0   : > { %p15011_p0 = pneg %p15010_p13 }
 0x3f2   : > { %p15018_p5 = pnand %p15017_p3, %p15011_p0 }
 0x3f4   : > { %15021 = shalt.err (!%p15018_p5)
}
 0x3f5   : > { %13033 = dma.hbm_to_vmem [thread:$0]  (%p13112_p7), %s17472_s10, 3072, %s1768_s6, [#allocation54], %s17451_s23, %s17451_s23, %s17450_s7  }
 0x3f6   : > { %s15022_s17 = scalar_lea.hbm %s15522_s21, 16 }
 0x3f7   : > { %p15023_p8 = scmp.ne.s32.totalorder %s15522_s21, %s15022_s17  ;;  %p15028_p11 = scmp.lt.u32.totalorder %s15022_s17, %s15522_s21 }
 0x3f9   : > { %p15024_p9 = pnand %p15023_p8, %p13112_p7 }
 0x3fb   : > { %p15025_p10 = pneg %p15024_p9 }
 0x3fd   : > { %p15030_p12 = pnand %p15028_p11, %p15025_p10 }
 0x3ff   : > { %15033 = shalt.err (!%p15030_p12)
}
 0x400   : > { %s15034_s8 = scalar_lea.vmem %s1796_s3, 16  ;;  %s15040_s12 = scalar_lea.vmem %s1796_s3, 32 }
 0x401   : > { %p15035_p6 = scmp.ne.s32.totalorder %s1796_s3, %s15034_s8  ;;  %p15041_p1 = scmp.lt.s32.totalorder %s1796_s3, %s1796_s3 }
 0x402   : > { %p15042_p2 = scmp.lt.s32.totalorder %s15040_s12, %s15034_s8 }
 0x403   : > { %p15036_p13 = pnand %p15035_p6, %p13112_p7 }
 0x404   : > { %p15043_p3 = por %p15042_p2, %p15041_p1 }
 0x405   : > { %p15037_p0 = pneg %p15036_p13 }
 0x407   : > { %p15044_p5 = pnand %p15043_p3, %p15037_p0 }
 0x409   : > { %15047 = shalt.err (!%p15044_p5)
}
 0x40a   : > { %13037 = dma.hbm_to_vmem [thread:$0]  (%p13112_p7), %s15522_s21, 16, %s1796_s3, [#allocation57]  }
 0x40b PF: > { %p11034_p8 = scmp.ge.s32.totalorder %s15146_s16, 2 }
 0x40d   : > { %1802 = sbr.rel (%p11034_p8) target bundleno = 1060 (0x424), region = 228 }
 0x414   : > { %1805 = sbr.rel (!%p15560_p4) target bundleno = 1060 (0x424), region = 232  ;;  %s17473_s7 = sld [smem:[#allocation78_spill]] (%p15560_p4) }
 0x415   : > { %s1807_s23 = sand.u32 (%p15560_p4), 1, %s15142_s15   ;;  %s11792_s6 = sshll.u32 (%p15560_p4), %s15146_s16, 4 }
 0x416   : > { %s11035_s14 = sshll.u32 (%p15560_p4), %s1807_s23, 7 }
 0x417   : > { %s1809_s1 = scalar_lea.vmem (%p15560_p4), [#allocation2], %s11035_s14 }
 0x41a   : > { %s16020_s4 = scalar_lea.vmem (%p15560_p4), %s17473_s7, %s11792_s6 }
 0x41b   : > { %v1825_v0 = vld [vmem:[%s16020_s4] sm:$0xff]  ;;  %v1827_v1 = vld [vmem:[%s16020_s4 + $0x8] sm:$0xff] }
 0x41c   : > { %v1829_v2 = vld [vmem:[%s16020_s4 + $0x20] sm:$0xff]  ;;  %1826 = vst [vmem:[%s1809_s1] sm:$0xff] %v1825_v0  ;;  %1828 = vst [vmem:[%s1809_s1 + $0x8] sm:$0xff] %v1827_v1  ;;  %v1831_v3 = vld [vmem:[%s16020_s4 + $0x28] sm:$0xff] }
 0x41d   : > { %1830 = vst [vmem:[%s1809_s1 + $0x10] sm:$0xff] %v1829_v2  ;;  %v1833_v4 = vld [vmem:[%s16020_s4 + $0x40] sm:$0xff]  ;;  %v1835_v5 = vld [vmem:[%s16020_s4 + $0x48] sm:$0xff]  ;;  %1832 = vst [vmem:[%s1809_s1 + $0x18] sm:$0xff] %v1831_v3 }
 0x41e   : > { %1834 = vst [vmem:[%s1809_s1 + $0x20] sm:$0xff] %v1833_v4  ;;  %1836 = vst [vmem:[%s1809_s1 + $0x28] sm:$0xff] %v1835_v5  ;;  %v1837_v6 = vld [vmem:[%s16020_s4 + $0x60] sm:$0xff]  ;;  %v1839_v7 = vld [vmem:[%s16020_s4 + $0x68] sm:$0xff] }
 0x41f   : > { %v1841_v8 = vld [vmem:[%s16020_s4 + $0x80] sm:$0xff]  ;;  %1838 = vst [vmem:[%s1809_s1 + $0x30] sm:$0xff] %v1837_v6  ;;  %1840 = vst [vmem:[%s1809_s1 + $0x38] sm:$0xff] %v1839_v7  ;;  %v1843_v9 = vld [vmem:[%s16020_s4 + $0x88] sm:$0xff] }
 0x420   : > { %1842 = vst [vmem:[%s1809_s1 + $0x40] sm:$0xff] %v1841_v8  ;;  %v1845_v10 = vld [vmem:[%s16020_s4 + $0xa0] sm:$0xff]  ;;  %v1847_v11 = vld [vmem:[%s16020_s4 + $0xa8] sm:$0xff]  ;;  %1844 = vst [vmem:[%s1809_s1 + $0x48] sm:$0xff] %v1843_v9 }
 0x421   : > { %1846 = vst [vmem:[%s1809_s1 + $0x50] sm:$0xff] %v1845_v10  ;;  %1848 = vst [vmem:[%s1809_s1 + $0x58] sm:$0xff] %v1847_v11  ;;  %v1849_v12 = vld [vmem:[%s16020_s4 + $0xc0] sm:$0xff]  ;;  %v1851_v13 = vld [vmem:[%s16020_s4 + $0xc8] sm:$0xff] }
 0x422   : > { %v1853_v14 = vld [vmem:[%s16020_s4 + $0xe0] sm:$0xff]  ;;  %1850 = vst [vmem:[%s1809_s1 + $0x60] sm:$0xff] %v1849_v12  ;;  %1852 = vst [vmem:[%s1809_s1 + $0x68] sm:$0xff] %v1851_v13  ;;  %v1855_v15 = vld [vmem:[%s16020_s4 + $0xe8] sm:$0xff] }
 0x423   : > { %1854 = vst [vmem:[%s1809_s1 + $0x70] sm:$0xff] %v1853_v14  ;;  %1856 = vst [vmem:[%s1809_s1 + $0x78] sm:$0xff] %v1855_v15 }
 0x424 PF: > { %p17474_p4 = scmp.ne.s32.totalorder %s17449_s2, 0 }
 0x425   : > { %s1868_s16 = sand.u32 (!%p17474_p4), 1, %s15138_s0   ;;  %p13149_p7 = scmp.eq.s32.totalorder (!%p17474_p4), %s15545_s18, 0 }
 0x426   : > { %1865 = sbr.rel (%p17474_p4) target bundleno = 7569 (0x1d91), region = 255  ;;  %s11039_s3 = sshll.u32 (!%p17474_p4), %s1868_s16, 7 }
 0x427   : > { %s16042_s17 = scalar_lea.vmem (!%p17474_p4), [#allocation2], %s11039_s3 }
 0x42d   : > { %15061 = dma.done.wait (%p13149_p7), [#allocation4], 1792  }
 0x42e   : > { %15063 = vsyncadd (%p13149_p7), [#allocation4], 4294965504 }
 0x42f   : > { %15065 = dma.done.wait (%p13149_p7), [#allocation6], 64  }
 0x430   : > { %15067 = vsyncadd (%p13149_p7), [#allocation6], 4294967232 }
 0x431   : > { %15069 = dma.done.wait (%p13149_p7), [#allocation9], 48  }
 0x432   : > { %15071 = vsyncadd (%p13149_p7), [#allocation9], 4294967248 }
 0x433   : > { %15073 = dma.done.wait (%p13149_p7), [#allocation12], 1040  }
 0x434   : > { %15075 = vsyncadd (%p13149_p7), [#allocation12], 4294966256 }
 0x435   : > { %15077 = dma.done.wait (%p13149_p7), [#allocation15], 32  }
 0x436   : > { %15079 = vsyncadd (%p13149_p7), [#allocation15], 4294967264 }
 0x437   : > { %15081 = dma.done.wait (%p13149_p7), [#allocation18], 3088  }
 0x438   : > { %15083 = vsyncadd (%p13149_p7), [#allocation18], 4294964208 }
 0x439   : > { %15085 = dma.done.wait (%p13149_p7), [#allocation21], 3088  }
 0x43a   : > { %15087 = vsyncadd (%p13149_p7), [#allocation21], 4294964208 }
 0x43b   : > { %15089 = dma.done.wait (%p13149_p7), [#allocation24], 1056  }
 0x43c   : > { %15091 = vsyncadd (%p13149_p7), [#allocation24], 4294966240 }
 0x43d   : > { %15093 = dma.done.wait (%p13149_p7), [#allocation27], 112  }
 0x43e   : > { %15095 = vsyncadd (%p13149_p7), [#allocation27], 4294967184 }
 0x43f   : > { %15097 = dma.done.wait (%p13149_p7), [#allocation30], 3088  }
 0x440   : > { %15099 = vsyncadd (%p13149_p7), [#allocation30], 4294964208 }
 0x441   : > { %15101 = dma.done.wait (%p13149_p7), [#allocation33], 3088  }
 0x442   : > { %15103 = vsyncadd (%p13149_p7), [#allocation33], 4294964208 }
 0x443   : > { %15105 = dma.done.wait (%p13149_p7), [#allocation36], 3088  }
 0x444   : > { %15107 = vsyncadd (%p13149_p7), [#allocation36], 4294964208 }
 0x445   : > { %15109 = dma.done.wait (%p13149_p7), [#allocation39], 3088  }
 0x446   : > { %15111 = vsyncadd (%p13149_p7), [#allocation39], 4294964208 }
 0x447   : > { %15113 = dma.done.wait (%p13149_p7), [#allocation42], 1040  }
 0x448   : > { %15115 = vsyncadd (%p13149_p7), [#allocation42], 4294966256 }
 0x449   : > { %15117 = dma.done.wait (%p13149_p7), [#allocation45], 3088  }
 0x44a   : > { %15119 = vsyncadd (%p13149_p7), [#allocation45], 4294964208 }
 0x44b   : > { %15121 = dma.done.wait (%p13149_p7), [#allocation48], 3088  }
 0x44c   : > { %15123 = vsyncadd (%p13149_p7), [#allocation48], 4294964208 }
 0x44d   : > { %15125 = dma.done.wait (%p13149_p7), [#allocation51], 3088  }
 0x44e   : > { %15127 = vsyncadd (%p13149_p7), [#allocation51], 4294964208 }
 0x44f   : > { %15129 = dma.done.wait (%p13149_p7), [#allocation54], 3088  }
 0x450   : > { %15131 = vsyncadd (%p13149_p7), [#allocation54], 4294964208 }
 0x451   : > { %15133 = dma.done.wait (%p13149_p7), [#allocation57], 32  }
 0x452   : > { %15135 = vsyncadd (%p13149_p7), [#allocation57], 4294967264  ;;  %v15243_v16 = vmov 0   ;;  %v2145_v17 = vld [vmem:[%s16042_s17 + $0x8] sm:$0xff]  ;;  %v2147_v18 = vld [vmem:[%s16042_s17 + $0x18] sm:$0xff]  ;;  %vm2182_vm0 = vcmask 523264  }
 0x453   : > { %2221 = vmatprep.mubr.bf16.mxu1 %v15243_v16  ;;  %2377 = vmatprep.mubr.bf16.mxu0 %v15243_v16  ;;  %v2144_v19 = vld [vmem:[%s16042_s17] sm:$0xff]  ;;  %v16125_v20 = vpack.c.bf16 %v2147_v18, %v2145_v17  ;;  %v2146_v21 = vld [vmem:[%s16042_s17 + $0x10] sm:$0xff]  ;;  %v2149_v22 = vld [vmem:[%s16042_s17 + $0x28] sm:$0xff]  ;;  %s17475_s0 = sld [smem:[#allocation80_spill]]  ;;  %vm4457_vm1 = vcmask 1040384   ;;  %vm4482_vm2 = vcmask 1046528  }
 0x454   : > { %v2151_v23 = vld [vmem:[%s16042_s17 + $0x38] sm:$0xff]  ;;  %v16130_v24 = vpack.c.bf16 %v2146_v21, %v2144_v19  ;;  %v2148_v26 = vld [vmem:[%s16042_s17 + $0x20] sm:$0xff]  ;;  %v2150_v27 = vld [vmem:[%s16042_s17 + $0x30] sm:$0xff]  ;;  %s15244_s8 = smov 2   ;;  %s15245_s12 = smov 126   ;;  %vm4642_vm5 = vcmask 261120  }
 0x455   : > { %v16132_v25 = vpack.c.bf16 %v2151_v23, %v2149_v22  ;;  %v2153_v28 = vld [vmem:[%s16042_s17 + $0x48] sm:$0xff]  ;;  %2189 = vmatprep.subr.bf16.mxu1 %v16125_v20  ;;  %v2155_v29 = vld [vmem:[%s16042_s17 + $0x58] sm:$0xff]  ;;  %2345 = vmatprep.subr.bf16.mxu0 %v16125_v20  ;;  %v16141_v30 = vpack.c.bf16 %v2150_v27, %v2148_v26  ;;  %v2152_v31 = vld [vmem:[%s16042_s17 + $0x40] sm:$0xff]  ;;  %s17477_s7 = sld [smem:[#allocation83_spill]]  ;;  %s17478_s23 = sld [smem:[#allocation82_spill]]  ;;  %vm15247_vm8 = vmmov 0  }
 0x456   : > { %2190 = vmatpush1.bf16.msra.mxu1 %v16130_v24  ;;  %v2154_v32 = vld [vmem:[%s16042_s17 + $0x50] sm:$0xff]  ;;  %2346 = vmatpush1.bf16.msra.mxu0 %v16130_v24  ;;  %v16147_v33 = vpack.c.bf16 %v2155_v29, %v2153_v28  ;;  %v2157_v34 = vld [vmem:[%s16042_s17 + $0x68] sm:$0xff]  ;;  %v2159_v35 = vld [vmem:[%s16042_s17 + $0x78] sm:$0xff]  ;;  %s17479_s6 = sld [smem:[#allocation86_spill]]  ;;  %vm4870_vm6 = vsmask.f32 256 }
 0x457   : > { %2191 = vmatprep.subr.bf16.mxu1 %v16132_v25  ;;  %2347 = vmatprep.subr.bf16.mxu0 %v16132_v25  ;;  %v16153_v36 = vpack.c.bf16 %v2154_v32, %v2152_v31  ;;  %v2156_v37 = vld [vmem:[%s16042_s17 + $0x60] sm:$0xff]  ;;  %v16158_v38 = vpack.c.bf16 %v2159_v35, %v2157_v34  ;;  %v2158_v39 = vld [vmem:[%s16042_s17 + $0x70] sm:$0xff]  ;;  %v13312_v43 = vld [vmem:[#allocation3 + $0x8] sm:$0xff]   ;;  %s17482_s14 = sld [smem:[#allocation88_spill]]  ;;  %vm4876_vm9 = vcmask 1047552   ;;  %s17485_s4 = sld [smem:[#allocation90_spill]] }
 0x458   : > { %v16163_v40 = vpack.c.bf16 %v2158_v39, %v2156_v37  ;;  %v13311_v41 = vld [vmem:[#allocation3] sm:$0xff]   ;;  %v13316_v44 = vld [vmem:[#allocation3 + $0x28] sm:$0xff]   ;;  %v13313_v45 = vld [vmem:[#allocation3 + $0x10] sm:$0xff]   ;;  %vm4877_vm10 = vsmask.f32 7424  ;;  %s17486_s1 = sld [smem:[#allocation89_spill]] }
 0x459   : > { %v13315_v42 = vld [vmem:[#allocation3 + $0x20] sm:$0xff]   ;;  %v13314_v46 = vld [vmem:[#allocation3 + $0x18] sm:$0xff]   ;;  %s17476_s2 = smov %s17475_s0  ;;  %v13317_v47 = vld [vmem:[#allocation3 + $0x30] sm:$0xff]   ;;  %s17487_s16 = sld [smem:[#allocation92_spill]]  ;;  %vm6060_vm12 = vcmask 130048   ;;  %vm6646_vm13 = vcmask 1043456  }
 0x45a   : > { %2192 = vmatpush1.bf16.msra.mxu1 %v16141_v30  ;;  %2348 = vmatpush1.bf16.msra.mxu0 %v16141_v30  ;;  %v13318_v48 = vld [vmem:[#allocation3 + $0x38] sm:$0xff]   ;;  %v13322_v49 = vld [vmem:[%s17475_s0 + $0x4] ss:$8 sps:$4 sm:$0xff]   ;;  %v13319_v50 = vld [vmem:[#allocation3 + $0x50] sm:$0xff]   ;;  %s17489_s17 = sld [smem:[#allocation91_spill]]  ;;  %s17490_s0 = sld [smem:[#allocation93_spill]] }
 0x45b   : > { %2193 = vmatprep.subr.bf16.mxu1 %v16147_v33  ;;  %2349 = vmatprep.subr.bf16.mxu0 %v16147_v33  ;;  %v13320_v51 = vld [vmem:[%s17476_s2] ss:$8 sps:$4 sm:$0xff]   ;;  %v13325_v52 = vld [vmem:[%s17476_s2 + $0x14] ss:$8 sps:$4 sm:$0xff]   ;;  %v13323_v53 = vld [vmem:[%s17476_s2 + $0x10] ss:$8 sps:$4 sm:$0xff]  }
 0x45c   : > { %v13328_v54 = vld [vmem:[%s17476_s2 + $0x24] ss:$8 sps:$4 sm:$0xff]   ;;  %v13362_v55 = vld [vmem:[#allocation3 + $0x58] sm:$0xff]   ;;  %v13326_v56 = vld [vmem:[%s17476_s2 + $0x20] ss:$8 sps:$4 sm:$0xff]   ;;  %p2140_p9 = scmp.lt.s32.totalorder %s15545_s18, 1 }
 0x45d   : > { %v13331_v57 = vld [vmem:[%s17476_s2 + $0x34] ss:$8 sps:$4 sm:$0xff]   ;;  %v13329_v58 = vld [vmem:[%s17476_s2 + $0x30] ss:$8 sps:$4 sm:$0xff]   ;;  %v13334_v59 = vld [vmem:[%s17476_s2 + $0x44] ss:$8 sps:$4 sm:$0xff]  }
 0x45e   : > { %2194 = vmatpush1.bf16.msra.mxu1 %v16153_v36  ;;  %2350 = vmatpush1.bf16.msra.mxu0 %v16153_v36  ;;  %v13332_v60 = vld [vmem:[%s17476_s2 + $0x40] ss:$8 sps:$4 sm:$0xff]   ;;  %v13337_v61 = vld [vmem:[%s17476_s2 + $0x54] ss:$8 sps:$4 sm:$0xff]   ;;  %v13335_v62 = vld [vmem:[%s17476_s2 + $0x50] ss:$8 sps:$4 sm:$0xff]  }
 0x45f   : > { %2195 = vmatprep.subr.bf16.mxu1 %v16158_v38  ;;  %2351 = vmatprep.subr.bf16.mxu0 %v16158_v38  ;;  %v13340_v63 = vld [vmem:[%s17476_s2 + $0x64] ss:$8 sps:$4 sm:$0xff]   ;;  %v13338_v0 = vld [vmem:[%s17476_s2 + $0x60] ss:$8 sps:$4 sm:$0xff]   ;;  %v13343_v1 = vld [vmem:[%s17476_s2 + $0x74] ss:$8 sps:$4 sm:$0xff]   ;;  %s17488_s3 = smov %s17487_s16 }
 0x460   : > { %v13341_v2 = vld [vmem:[%s17476_s2 + $0x70] ss:$8 sps:$4 sm:$0xff]   ;;  %v13346_v3 = vld [vmem:[%s17476_s2 + $0x84] ss:$8 sps:$4 sm:$0xff]   ;;  %v13344_v4 = vld [vmem:[%s17476_s2 + $0x80] ss:$8 sps:$4 sm:$0xff]  }
 0x461   : > { %v13349_v5 = vld [vmem:[%s17476_s2 + $0x94] ss:$8 sps:$4 sm:$0xff]   ;;  %v13347_v6 = vld [vmem:[%s17476_s2 + $0x90] ss:$8 sps:$4 sm:$0xff]   ;;  %v13352_v7 = vld [vmem:[%s17476_s2 + $0xa4] ss:$8 sps:$4 sm:$0xff]  }
 0x462   : > { %2196 = vmatpush1.bf16.msra.mxu1 %v16163_v40  ;;  %2352 = vmatpush1.bf16.msra.mxu0 %v16163_v40  ;;  %v13350_v8 = vld [vmem:[%s17476_s2 + $0xa0] ss:$8 sps:$4 sm:$0xff]   ;;  %v13355_v9 = vld [vmem:[%s17476_s2 + $0xb4] ss:$8 sps:$4 sm:$0xff]   ;;  %v13353_v10 = vld [vmem:[%s17476_s2 + $0xb0] ss:$8 sps:$4 sm:$0xff]  }
 0x463   : > { %2267 = vmatprep.subr.bf16.mxu1 %v16125_v20  ;;  %2501 = vmatprep.subr.bf16.mxu0 %v16125_v20  ;;  %v13358_v11 = vld [vmem:[%s17476_s2 + $0xc4] ss:$8 sps:$4 sm:$0xff]   ;;  %v13356_v12 = vld [vmem:[%s17476_s2 + $0xc0] ss:$8 sps:$4 sm:$0xff]   ;;  %v13361_v13 = vld [vmem:[%s17476_s2 + $0xd4] ss:$8 sps:$4 sm:$0xff]  }
 0x464   : > { %v13359_v14 = vld [vmem:[%s17476_s2 + $0xd0] ss:$8 sps:$4 sm:$0xff]   ;;  %v13365_v15 = vld [vmem:[%s17476_s2 + $0xe4] ss:$8 sps:$4 sm:$0xff]   ;;  %v13363_v17 = vld [vmem:[%s17476_s2 + $0xe0] ss:$8 sps:$4 sm:$0xff]  }
 0x465   : > { %11079 = vmatmul.mubr.msk.bf16.vlgmr.msra.gmra.mrb[0].mxu1 %vm2182_vm0, %v13311_v41  ;;  %11087 = vmatmul.mubr.msk.bf16.vlgmr.msra.gmra.mrb[0].mxu0 %vm2182_vm0, %v13315_v42  ;;  %v13368_v18 = vld [vmem:[%s17476_s2 + $0xf4] ss:$8 sps:$4 sm:$0xff]   ;;  %v13366_v19 = vld [vmem:[%s17476_s2 + $0xf0] ss:$8 sps:$4 sm:$0xff]   ;;  %v13396_v21 = vld [vmem:[#allocation3 + $0x40] sm:$0xff]   ;;  %s17506_s18 = smov (!%p2140_p9, %s15545_s18), 1 }
 0x466   : > { %2268 = vmatpush1.bf16.msra.mxu1 %v16130_v24  ;;  %2231 = vmatprep.mubr.bf16.mxu1 %v15243_v16  ;;  %v13406_v22 = vld [vmem:[#allocation3 + $0x48] sm:$0xff]   ;;  %v13372_v37 = vld [vmem:[%s17476_s2 + $0x110] ss:$8 sps:$4 sm:$0xff]   ;;  %vm16821_vm7 = vmand %vm4457_vm1, %vm4870_vm6  ;;  %vm6647_vm14 = vsmask.f32 3328 }
 0x467   : > { %2269 = vmatprep.subr.bf16.mxu1 %v16132_v25  ;;  %2387 = vmatprep.mubr.bf16.mxu0 %v15243_v16  ;;  %v13369_v28 = vld [vmem:[%s17476_s2 + $0x100] ss:$8 sps:$4 sm:$0xff]   ;;  %vm16844_vm11 = vmand %vm4876_vm9, %vm4877_vm10 }
 0x468   : > { %2502 = vmatpush1.bf16.msra.mxu0 %v16130_v24  ;;  %vm17084_vm15 = vmand %vm6646_vm13, %vm6647_vm14 }
 0x469   : > { %2503 = vmatprep.subr.bf16.mxu0 %v16132_v25 }
 0x46a   : > { %2270 = vmatpush1.bf16.msra.mxu1 %v16141_v30 }
 0x46b   : > { %2271 = vmatprep.subr.bf16.mxu1 %v16147_v33 }
 0x46c   : > { %2504 = vmatpush1.bf16.msra.mxu0 %v16141_v30 }
 0x46d   : > { %11080 = vmatmul.mubr.msk.bf16.gmra.mrb[4].mxu1 %vm2182_vm0, %v13312_v43  ;;  %11088 = vmatmul.mubr.msk.bf16.gmra.mrb[4].mxu0 %vm2182_vm0, %v13316_v44  ;;  %v13375_v43 = vld [vmem:[%s17476_s2 + $0x120] ss:$8 sps:$4 sm:$0xff]  }
 0x46e   : > { %2272 = vmatpush1.bf16.msra.mxu1 %v16153_v36  ;;  %2299 = vmatprep.mubr.bf16.mxu1 %v15243_v16 }
 0x46f   : > { %2273 = vmatprep.subr.bf16.mxu1 %v16158_v38  ;;  %2505 = vmatprep.subr.bf16.mxu0 %v16147_v33 }
 0x470   : > { %2506 = vmatpush1.bf16.msra.mxu0 %v16153_v36  ;;  %2533 = vmatprep.mubr.bf16.mxu0 %v15243_v16 }
 0x471   : > { %2507 = vmatprep.subr.bf16.mxu0 %v16158_v38 }
 0x472   : > { %2274 = vmatpush1.bf16.msra.mxu1 %v16163_v40 }
 0x473   : > { %2423 = vmatprep.subr.bf16.mxu1 %v16125_v20 }
 0x474   : > { %2508 = vmatpush1.bf16.msra.mxu0 %v16163_v40 }
 0x475   : > { %11083 = vmatmul.mubr.msk.bf16.vlgmr.msra.gmra.mrb[8].mxu1 %vm2182_vm0, %v13313_v45  ;;  %2657 = vmatprep.subr.bf16.mxu0 %v16125_v20 }
 0x476   : > { %2309 = vmatprep.mubr.bf16.mxu1 %v15243_v16  ;;  %2424 = vmatpush1.bf16.msra.mxu1 %v16130_v24 }
 0x477   : > { %2425 = vmatprep.subr.bf16.mxu1 %v16132_v25  ;;  %11095 = vmatmul.mubr.msk.bf16.vlgmr.msra.gmra.mrb[8].mxu0 %vm2182_vm0, %v13396_v21  ;;  %v13402_v21 = vld [vmem:[%s17476_s2 + $0x1a4] ss:$8 sps:$4 sm:$0xff]  }
 0x478   : > { %2543 = vmatprep.mubr.bf16.mxu0 %v15243_v16  ;;  %2658 = vmatpush1.bf16.msra.mxu0 %v16130_v24 }
 0x479   : > { %2659 = vmatprep.subr.bf16.mxu0 %v16132_v25 }
 0x47a   : > { %2426 = vmatpush1.bf16.msra.mxu1 %v16141_v30 }
 0x47b   : > { %2427 = vmatprep.subr.bf16.mxu1 %v16147_v33 }
 0x47c   : > { %2660 = vmatpush1.bf16.msra.mxu0 %v16141_v30 }
 0x47d   : > { %11084 = vmatmul.mubr.msk.bf16.gmra.mrb[12].mxu1 %vm2182_vm0, %v13314_v46  ;;  %2661 = vmatprep.subr.bf16.mxu0 %v16147_v33 }
 0x47e   : > { %2428 = vmatpush1.bf16.msra.mxu1 %v16153_v36  ;;  %2455 = vmatprep.mubr.bf16.mxu1 %v15243_v16 }
 0x47f   : > { %2429 = vmatprep.subr.bf16.mxu1 %v16158_v38  ;;  %11096 = vmatmul.mubr.msk.bf16.gmra.mrb[12].mxu0 %vm2182_vm0, %v13406_v22 }
 0x480   : > { %2662 = vmatpush1.bf16.msra.mxu0 %v16153_v36  ;;  %2689 = vmatprep.mubr.bf16.mxu0 %v15243_v16 }
 0x481   : > { %2663 = vmatprep.subr.bf16.mxu0 %v16158_v38 }
 0x482   : > { %2430 = vmatpush1.bf16.msra.mxu1 %v16163_v40 }
 0x483   : > { %2579 = vmatprep.subr.bf16.mxu1 %v16125_v20  ;;  %v13371_v20 = vld [vmem:[%s17476_s2 + $0x104] ss:$8 sps:$4 sm:$0xff]  }
 0x484   : > { %2664 = vmatpush1.bf16.msra.mxu0 %v16163_v40 }
 0x485   : > { %11091 = vmatmul.mubr.msk.bf16.vlgmr.msra.gmra.mrb[16].mxu1 %vm2182_vm0, %v13317_v47 }
 0x486   : > { %2580 = vmatpush1.bf16.msra.mxu1 %v16130_v24  ;;  %2465 = vmatprep.mubr.bf16.mxu1 %v15243_v16 }
 0x487   : > { %2581 = vmatprep.subr.bf16.mxu1 %v16132_v25 }
 0x48a   : > { %2582 = vmatpush1.bf16.msra.mxu1 %v16141_v30 }
 0x48b   : > { %2583 = vmatprep.subr.bf16.mxu1 %v16147_v33 }
 0x48d   : > { %11092 = vmatmul.mubr.msk.bf16.gmra.mrb[20].mxu1 %vm2182_vm0, %v13318_v48 }
 0x48e   : > { %2584 = vmatpush1.bf16.msra.mxu1 %v16153_v36  ;;  %2611 = vmatprep.mubr.bf16.mxu1 %v15243_v16  ;;  %v13374_v36 = vld [vmem:[%s17476_s2 + $0x114] ss:$8 sps:$4 sm:$0xff]  }
 0x48f   : > { %2585 = vmatprep.subr.bf16.mxu1 %v16158_v38  ;;  %v13377_v38 = vld [vmem:[%s17476_s2 + $0x124] ss:$8 sps:$4 sm:$0xff]  }
 0x492   : > { %2586 = vmatpush1.bf16.msra.mxu1 %v16163_v40 }
 0x493   : > { %4070 = vmatprep.subr.bf16.mxu1 %v13322_v49 }
 0x495   : > { %11099 = vmatmul.mubr.msk.bf16.vlgmr.msra.gmra.mrb[24].mxu1 %vm2182_vm0, %v13319_v50 }
 0x496   : > { %4071 = vmatpush1.bf16.msra.mxu1 %v13320_v51  ;;  %2621 = vmatprep.mubr.bf16.mxu1 %v15243_v16 }
 0x497   : > { %4072 = vmatprep.subr.bf16.mxu1 %v13325_v52  ;;  %v13380_v52 = vld [vmem:[%s17476_s2 + $0x134] ss:$8 sps:$4 sm:$0xff]  }
 0x49a   : > { %4073 = vmatpush1.bf16.msra.mxu1 %v13323_v53  ;;  %v13378_v53 = vld [vmem:[%s17476_s2 + $0x130] ss:$8 sps:$4 sm:$0xff]  }
 0x49b   : > { %4074 = vmatprep.subr.bf16.mxu1 %v13328_v54  ;;  %v13383_v54 = vld [vmem:[%s17476_s2 + $0x144] ss:$8 sps:$4 sm:$0xff]  }
 0x49d   : > { %11100 = vmatmul.mubr.msk.bf16.gmra.mrb[28].mxu1 %vm2182_vm0, %v13362_v55 }
 0x49e   : > { %4075 = vmatpush1.bf16.msra.mxu1 %v13326_v56 }
 0x49f   : > { %4076 = vmatprep.subr.bf16.mxu1 %v13331_v57 }
 0x4a2   : > { %4077 = vmatpush1.bf16.msra.mxu1 %v13329_v58 }
 0x4a3   : > { %4078 = vmatprep.subr.bf16.mxu1 %v13334_v59 }
 0x4a6   : > { %4079 = vmatpush1.bf16.msra.mxu1 %v13332_v60  ;;  %v13381_v60 = vld [vmem:[%s17476_s2 + $0x140] ss:$8 sps:$4 sm:$0xff]  }
 0x4a7   : > { %4080 = vmatprep.subr.bf16.mxu1 %v13337_v61  ;;  %v13386_v61 = vld [vmem:[%s17476_s2 + $0x154] ss:$8 sps:$4 sm:$0xff]  }
 0x4aa   : > { %4081 = vmatpush1.bf16.msra.mxu1 %v13335_v62 }
 0x4ab   : > { %4082 = vmatprep.subr.bf16.mxu1 %v13340_v63  ;;  %v13384_v63 = vld [vmem:[%s17476_s2 + $0x150] ss:$8 sps:$4 sm:$0xff]  }
 0x4ae   : > { %4083 = vmatpush1.bf16.msra.mxu1 %v13338_v0  ;;  %v13389_v0 = vld [vmem:[%s17476_s2 + $0x164] ss:$8 sps:$4 sm:$0xff]  }
 0x4af   : > { %4084 = vmatprep.subr.bf16.mxu1 %v13343_v1 }
 0x4b2   : > { %4085 = vmatpush1.bf16.msra.mxu1 %v13341_v2 }
 0x4b3   : > { %4086 = vmatprep.subr.bf16.mxu1 %v13346_v3 }
 0x4b6   : > { %4087 = vmatpush1.bf16.msra.mxu1 %v13344_v4 }
 0x4b7   : > { %4088 = vmatprep.subr.bf16.mxu1 %v13349_v5 }
 0x4ba   : > { %4089 = vmatpush1.bf16.msra.mxu1 %v13347_v6  ;;  %v13387_v6 = vld [vmem:[%s17476_s2 + $0x160] ss:$8 sps:$4 sm:$0xff]  }
 0x4bb   : > { %4090 = vmatprep.subr.bf16.mxu1 %v13352_v7  ;;  %v13392_v7 = vld [vmem:[%s17476_s2 + $0x174] ss:$8 sps:$4 sm:$0xff]  }
 0x4be   : > { %4091 = vmatpush1.bf16.msra.mxu1 %v13350_v8 }
 0x4bf   : > { %4092 = vmatprep.subr.bf16.mxu1 %v13355_v9  ;;  %v13390_v9 = vld [vmem:[%s17476_s2 + $0x170] ss:$8 sps:$4 sm:$0xff]  }
 0x4c2   : > { %4093 = vmatpush1.bf16.msra.mxu1 %v13353_v10  ;;  %v13395_v10 = vld [vmem:[%s17476_s2 + $0x184] ss:$8 sps:$4 sm:$0xff]  }
 0x4c3   : > { %4094 = vmatprep.subr.bf16.mxu1 %v13358_v11 }
 0x4c6   : > { %4095 = vmatpush1.bf16.msra.mxu1 %v13356_v12 }
 0x4c7   : > { %4096 = vmatprep.subr.bf16.mxu1 %v13361_v13 }
 0x4ca   : > { %4097 = vmatpush1.bf16.msra.mxu1 %v13359_v14 }
 0x4cb   : > { %4098 = vmatprep.subr.bf16.mxu1 %v13365_v15 }
 0x4ce   : > { %4099 = vmatpush1.bf16.msra.mxu1 %v13363_v17  ;;  %v13393_v17 = vld [vmem:[%s17476_s2 + $0x180] ss:$8 sps:$4 sm:$0xff]  }
 0x4cf   : > { %4100 = vmatprep.subr.bf16.mxu1 %v13368_v18  ;;  %v13399_v18 = vld [vmem:[%s17476_s2 + $0x194] ss:$8 sps:$4 sm:$0xff]  }
 0x4d2   : > { %4101 = vmatpush1.bf16.msra.mxu1 %v13366_v19 }
 0x4d3   : > { %4123 = vmatprep.subr.bf16.mxu1 %v13371_v20  ;;  %v13397_v20 = vld [vmem:[%s17476_s2 + $0x190] ss:$8 sps:$4 sm:$0xff]  }
 0x538   : > { %v2223_v23 = vpop.f32.mrb[0].mxu1  ;;  %v16266_v24 = vpop.f32.mrb[0].mxu0 }
 0x539   : > { %v2225_v25 = vpop.f32.mrb[1].mxu1  ;;  %v16268_v26 = vpop.f32.mrb[1].mxu0 }
 0x53a   : > { %v2227_v27 = vpop.f32.mrb[2].mxu1  ;;  %v16271_v29 = vpop.f32.mrb[2].mxu0 }
 0x53b   : > { %v2242_v30 = vpack.c.bf16 %v2227_v27, %v2223_v23  ;;  %v2229_v31 = vpop.f32.mrb[3].mxu1  ;;  %v2398_v32 = vpack.c.bf16 %v16271_v29, %v16266_v24  ;;  %v16275_v33 = vpop.f32.mrb[3].mxu0  ;;  %v13494_v23 = vld [vmem:[#allocation3 + $0x60] sm:$0xff]  }
 0x53c   : > { %v2243_v34 = vpack.c.bf16 %v2229_v31, %v2225_v25  ;;  %v2399_v35 = vpack.c.bf16 %v16275_v33, %v16268_v26  ;;  %11103 = vmatmul.mubr.msk.bf16.vlgmr.msra.gmra.mrb[16].mxu0 %vm2182_vm0, %v13494_v23  ;;  %v13400_v31 = vld [vmem:[%s17476_s2 + $0x1a0] ss:$8 sps:$4 sm:$0xff]   ;;  %v13436_v33 = vld [vmem:[%s17476_s2 + $0x254] ss:$8 sps:$4 sm:$0xff]  }
 0x53d   : > { %2699 = vmatprep.mubr.bf16.mxu0 %v15243_v16  ;;  %v13431_v26 = vld [vmem:[%s17476_s2 + $0x240] ss:$8 sps:$4 sm:$0xff]   ;;  %v13448_v23 = vld [vmem:[%s17476_s2 + $0x294] ss:$8 sps:$4 sm:$0xff]  }
 0x53e   : > { %4102 = vmatprep.mubr.bf16.mxu1 %v2243_v34  ;;  %v13405_v34 = vld [vmem:[%s17476_s2 + $0x1b4] ss:$8 sps:$4 sm:$0xff]  }
 0x53f   : > { %4103 = vmatmul.mubr.bf16.vlgmr.msra.gmra.mrb[32].mxu1 %v2242_v30 }
 0x540   : > { %4124 = vmatpush1.bf16.msra.mxu1 %v13369_v28  ;;  %v2233_v39 = vpop.f32.mrb[4].mxu1  ;;  %v16282_v40 = vpop.f32.mrb[4].mxu0 }
 0x541   : > { %4125 = vmatprep.subr.bf16.mxu1 %v13374_v36  ;;  %v2235_v41 = vpop.f32.mrb[5].mxu1  ;;  %v16284_v42 = vpop.f32.mrb[5].mxu0 }
 0x542   : > { %v2237_v44 = vpop.f32.mrb[6].mxu1  ;;  %v16287_v45 = vpop.f32.mrb[6].mxu0 }
 0x543   : > { %v2244_v46 = vpack.c.bf16 %v2237_v44, %v2233_v39  ;;  %v2239_v47 = vpop.f32.mrb[7].mxu1  ;;  %v2400_v48 = vpack.c.bf16 %v16287_v45, %v16282_v40  ;;  %v16291_v49 = vpop.f32.mrb[7].mxu0  ;;  %v13482_v40 = vld [vmem:[%s17476_s2 + $0x350] ss:$8 sps:$4 sm:$0xff]   ;;  %v13487_v45 = vld [vmem:[%s17476_s2 + $0x364] ss:$8 sps:$4 sm:$0xff]  }
 0x544   : > { %4126 = vmatpush1.bf16.msra.mxu1 %v13372_v37  ;;  %v2245_v50 = vpack.c.bf16 %v2239_v47, %v2235_v41  ;;  %v2401_v51 = vpack.c.bf16 %v16291_v49, %v16284_v42  ;;  %v13403_v37 = vld [vmem:[%s17476_s2 + $0x1b0] ss:$8 sps:$4 sm:$0xff]   ;;  %v13501_v41 = vld [vmem:[#allocation3 + $0x68] sm:$0xff]   ;;  %v13478_v49 = vld [vmem:[%s17476_s2 + $0x334] ss:$8 sps:$4 sm:$0xff]  }
 0x545   : > { %4127 = vmatprep.subr.bf16.mxu1 %v13377_v38  ;;  %v13409_v38 = vld [vmem:[%s17476_s2 + $0x1c4] ss:$8 sps:$4 sm:$0xff]   ;;  %11104 = vmatmul.mubr.msk.bf16.gmra.mrb[20].mxu0 %vm2182_vm0, %v13501_v41  ;;  %v13452_v41 = vld [vmem:[%s17476_s2 + $0x2b0] ss:$8 sps:$4 sm:$0xff]   ;;  %vm7522_vm0 = vcmask 64512  }
 0x546   : > { %4112 = vmatprep.mubr.bf16.mxu1 %v2245_v50  ;;  %4678 = vmatprep.mubr.bf16.mxu0 %v15243_v16  ;;  %v13407_v50 = vld [vmem:[%s17476_s2 + $0x1c0] ss:$8 sps:$4 sm:$0xff]   ;;  %v13416_v16 = vld [vmem:[%s17476_s2 + $0x1f0] ss:$8 sps:$4 sm:$0xff]  }
 0x547   : > { %4113 = vmatmul.mubr.bf16.gmra.mrb[36].mxu1 %v2244_v46 }
 0x548   : > { %4128 = vmatpush1.bf16.msra.mxu1 %v13375_v43  ;;  %v16298_v55 = vpop.f32.mrb[8].mxu1 }
 0x549   : > { %4129 = vmatprep.subr.bf16.mxu1 %v13380_v52  ;;  %v2303_v56 = vpop.f32.mrb[9].mxu1  ;;  %v13412_v52 = vld [vmem:[%s17476_s2 + $0x1d4] ss:$8 sps:$4 sm:$0xff]  }
 0x54a   : > { %v16300_v57 = vpop.f32.mrb[10].mxu1 }
 0x54b   : > { %v2320_v58 = vpack.c.bf16 %v16300_v57, %v16298_v55  ;;  %v2307_v59 = vpop.f32.mrb[11].mxu1  ;;  %v13428_v57 = vld [vmem:[%s17476_s2 + $0x230] ss:$8 sps:$4 sm:$0xff]  }
 0x54c   : > { %4130 = vmatpush1.bf16.msra.mxu1 %v13378_v53  ;;  %v2321_v62 = vpack.c.bf16 %v2307_v59, %v2303_v56  ;;  %v13415_v56 = vld [vmem:[%s17476_s2 + $0x1e4] ss:$8 sps:$4 sm:$0xff]   ;;  %v13413_v59 = vld [vmem:[%s17476_s2 + $0x1e0] ss:$8 sps:$4 sm:$0xff]  }
 0x54d   : > { %4131 = vmatprep.subr.bf16.mxu1 %v13383_v54  ;;  %v13410_v54 = vld [vmem:[%s17476_s2 + $0x1d0] ss:$8 sps:$4 sm:$0xff]  }
 0x54e   : > { %4155 = vmatprep.mubr.bf16.mxu1 %v2321_v62  ;;  %v13419_v62 = vld [vmem:[%s17476_s2 + $0x200] ss:$8 sps:$4 sm:$0xff]  }
 0x550   : > { %4132 = vmatpush1.bf16.msra.mxu1 %v13381_v60  ;;  %v16308_v1 = vpop.f32.mrb[12].mxu1  ;;  %v13418_v60 = vld [vmem:[%s17476_s2 + $0x1f4] ss:$8 sps:$4 sm:$0xff]  }
 0x551   : > { %4133 = vmatprep.subr.bf16.mxu1 %v13386_v61  ;;  %v16310_v2 = vpop.f32.mrb[13].mxu1  ;;  %v13421_v61 = vld [vmem:[%s17476_s2 + $0x204] ss:$8 sps:$4 sm:$0xff]  }
 0x552   : > { %v16312_v3 = vpop.f32.mrb[14].mxu1 }
 0x553   : > { %v2322_v4 = vpack.c.bf16 %v16312_v3, %v16308_v1  ;;  %v16316_v5 = vpop.f32.mrb[15].mxu1 }
 0x554   : > { %4134 = vmatpush1.bf16.msra.mxu1 %v13384_v63  ;;  %v2323_v8 = vpack.c.bf16 %v16316_v5, %v16310_v2  ;;  %v13424_v63 = vld [vmem:[%s17476_s2 + $0x214] ss:$8 sps:$4 sm:$0xff]  }
 0x555   : > { %4135 = vmatprep.subr.bf16.mxu1 %v13389_v0  ;;  %v13422_v0 = vld [vmem:[%s17476_s2 + $0x210] ss:$8 sps:$4 sm:$0xff]  }
 0x558   : > { %4136 = vmatpush1.bf16.msra.mxu1 %v13387_v6  ;;  %v16324_v11 = vpop.f32.mrb[16].mxu1  ;;  %v13427_v6 = vld [vmem:[%s17476_s2 + $0x224] ss:$8 sps:$4 sm:$0xff]  }
 0x559   : > { %4137 = vmatprep.subr.bf16.mxu1 %v13392_v7  ;;  %v16326_v12 = vpop.f32.mrb[17].mxu1  ;;  %v13425_v7 = vld [vmem:[%s17476_s2 + $0x220] ss:$8 sps:$4 sm:$0xff]  }
 0x55a   : > { %v16328_v13 = vpop.f32.mrb[18].mxu1 }
 0x55b   : > { %v2476_v14 = vpack.c.bf16 %v16328_v13, %v16324_v11  ;;  %v16332_v15 = vpop.f32.mrb[19].mxu1  ;;  %v13526_v11 = vld [vmem:[%s17476_s2 + $0x430] ss:$8 sps:$4 sm:$0xff]   ;;  %v13531_v13 = vld [vmem:[%s17476_s2 + $0x444] ss:$8 sps:$4 sm:$0xff]  }
 0x55c   : > { %4138 = vmatpush1.bf16.msra.mxu1 %v13390_v9  ;;  %v2477_v19 = vpack.c.bf16 %v16332_v15, %v16326_v12  ;;  %v13430_v9 = vld [vmem:[%s17476_s2 + $0x234] ss:$8 sps:$4 sm:$0xff]   ;;  %v13488_v15 = vld [vmem:[%s17476_s2 + $0x370] ss:$8 sps:$4 sm:$0xff]  }
 0x55d   : > { %4139 = vmatprep.subr.bf16.mxu1 %v13395_v10  ;;  %v13437_v10 = vld [vmem:[%s17476_s2 + $0x260] ss:$8 sps:$4 sm:$0xff]   ;;  %v13490_v12 = vld [vmem:[%s17476_s2 + $0x374] ss:$8 sps:$4 sm:$0xff]  }
 0x560   : > { %4140 = vmatpush1.bf16.msra.mxu1 %v13393_v17  ;;  %v16340_v22 = vpop.f32.mrb[20].mxu1  ;;  %v13442_v17 = vld [vmem:[%s17476_s2 + $0x274] ss:$8 sps:$4 sm:$0xff]  }
 0x561   : > { %4141 = vmatprep.subr.bf16.mxu1 %v13399_v18  ;;  %v16342_v25 = vpop.f32.mrb[21].mxu1  ;;  %v13440_v18 = vld [vmem:[%s17476_s2 + $0x270] ss:$8 sps:$4 sm:$0xff]  }
 0x562   : > { %v16344_v27 = vpop.f32.mrb[22].mxu1 }
 0x563   : > { %v2478_v28 = vpack.c.bf16 %v16344_v27, %v16340_v22  ;;  %v16349_v30 = vpop.f32.mrb[23].mxu1  ;;  %v13532_v22 = vld [vmem:[%s17476_s2 + $0x450] ss:$8 sps:$4 sm:$0xff]   ;;  %v13537_v27 = vld [vmem:[%s17476_s2 + $0x464] ss:$8 sps:$4 sm:$0xff]  }
 0x564   : > { %4142 = vmatpush1.bf16.msra.mxu1 %v13397_v20  ;;  %v2479_v36 = vpack.c.bf16 %v16349_v30, %v16342_v25  ;;  %v13445_v20 = vld [vmem:[%s17476_s2 + $0x284] ss:$8 sps:$4 sm:$0xff]   ;;  %v13534_v25 = vld [vmem:[%s17476_s2 + $0x454] ss:$8 sps:$4 sm:$0xff]  }
 0x565   : > { %4143 = vmatprep.subr.bf16.mxu1 %v13402_v21  ;;  %v13443_v21 = vld [vmem:[%s17476_s2 + $0x280] ss:$8 sps:$4 sm:$0xff]   ;;  %v13540_v30 = vld [vmem:[%s17476_s2 + $0x474] ss:$8 sps:$4 sm:$0xff]  }
 0x568   : > { %4144 = vmatpush1.bf16.msra.mxu1 %v13400_v31  ;;  %v16358_v39 = vpop.f32.mrb[24].mxu1  ;;  %v13446_v31 = vld [vmem:[%s17476_s2 + $0x290] ss:$8 sps:$4 sm:$0xff]  }
 0x569   : > { %4145 = vmatprep.subr.bf16.mxu1 %v13405_v34  ;;  %v16360_v43 = vpop.f32.mrb[25].mxu1  ;;  %v13451_v34 = vld [vmem:[%s17476_s2 + $0x2a4] ss:$8 sps:$4 sm:$0xff]  }
 0x56a   : > { %v16362_v44 = vpop.f32.mrb[26].mxu1 }
 0x56b   : > { %v2632_v46 = vpack.c.bf16 %v16362_v44, %v16358_v39  ;;  %v16367_v47 = vpop.f32.mrb[27].mxu1  ;;  %v13622_v39 = vld [vmem:[%s17476_s2 + $0x630] ss:$8 sps:$4 sm:$0xff]   ;;  %v13627_v44 = vld [vmem:[%s17476_s2 + $0x644] ss:$8 sps:$4 sm:$0xff]  }
 0x56c   : > { %4146 = vmatpush1.bf16.msra.mxu1 %v13403_v37  ;;  %v2633_v53 = vpack.c.bf16 %v16367_v47, %v16360_v43  ;;  %v13449_v37 = vld [vmem:[%s17476_s2 + $0x2a0] ss:$8 sps:$4 sm:$0xff]   ;;  %v13588_v47 = vld [vmem:[%s17476_s2 + $0x574] ss:$8 sps:$4 sm:$0xff]  }
 0x56d   : > { %4147 = vmatprep.subr.bf16.mxu1 %v13409_v38  ;;  %v13454_v38 = vld [vmem:[%s17476_s2 + $0x2b4] ss:$8 sps:$4 sm:$0xff]   ;;  %v13583_v43 = vld [vmem:[%s17476_s2 + $0x560] ss:$8 sps:$4 sm:$0xff]  }
 0x570   : > { %4148 = vmatpush1.bf16.msra.mxu1 %v13407_v50  ;;  %v16395_v55 = vpop.f32.mrb[28].mxu1  ;;  %v13457_v50 = vld [vmem:[%s17476_s2 + $0x2c4] ss:$8 sps:$4 sm:$0xff]  }
 0x571   : > { %4149 = vmatprep.subr.bf16.mxu1 %v13412_v52  ;;  %v16402_v2 = vpop.f32.mrb[29].mxu1  ;;  %v13455_v52 = vld [vmem:[%s17476_s2 + $0x2c0] ss:$8 sps:$4 sm:$0xff]  }
 0x572   : > { %v16404_v5 = vpop.f32.mrb[30].mxu1 }
 0x573   : > { %v2634_v1 = vpack.c.bf16 %v16404_v5, %v16395_v55  ;;  %v16408_v3 = vpop.f32.mrb[31].mxu1  ;;  %v13628_v55 = vld [vmem:[%s17476_s2 + $0x650] ss:$8 sps:$4 sm:$0xff]   ;;  %v13633_v5 = vld [vmem:[%s17476_s2 + $0x664] ss:$8 sps:$4 sm:$0xff]  }
 0x574   : > { %4150 = vmatpush1.bf16.msra.mxu1 %v13410_v54  ;;  %v13460_v54 = vld [vmem:[%s17476_s2 + $0x2d4] ss:$8 sps:$4 sm:$0xff]  }
 0x575   : > { %4151 = vmatprep.subr.bf16.mxu1 %v13415_v56  ;;  %v13458_v56 = vld [vmem:[%s17476_s2 + $0x2d0] ss:$8 sps:$4 sm:$0xff]  }
 0x578   : > { %4152 = vmatpush1.bf16.msra.mxu1 %v13413_v59  ;;  %v13463_v59 = vld [vmem:[%s17476_s2 + $0x2e4] ss:$8 sps:$4 sm:$0xff]  }
 0x579   : > { %4153 = vmatprep.subr.bf16.mxu1 %v13418_v60  ;;  %v13461_v60 = vld [vmem:[%s17476_s2 + $0x2e0] ss:$8 sps:$4 sm:$0xff]  }
 0x57c   : > { %4154 = vmatpush1.bf16.msra.mxu1 %v13416_v16  ;;  %v13466_v16 = vld [vmem:[%s17476_s2 + $0x2f4] ss:$8 sps:$4 sm:$0xff]  }
 0x57d   : > { %4176 = vmatprep.subr.bf16.mxu1 %v13421_v61  ;;  %v16434_v61 = vpop.f32.mrb[8].mxu0 }
 0x57f   : > { %4156 = vmatmul.mubr.bf16.vlgmr.msra.gmra.mrb[32].mxu1 %v2320_v58  ;;  %v13433_v58 = vld [vmem:[%s17476_s2 + $0x244] ss:$8 sps:$4 sm:$0xff]  }
 0x580   : > { %4177 = vmatpush1.bf16.msra.mxu1 %v13419_v62  ;;  %4165 = vmatprep.mubr.bf16.mxu1 %v2323_v8  ;;  %v13439_v8 = vld [vmem:[%s17476_s2 + $0x264] ss:$8 sps:$4 sm:$0xff]   ;;  %v16436_v62 = vpop.f32.mrb[9].mxu0 }
 0x581   : > { %4178 = vmatprep.subr.bf16.mxu1 %v13424_v63  ;;  %v16438_v63 = vpop.f32.mrb[10].mxu0 }
 0x584   : > { %4179 = vmatpush1.bf16.msra.mxu1 %v13422_v0  ;;  %v13464_v0 = vld [vmem:[%s17476_s2 + $0x2f0] ss:$8 sps:$4 sm:$0xff]  }
 0x585   : > { %4180 = vmatprep.subr.bf16.mxu1 %v13427_v6  ;;  %v13469_v6 = vld [vmem:[%s17476_s2 + $0x304] ss:$8 sps:$4 sm:$0xff]  }
 0x587   : > { %4166 = vmatmul.mubr.bf16.gmra.mrb[36].mxu1 %v2322_v4  ;;  %v2635_v4 = vpack.c.bf16 %v16408_v3, %v16402_v2  ;;  %v13630_v2 = vld [vmem:[%s17476_s2 + $0x654] ss:$8 sps:$4 sm:$0xff]  }
 0x588   : > { %4181 = vmatpush1.bf16.msra.mxu1 %v13425_v7  ;;  %4208 = vmatprep.mubr.bf16.mxu1 %v2399_v35  ;;  %v13434_v35 = vld [vmem:[%s17476_s2 + $0x250] ss:$8 sps:$4 sm:$0xff]   ;;  %v2554_v7 = vpack.c.bf16 %v16438_v63, %v16434_v61  ;;  %v13573_v61 = vld [vmem:[%s17476_s2 + $0x524] ss:$8 sps:$4 sm:$0xff]   ;;  %v13636_v3 = vld [vmem:[%s17476_s2 + $0x674] ss:$8 sps:$4 sm:$0xff]  }
 0x589   : > { %4182 = vmatprep.subr.bf16.mxu1 %v13430_v9  ;;  %v16444_v9 = vpop.f32.mrb[11].mxu0 }
 0x58c   : > { %4183 = vmatpush1.bf16.msra.mxu1 %v13428_v57  ;;  %v2555_v57 = vpack.c.bf16 %v16444_v9, %v16436_v62  ;;  %v13543_v62 = vld [vmem:[%s17476_s2 + $0x484] ss:$8 sps:$4 sm:$0xff]   ;;  %v13541_v9 = vld [vmem:[%s17476_s2 + $0x480] ss:$8 sps:$4 sm:$0xff]  }
 0x58d   : > { %4184 = vmatprep.subr.bf16.mxu1 %v13433_v58  ;;  %v13467_v58 = vld [vmem:[%s17476_s2 + $0x300] ss:$8 sps:$4 sm:$0xff]  }
 0x590   : > { %4185 = vmatpush1.bf16.msra.mxu1 %v13431_v26  ;;  %v13472_v26 = vld [vmem:[%s17476_s2 + $0x314] ss:$8 sps:$4 sm:$0xff]  }
 0x591   : > { %4186 = vmatprep.subr.bf16.mxu1 %v13436_v33  ;;  %v13470_v33 = vld [vmem:[%s17476_s2 + $0x310] ss:$8 sps:$4 sm:$0xff]  }
 0x594   : > { %4187 = vmatpush1.bf16.msra.mxu1 %v13434_v35  ;;  %v13475_v35 = vld [vmem:[%s17476_s2 + $0x324] ss:$8 sps:$4 sm:$0xff]  }
 0x595   : > { %4188 = vmatprep.subr.bf16.mxu1 %v13439_v8  ;;  %v16458_v8 = vpop.f32.mrb[12].mxu0 }
 0x598   : > { %4189 = vmatpush1.bf16.msra.mxu1 %v13437_v10  ;;  %v16460_v10 = vpop.f32.mrb[13].mxu0 }
 0x599   : > { %4190 = vmatprep.subr.bf16.mxu1 %v13442_v17  ;;  %v13473_v17 = vld [vmem:[%s17476_s2 + $0x320] ss:$8 sps:$4 sm:$0xff]   ;;  %v16463_v24 = vpop.f32.mrb[14].mxu0 }
 0x59a   : > { %v2556_v29 = vpack.c.bf16 %v16463_v24, %v16458_v8  ;;  %v13580_v8 = vld [vmem:[%s17476_s2 + $0x550] ss:$8 sps:$4 sm:$0xff]   ;;  %v13585_v24 = vld [vmem:[%s17476_s2 + $0x564] ss:$8 sps:$4 sm:$0xff]  }
 0x59c   : > { %4191 = vmatpush1.bf16.msra.mxu1 %v13440_v18  ;;  %v13481_v18 = vld [vmem:[%s17476_s2 + $0x344] ss:$8 sps:$4 sm:$0xff]  }
 0x59d   : > { %4192 = vmatprep.subr.bf16.mxu1 %v13445_v20  ;;  %v13479_v20 = vld [vmem:[%s17476_s2 + $0x340] ss:$8 sps:$4 sm:$0xff]  }
 0x5a0   : > { %4193 = vmatpush1.bf16.msra.mxu1 %v13443_v21  ;;  %v13484_v21 = vld [vmem:[%s17476_s2 + $0x354] ss:$8 sps:$4 sm:$0xff]  }
 0x5a1   : > { %4194 = vmatprep.subr.bf16.mxu1 %v13448_v23  ;;  %v13491_v23 = vld [vmem:[%s17476_s2 + $0x380] ss:$8 sps:$4 sm:$0xff]  }
 0x5a4   : > { %4195 = vmatpush1.bf16.msra.mxu1 %v13446_v31  ;;  %v13497_v31 = vld [vmem:[%s17476_s2 + $0x394] ss:$8 sps:$4 sm:$0xff]  }
 0x5a5   : > { %4196 = vmatprep.subr.bf16.mxu1 %v13451_v34  ;;  %v13495_v34 = vld [vmem:[%s17476_s2 + $0x390] ss:$8 sps:$4 sm:$0xff]  }
 0x5a8   : > { %4197 = vmatpush1.bf16.msra.mxu1 %v13449_v37  ;;  %v13500_v37 = vld [vmem:[%s17476_s2 + $0x3a4] ss:$8 sps:$4 sm:$0xff]  }
 0x5a9   : > { %4198 = vmatprep.subr.bf16.mxu1 %v13454_v38  ;;  %v13498_v38 = vld [vmem:[%s17476_s2 + $0x3a0] ss:$8 sps:$4 sm:$0xff]  }
 0x5ac   : > { %4199 = vmatpush1.bf16.msra.mxu1 %v13452_v41  ;;  %v13504_v41 = vld [vmem:[%s17476_s2 + $0x3b4] ss:$8 sps:$4 sm:$0xff]  }
 0x5ad   : > { %4200 = vmatprep.subr.bf16.mxu1 %v13457_v50  ;;  %v13502_v50 = vld [vmem:[%s17476_s2 + $0x3b0] ss:$8 sps:$4 sm:$0xff]  }
 0x5b0   : > { %4201 = vmatpush1.bf16.msra.mxu1 %v13455_v52  ;;  %v13507_v52 = vld [vmem:[%s17476_s2 + $0x3c4] ss:$8 sps:$4 sm:$0xff]  }
 0x5b1   : > { %4202 = vmatprep.subr.bf16.mxu1 %v13460_v54  ;;  %v13505_v54 = vld [vmem:[%s17476_s2 + $0x3c0] ss:$8 sps:$4 sm:$0xff]  }
 0x5b4   : > { %4203 = vmatpush1.bf16.msra.mxu1 %v13458_v56  ;;  %v13510_v56 = vld [vmem:[%s17476_s2 + $0x3d4] ss:$8 sps:$4 sm:$0xff]  }
 0x5b5   : > { %4204 = vmatprep.subr.bf16.mxu1 %v13463_v59  ;;  %v13508_v59 = vld [vmem:[%s17476_s2 + $0x3d0] ss:$8 sps:$4 sm:$0xff]  }
 0x5b8   : > { %4205 = vmatpush1.bf16.msra.mxu1 %v13461_v60  ;;  %v13513_v60 = vld [vmem:[%s17476_s2 + $0x3e4] ss:$8 sps:$4 sm:$0xff]  }
 0x5b9   : > { %4206 = vmatprep.subr.bf16.mxu1 %v13466_v16  ;;  %v13511_v16 = vld [vmem:[%s17476_s2 + $0x3e0] ss:$8 sps:$4 sm:$0xff]  }
 0x5bc   : > { %4207 = vmatpush1.bf16.msra.mxu1 %v13464_v0  ;;  %v13516_v0 = vld [vmem:[%s17476_s2 + $0x3f4] ss:$8 sps:$4 sm:$0xff]  }
 0x5bd   : > { %4229 = vmatprep.subr.bf16.mxu1 %v13469_v6  ;;  %v13514_v6 = vld [vmem:[%s17476_s2 + $0x3f0] ss:$8 sps:$4 sm:$0xff]  }
 0x5bf   : > { %4209 = vmatmul.mubr.bf16.vlgmr.msra.gmra.mrb[32].mxu1 %v2398_v32  ;;  %v16467_v32 = vpop.f32.mrb[15].mxu0 }
 0x5c0   : > { %4230 = vmatpush1.bf16.msra.mxu1 %v13467_v58  ;;  %4218 = vmatprep.mubr.bf16.mxu1 %v2401_v51  ;;  %v2557_v42 = vpack.c.bf16 %v16467_v32, %v16460_v10  ;;  %v13476_v51 = vld [vmem:[%s17476_s2 + $0x330] ss:$8 sps:$4 sm:$0xff]   ;;  %v13519_v58 = vld [vmem:[%s17476_s2 + $0x404] ss:$8 sps:$4 sm:$0xff]   ;;  %v13576_v10 = vld [vmem:[%s17476_s2 + $0x534] ss:$8 sps:$4 sm:$0xff]  }
 0x5c1   : > { %4231 = vmatprep.subr.bf16.mxu1 %v13472_v26  ;;  %v13517_v26 = vld [vmem:[%s17476_s2 + $0x400] ss:$8 sps:$4 sm:$0xff]   ;;  %v13574_v32 = vld [vmem:[%s17476_s2 + $0x530] ss:$8 sps:$4 sm:$0xff]  }
 0x5c4   : > { %4232 = vmatpush1.bf16.msra.mxu1 %v13470_v33  ;;  %v13522_v33 = vld [vmem:[%s17476_s2 + $0x414] ss:$8 sps:$4 sm:$0xff]  }
 0x5c5   : > { %4233 = vmatprep.subr.bf16.mxu1 %v13475_v35  ;;  %v13520_v35 = vld [vmem:[%s17476_s2 + $0x410] ss:$8 sps:$4 sm:$0xff]  }
 0x5c7   : > { %4219 = vmatmul.mubr.bf16.gmra.mrb[36].mxu1 %v2400_v48  ;;  %v13485_v48 = vld [vmem:[%s17476_s2 + $0x360] ss:$8 sps:$4 sm:$0xff]  }
 0x5c8   : > { %4234 = vmatpush1.bf16.msra.mxu1 %v13473_v17  ;;  %4261 = vmatprep.mubr.bf16.mxu1 %v2477_v19  ;;  %v13493_v19 = vld [vmem:[%s17476_s2 + $0x384] ss:$8 sps:$4 sm:$0xff]  }
 0x5c9   : > { %4235 = vmatprep.subr.bf16.mxu1 %v13478_v49  ;;  %v13525_v17 = vld [vmem:[%s17476_s2 + $0x424] ss:$8 sps:$4 sm:$0xff]   ;;  %v13523_v49 = vld [vmem:[%s17476_s2 + $0x420] ss:$8 sps:$4 sm:$0xff]  }
 0x5cc   : > { %4236 = vmatpush1.bf16.msra.mxu1 %v13476_v51  ;;  %v13528_v51 = vld [vmem:[%s17476_s2 + $0x434] ss:$8 sps:$4 sm:$0xff]  }
 0x5cd   : > { %4237 = vmatprep.subr.bf16.mxu1 %v13481_v18  ;;  %v13544_v18 = vld [vmem:[%s17476_s2 + $0x490] ss:$8 sps:$4 sm:$0xff]  }
 0x5d0   : > { %4238 = vmatpush1.bf16.msra.mxu1 %v13479_v20  ;;  %v13549_v20 = vld [vmem:[%s17476_s2 + $0x4a4] ss:$8 sps:$4 sm:$0xff]  }
 0x5d1   : > { %4239 = vmatprep.subr.bf16.mxu1 %v13484_v21  ;;  %v13547_v21 = vld [vmem:[%s17476_s2 + $0x4a0] ss:$8 sps:$4 sm:$0xff]  }
 0x5d4   : > { %4240 = vmatpush1.bf16.msra.mxu1 %v13482_v40  ;;  %v13552_v40 = vld [vmem:[%s17476_s2 + $0x4b4] ss:$8 sps:$4 sm:$0xff]  }
 0x5d5   : > { %4241 = vmatprep.subr.bf16.mxu1 %v13487_v45  ;;  %v13550_v45 = vld [vmem:[%s17476_s2 + $0x4b0] ss:$8 sps:$4 sm:$0xff]  }
 0x5d8   : > { %4242 = vmatpush1.bf16.msra.mxu1 %v13485_v48  ;;  %v13555_v48 = vld [vmem:[%s17476_s2 + $0x4c4] ss:$8 sps:$4 sm:$0xff]  }
 0x5d9   : > { %4243 = vmatprep.subr.bf16.mxu1 %v13490_v12  ;;  %v13553_v12 = vld [vmem:[%s17476_s2 + $0x4c0] ss:$8 sps:$4 sm:$0xff]  }
 0x5dc   : > { %4244 = vmatpush1.bf16.msra.mxu1 %v13488_v15  ;;  %v13558_v15 = vld [vmem:[%s17476_s2 + $0x4d4] ss:$8 sps:$4 sm:$0xff]  }
 0x5dd   : > { %4245 = vmatprep.subr.bf16.mxu1 %v13493_v19  ;;  %v13556_v19 = vld [vmem:[%s17476_s2 + $0x4d0] ss:$8 sps:$4 sm:$0xff]  }
 0x5e0   : > { %4246 = vmatpush1.bf16.msra.mxu1 %v13491_v23  ;;  %v13561_v23 = vld [vmem:[%s17476_s2 + $0x4e4] ss:$8 sps:$4 sm:$0xff]  }
 0x5e1   : > { %4247 = vmatprep.subr.bf16.mxu1 %v13497_v31  ;;  %v13559_v31 = vld [vmem:[%s17476_s2 + $0x4e0] ss:$8 sps:$4 sm:$0xff]  }
 0x5e4   : > { %4248 = vmatpush1.bf16.msra.mxu1 %v13495_v34  ;;  %v13564_v34 = vld [vmem:[%s17476_s2 + $0x4f4] ss:$8 sps:$4 sm:$0xff]  }
 0x5e5   : > { %4249 = vmatprep.subr.bf16.mxu1 %v13500_v37 }
 0x5e8   : > { %4250 = vmatpush1.bf16.msra.mxu1 %v13498_v38 }
 0x5e9   : > { %4251 = vmatprep.subr.bf16.mxu1 %v13504_v41 }
 0x5ec   : > { %4252 = vmatpush1.bf16.msra.mxu1 %v13502_v50  ;;  %v13562_v50 = vld [vmem:[%s17476_s2 + $0x4f0] ss:$8 sps:$4 sm:$0xff]  }
 0x5ed   : > { %4253 = vmatprep.subr.bf16.mxu1 %v13507_v52 }
 0x5f0   : > { %4254 = vmatpush1.bf16.msra.mxu1 %v13505_v54 }
 0x5f1   : > { %4255 = vmatprep.subr.bf16.mxu1 %v13510_v56  ;;  %v13567_v56 = vld [vmem:[%s17476_s2 + $0x504] ss:$8 sps:$4 sm:$0xff]  }
 0x5f4   : > { %4256 = vmatpush1.bf16.msra.mxu1 %v13508_v59 }
 0x5f5   : > { %4257 = vmatprep.subr.bf16.mxu1 %v13513_v60  ;;  %v13565_v60 = vld [vmem:[%s17476_s2 + $0x500] ss:$8 sps:$4 sm:$0xff]  }
 0x5f8   : > { %4258 = vmatpush1.bf16.msra.mxu1 %v13511_v16  ;;  %v13570_v16 = vld [vmem:[%s17476_s2 + $0x514] ss:$8 sps:$4 sm:$0xff]  }
 0x5f9   : > { %4259 = vmatprep.subr.bf16.mxu1 %v13516_v0 }
 0x5fc   : > { %4260 = vmatpush1.bf16.msra.mxu1 %v13514_v6 }
 0x5fd   : > { %4282 = vmatprep.subr.bf16.mxu1 %v13519_v58 }
 0x5ff   : > { %4262 = vmatmul.mubr.bf16.vlgmr.msra.gmra.mrb[32].mxu1 %v2476_v14  ;;  %v13529_v14 = vld [vmem:[%s17476_s2 + $0x440] ss:$8 sps:$4 sm:$0xff]  }
 0x600   : > { %4271 = vmatprep.mubr.bf16.mxu1 %v2479_v36  ;;  %4283 = vmatpush1.bf16.msra.mxu1 %v13517_v26  ;;  %v13538_v36 = vld [vmem:[%s17476_s2 + $0x470] ss:$8 sps:$4 sm:$0xff]  }
 0x601   : > { %4284 = vmatprep.subr.bf16.mxu1 %v13522_v33  ;;  %v13568_v26 = vld [vmem:[%s17476_s2 + $0x510] ss:$8 sps:$4 sm:$0xff]  }
 0x604   : > { %4285 = vmatpush1.bf16.msra.mxu1 %v13520_v35 }
 0x605   : > { %4286 = vmatprep.subr.bf16.mxu1 %v13525_v17  ;;  %v13577_v17 = vld [vmem:[%s17476_s2 + $0x540] ss:$8 sps:$4 sm:$0xff]  }
 0x607   : > { %4272 = vmatmul.mubr.bf16.gmra.mrb[36].mxu1 %v2478_v28  ;;  %v13535_v28 = vld [vmem:[%s17476_s2 + $0x460] ss:$8 sps:$4 sm:$0xff]  }
 0x608   : > { %4287 = vmatpush1.bf16.msra.mxu1 %v13523_v49  ;;  %4314 = vmatprep.mubr.bf16.mxu1 %v2555_v57  ;;  %v13546_v57 = vld [vmem:[%s17476_s2 + $0x494] ss:$8 sps:$4 sm:$0xff]  }
 0x609   : > { %4288 = vmatprep.subr.bf16.mxu1 %v13528_v51  ;;  %v13582_v49 = vld [vmem:[%s17476_s2 + $0x554] ss:$8 sps:$4 sm:$0xff]   ;;  %v13589_v51 = vld [vmem:[%s17476_s2 + $0x580] ss:$8 sps:$4 sm:$0xff]  }
 0x60c   : > { %4289 = vmatpush1.bf16.msra.mxu1 %v13526_v11  ;;  %v13594_v11 = vld [vmem:[%s17476_s2 + $0x594] ss:$8 sps:$4 sm:$0xff]  }
 0x60d   : > { %4290 = vmatprep.subr.bf16.mxu1 %v13531_v13  ;;  %v13592_v13 = vld [vmem:[%s17476_s2 + $0x590] ss:$8 sps:$4 sm:$0xff]  }
 0x60f   : > { %v16546_v37 = vpop.f32.mrb[16].mxu0 }
 0x610   : > { %4291 = vmatpush1.bf16.msra.mxu1 %v13529_v14  ;;  %v16548_v38 = vpop.f32.mrb[17].mxu0  ;;  %v13597_v14 = vld [vmem:[%s17476_s2 + $0x5a4] ss:$8 sps:$4 sm:$0xff]  }
 0x611   : > { %4292 = vmatprep.subr.bf16.mxu1 %v13534_v25  ;;  %v16550_v41 = vpop.f32.mrb[18].mxu0  ;;  %v13595_v25 = vld [vmem:[%s17476_s2 + $0x5a0] ss:$8 sps:$4 sm:$0xff]  }
 0x612   : > { %v2710_v52 = vpack.c.bf16 %v16550_v41, %v16546_v37  ;;  %v16555_v54 = vpop.f32.mrb[19].mxu0 }
 0x613   : > { %v2711_v59 = vpack.c.bf16 %v16555_v54, %v16548_v38  ;;  %v13640_v38 = vld [vmem:[%s17476_s2 + $0x690] ss:$8 sps:$4 sm:$0xff]   ;;  %v13643_v54 = vld [vmem:[%s17476_s2 + $0x6a0] ss:$8 sps:$4 sm:$0xff]  }
 0x614   : > { %4293 = vmatpush1.bf16.msra.mxu1 %v13532_v22  ;;  %v13600_v22 = vld [vmem:[%s17476_s2 + $0x5b4] ss:$8 sps:$4 sm:$0xff]  }
 0x615   : > { %4294 = vmatprep.subr.bf16.mxu1 %v13537_v27  ;;  %v13598_v27 = vld [vmem:[%s17476_s2 + $0x5b0] ss:$8 sps:$4 sm:$0xff]  }
 0x618   : > { %4295 = vmatpush1.bf16.msra.mxu1 %v13535_v28  ;;  %v16562_v0 = vpop.f32.mrb[20].mxu0  ;;  %v13603_v28 = vld [vmem:[%s17476_s2 + $0x5c4] ss:$8 sps:$4 sm:$0xff]  }
 0x619   : > { %4296 = vmatprep.subr.bf16.mxu1 %v13540_v30  ;;  %v16564_v6 = vpop.f32.mrb[21].mxu0  ;;  %v13601_v30 = vld [vmem:[%s17476_s2 + $0x5c0] ss:$8 sps:$4 sm:$0xff]  }
 0x61a   : > { %v16569_v58 = vpop.f32.mrb[22].mxu0 }
 0x61b   : > { %v2712_v33 = vpack.c.bf16 %v16569_v58, %v16562_v0  ;;  %v16577_v35 = vpop.f32.mrb[23].mxu0 }
 0x61c   : > { %4297 = vmatpush1.bf16.msra.mxu1 %v13538_v36  ;;  %v2713_v63 = vpack.c.bf16 %v16577_v35, %v16564_v6  ;;  %v13606_v36 = vld [vmem:[%s17476_s2 + $0x5d4] ss:$8 sps:$4 sm:$0xff]  }
 0x61d   : > { %4298 = vmatprep.subr.bf16.mxu1 %v13543_v62  ;;  %v13604_v62 = vld [vmem:[%s17476_s2 + $0x5d0] ss:$8 sps:$4 sm:$0xff]  }
 0x620   : > { %4299 = vmatpush1.bf16.msra.mxu1 %v13541_v9  ;;  %v13609_v9 = vld [vmem:[%s17476_s2 + $0x5e4] ss:$8 sps:$4 sm:$0xff]  }
 0x621   : > { %4300 = vmatprep.subr.bf16.mxu1 %v13546_v57  ;;  %v13607_v57 = vld [vmem:[%s17476_s2 + $0x5e0] ss:$8 sps:$4 sm:$0xff]  }
 0x624   : > { %4301 = vmatpush1.bf16.msra.mxu1 %v13544_v18  ;;  %v13612_v18 = vld [vmem:[%s17476_s2 + $0x5f4] ss:$8 sps:$4 sm:$0xff]  }
 0x625   : > { %4302 = vmatprep.subr.bf16.mxu1 %v13549_v20  ;;  %v13610_v20 = vld [vmem:[%s17476_s2 + $0x5f0] ss:$8 sps:$4 sm:$0xff]  }
 0x628   : > { %4303 = vmatpush1.bf16.msra.mxu1 %v13547_v21  ;;  %v13615_v21 = vld [vmem:[%s17476_s2 + $0x604] ss:$8 sps:$4 sm:$0xff]  }
 0x629   : > { %4304 = vmatprep.subr.bf16.mxu1 %v13552_v40  ;;  %v13613_v40 = vld [vmem:[%s17476_s2 + $0x600] ss:$8 sps:$4 sm:$0xff]  }
 0x62c   : > { %4305 = vmatpush1.bf16.msra.mxu1 %v13550_v45  ;;  %v13618_v45 = vld [vmem:[%s17476_s2 + $0x614] ss:$8 sps:$4 sm:$0xff]  }
 0x62d   : > { %4306 = vmatprep.subr.bf16.mxu1 %v13555_v48  ;;  %v13616_v48 = vld [vmem:[%s17476_s2 + $0x610] ss:$8 sps:$4 sm:$0xff]  }
 0x630   : > { %4307 = vmatpush1.bf16.msra.mxu1 %v13553_v12  ;;  %v13621_v12 = vld [vmem:[%s17476_s2 + $0x624] ss:$8 sps:$4 sm:$0xff]  }
 0x631   : > { %4308 = vmatprep.subr.bf16.mxu1 %v13558_v15  ;;  %v13619_v15 = vld [vmem:[%s17476_s2 + $0x620] ss:$8 sps:$4 sm:$0xff]  }
 0x634   : > { %4309 = vmatpush1.bf16.msra.mxu1 %v13556_v19  ;;  %v13624_v19 = vld [vmem:[%s17476_s2 + $0x634] ss:$8 sps:$4 sm:$0xff]  }
 0x635   : > { %4310 = vmatprep.subr.bf16.mxu1 %v13561_v23  ;;  %v13639_v23 = vld [vmem:[%s17476_s2 + $0x684] ss:$8 sps:$4 sm:$0xff]  }
 0x638   : > { %4311 = vmatpush1.bf16.msra.mxu1 %v13559_v31  ;;  %v13637_v31 = vld [vmem:[%s17476_s2 + $0x680] ss:$8 sps:$4 sm:$0xff]  }
 0x639   : > { %4312 = vmatprep.subr.bf16.mxu1 %v13564_v34  ;;  %v13642_v34 = vld [vmem:[%s17476_s2 + $0x694] ss:$8 sps:$4 sm:$0xff]  }
 0x63c   : > { %4313 = vmatpush1.bf16.msra.mxu1 %v13562_v50  ;;  %v13645_v50 = vld [vmem:[%s17476_s2 + $0x6a4] ss:$8 sps:$4 sm:$0xff]  }
 0x63d   : > { %4335 = vmatprep.subr.bf16.mxu1 %v13567_v56  ;;  %v13648_v56 = vld [vmem:[%s17476_s2 + $0x6b4] ss:$8 sps:$4 sm:$0xff]  }
 0x63f   : > { %4315 = vmatmul.mubr.bf16.vlgmr.msra.gmra.mrb[32].mxu1 %v2554_v7  ;;  %v13571_v7 = vld [vmem:[%s17476_s2 + $0x520] ss:$8 sps:$4 sm:$0xff]  }
 0x640   : > { %4336 = vmatpush1.bf16.msra.mxu1 %v13565_v60  ;;  %4324 = vmatprep.mubr.bf16.mxu1 %v2557_v42  ;;  %v13579_v42 = vld [vmem:[%s17476_s2 + $0x544] ss:$8 sps:$4 sm:$0xff]  }
 0x641   : > { %4337 = vmatprep.subr.bf16.mxu1 %v13570_v16  ;;  %v13651_v60 = vld [vmem:[%s17476_s2 + $0x6c4] ss:$8 sps:$4 sm:$0xff]   ;;  %v13649_v16 = vld [vmem:[%s17476_s2 + $0x6c0] ss:$8 sps:$4 sm:$0xff]  }
 0x644   : > { %4338 = vmatpush1.bf16.msra.mxu1 %v13568_v26  ;;  %v13654_v26 = vld [vmem:[%s17476_s2 + $0x6d4] ss:$8 sps:$4 sm:$0xff]  }
 0x645   : > { %4339 = vmatprep.subr.bf16.mxu1 %v13573_v61  ;;  %v13652_v61 = vld [vmem:[%s17476_s2 + $0x6d0] ss:$8 sps:$4 sm:$0xff]  }
 0x647   : > { %4325 = vmatmul.mubr.bf16.gmra.mrb[36].mxu1 %v2556_v29  ;;  %v13591_v29 = vld [vmem:[%s17476_s2 + $0x584] ss:$8 sps:$4 sm:$0xff]  }
 0x648   : > { %4340 = vmatpush1.bf16.msra.mxu1 %v13571_v7  ;;  %4367 = vmatprep.mubr.bf16.mxu1 %v2633_v53  ;;  %v13586_v53 = vld [vmem:[%s17476_s2 + $0x570] ss:$8 sps:$4 sm:$0xff]   ;;  %v13657_v7 = vld [vmem:[%s17476_s2 + $0x6e4] ss:$8 sps:$4 sm:$0xff]  }
 0x649   : > { %4341 = vmatprep.subr.bf16.mxu1 %v13576_v10  ;;  %v13655_v10 = vld [vmem:[%s17476_s2 + $0x6e0] ss:$8 sps:$4 sm:$0xff]  }
 0x64c   : > { %4342 = vmatpush1.bf16.msra.mxu1 %v13574_v32  ;;  %v13660_v32 = vld [vmem:[%s17476_s2 + $0x6f4] ss:$8 sps:$4 sm:$0xff]  }
 0x64d   : > { %4343 = vmatprep.subr.bf16.mxu1 %v13579_v42  ;;  %v13658_v42 = vld [vmem:[%s17476_s2 + $0x6f0] ss:$8 sps:$4 sm:$0xff]  }
 0x650   : > { %4344 = vmatpush1.bf16.msra.mxu1 %v13577_v17  ;;  %v2940_v17 = vlaneseq }
 0x651   : > { %4345 = vmatprep.subr.bf16.mxu1 %v13582_v49 }
 0x652   : > { %v2941_v49 = vshrl.u32 %v2940_v17, 7 }
 0x654   : > { %4346 = vmatpush1.bf16.msra.mxu1 %v13580_v8  ;;  %v16669_v8 = vsub.s32 0, %v2941_v49 }
 0x655   : > { %4347 = vmatprep.subr.bf16.mxu1 %v13585_v24  ;;  %v2938_v24 = vld [vmem:[#allocation5] sm:$0x3] }
 0x658   : > { %4348 = vmatpush1.bf16.msra.mxu1 %v13583_v43  ;;  %v16671_v43 = vsub.s32 1, %v2941_v49 }
 0x659   : > { %4349 = vmatprep.subr.bf16.mxu1 %v13588_v47  ;;  %v2943_v47 = vrot.slane %v2938_v24, %v16669_v8 }
 0x65a   : > { %v2947_v37 = vrot.slane %v2938_v24, %v16671_v43 }
 0x65c   : > { %4350 = vmatpush1.bf16.msra.mxu1 %v13586_v53 }
 0x65d   : > { %4351 = vmatprep.subr.bf16.mxu1 %v13591_v29 }
 0x660   : > { %4352 = vmatpush1.bf16.msra.mxu1 %v13589_v51 }
 0x661   : > { %4353 = vmatprep.subr.bf16.mxu1 %v13594_v11 }
 0x664   : > { %4354 = vmatpush1.bf16.msra.mxu1 %v13592_v13 }
 0x665   : > { %4355 = vmatprep.subr.bf16.mxu1 %v13597_v14 }
 0x668   : > { %4356 = vmatpush1.bf16.msra.mxu1 %v13595_v25 }
 0x669   : > { %4357 = vmatprep.subr.bf16.mxu1 %v13600_v22 }
 0x66c   : > { %4358 = vmatpush1.bf16.msra.mxu1 %v13598_v27 }
 0x66d   : > { %4359 = vmatprep.subr.bf16.mxu1 %v13603_v28 }
 0x670   : > { %4360 = vmatpush1.bf16.msra.mxu1 %v13601_v30 }
 0x671   : > { %4361 = vmatprep.subr.bf16.mxu1 %v13606_v36 }
 0x674   : > { %4362 = vmatpush1.bf16.msra.mxu1 %v13604_v62 }
 0x675   : > { %4363 = vmatprep.subr.bf16.mxu1 %v13609_v9 }
 0x678   : > { %4364 = vmatpush1.bf16.msra.mxu1 %v13607_v57 }
 0x679   : > { %4365 = vmatprep.subr.bf16.mxu1 %v13612_v18 }
 0x67c   : > { %4366 = vmatpush1.bf16.msra.mxu1 %v13610_v20 }
 0x67d   : > { %4388 = vmatprep.subr.bf16.mxu1 %v13615_v21 }
 0x67f   : > { %4368 = vmatmul.mubr.bf16.vlgmr.msra.gmra.mrb[32].mxu1 %v2632_v46  ;;  %v13625_v46 = vld [vmem:[%s17476_s2 + $0x640] ss:$8 sps:$4 sm:$0xff]  }
 0x680   : > { %4377 = vmatprep.mubr.bf16.mxu1 %v2635_v4  ;;  %4389 = vmatpush1.bf16.msra.mxu1 %v13613_v40  ;;  %v13634_v4 = vld [vmem:[%s17476_s2 + $0x670] ss:$8 sps:$4 sm:$0xff]  }
 0x681   : > { %4390 = vmatprep.subr.bf16.mxu1 %v13618_v45 }
 0x684   : > { %4391 = vmatpush1.bf16.msra.mxu1 %v13616_v48 }
 0x685   : > { %4392 = vmatprep.subr.bf16.mxu1 %v13621_v12 }
 0x687   : > { %4378 = vmatmul.mubr.bf16.gmra.mrb[36].mxu1 %v2634_v1  ;;  %v13631_v1 = vld [vmem:[%s17476_s2 + $0x660] ss:$8 sps:$4 sm:$0xff]  }
 0x688   : > { %4393 = vmatpush1.bf16.msra.mxu1 %v13619_v15  ;;  %4420 = vmatprep.mubr.bf16.mxu1 %v2711_v59  ;;  %v13646_v59 = vld [vmem:[%s17476_s2 + $0x6b0] ss:$8 sps:$4 sm:$0xff]  }
 0x689   : > { %4394 = vmatprep.subr.bf16.mxu1 %v13624_v19 }
 0x68c   : > { %4395 = vmatpush1.bf16.msra.mxu1 %v13622_v39 }
 0x68d   : > { %4396 = vmatprep.subr.bf16.mxu1 %v13627_v44 }
 0x690   : > { %4397 = vmatpush1.bf16.msra.mxu1 %v13625_v46 }
 0x691   : > { %4398 = vmatprep.subr.bf16.mxu1 %v13630_v2 }
 0x694   : > { %4399 = vmatpush1.bf16.msra.mxu1 %v13628_v55 }
 0x695   : > { %4400 = vmatprep.subr.bf16.mxu1 %v13633_v5 }
 0x698   : > { %4401 = vmatpush1.bf16.msra.mxu1 %v13631_v1 }
 0x699   : > { %4402 = vmatprep.subr.bf16.mxu1 %v13636_v3 }
 0x69c   : > { %4403 = vmatpush1.bf16.msra.mxu1 %v13634_v4 }
 0x69d   : > { %4404 = vmatprep.subr.bf16.mxu1 %v13639_v23 }
 0x6a0   : > { %4405 = vmatpush1.bf16.msra.mxu1 %v13637_v31 }
 0x6a1   : > { %4406 = vmatprep.subr.bf16.mxu1 %v13642_v34 }
 0x6a4   : > { %4407 = vmatpush1.bf16.msra.mxu1 %v13640_v38 }
 0x6a5   : > { %4408 = vmatprep.subr.bf16.mxu1 %v13645_v50 }
 0x6a8   : > { %4409 = vmatpush1.bf16.msra.mxu1 %v13643_v54 }
 0x6a9   : > { %4410 = vmatprep.subr.bf16.mxu1 %v13648_v56 }
 0x6ac   : > { %4411 = vmatpush1.bf16.msra.mxu1 %v13646_v59 }
 0x6ad   : > { %4412 = vmatprep.subr.bf16.mxu1 %v13651_v60 }
 0x6b0   : > { %4413 = vmatpush1.bf16.msra.mxu1 %v13649_v16 }
 0x6b1   : > { %4414 = vmatprep.subr.bf16.mxu1 %v13654_v26 }
 0x6b4   : > { %4415 = vmatpush1.bf16.msra.mxu1 %v13652_v61 }
 0x6b5   : > { %4416 = vmatprep.subr.bf16.mxu1 %v13657_v7 }
 0x6b8   : > { %4417 = vmatpush1.bf16.msra.mxu1 %v13655_v10 }
 0x6b9   : > { %4418 = vmatprep.subr.bf16.mxu1 %v13660_v32 }
 0x6bc   : > { %4419 = vmatpush1.bf16.msra.mxu1 %v13658_v42 }
 0x6bf   : > { %4421 = vmatmul.mubr.bf16.vlgmr.msra.gmra.mrb[32].mxu1 %v2710_v52 }
 0x6c0   : > { %4430 = vmatprep.mubr.bf16.mxu1 %v2713_v63 }
 0x6c7   : > { %4431 = vmatmul.mubr.bf16.gmra.mrb[36].mxu1 %v2712_v33 }
 0x792   : > { %v4422_v41 = vpop.f32.mrb[32].mxu1 }
 0x793   : > { %v12890_v52 = vadd.f32 %v4422_v41, %v2943_v47  ;;  %v4424_v6 = vpop.f32.mrb[33].mxu1 }
 0x794   : > { %v12891_v35 = vadd.f32 %v4424_v6, %v2947_v37  ;;  %v4426_v63 = vpop.f32.mrb[34].mxu1 }
 0x795   : > { %v4441_v53 = vmax.f32 %v12890_v52, 0.0  ;;  %v12892_v0 = vadd.f32 %v4426_v63, %v2943_v47  ;;  %v4428_v58 = vpop.f32.mrb[35].mxu1 }
 0x796   : > { %v4442_v33 = vmax.f32 %v12891_v35, 0.0  ;;  %v12893_v29 = vadd.f32 %v4428_v58, %v2947_v37 }
 0x797   : > { %v4458_v51 = vrot.slane %v4441_v53, 7  ;;  %v4443_v11 = vmax.f32 %v12892_v0, 0.0  ;;  %v4483_v25 = vrot.slane %v4441_v53, 1 }
 0x798   : > { %v4459_v13 = vrot.slane %v4442_v33, 7  ;;  %v4444_v14 = vmax.f32 %v12893_v29, 0.0  ;;  %v4486_v28 = vrot.slane %v4442_v33, 1 }
 0x799   : > { %v4460_v22 = vrot.slane %v4443_v11, 7  ;;  %v4484_v27 = vrot.slane %v4443_v11, 1  ;;  %v4480_v9 = vsel %vm4457_vm1, 0.0, %v4458_v51 }
 0x79a   : > { %v4462_v30 = vrot.slane %v4444_v14, 7  ;;  %v4487_v36 = vrot.slane %v4444_v14, 1  ;;  %v4432_v62 = vpop.f32.mrb[36].mxu1  ;;  %v4481_v21 = vsel %vm4457_vm1, 0.0, %v4459_v13 }
 0x79b   : > { %v12894_v57 = vadd.f32 %v4432_v62, %v2943_v47  ;;  %v4434_v18 = vpop.f32.mrb[37].mxu1  ;;  %v4485_v20 = vsel %vm4482_vm2, %v4483_v25, %v4484_v27  ;;  %v4461_v40 = vsel %vm4457_vm1, %v4458_v51, %v4460_v22 }
 0x79c   : > { %v12895_v45 = vadd.f32 %v4434_v18, %v2947_v37  ;;  %v4436_v48 = vpop.f32.mrb[38].mxu1  ;;  %v4507_v12 = vmax.f32 %v4480_v9, %v4485_v20  ;;  %v4488_v15 = vsel %vm4482_vm2, %v4486_v28, %v4487_v36  ;;  %v4463_v19 = vsel %vm4457_vm1, %v4459_v13, %v4462_v30 }
 0x79d   : > { %v4445_v39 = vmax.f32 %v12894_v57, 0.0  ;;  %v12896_v44 = vadd.f32 %v4436_v48, %v2943_v47  ;;  %v4438_v46 = vpop.f32.mrb[39].mxu1  ;;  %v4508_v2 = vmax.f32 %v4481_v21, %v4488_v15 }
 0x79e   : > { %v4446_v55 = vmax.f32 %v12895_v45, 0.0  ;;  %v12897_v5 = vadd.f32 %v4438_v46, %v2947_v37  ;;  %v16681_v1 = vmax.f32 %v4441_v53, %v4507_v12 }
 0x79f   : > { %v4464_v3 = vrot.slane %v4445_v39, 7  ;;  %v4489_v4 = vrot.slane %v4445_v39, 1  ;;  %v4447_v23 = vmax.f32 %v12896_v44, 0.0  ;;  %v16683_v31 = vmax.f32 %v4442_v33, %v4508_v2 }
 0x7a0   : > { %v4466_v34 = vrot.slane %v4446_v55, 7  ;;  %v4491_v38 = vrot.slane %v4446_v55, 1  ;;  %v4448_v50 = vmax.f32 %v12897_v5, 0.0  ;;  %4523 = vrot.lane.b32.xlu0 %v16681_v1, %s15244_s8 }
 0x7a1   : > { %v4468_v54 = vrot.slane %v4447_v23, 7  ;;  %v4493_v56 = vrot.slane %v4447_v23, 1  ;;  %4531 = vrot.lane.b32.xlu1 %v16683_v31, %s15244_s8  ;;  %v4490_v59 = vsel %vm4482_vm2, %v4484_v27, %v4489_v4  ;;  %v4465_v60 = vsel %vm4457_vm1, %v4460_v22, %v4464_v3  ;;  %v4595_v22 = vld [vmem:[#allocation8] sm:$0x3]  ;;  %v4550_v27 = vld [vmem:[#allocation7] sm:$0x3] }
 0x7a2   : > { %v4470_v16 = vrot.slane %v4448_v50, 7  ;;  %v4495_v26 = vrot.slane %v4448_v50, 1  ;;  %v4509_v61 = vmax.f32 %v4461_v40, %v4490_v59  ;;  %v4492_v7 = vsel %vm4482_vm2, %v4487_v36, %v4491_v38 }
 0x7a3   : > { %v4510_v10 = vmax.f32 %v4463_v19, %v4492_v7  ;;  %v4494_v32 = vsel %vm4482_vm2, %v4489_v4, %v4493_v56  ;;  %v4469_v42 = vsel %vm4457_vm1, %v4464_v3, %v4468_v54  ;;  %v4505_v49 = vsel %vm4482_vm2, %v4493_v56, 0.0 }
 0x7a4   : > { %4570 = vrot.lane.b32.xlu0 %v16681_v1, %s15245_s12  ;;  %v16696_v24 = vmax.f32 %v4443_v11, %v4509_v61  ;;  %v4511_v47 = vmax.f32 %v4465_v60, %v4494_v32  ;;  %v4513_v37 = vmax.f32 %v4469_v42, %v4505_v49  ;;  %v4467_v41 = vsel %vm4457_vm1, %v4462_v30, %v4466_v34 }
 0x7a5   : > { %v16699_v52 = vmax.f32 %v4444_v14, %v4510_v10  ;;  %v4496_v6 = vsel %vm4482_vm2, %v4491_v38, %v4495_v26  ;;  %v4471_v35 = vsel %vm4457_vm1, %v4466_v34, %v4470_v16  ;;  %v4506_v63 = vsel %vm4482_vm2, %v4495_v26, 0.0 }
 0x7a6   : > { %4572 = vrot.lane.b32.xlu1 %v16696_v24, %s15245_s12  ;;  %v16705_v53 = vmax.f32 %v4445_v39, %v4511_v47  ;;  %v16707_v0 = vmax.f32 %v4447_v23, %v4513_v37  ;;  %v4512_v58 = vmax.f32 %v4467_v41, %v4496_v6  ;;  %v4514_v33 = vmax.f32 %v4471_v35, %v4506_v63 }
 0x7a7   : > { %v16732_v14 = vand.u32 127, %v2940_v17  ;;  %v4600_v30 = vrot.slane %v4595_v22, %v16669_v8  ;;  %v4604_v36 = vrot.slane %v4595_v22, %v16671_v43  ;;  %v4555_v9 = vrot.slane %v4550_v27, %v16669_v8 }
 0x7a8   : > { %4578 = vrot.lane.b32.xlu0 %v16683_v31, %s15245_s12  ;;  %v16710_v29 = vmax.f32 %v4446_v55, %v4512_v58  ;;  %v16712_v51 = vmax.f32 %v4448_v50, %v4514_v33  ;;  %v4559_v57 = vrot.slane %v4550_v27, %v16671_v43  ;;  %vm8112_vm1 = vcmask 1041408  }
 0x7a9   : > { %vm4586_vm3 = vcmp.lt.s32.totalorder %v16732_v14, 126  ;;  %vm4541_vm4 = vcmp.lt.s32.totalorder %v16732_v14, 2  ;;  %vm8113_vm2 = vsmask.f32 1280 }
 0x7aa   : > { %4533 = vrot.lane.b32.xlu1 %v16699_v52, %s15244_s8 }
 0x7ac   : > { %4525 = vrot.lane.b32.xlu0 %v16696_v24, %s15244_s8 }
 0x7ae   : > { %4580 = vrot.lane.b32.xlu1 %v16699_v52, %s15245_s12 }
 0x7b0   : > { %4527 = vrot.lane.b32.xlu0 %v16705_v53, %s15244_s8 }
 0x7b2   : > { %4529 = vrot.lane.b32.xlu1 %v16707_v0, %s15244_s8 }
 0x7b4   : > { %4574 = vrot.lane.b32.xlu0 %v16705_v53, %s15245_s12 }
 0x7b6   : > { %4576 = vrot.lane.b32.xlu1 %v16707_v0, %s15245_s12 }
 0x7b8   : > { %4535 = vrot.lane.b32.xlu0 %v16710_v29, %s15244_s8 }
 0x7ba   : > { %4537 = vrot.lane.b32.xlu1 %v16712_v51, %s15244_s8  ;;  %s17491_s8 = sld [smem:[#allocation94_spill]] }
 0x7bc   : > { %4582 = vrot.lane.b32.xlu0 %v16710_v29, %s15245_s12 }
 0x7be   : > { %4584 = vrot.lane.b32.xlu1 %v16712_v51, %s15245_s12  ;;  %s17492_s12 = sld [smem:[#allocation97_spill]] }
 0x812   : > { %v4524_v11 = vpop.permute.xlu0 %4523 }
 0x813   : > { %v4532_v13 = vpop.permute.xlu1 %4531 }
 0x814   : > { %v4542_v20 = vsel %vm4541_vm4, %v4524_v11, %v4532_v13  ;;  %v4546_v21 = vsel %vm4541_vm4, %v4532_v13, %v4524_v11 }
 0x815   : > { %v4562_v15 = vmul.f32 %v4555_v9, %v4546_v21  ;;  %v4563_v8 = vmul.f32 %v4559_v57, %v4542_v20 }
 0x816   : > { %v4571_v25 = vpop.permute.xlu0 %4570 }
 0x818   : > { %v4573_v28 = vpop.permute.xlu1 %4572 }
 0x81a   : > { %v4579_v62 = vpop.permute.xlu0 %4578 }
 0x81b   : > { %v4587_v17 = vsel %vm4586_vm3, %v4571_v25, %v4579_v62  ;;  %v4591_v18 = vsel %vm4586_vm3, %v4579_v62, %v4571_v25 }
 0x81c   : > { %v4534_v40 = vpop.permute.xlu1 %4533  ;;  %v4607_v45 = vmul.f32 %v4600_v30, %v4587_v17  ;;  %v4608_v48 = vmul.f32 %v4604_v36, %v4591_v18 }
 0x81e   : > { %v4526_v12 = vpop.permute.xlu0 %4525  ;;  %v4615_v44 = vmax.f32 %v4562_v15, %v4607_v45  ;;  %v4616_v46 = vmax.f32 %v4563_v8, %v4608_v48  ;;  %v13662_v45 = vld [vmem:[%s17477_s7 + $0x40] sm:$0xff]   ;;  %v13668_v48 = vld [vmem:[%s17477_s7 + $0x58] sm:$0xff]  }
 0x81f   : > { %v4543_v43 = vsel %vm4541_vm4, %v4526_v12, %v4534_v40  ;;  %v4547_v19 = vsel %vm4541_vm4, %v4534_v40, %v4526_v12  ;;  %v13669_v12 = vld [vmem:[%s17477_s7 + $0x18] sm:$0xff]   ;;  %v13670_v15 = vld [vmem:[%s17477_s7 + $0x60] sm:$0xff]  }
 0x820   : > { %v4581_v39 = vpop.permute.xlu1 %4580  ;;  %v4564_v5 = vmul.f32 %v4555_v9, %v4547_v19  ;;  %v4565_v3 = vmul.f32 %v4559_v57, %v4543_v43  ;;  %v4623_v56 = vmax.f32 %v16681_v1, %v4615_v44  ;;  %v4624_v16 = vmax.f32 %v16683_v31, %v4616_v46  ;;  %v13671_v8 = vld [vmem:[%s17477_s7 + $0x20] sm:$0xff]   ;;  %v13672_v43 = vld [vmem:[%s17477_s7 + $0x68] sm:$0xff]   ;;  %v13675_v44 = vld [vmem:[%s17477_s7 + $0x30] sm:$0xff]  }
 0x821   : > { %v4588_v2 = vsel %vm4586_vm3, %v4573_v28, %v4581_v39  ;;  %v4592_v55 = vsel %vm4586_vm3, %v4581_v39, %v4573_v28  ;;  %v13673_v19 = vld [vmem:[%s17477_s7 + $0x28] sm:$0xff]   ;;  %v13674_v39 = vld [vmem:[%s17477_s7 + $0x70] sm:$0xff]   ;;  %v13676_v46 = vld [vmem:[%s17477_s7 + $0x78] sm:$0xff]  }
 0x822   : > { %v4609_v4 = vmul.f32 %v4600_v30, %v4588_v2  ;;  %v4610_v23 = vmul.f32 %v4604_v36, %v4592_v55  ;;  %v4528_v34 = vpop.permute.xlu0 %4527  ;;  %v13677_v2 = vld [vmem:[%s17477_s7 + $0x38] sm:$0xff]   ;;  %v13678_v55 = vld [vmem:[%s17479_s6 + $0x40] sm:$0xff]  }
 0x824   : > { %v4617_v38 = vmax.f32 %v4564_v5, %v4609_v4  ;;  %v4618_v50 = vmax.f32 %v4565_v3, %v4610_v23  ;;  %v4530_v54 = vpop.permute.xlu1 %4529 }
 0x826   : > { %v4625_v59 = vmax.f32 %v16696_v24, %v4617_v38  ;;  %v4575_v60 = vpop.permute.xlu0 %4574  ;;  %v4626_v26 = vmax.f32 %v16699_v52, %v4618_v50  ;;  %v13679_v50 = vld [vmem:[%s17479_s6] sm:$0xff]  }
 0x828   : > { %v4577_v61 = vpop.permute.xlu1 %4576  ;;  %v4632_v7 = vpack.c.bf16 %v4626_v26, %v4624_v16  ;;  %v4631_v10 = vpack.c.bf16 %v4625_v59, %v4623_v56  ;;  %v13681_v56 = vld [vmem:[%s17479_s6 + $0x8] sm:$0xff]   ;;  %v13682_v59 = vld [vmem:[%s17479_s6 + $0x50] sm:$0xff]   ;;  %v13684_v16 = vld [vmem:[%s17479_s6 + $0x58] sm:$0xff]  }
 0x829   : > { %v13685_v26 = vld [vmem:[%s17479_s6 + $0x18] sm:$0xff]  }
 0x82a   : > { %4646 = vmatprep.subr.bf16.mxu0 %v4632_v7  ;;  %v4536_v32 = vpop.permute.xlu0 %4535  ;;  %v13687_v7 = vld [vmem:[%s17479_s6 + $0x20] sm:$0xff]  }
 0x82b   : > { %4647 = vmatpush1.bf16.msra.mxu0 %v4631_v10  ;;  %v4544_v49 = vsel %vm4541_vm4, %v4528_v34, %v4536_v32  ;;  %v4548_v1 = vsel %vm4541_vm4, %v4536_v32, %v4528_v34  ;;  %v13688_v10 = vld [vmem:[%s17479_s6 + $0x68] sm:$0xff]  }
 0x82c   : > { %v4538_v42 = vpop.permute.xlu1 %4537  ;;  %v4566_v52 = vmul.f32 %v4555_v9, %v4548_v1  ;;  %v4567_v6 = vmul.f32 %v4559_v57, %v4544_v49  ;;  %v13689_v32 = vld [vmem:[%s17479_s6 + $0x28] sm:$0xff]   ;;  %v13691_v49 = vld [vmem:[%s17479_s6 + $0x30] sm:$0xff]   ;;  %v13692_v1 = vld [vmem:[%s17479_s6 + $0x78] sm:$0xff]  }
 0x82d   : > { %v4545_v24 = vsel %vm4541_vm4, %v4530_v54, %v4538_v42  ;;  %v4549_v31 = vsel %vm4541_vm4, %v4538_v42, %v4530_v54  ;;  %v13680_v54 = vld [vmem:[%s17479_s6 + $0x48] sm:$0xff]   ;;  %v13690_v42 = vld [vmem:[%s17479_s6 + $0x70] sm:$0xff]   ;;  %vm8988_vm4 = vcmask 31744  }
 0x82e   : > { %v4583_v47 = vpop.permute.xlu0 %4582  ;;  %v4568_v33 = vmul.f32 %v4555_v9, %v4549_v31  ;;  %v4569_v11 = vmul.f32 %v4559_v57, %v4545_v24  ;;  %v13693_v24 = vld [vmem:[%s17479_s6 + $0x38] sm:$0xff]   ;;  %v15246_v31 = vmov 0.0  }
 0x82f   : > { %v4589_v37 = vsel %vm4586_vm3, %v4575_v60, %v4583_v47  ;;  %v4593_v41 = vsel %vm4586_vm3, %v4583_v47, %v4575_v60  ;;  %v13683_v60 = vld [vmem:[%s17479_s6 + $0x10] sm:$0xff]  }
 0x830   : > { %v4611_v35 = vmul.f32 %v4600_v30, %v4589_v37  ;;  %v4612_v63 = vmul.f32 %v4604_v36, %v4593_v41  ;;  %v4585_v58 = vpop.permute.xlu1 %4584 }
 0x831   : > { %v4590_v13 = vsel %vm4586_vm3, %v4577_v61, %v4585_v58  ;;  %v4594_v25 = vsel %vm4586_vm3, %v4585_v58, %v4577_v61  ;;  %v13686_v61 = vld [vmem:[%s17479_s6 + $0x60] sm:$0xff]   ;;  %vm17172_vm3 = vmand %vm8112_vm1, %vm8113_vm2 }
 0x832   : > { %v4619_v22 = vmax.f32 %v4566_v52, %v4611_v35  ;;  %v4620_v27 = vmax.f32 %v4567_v6, %v4612_v63  ;;  %v4613_v28 = vmul.f32 %v4600_v30, %v4590_v13  ;;  %v4614_v62 = vmul.f32 %v4604_v36, %v4594_v25  ;;  %v13661_v30 = vld [vmem:[%s17478_s23] sm:$0xff]   ;;  %v13667_v36 = vld [vmem:[%s17477_s7 + $0x10] sm:$0xff]   ;;  %s17493_s23 = sld [smem:[#allocation98_spill]] }
 0x833   : > { %v10450_v13 = vld [vmem:[%s15517_s29 + $0x30] sm:$0xff] }
 0x834   : > { %v4621_v17 = vmax.f32 %v4568_v33, %v4613_v28  ;;  %v4622_v18 = vmax.f32 %v4569_v11, %v4614_v62  ;;  %v4627_v20 = vmax.f32 %v16705_v53, %v4619_v22  ;;  %v4628_v57 = vmax.f32 %v16710_v29, %v4620_v27  ;;  %v13663_v53 = vld [vmem:[%s17477_s7] sm:$0xff]   ;;  %v13665_v29 = vld [vmem:[%s17477_s7 + $0x8] sm:$0xff]   ;;  %v13696_v62 = vld [vmem:[%s17479_s6 + $0x90] sm:$0xff]  }
 0x835   : > { %v13694_v22 = vld [vmem:[%s17479_s6 + $0x80] sm:$0xff]   ;;  %v13695_v28 = vld [vmem:[%s17479_s6 + $0x88] sm:$0xff]  }
 0x836   : > { %v4629_v9 = vmax.f32 %v16707_v0, %v4621_v17  ;;  %v4630_v14 = vmax.f32 %v16712_v51, %v4622_v18  ;;  %v13664_v0 = vld [vmem:[%s17477_s7 + $0x48] sm:$0xff]   ;;  %v13666_v51 = vld [vmem:[%s17477_s7 + $0x50] sm:$0xff]   ;;  %v13697_v17 = vld [vmem:[%s17479_s6 + $0x98] sm:$0xff]  }
 0x837   : > { %v13698_v18 = vld [vmem:[%s17479_s6 + $0xa0] sm:$0xff]  }
 0x838   : > { %v4634_v21 = vpack.c.bf16 %v4630_v14, %v4628_v57  ;;  %v4633_v40 = vpack.c.bf16 %v4629_v9, %v4627_v20  ;;  %v13699_v20 = vld [vmem:[%s17479_s6 + $0xa8] sm:$0xff]   ;;  %v13700_v9 = vld [vmem:[%s17479_s6 + $0xb0] sm:$0xff]   ;;  %v13701_v14 = vld [vmem:[%s17479_s6 + $0xb8] sm:$0xff]  }
 0x83a   : > { %4648 = vmatprep.subr.bf16.mxu0 %v4634_v21 }
 0x83b   : > { %4649 = vmatpush1.bf16.msra.mxu0 %v4633_v40 }
 0x83c   : > { %11793 = vmatprep.subr.bf16.mxu0 %v13662_v45 }
 0x83e   : > { %11330 = vmatmul.mubr.msk.bf16.vlgmr.msra.gmra.mrb[24].mxu0 %vm4642_vm5, %v13661_v30  ;;  %v13702_v30 = vld [vmem:[%s17482_s14 + $0x40] sm:$0xff]   ;;  %vm10531_vm5 = vcmask 319488  }
 0x83f   : > { %11794 = vmatpush3.bf16.msra.mxu0 %v13663_v53  ;;  %v13703_v53 = vld [vmem:[%s17482_s14] sm:$0xff]  }
 0x840   : > { %11795 = vmatprep.subr.bf16.mxu0 %v13664_v0  ;;  %v13704_v0 = vld [vmem:[%s17482_s14 + $0x48] sm:$0xff]  }
 0x843   : > { %11796 = vmatpush3.bf16.msra.mxu0 %v13665_v29  ;;  %v13705_v29 = vld [vmem:[%s17482_s14 + $0x8] sm:$0xff]  }
 0x844   : > { %11797 = vmatprep.subr.bf16.mxu0 %v13666_v51  ;;  %v13706_v51 = vld [vmem:[%s17482_s14 + $0x50] sm:$0xff]  }
 0x847   : > { %11798 = vmatpush3.bf16.msra.mxu0 %v13667_v36  ;;  %v13707_v36 = vld [vmem:[%s17482_s14 + $0x10] sm:$0xff]  }
 0x848   : > { %11799 = vmatprep.subr.bf16.mxu0 %v13668_v48  ;;  %v13708_v48 = vld [vmem:[%s17482_s14 + $0x58] sm:$0xff]  }
 0x84b   : > { %11800 = vmatpush3.bf16.msra.mxu0 %v13669_v12  ;;  %v13709_v12 = vld [vmem:[%s17482_s14 + $0x18] sm:$0xff]  }
 0x84c   : > { %11801 = vmatprep.subr.bf16.mxu0 %v13670_v15  ;;  %v13710_v15 = vld [vmem:[%s17482_s14 + $0x60] sm:$0xff]  }
 0x84f   : > { %11802 = vmatpush3.bf16.msra.mxu0 %v13671_v8  ;;  %v13711_v8 = vld [vmem:[%s17482_s14 + $0x20] sm:$0xff]  }
 0x850   : > { %11803 = vmatprep.subr.bf16.mxu0 %v13672_v43  ;;  %v13712_v43 = vld [vmem:[%s17482_s14 + $0x68] sm:$0xff]  }
 0x853   : > { %11804 = vmatpush3.bf16.msra.mxu0 %v13673_v19  ;;  %v13713_v19 = vld [vmem:[%s17482_s14 + $0x28] sm:$0xff]  }
 0x854   : > { %11805 = vmatprep.subr.bf16.mxu0 %v13674_v39  ;;  %v13714_v39 = vld [vmem:[%s17482_s14 + $0x70] sm:$0xff]  }
 0x857   : > { %11806 = vmatpush3.bf16.msra.mxu0 %v13675_v44  ;;  %v13715_v44 = vld [vmem:[%s17482_s14 + $0x30] sm:$0xff]  }
 0x858   : > { %11807 = vmatprep.subr.bf16.mxu0 %v13676_v46  ;;  %v13716_v46 = vld [vmem:[%s17482_s14 + $0x78] sm:$0xff]  }
 0x85b   : > { %11808 = vmatpush3.bf16.msra.mxu0 %v13677_v2  ;;  %v13717_v2 = vld [vmem:[%s17482_s14 + $0x38] sm:$0xff]  }
 0x85c   : > { %11815 = vmatprep.subr.bf16.mxu0 %v13678_v55 }
 0x911   : > { %v4680_v5 = vpop.f32.mrb[24].mxu0 }
 0x912   : > { %v4682_v3 = vpop.f32.mrb[25].mxu0 }
 0x913   : > { %v4684_v4 = vpop.f32.mrb[26].mxu0 }
 0x914   : > { %v4689_v23 = vpack.c.bf16 %v4684_v4, %v4680_v5  ;;  %v4686_v34 = vpop.f32.mrb[27].mxu0 }
 0x915   : > { %v4690_v38 = vpack.c.bf16 %v4686_v34, %v4682_v3 }
 0x917   : > { %4851 = vmatprep.mubr.bf16.mxu0 %v4690_v38  ;;  %v11347_v38 = vld [vmem:[#allocation10] ss:$0 sm:$0xff] }
 0x918   : > { %4852 = vmatmul.mubr.bf16.vlgmr.msra.gmra.mrb[28].mxu0 %v4689_v23 }
 0x919   : > { %11816 = vmatpush3.bf16.msra.mxu0 %v13679_v50 }
 0x91a   : > { %11817 = vmatprep.subr.bf16.mxu0 %v13680_v54 }
 0x91d   : > { %11818 = vmatpush3.bf16.msra.mxu0 %v13681_v56 }
 0x91e   : > { %11819 = vmatprep.subr.bf16.mxu0 %v13682_v59 }
 0x921   : > { %11820 = vmatpush3.bf16.msra.mxu0 %v13683_v60 }
 0x922   : > { %11821 = vmatprep.subr.bf16.mxu0 %v13684_v16 }
 0x925   : > { %11822 = vmatpush3.bf16.msra.mxu0 %v13685_v26 }
 0x926   : > { %11823 = vmatprep.subr.bf16.mxu0 %v13686_v61 }
 0x929   : > { %11824 = vmatpush3.bf16.msra.mxu0 %v13687_v7 }
 0x92a   : > { %11825 = vmatprep.subr.bf16.mxu0 %v13688_v10 }
 0x92d   : > { %11826 = vmatpush3.bf16.msra.mxu0 %v13689_v32 }
 0x92e   : > { %11827 = vmatprep.subr.bf16.mxu0 %v13690_v42 }
 0x931   : > { %11828 = vmatpush3.bf16.msra.mxu0 %v13691_v49 }
 0x932   : > { %11829 = vmatprep.subr.bf16.mxu0 %v13692_v1 }
 0x935   : > { %11830 = vmatpush3.bf16.msra.mxu0 %v13693_v24 }
 0x936   : > { %12379 = vmatprep.subr.bf16.mxu0 %v15246_v31 }
 0x9eb   : > { %v11809_v47 = vpop.f32.mrb[28].mxu0 }
 0x9ec   : > { %v11810_v37 = vpop.f32.mrb[29].mxu0 }
 0x9ed   : > { %v16814_v41 = vadd.f32 %v11810_v37, %v11809_v47  ;;  %v11812_v52 = vpop.f32.mrb[30].mxu0  ;;  %v13718_v47 = vld [vmem:[%s17482_s14 + $0x80] sm:$0xff]  }
 0x9ee   : > { %v11813_v6 = vpop.f32.mrb[31].mxu0 }
 0x9ef   : > { %v16816_v35 = vadd.f32 %v11813_v6, %v11812_v52  ;;  %v13719_v52 = vld [vmem:[%s17482_s14 + $0x88] sm:$0xff]   ;;  %v13720_v6 = vld [vmem:[%s17482_s14 + $0x90] sm:$0xff]  }
 0x9f1   : > { %v4860_v63 = vpack.c.bf16 %v16816_v35, %v16814_v41 }
 0x9f3   : > { %v4862_v58 = vshrl.u32 %v4860_v63, 16  ;;  %5111 = vmatprep.mubr.bf16.mxu0 %v4860_v63  ;;  %v4865_v33 = vshll.u32 %v4860_v63, 16  ;;  %v13721_v63 = vld [vmem:[%s17482_s14 + $0x98] sm:$0xff]  }
 0x9f5   : > { %v4864_v11 = vrot.slane %v4862_v58, 7  ;;  %v4873_v57 = vrot.slane %v4865_v33, 1 }
 0x9f7   : > { %v4867_v25 = vor.u32 %v4865_v33, %v4864_v11  ;;  %v4874_v21 = vor.u32 %v4873_v57, %v4862_v58  ;;  %v13722_v58 = vld [vmem:[%s17482_s14 + $0xa0] sm:$0xff]   ;;  %v13723_v33 = vld [vmem:[%s17482_s14 + $0xa8] sm:$0xff]   ;;  %v13724_v11 = vld [vmem:[%s17482_s14 + $0xb0] sm:$0xff]  }
 0x9f8   : > { %v13731_v57 = vld [vmem:[%s17485_s4 + $0x10] sm:$0xff]  }
 0x9f9   : > { %v4872_v27 = vsel %vm16821_vm7, 0, %v4867_v25  ;;  %v4879_v45 = vsel %vm16844_vm11, %v4874_v21, 0  ;;  %v13733_v21 = vld [vmem:[%s17485_s4 + $0x18] sm:$0xff]  }
 0x9fa   : > { %5112 = vmatmul.mubr.bf16.vlgmr.msra.gmra.mrb[32].mxu0 %v4872_v27 }
 0x9fb   : > { %12380 = vmatpush3.bf16.msra.mxu0 %v13694_v22  ;;  %12395 = vmatprep.mubr.msk.bf16.mxu0 %vm15247_vm8, %v15246_v31  ;;  %v13725_v22 = vld [vmem:[%s17482_s14 + $0xb8] sm:$0xff]  }
 0x9fc   : > { %12381 = vmatprep.subr.bf16.mxu0 %v15246_v31 }
 0x9ff   : > { %12382 = vmatpush3.bf16.msra.mxu0 %v13695_v28 }
 0xa00   : > { %12383 = vmatprep.subr.bf16.mxu0 %v15246_v31 }
 0xa03   : > { %12384 = vmatpush3.bf16.msra.mxu0 %v13696_v62  ;;  %v13726_v62 = vld [vmem:[%s17485_s4 + $0x40] sm:$0xff]  }
 0xa04   : > { %12385 = vmatprep.subr.bf16.mxu0 %v15246_v31 }
 0xa07   : > { %12386 = vmatpush3.bf16.msra.mxu0 %v13697_v17  ;;  %v13727_v17 = vld [vmem:[%s17485_s4] sm:$0xff]  }
 0xa08   : > { %12387 = vmatprep.subr.bf16.mxu0 %v15246_v31 }
 0xa0b   : > { %12388 = vmatpush3.bf16.msra.mxu0 %v13698_v18  ;;  %v13728_v18 = vld [vmem:[%s17485_s4 + $0x48] sm:$0xff]  }
 0xa0c   : > { %12389 = vmatprep.subr.bf16.mxu0 %v15246_v31 }
 0xa0f   : > { %12390 = vmatpush3.bf16.msra.mxu0 %v13699_v20  ;;  %v13729_v20 = vld [vmem:[%s17485_s4 + $0x8] sm:$0xff]  }
 0xa10   : > { %12391 = vmatprep.subr.bf16.mxu0 %v15246_v31 }
 0xa13   : > { %12392 = vmatpush3.bf16.msra.mxu0 %v13700_v9  ;;  %v13730_v9 = vld [vmem:[%s17485_s4 + $0x50] sm:$0xff]  }
 0xa14   : > { %12393 = vmatprep.subr.bf16.mxu0 %v15246_v31 }
 0xa17   : > { %12394 = vmatpush3.bf16.msra.mxu0 %v13701_v14  ;;  %v13732_v14 = vld [vmem:[%s17485_s4 + $0x58] sm:$0xff]  }
 0xa18   : > { %11846 = vmatprep.subr.bf16.mxu0 %v13702_v30  ;;  %v13735_v30 = vld [vmem:[%s17485_s4 + $0x20] sm:$0xff]  }
 0xa1a   : > { %12396 = vmatmul.mubr.bf16.vlgmr.msra.gmra.mrb[36].mxu0 %v4879_v45  ;;  %v13734_v45 = vld [vmem:[%s17485_s4 + $0x60] sm:$0xff]  }
 0xa1b   : > { %11847 = vmatpush3.bf16.msra.mxu0 %v13703_v53  ;;  %v13736_v53 = vld [vmem:[%s17485_s4 + $0x68] sm:$0xff]  }
 0xa1c   : > { %11848 = vmatprep.subr.bf16.mxu0 %v13704_v0  ;;  %v13737_v0 = vld [vmem:[%s17485_s4 + $0x28] sm:$0xff]  }
 0xa1f   : > { %11849 = vmatpush3.bf16.msra.mxu0 %v13705_v29  ;;  %v13738_v29 = vld [vmem:[%s17485_s4 + $0x70] sm:$0xff]  }
 0xa20   : > { %11850 = vmatprep.subr.bf16.mxu0 %v13706_v51  ;;  %v13739_v51 = vld [vmem:[%s17485_s4 + $0x30] sm:$0xff]  }
 0xa23   : > { %11851 = vmatpush3.bf16.msra.mxu0 %v13707_v36  ;;  %v13740_v36 = vld [vmem:[%s17485_s4 + $0x78] sm:$0xff]  }
 0xa24   : > { %11852 = vmatprep.subr.bf16.mxu0 %v13708_v48  ;;  %v13741_v48 = vld [vmem:[%s17485_s4 + $0x38] sm:$0xff]  }
 0xa27   : > { %11853 = vmatpush3.bf16.msra.mxu0 %v13709_v12 }
 0xa28   : > { %11854 = vmatprep.subr.bf16.mxu0 %v13710_v15 }
 0xa2b   : > { %11855 = vmatpush3.bf16.msra.mxu0 %v13711_v8 }
 0xa2c   : > { %11856 = vmatprep.subr.bf16.mxu0 %v13712_v43 }
 0xa2f   : > { %11857 = vmatpush3.bf16.msra.mxu0 %v13713_v19 }
 0xa30   : > { %11858 = vmatprep.subr.bf16.mxu0 %v13714_v39 }
 0xa33   : > { %11859 = vmatpush3.bf16.msra.mxu0 %v13715_v44  ;;  %v11372_v44 = vld [vmem:[%s17486_s1] ss:$0 sm:$0xff]  ;;  %s17494_s1 = sld [smem:[#allocation100_spill]] }
 0xa34   : > { %11860 = vmatprep.subr.bf16.mxu0 %v13716_v46 }
 0xa37   : > { %11861 = vmatpush3.bf16.msra.mxu0 %v13717_v2 }
 0xa38   : > { %12399 = vmatprep.subr.bf16.mxu0 %v15246_v31 }
 0xacd   : > { %v11831_v55 = vpop.f32.mrb[32].mxu0 }
 0xace   : > { %v11832_v5 = vpop.f32.mrb[33].mxu0 }
 0xacf   : > { %v11833_v3 = vadd.f32 %v11832_v5, %v11831_v55  ;;  %v11834_v4 = vpop.f32.mrb[34].mxu0 }
 0xad0   : > { %v11835_v23 = vpop.f32.mrb[35].mxu0 }
 0xad1   : > { %v11836_v34 = vadd.f32 %v11835_v23, %v11834_v4  ;;  %v5114_v50 = vadd.f32 %v11833_v3, %v11347_v38 }
 0xad3   : > { %v5117_v60 = vadd.f32 %v11836_v34, %v11347_v38 }
 0xaed   : > { %v5154_v54 = vpop.f32.mrb[36].mxu0 }
 0xaee   : > { %v5155_v56 = vadd.f32 %v5154_v54, %v5114_v50  ;;  %v12397_v59 = vpop.f32.mrb[37].mxu0 }
 0xaef   : > { %v5157_v16 = vpop.f32.mrb[38].mxu0 }
 0xaf0   : > { %v5158_v26 = vadd.f32 %v5157_v16, %v5117_v60  ;;  %v12398_v61 = vpop.f32.mrb[39].mxu0  ;;  %v5161_v7 = vmax.f32 %v5155_v56, 0.0 }
 0xaf1   : > { %v13742_v61 = vld [vmem:[%s17485_s4 + $0x80] sm:$0xff]  }
 0xaf2   : > { %v5162_v10 = vmax.f32 %v5158_v26, 0.0 }
 0xaf4   : > { %v5163_v32 = vpack.c.bf16 %v5162_v10, %v5161_v7  ;;  %v13743_v7 = vld [vmem:[%s17485_s4 + $0x88] sm:$0xff]   ;;  %v13744_v10 = vld [vmem:[%s17485_s4 + $0x90] sm:$0xff]  }
 0xaf6   : > { %v5165_v42 = vshrl.u32 %v5163_v32, 16  ;;  %5408 = vmatprep.mubr.bf16.mxu0 %v5163_v32  ;;  %v5168_v1 = vshll.u32 %v5163_v32, 16  ;;  %v13745_v32 = vld [vmem:[%s17485_s4 + $0x98] sm:$0xff]  }
 0xaf8   : > { %v5167_v49 = vrot.slane %v5165_v42, 7  ;;  %v5173_v25 = vrot.slane %v5168_v1, 1 }
 0xafa   : > { %v5170_v24 = vor.u32 %v5168_v1, %v5167_v49  ;;  %v5174_v27 = vor.u32 %v5173_v25, %v5165_v42  ;;  %v13746_v42 = vld [vmem:[%s17485_s4 + $0xa0] sm:$0xff]   ;;  %v13747_v49 = vld [vmem:[%s17485_s4 + $0xa8] sm:$0xff]   ;;  %v13748_v1 = vld [vmem:[%s17485_s4 + $0xb0] sm:$0xff]  }
 0xafb   : > { %v13755_v25 = vld [vmem:[%s17488_s3 + $0x10] sm:$0xff]  }
 0xafc   : > { %v5172_v37 = vsel %vm16821_vm7, 0, %v5170_v24  ;;  %v5176_v28 = vsel %vm16844_vm11, %v5174_v27, 0  ;;  %v13757_v27 = vld [vmem:[%s17488_s3 + $0x18] sm:$0xff]  }
 0xafd   : > { %5409 = vmatmul.mubr.bf16.vlgmr.msra.gmra.mrb[40].mxu0 %v5172_v37 }
 0xafe   : > { %12400 = vmatpush3.bf16.msra.mxu0 %v13718_v47  ;;  %12415 = vmatprep.mubr.msk.bf16.mxu0 %vm15247_vm8, %v15246_v31  ;;  %v13749_v47 = vld [vmem:[%s17485_s4 + $0xb8] sm:$0xff]  }
 0xaff   : > { %12401 = vmatprep.subr.bf16.mxu0 %v15246_v31 }
 0xb02   : > { %12402 = vmatpush3.bf16.msra.mxu0 %v13719_v52 }
 0xb03   : > { %12403 = vmatprep.subr.bf16.mxu0 %v15246_v31 }
 0xb06   : > { %12404 = vmatpush3.bf16.msra.mxu0 %v13720_v6  ;;  %v13750_v6 = vld [vmem:[%s17487_s16 + $0x40] sm:$0xff]   ;;  %s17499_s16 = sld [smem:[#allocation115_spill]] }
 0xb07   : > { %12405 = vmatprep.subr.bf16.mxu0 %v15246_v31 }
 0xb0a   : > { %12406 = vmatpush3.bf16.msra.mxu0 %v13721_v63  ;;  %v13751_v63 = vld [vmem:[%s17488_s3] sm:$0xff]  }
 0xb0b   : > { %12407 = vmatprep.subr.bf16.mxu0 %v15246_v31 }
 0xb0e   : > { %12408 = vmatpush3.bf16.msra.mxu0 %v13722_v58  ;;  %v13752_v58 = vld [vmem:[%s17488_s3 + $0x48] sm:$0xff]  }
 0xb0f   : > { %12409 = vmatprep.subr.bf16.mxu0 %v15246_v31 }
 0xb12   : > { %12410 = vmatpush3.bf16.msra.mxu0 %v13723_v33  ;;  %v13753_v33 = vld [vmem:[%s17488_s3 + $0x8] sm:$0xff]  }
 0xb13   : > { %12411 = vmatprep.subr.bf16.mxu0 %v15246_v31 }
 0xb16   : > { %12412 = vmatpush3.bf16.msra.mxu0 %v13724_v11  ;;  %v13754_v11 = vld [vmem:[%s17488_s3 + $0x50] sm:$0xff]  }
 0xb17   : > { %12413 = vmatprep.subr.bf16.mxu0 %v15246_v31 }
 0xb1a   : > { %12414 = vmatpush3.bf16.msra.mxu0 %v13725_v22  ;;  %v13756_v22 = vld [vmem:[%s17488_s3 + $0x58] sm:$0xff]  }
 0xb1b   : > { %11877 = vmatprep.subr.bf16.mxu0 %v13726_v62  ;;  %v13759_v62 = vld [vmem:[%s17488_s3 + $0x20] sm:$0xff]  }
 0xb1d   : > { %12416 = vmatmul.mubr.bf16.vlgmr.msra.gmra.mrb[44].mxu0 %v5176_v28  ;;  %v13758_v28 = vld [vmem:[%s17488_s3 + $0x60] sm:$0xff]  }
 0xb1e   : > { %11878 = vmatpush3.bf16.msra.mxu0 %v13727_v17  ;;  %v13760_v17 = vld [vmem:[%s17488_s3 + $0x68] sm:$0xff]  }
 0xb1f   : > { %11879 = vmatprep.subr.bf16.mxu0 %v13728_v18  ;;  %v13761_v18 = vld [vmem:[%s17488_s3 + $0x28] sm:$0xff]  }
 0xb22   : > { %11880 = vmatpush3.bf16.msra.mxu0 %v13729_v20  ;;  %v13762_v20 = vld [vmem:[%s17488_s3 + $0x70] sm:$0xff]  }
 0xb23   : > { %11881 = vmatprep.subr.bf16.mxu0 %v13730_v9  ;;  %v13763_v9 = vld [vmem:[%s17488_s3 + $0x30] sm:$0xff]  }
 0xb26   : > { %11882 = vmatpush3.bf16.msra.mxu0 %v13731_v57  ;;  %v13764_v57 = vld [vmem:[%s17488_s3 + $0x78] sm:$0xff]  }
 0xb27   : > { %11883 = vmatprep.subr.bf16.mxu0 %v13732_v14  ;;  %v13765_v14 = vld [vmem:[%s17488_s3 + $0x38] sm:$0xff]  }
 0xb2a   : > { %11884 = vmatpush3.bf16.msra.mxu0 %v13733_v21 }
 0xb2b   : > { %11885 = vmatprep.subr.bf16.mxu0 %v13734_v45 }
 0xb2e   : > { %11886 = vmatpush3.bf16.msra.mxu0 %v13735_v30 }
 0xb2f   : > { %11887 = vmatprep.subr.bf16.mxu0 %v13736_v53 }
 0xb32   : > { %11888 = vmatpush3.bf16.msra.mxu0 %v13737_v0 }
 0xb33   : > { %11889 = vmatprep.subr.bf16.mxu0 %v13738_v29 }
 0xb36   : > { %11890 = vmatpush3.bf16.msra.mxu0 %v13739_v51  ;;  %v11397_v51 = vld [vmem:[%s17489_s17] ss:$0 sm:$0xff]  ;;  %s17500_s17 = smov %s17499_s16 }
 0xb37   : > { %11891 = vmatprep.subr.bf16.mxu0 %v13740_v36 }
 0xb3a   : > { %11892 = vmatpush3.bf16.msra.mxu0 %v13741_v48 }
 0xb3b   : > { %12419 = vmatprep.subr.bf16.mxu0 %v15246_v31 }
 0xbd0   : > { %v11862_v12 = vpop.f32.mrb[40].mxu0 }
 0xbd1   : > { %v11863_v15 = vpop.f32.mrb[41].mxu0 }
 0xbd2   : > { %v11864_v8 = vadd.f32 %v11863_v15, %v11862_v12  ;;  %v11865_v43 = vpop.f32.mrb[42].mxu0 }
 0xbd3   : > { %v11866_v19 = vpop.f32.mrb[43].mxu0 }
 0xbd4   : > { %v11867_v39 = vadd.f32 %v11866_v19, %v11865_v43  ;;  %v5411_v46 = vadd.f32 %v11864_v8, %v11372_v44 }
 0xbd6   : > { %v5414_v3 = vadd.f32 %v11867_v39, %v11372_v44 }
 0xbf0   : > { %v5451_v2 = vpop.f32.mrb[44].mxu0 }
 0xbf1   : > { %v5452_v55 = vadd.f32 %v5451_v2, %v5411_v46  ;;  %v12417_v5 = vpop.f32.mrb[45].mxu0 }
 0xbf2   : > { %v5454_v4 = vpop.f32.mrb[46].mxu0 }
 0xbf3   : > { %v16907_v23 = vadd.f32 %v16814_v41, %v5452_v55  ;;  %v5455_v34 = vadd.f32 %v5454_v4, %v5414_v3  ;;  %v12418_v38 = vpop.f32.mrb[47].mxu0 }
 0xbf5   : > { %v16910_v50 = vadd.f32 %v16816_v35, %v5455_v34  ;;  %v5460_v54 = vmax.f32 %v16907_v23, 0.0  ;;  %v13766_v34 = vld [vmem:[%s17488_s3 + $0x80] sm:$0xff]   ;;  %v13776_v23 = vld [vmem:[#allocation11 + $0x10] sm:$0xff]  }
 0xbf7   : > { %v5461_v56 = vmax.f32 %v16910_v50, 0.0  ;;  %v13777_v50 = vld [vmem:[#allocation11 + $0x18] sm:$0xff]  }
 0xbf9   : > { %v5462_v59 = vpack.c.bf16 %v5461_v56, %v5460_v54 }
 0xbfb   : > { %v5464_v60 = vshrl.u32 %v5462_v59, 16  ;;  %5707 = vmatprep.mubr.bf16.mxu0 %v5462_v59  ;;  %v5467_v16 = vshll.u32 %v5462_v59, 16  ;;  %v13767_v59 = vld [vmem:[%s17488_s3 + $0x88] sm:$0xff]  }
 0xbfd   : > { %v5466_v41 = vrot.slane %v5464_v60, 7  ;;  %v5472_v24 = vrot.slane %v5467_v16, 1 }
 0xbff   : > { %v5469_v26 = vor.u32 %v5467_v16, %v5466_v41  ;;  %v5473_v37 = vor.u32 %v5472_v24, %v5464_v60  ;;  %v13768_v60 = vld [vmem:[%s17488_s3 + $0x90] sm:$0xff]   ;;  %v13769_v41 = vld [vmem:[%s17488_s3 + $0x98] sm:$0xff]   ;;  %v13770_v16 = vld [vmem:[%s17488_s3 + $0xa0] sm:$0xff]  }
 0xc01   : > { %v5471_v35 = vsel %vm16821_vm7, 0, %v5469_v26  ;;  %v5475_v52 = vsel %vm16844_vm11, %v5473_v37, 0  ;;  %v13771_v26 = vld [vmem:[%s17488_s3 + $0xa8] sm:$0xff]  }
 0xc02   : > { %5708 = vmatmul.mubr.bf16.vlgmr.msra.gmra.mrb[48].mxu0 %v5471_v35 }
 0xc03   : > { %12420 = vmatpush3.bf16.msra.mxu0 %v13742_v61  ;;  %12435 = vmatprep.mubr.msk.bf16.mxu0 %vm15247_vm8, %v15246_v31  ;;  %v13772_v61 = vld [vmem:[%s17488_s3 + $0xb0] sm:$0xff]  }
 0xc04   : > { %12421 = vmatprep.subr.bf16.mxu0 %v15246_v31 }
 0xc07   : > { %12422 = vmatpush3.bf16.msra.mxu0 %v13743_v7  ;;  %v13773_v7 = vld [vmem:[%s17488_s3 + $0xb8] sm:$0xff]  }
 0xc08   : > { %12423 = vmatprep.subr.bf16.mxu0 %v15246_v31 }
 0xc0b   : > { %12424 = vmatpush3.bf16.msra.mxu0 %v13744_v10 }
 0xc0c   : > { %12425 = vmatprep.subr.bf16.mxu0 %v15246_v31 }
 0xc0f   : > { %12426 = vmatpush3.bf16.msra.mxu0 %v13745_v32 }
 0xc10   : > { %12427 = vmatprep.subr.bf16.mxu0 %v15246_v31 }
 0xc13   : > { %12428 = vmatpush3.bf16.msra.mxu0 %v13746_v42 }
 0xc14   : > { %12429 = vmatprep.subr.bf16.mxu0 %v15246_v31 }
 0xc17   : > { %12430 = vmatpush3.bf16.msra.mxu0 %v13747_v49 }
 0xc18   : > { %12431 = vmatprep.subr.bf16.mxu0 %v15246_v31 }
 0xc1b   : > { %12432 = vmatpush3.bf16.msra.mxu0 %v13748_v1 }
 0xc1c   : > { %12433 = vmatprep.subr.bf16.mxu0 %v15246_v31 }
 0xc1f   : > { %12434 = vmatpush3.bf16.msra.mxu0 %v13749_v47 }
 0xc20   : > { %11908 = vmatprep.subr.bf16.mxu0 %v13750_v6 }
 0xc22   : > { %12436 = vmatmul.mubr.bf16.vlgmr.msra.gmra.mrb[52].mxu0 %v5475_v52  ;;  %v11422_v52 = vld [vmem:[%s17490_s0] ss:$0 sm:$0xff]  ;;  %s2142_s0 = scalar_lea.vmem %s15527_s9, %s17506_s18 }
 0xc23   : > { %11909 = vmatpush3.bf16.msra.mxu0 %v13751_v63 }
 0xc24   : > { %11910 = vmatprep.subr.bf16.mxu0 %v13752_v58 }
 0xc27   : > { %11911 = vmatpush3.bf16.msra.mxu0 %v13753_v33 }
 0xc28   : > { %11912 = vmatprep.subr.bf16.mxu0 %v13754_v11 }
 0xc2b   : > { %11913 = vmatpush3.bf16.msra.mxu0 %v13755_v25 }
 0xc2c   : > { %11914 = vmatprep.subr.bf16.mxu0 %v13756_v22 }
 0xc2f   : > { %11915 = vmatpush3.bf16.msra.mxu0 %v13757_v27 }
 0xc30   : > { %11916 = vmatprep.subr.bf16.mxu0 %v13758_v28 }
 0xc33   : > { %11917 = vmatpush3.bf16.msra.mxu0 %v13759_v62 }
 0xc34   : > { %11918 = vmatprep.subr.bf16.mxu0 %v13760_v17 }
 0xc37   : > { %11919 = vmatpush3.bf16.msra.mxu0 %v13761_v18 }
 0xc38   : > { %11920 = vmatprep.subr.bf16.mxu0 %v13762_v20  ;;  %v6059_v20 = vld [vmem:[%s17491_s8] sm:$0xf] }
 0xc3b   : > { %11921 = vmatpush3.bf16.msra.mxu0 %v13763_v9  ;;  %v13774_v9 = vld [vmem:[#allocation11] sm:$0xff]  }
 0xc3c   : > { %11922 = vmatprep.subr.bf16.mxu0 %v13764_v57  ;;  %v13775_v57 = vld [vmem:[#allocation11 + $0x8] sm:$0xff]  }
 0xc3f   : > { %11923 = vmatpush3.bf16.msra.mxu0 %v13765_v14  ;;  %v13780_v14 = vld [vmem:[#allocation11 + $0x30] sm:$0xff]  }
 0xc40   : > { %12439 = vmatprep.subr.bf16.mxu0 %v15246_v31 }
 0xcd5   : > { %v11893_v21 = vpop.f32.mrb[48].mxu0 }
 0xcd6   : > { %v11894_v45 = vpop.f32.mrb[49].mxu0 }
 0xcd7   : > { %v11895_v30 = vadd.f32 %v11894_v45, %v11893_v21  ;;  %v11896_v53 = vpop.f32.mrb[50].mxu0  ;;  %v13781_v21 = vld [vmem:[#allocation11 + $0x38] sm:$0xff]  }
 0xcd8   : > { %v11897_v0 = vpop.f32.mrb[51].mxu0 }
 0xcd9   : > { %v11898_v29 = vadd.f32 %v11897_v0, %v11896_v53  ;;  %v5710_v36 = vadd.f32 %v11895_v30, %v11397_v51 }
 0xcdb   : > { %v5713_v8 = vadd.f32 %v11898_v29, %v11397_v51  ;;  %v6216_v51 = vld [vmem:[%s17492_s12] sm:$0xf] }
 0xcf5   : > { %v5750_v48 = vpop.f32.mrb[52].mxu0 }
 0xcf6   : > { %v5751_v12 = vadd.f32 %v5750_v48, %v5710_v36  ;;  %v12437_v15 = vpop.f32.mrb[53].mxu0  ;;  %v11458_v36 = vld [vmem:[%s17492_s12 + $0x4] sm:$0xf] }
 0xcf7   : > { %v5753_v43 = vpop.f32.mrb[54].mxu0  ;;  %v13782_v48 = vld [vmem:[%s17493_s23 + $0x40] sm:$0xff]  }
 0xcf8   : > { %v5754_v19 = vadd.f32 %v5753_v43, %v5713_v8  ;;  %v12438_v39 = vpop.f32.mrb[55].mxu0  ;;  %v5757_v44 = vmax.f32 %v5751_v12, 0.0  ;;  %v11460_v12 = vld [vmem:[%s17492_s12 + $0x8] sm:$0xf]  ;;  %v13783_v15 = vld [vmem:[%s17493_s23] sm:$0xff]  }
 0xcf9   : > { %v13784_v8 = vld [vmem:[%s17493_s23 + $0x48] sm:$0xff]   ;;  %v13787_v39 = vld [vmem:[%s17493_s23 + $0x10] sm:$0xff]  }
 0xcfa   : > { %v5758_v46 = vmax.f32 %v5754_v19, 0.0  ;;  %v13785_v43 = vld [vmem:[%s17493_s23 + $0x8] sm:$0xff]   ;;  %v13786_v19 = vld [vmem:[%s17493_s23 + $0x50] sm:$0xff]  }
 0xcfc   : > { %v5759_v2 = vpack.c.bf16 %v5758_v46, %v5757_v44  ;;  %v13788_v44 = vld [vmem:[%s17493_s23 + $0x58] sm:$0xff]  }
 0xcfd   : > { %v13789_v46 = vld [vmem:[%s17493_s23 + $0x18] sm:$0xff]  }
 0xcfe   : > { %v5761_v55 = vshrl.u32 %v5759_v2, 16  ;;  %6004 = vmatprep.mubr.bf16.mxu0 %v5759_v2  ;;  %v5764_v3 = vshll.u32 %v5759_v2, 16  ;;  %v13790_v2 = vld [vmem:[%s17493_s23 + $0x60] sm:$0xff]  }
 0xd00   : > { %v5763_v5 = vrot.slane %v5761_v55, 7  ;;  %v5769_v35 = vrot.slane %v5764_v3, 1 }
 0xd02   : > { %v5766_v4 = vor.u32 %v5764_v3, %v5763_v5  ;;  %v5770_v10 = vor.u32 %v5769_v35, %v5761_v55  ;;  %v13791_v55 = vld [vmem:[%s17493_s23 + $0x20] sm:$0xff]   ;;  %v13792_v5 = vld [vmem:[%s17493_s23 + $0x68] sm:$0xff]  }
 0xd03   : > { %v13793_v3 = vld [vmem:[%s17493_s23 + $0x28] sm:$0xff]  }
 0xd04   : > { %v5768_v38 = vsel %vm16821_vm7, 0, %v5766_v4  ;;  %v5772_v32 = vsel %vm16844_vm11, %v5770_v10, 0  ;;  %v13794_v4 = vld [vmem:[%s17493_s23 + $0x70] sm:$0xff]   ;;  %v13798_v10 = vld [vmem:[%s17493_s23 + $0x80] sm:$0xff]  }
 0xd05   : > { %6005 = vmatmul.mubr.bf16.vlgmr.msra.gmra.mrb[56].mxu0 %v5768_v38  ;;  %v13796_v38 = vld [vmem:[%s17493_s23 + $0x78] sm:$0xff]  }
 0xd06   : > { %12440 = vmatpush3.bf16.msra.mxu0 %v13766_v34  ;;  %12455 = vmatprep.mubr.msk.bf16.mxu0 %vm15247_vm8, %v15246_v31  ;;  %v13795_v34 = vld [vmem:[%s17493_s23 + $0x30] sm:$0xff]  }
 0xd07   : > { %12441 = vmatprep.subr.bf16.mxu0 %v15246_v31 }
 0xd0a   : > { %12442 = vmatpush3.bf16.msra.mxu0 %v13767_v59  ;;  %v13797_v59 = vld [vmem:[%s17493_s23 + $0x38] sm:$0xff]  }
 0xd0b   : > { %12443 = vmatprep.subr.bf16.mxu0 %v15246_v31 }
 0xd0e   : > { %12444 = vmatpush3.bf16.msra.mxu0 %v13768_v60 }
 0xd0f   : > { %12445 = vmatprep.subr.bf16.mxu0 %v15246_v31 }
 0xd12   : > { %12446 = vmatpush3.bf16.msra.mxu0 %v13769_v41 }
 0xd13   : > { %12447 = vmatprep.subr.bf16.mxu0 %v15246_v31 }
 0xd16   : > { %12448 = vmatpush3.bf16.msra.mxu0 %v13770_v16 }
 0xd17   : > { %12449 = vmatprep.subr.bf16.mxu0 %v15246_v31 }
 0xd1a   : > { %12450 = vmatpush3.bf16.msra.mxu0 %v13771_v26 }
 0xd1b   : > { %12451 = vmatprep.subr.bf16.mxu0 %v15246_v31 }
 0xd1e   : > { %12452 = vmatpush3.bf16.msra.mxu0 %v13772_v61 }
 0xd1f   : > { %12453 = vmatprep.subr.bf16.mxu0 %v15246_v31 }
 0xd22   : > { %12454 = vmatpush3.bf16.msra.mxu0 %v13773_v7 }
 0xd23   : > { %12459 = vmatprep.subr.bf16.mxu0 %v15246_v31 }
 0xd25   : > { %12456 = vmatmul.mubr.bf16.vlgmr.msra.gmra.mrb[60].mxu0 %v5772_v32 }
 0xd26   : > { %12461 = vmatprep.mubr.msk.bf16.mxu0 %vm15247_vm8, %v15246_v31 }
 0xdd8   : > { %v11924_v42 = vpop.f32.mrb[56].mxu0 }
 0xdd9   : > { %v11925_v49 = vpop.f32.mrb[57].mxu0 }
 0xdda   : > { %v11926_v1 = vadd.f32 %v11925_v49, %v11924_v42  ;;  %v11927_v24 = vpop.f32.mrb[58].mxu0 }
 0xddb   : > { %v11928_v47 = vpop.f32.mrb[59].mxu0 }
 0xddc   : > { %v11929_v37 = vadd.f32 %v11928_v47, %v11927_v24  ;;  %v6007_v6 = vadd.f32 %v11926_v1, %v11422_v52  ;;  %v13799_v1 = vld [vmem:[%s17493_s23 + $0x88] sm:$0xff]   ;;  %v13800_v47 = vld [vmem:[%s17493_s23 + $0x90] sm:$0xff]  }
 0xdde   : > { %v6010_v11 = vadd.f32 %v11929_v37, %v11422_v52 }
 0xdf8   : > { %v6047_v63 = vpop.f32.mrb[60].mxu0 }
 0xdf9   : > { %v6048_v58 = vadd.f32 %v6047_v63, %v6007_v6  ;;  %v12457_v33 = vpop.f32.mrb[61].mxu0  ;;  %v13801_v63 = vld [vmem:[%s17493_s23 + $0x98] sm:$0xff]  }
 0xdfa   : > { %v6050_v25 = vpop.f32.mrb[62].mxu0  ;;  %v13803_v33 = vld [vmem:[%s17493_s23 + $0xa8] sm:$0xff]  }
 0xdfb   : > { %v6054_v40 = vadd.f32 %v6048_v58, %v5460_v54  ;;  %v6051_v22 = vadd.f32 %v6050_v25, %v6010_v11  ;;  %v12458_v27 = vpop.f32.mrb[63].mxu0  ;;  %v13778_v54 = vld [vmem:[#allocation11 + $0x20] sm:$0xff]   ;;  %v13802_v58 = vld [vmem:[%s17493_s23 + $0xa0] sm:$0xff]   ;;  %v13804_v11 = vld [vmem:[%s17493_s23 + $0xb0] sm:$0xff]  }
 0xdfc   : > { %v13805_v25 = vld [vmem:[%s17493_s23 + $0xb8] sm:$0xff]   ;;  %v13807_v27 = vld [vmem:[%s17494_s1] sm:$0xff]  }
 0xdfd   : > { %v6055_v28 = vadd.f32 %v6051_v22, %v5461_v56  ;;  %v6056_v62 = vmax.f32 %v6054_v40, 0.0  ;;  %v13779_v56 = vld [vmem:[#allocation11 + $0x28] sm:$0xff]  }
 0xdfe   : > { %v13806_v22 = vld [vmem:[%s17494_s1 + $0x40] sm:$0xff]  }
 0xdff   : > { %v6057_v17 = vmax.f32 %v6055_v28, 0.0  ;;  %v13808_v28 = vld [vmem:[%s17494_s1 + $0x48] sm:$0xff]  }
 0xe01   : > { %v6058_v18 = vpack.c.bf16 %v6057_v17, %v6056_v62  ;;  %v13809_v62 = vld [vmem:[%s17494_s1 + $0x8] sm:$0xff]   ;;  %v13810_v17 = vld [vmem:[%s17494_s1 + $0x50] sm:$0xff]  }
 0xe03   : > { %12460 = vmatpush3.bf16.msra.mxu0 %v6058_v18 }
 0xe04   : > { %12465 = vmatprep.subr.bf16.mxu0 %v15246_v31 }
 0xe06   : > { %12462 = vmatmul.mubr.msk.bf16.vlgmr.msra.gmra.mrb[64].mxu0 %vm6060_vm12, %v6059_v20  ;;  %v13812_v20 = vld [vmem:[%s17494_s1 + $0x58] sm:$0xff]  }
 0xe07   : > { %12466 = vmatpush3.bf16.msra.mxu0 %v13774_v9  ;;  %12481 = vmatprep.mubr.msk.bf16.mxu0 %vm15247_vm8, %v15246_v31  ;;  %v13813_v9 = vld [vmem:[%s17494_s1 + $0x18] sm:$0xff]  }
 0xe08   : > { %12467 = vmatprep.subr.bf16.mxu0 %v15246_v31 }
 0xe0b   : > { %12468 = vmatpush3.bf16.msra.mxu0 %v13775_v57  ;;  %v13814_v57 = vld [vmem:[%s17494_s1 + $0x60] sm:$0xff]  }
 0xe0c   : > { %12469 = vmatprep.subr.bf16.mxu0 %v15246_v31 }
 0xe0f   : > { %12470 = vmatpush3.bf16.msra.mxu0 %v13776_v23  ;;  %v13815_v23 = vld [vmem:[%s17494_s1 + $0x20] sm:$0xff]  }
 0xe10   : > { %12471 = vmatprep.subr.bf16.mxu0 %v15246_v31 }
 0xe13   : > { %12472 = vmatpush3.bf16.msra.mxu0 %v13777_v50  ;;  %v13816_v50 = vld [vmem:[%s17494_s1 + $0x68] sm:$0xff]  }
 0xe14   : > { %12473 = vmatprep.subr.bf16.mxu0 %v15246_v31 }
 0xe17   : > { %12474 = vmatpush3.bf16.msra.mxu0 %v13778_v54  ;;  %v13817_v54 = vld [vmem:[%s17494_s1 + $0x28] sm:$0xff]  }
 0xe18   : > { %12475 = vmatprep.subr.bf16.mxu0 %v15246_v31 }
 0xe1b   : > { %12476 = vmatpush3.bf16.msra.mxu0 %v13779_v56  ;;  %v13818_v56 = vld [vmem:[%s17494_s1 + $0x70] sm:$0xff]  }
 0xe1c   : > { %12477 = vmatprep.subr.bf16.mxu0 %v15246_v31 }
 0xe1f   : > { %12478 = vmatpush3.bf16.msra.mxu0 %v13780_v14  ;;  %v13819_v14 = vld [vmem:[%s17494_s1 + $0x30] sm:$0xff]  }
 0xe20   : > { %12479 = vmatprep.subr.bf16.mxu0 %v15246_v31 }
 0xe23   : > { %12480 = vmatpush3.bf16.msra.mxu0 %v13781_v21  ;;  %v13820_v21 = vld [vmem:[%s17494_s1 + $0x78] sm:$0xff]  }
 0xe24   : > { %12485 = vmatprep.subr.bf16.mxu0 %v15246_v31 }
 0xed9   : > { %v6098_v45 = vpop.f32.mrb[64].mxu0 }
 0xeda   : > { %v6104_v30 = vpack.c.bf16 %v6098_v45, %v6098_v45  ;;  %v12463_v53 = vpop.f32.mrb[65].mxu0  ;;  %v13821_v45 = vld [vmem:[%s17494_s1 + $0x38] sm:$0xff]  }
 0xedb   : > { %v6101_v0 = vpop.f32.mrb[66].mxu0 }
 0xedc   : > { %v12464_v29 = vpop.f32.mrb[67].mxu0  ;;  %12482 = vmatmul.mubr.bf16.vlgmr.msra.gmra.mrb[68].mxu0 %v6104_v30 }
 0xedd   : > { %12486 = vmatpush3.bf16.msra.mxu0 %v6058_v18  ;;  %12487 = vmatprep.mubr.msk.bf16.mxu0 %vm15247_vm8, %v15246_v31 }
 0xede   : > { %12491 = vmatprep.subr.bf16.mxu0 %v15246_v31 }
 0xee4   : > { %12488 = vmatmul.mubr.msk.bf16.vlgmr.msra.gmra.mrb[72].mxu0 %vm6060_vm12, %v6216_v51 }
 0xee5   : > { %12492 = vmatpush3.bf16.msra.mxu0 %v6058_v18  ;;  %12493 = vmatprep.mubr.msk.bf16.mxu0 %vm15247_vm8, %v15246_v31 }
 0xee6   : > { %12497 = vmatprep.subr.bf16.mxu0 %v15246_v31 }
 0xeec   : > { %12494 = vmatmul.mubr.msk.bf16.vlgmr.msra.gmra.mrb[76].mxu0 %vm6060_vm12, %v11458_v36  ;;  %v11462_v36 = vld [vmem:[#allocation14] ss:$0 sm:$0xff] }
 0xeed   : > { %12498 = vmatpush3.bf16.msra.mxu0 %v6058_v18  ;;  %12499 = vmatprep.mubr.msk.bf16.mxu0 %vm15247_vm8, %v15246_v31  ;;  %v13811_v18 = vld [vmem:[%s17494_s1 + $0x10] sm:$0xff]  }
 0xeee   : > { %11956 = vmatprep.subr.bf16.mxu0 %v13782_v48 }
 0xef4   : > { %12500 = vmatmul.mubr.msk.bf16.vlgmr.msra.gmra.mrb[80].mxu0 %vm6060_vm12, %v11460_v12 }
 0xef5   : > { %11957 = vmatpush3.bf16.msra.mxu0 %v13783_v15 }
 0xef6   : > { %11958 = vmatprep.subr.bf16.mxu0 %v13784_v8 }
 0xef9   : > { %11959 = vmatpush3.bf16.msra.mxu0 %v13785_v43 }
 0xefa   : > { %11960 = vmatprep.subr.bf16.mxu0 %v13786_v19 }
 0xefd   : > { %11961 = vmatpush3.bf16.msra.mxu0 %v13787_v39 }
 0xefe   : > { %11962 = vmatprep.subr.bf16.mxu0 %v13788_v44 }
 0xf01   : > { %11963 = vmatpush3.bf16.msra.mxu0 %v13789_v46 }
 0xf02   : > { %11964 = vmatprep.subr.bf16.mxu0 %v13790_v2 }
 0xf05   : > { %11965 = vmatpush3.bf16.msra.mxu0 %v13791_v55 }
 0xf06   : > { %11966 = vmatprep.subr.bf16.mxu0 %v13792_v5 }
 0xf09   : > { %11967 = vmatpush3.bf16.msra.mxu0 %v13793_v3  ;;  %v13822_v3 = vld [vmem:[%s17494_s1 + $0x80] sm:$0xff]  }
 0xf0a   : > { %11968 = vmatprep.subr.bf16.mxu0 %v13794_v4 }
 0xf0d   : > { %11969 = vmatpush3.bf16.msra.mxu0 %v13795_v34  ;;  %v13823_v34 = vld [vmem:[%s17494_s1 + $0x88] sm:$0xff]  }
 0xf0e   : > { %11970 = vmatprep.subr.bf16.mxu0 %v13796_v38  ;;  %v13824_v38 = vld [vmem:[%s17494_s1 + $0x90] sm:$0xff]  }
 0xf11   : > { %11971 = vmatpush3.bf16.msra.mxu0 %v13797_v59  ;;  %v13825_v59 = vld [vmem:[%s17494_s1 + $0x98] sm:$0xff]  }
 0xf12   : > { %12503 = vmatprep.subr.bf16.mxu0 %v15246_v31 }
 0xfb7   : > { %v6254_v60 = vpop.f32.mrb[72].mxu0 }
 0xfb8   : > { %v12489_v41 = vpop.f32.mrb[73].mxu0  ;;  %v6260_v32 = vpack.c.bf16 %v6254_v60, %v6254_v60  ;;  %v13826_v60 = vld [vmem:[%s17494_s1 + $0xa0] sm:$0xff]  }
 0xfb9   : > { %v6257_v16 = vpop.f32.mrb[74].mxu0  ;;  %v13827_v41 = vld [vmem:[%s17494_s1 + $0xa8] sm:$0xff]  }
 0xfba   : > { %v12490_v26 = vpop.f32.mrb[75].mxu0  ;;  %v13828_v16 = vld [vmem:[%s17494_s1 + $0xb0] sm:$0xff]  }
 0xfbf   : > { %v6300_v61 = vpop.f32.mrb[76].mxu0 }
 0xfc0   : > { %v6306_v35 = vpack.c.bf16 %v6300_v61, %v6300_v61  ;;  %v12495_v7 = vpop.f32.mrb[77].mxu0  ;;  %v13829_v61 = vld [vmem:[%s17494_s1 + $0xb8] sm:$0xff]  }
 0xfc1   : > { %v6303_v42 = vpop.f32.mrb[78].mxu0  ;;  %v13881_v7 = vld [vmem:[#allocation25 + $0x18] sm:$0xff]  }
 0xfc2   : > { %v12496_v49 = vpop.f32.mrb[79].mxu0  ;;  %6584 = vmatprep.mubr.bf16.mxu0 %v6306_v35  ;;  %v13831_v42 = vld [vmem:[#allocation17] sm:$0xff]  }
 0xfc3   : > { %6585 = vmatmul.mubr.bf16.vlgmr.msra.gmra.mrb[84].mxu0 %v6260_v32  ;;  %v13830_v32 = vld [vmem:[#allocation17 + $0x40] sm:$0xff]   ;;  %v13832_v49 = vld [vmem:[#allocation17 + $0x48] sm:$0xff]  }
 0xfc4   : > { %12504 = vmatpush3.bf16.msra.mxu0 %v13798_v10  ;;  %12519 = vmatprep.mubr.msk.bf16.mxu0 %vm15247_vm8, %v15246_v31 }
 0xfc5   : > { %12505 = vmatprep.subr.bf16.mxu0 %v15246_v31  ;;  %12018 = vmatprep.subr.bf16.mxu1 %v13830_v32  ;;  %v13868_v32 = vld [vmem:[#allocation20 + $0xa0] sm:$0xff]  }
 0xfc6   : > { %12019 = vmatpush3.bf16.msra.mxu1 %v13831_v42  ;;  %v13867_v42 = vld [vmem:[#allocation20 + $0x20] sm:$0xff]  }
 0xfc7   : > { %v6346_v24 = vpop.f32.mrb[80].mxu0  ;;  %12020 = vmatprep.subr.bf16.mxu1 %v13832_v49  ;;  %v13869_v49 = vld [vmem:[#allocation20 + $0x68] sm:$0xff]  }
 0xfc8   : > { %12506 = vmatpush3.bf16.msra.mxu0 %v13799_v1  ;;  %v12501_v37 = vpop.f32.mrb[81].mxu0  ;;  %v6352_v40 = vpack.c.bf16 %v6346_v24, %v6346_v24  ;;  %v13833_v1 = vld [vmem:[#allocation17 + $0x8] sm:$0xff]   ;;  %v13834_v24 = vld [vmem:[#allocation17 + $0x50] sm:$0xff]  }
 0xfc9   : > { %12507 = vmatprep.subr.bf16.mxu0 %v15246_v31  ;;  %v6349_v52 = vpop.f32.mrb[82].mxu0  ;;  %v13836_v37 = vld [vmem:[#allocation17 + $0x58] sm:$0xff]  }
 0xfca   : > { %v12502_v6 = vpop.f32.mrb[83].mxu0  ;;  %12021 = vmatpush3.bf16.msra.mxu1 %v13833_v1  ;;  %v13837_v52 = vld [vmem:[#allocation17 + $0x18] sm:$0xff]   ;;  %v13870_v1 = vld [vmem:[#allocation20 + $0x28] sm:$0xff]  }
 0xfcb   : > { %12022 = vmatprep.subr.bf16.mxu1 %v13834_v24  ;;  %v13838_v6 = vld [vmem:[#allocation17 + $0x60] sm:$0xff]   ;;  %v13871_v24 = vld [vmem:[#allocation20 + $0xa8] sm:$0xff]  }
 0xfcc   : > { %12508 = vmatpush3.bf16.msra.mxu0 %v13800_v47  ;;  %v13835_v47 = vld [vmem:[#allocation17 + $0x10] sm:$0xff]  }
 0xfcd   : > { %12509 = vmatprep.subr.bf16.mxu0 %v15246_v31 }
 0xfce   : > { %12023 = vmatpush3.bf16.msra.mxu1 %v13835_v47  ;;  %v13872_v47 = vld [vmem:[#allocation20 + $0x70] sm:$0xff]  }
 0xfcf   : > { %12024 = vmatprep.subr.bf16.mxu1 %v13836_v37  ;;  %v13873_v37 = vld [vmem:[#allocation20 + $0x30] sm:$0xff]  }
 0xfd0   : > { %12510 = vmatpush3.bf16.msra.mxu0 %v13801_v63  ;;  %v13839_v63 = vld [vmem:[#allocation17 + $0x20] sm:$0xff]  }
 0xfd1   : > { %12511 = vmatprep.subr.bf16.mxu0 %v15246_v31 }
 0xfd2   : > { %12025 = vmatpush3.bf16.msra.mxu1 %v13837_v52  ;;  %v13874_v52 = vld [vmem:[#allocation20 + $0xb0] sm:$0xff]  }
 0xfd3   : > { %12026 = vmatprep.subr.bf16.mxu1 %v13838_v6  ;;  %v13875_v6 = vld [vmem:[#allocation20 + $0x78] sm:$0xff]  }
 0xfd4   : > { %12512 = vmatpush3.bf16.msra.mxu0 %v13802_v58  ;;  %v13840_v58 = vld [vmem:[#allocation17 + $0x68] sm:$0xff]  }
 0xfd5   : > { %12513 = vmatprep.subr.bf16.mxu0 %v15246_v31 }
 0xfd6   : > { %12027 = vmatpush3.bf16.msra.mxu1 %v13839_v63  ;;  %v13876_v63 = vld [vmem:[#allocation20 + $0x38] sm:$0xff]  }
 0xfd7   : > { %12028 = vmatprep.subr.bf16.mxu1 %v13840_v58  ;;  %v13877_v58 = vld [vmem:[#allocation20 + $0xb8] sm:$0xff]  }
 0xfd8   : > { %12514 = vmatpush3.bf16.msra.mxu0 %v13803_v33  ;;  %v13841_v33 = vld [vmem:[#allocation17 + $0x28] sm:$0xff]  }
 0xfd9   : > { %12515 = vmatprep.subr.bf16.mxu0 %v15246_v31 }
 0xfda   : > { %12029 = vmatpush3.bf16.msra.mxu1 %v13841_v33 }
 0xfdc   : > { %12516 = vmatpush3.bf16.msra.mxu0 %v13804_v11  ;;  %v13842_v11 = vld [vmem:[#allocation17 + $0x70] sm:$0xff]  }
 0xfdd   : > { %12517 = vmatprep.subr.bf16.mxu0 %v15246_v31  ;;  %12030 = vmatprep.subr.bf16.mxu1 %v13842_v11 }
 0xfe0   : > { %12518 = vmatpush3.bf16.msra.mxu0 %v13805_v25  ;;  %v13843_v25 = vld [vmem:[#allocation17 + $0x30] sm:$0xff]  }
 0xfe1   : > { %11987 = vmatprep.subr.bf16.mxu0 %v13806_v22  ;;  %12031 = vmatpush3.bf16.msra.mxu1 %v13843_v25  ;;  %v13845_v22 = vld [vmem:[#allocation17 + $0x38] sm:$0xff]  }
 0xfe3   : > { %12520 = vmatmul.mubr.bf16.vlgmr.msra.gmra.mrb[88].mxu0 %v6352_v40  ;;  %v13844_v40 = vld [vmem:[#allocation17 + $0x78] sm:$0xff]  }
 0xfe4   : > { %11988 = vmatpush3.bf16.msra.mxu0 %v13807_v27  ;;  %12032 = vmatprep.subr.bf16.mxu1 %v13844_v40 }
 0xfe5   : > { %11989 = vmatprep.subr.bf16.mxu0 %v13808_v28  ;;  %12033 = vmatpush3.bf16.msra.mxu1 %v13845_v22 }
 0xfe6   : > { %12543 = vmatprep.subr.bf16.mxu1 %v15246_v31 }
 0xfe8   : > { %11990 = vmatpush3.bf16.msra.mxu0 %v13809_v62 }
 0xfe9   : > { %11991 = vmatprep.subr.bf16.mxu0 %v13810_v17 }
 0xfec   : > { %11992 = vmatpush3.bf16.msra.mxu0 %v13811_v18 }
 0xfed   : > { %11993 = vmatprep.subr.bf16.mxu0 %v13812_v20  ;;  %v11487_v20 = vld [vmem:[#allocation16] ss:$0 sm:$0xff] }
 0xff0   : > { %11994 = vmatpush3.bf16.msra.mxu0 %v13813_v9 }
 0xff1   : > { %11995 = vmatprep.subr.bf16.mxu0 %v13814_v57  ;;  %v11448_v57 = vld [vmem:[#allocation13] ss:$0 sm:$0xff] }
 0xff4   : > { %11996 = vmatpush3.bf16.msra.mxu0 %v13815_v23 }
 0xff5   : > { %11997 = vmatprep.subr.bf16.mxu0 %v13816_v50 }
 0xff8   : > { %11998 = vmatpush3.bf16.msra.mxu0 %v13817_v54 }
 0xff9   : > { %11999 = vmatprep.subr.bf16.mxu0 %v13818_v56 }
 0xffc   : > { %12000 = vmatpush3.bf16.msra.mxu0 %v13819_v14 }
 0xffd   : > { %12001 = vmatprep.subr.bf16.mxu0 %v13820_v21 }
0x1000   : > { %12002 = vmatpush3.bf16.msra.mxu0 %v13821_v45 }
0x1001   : > { %12523 = vmatprep.subr.bf16.mxu0 %v15246_v31 }
0x1096   : > { %v11972_v30 = vpop.f32.mrb[84].mxu0 }
0x1097   : > { %v11973_v53 = vpop.f32.mrb[85].mxu0 }
0x1098   : > { %v11974_v0 = vadd.f32 %v11973_v53, %v11972_v30  ;;  %v11975_v29 = vpop.f32.mrb[86].mxu0 }
0x1099   : > { %v11976_v51 = vpop.f32.mrb[87].mxu0 }
0x109a   : > { %v6587_v48 = vadd.f32 %v11974_v0, %v11462_v36  ;;  %v13846_v36 = vld [vmem:[#allocation17 + $0x80] sm:$0xff]  }
0x10b6   : > { %v6626_v12 = vpop.f32.mrb[88].mxu0 }
0x10b7   : > { %v6627_v15 = vadd.f32 %v6626_v12, %v6587_v48  ;;  %v12521_v8 = vpop.f32.mrb[89].mxu0  ;;  %v13847_v12 = vld [vmem:[#allocation17 + $0x88] sm:$0xff]  }
0x10b8   : > { %v6629_v43 = vpop.f32.mrb[90].mxu0  ;;  %v13849_v8 = vld [vmem:[#allocation17 + $0x98] sm:$0xff]  }
0x10b9   : > { %v6632_v19 = vmax.f32 %v6627_v15, 0.0  ;;  %v12522_v39 = vpop.f32.mrb[91].mxu0  ;;  %v13848_v15 = vld [vmem:[#allocation17 + $0x90] sm:$0xff]   ;;  %v13850_v43 = vld [vmem:[#allocation17 + $0xa0] sm:$0xff]  }
0x10ba   : > { %v13852_v39 = vld [vmem:[#allocation17 + $0xb0] sm:$0xff]  }
0x10bb   : > { %v6633_v44 = vpack.c.bf16 %v6632_v19, %v6632_v19  ;;  %v13851_v19 = vld [vmem:[#allocation17 + $0xa8] sm:$0xff]  }
0x10bd   : > { %v6635_v46 = vshrl.u32 %v6633_v44, 16  ;;  %6881 = vmatprep.mubr.bf16.mxu0 %v6633_v44  ;;  %v6638_v2 = vshll.u32 %v6633_v44, 16 }
0x10bf   : > { %v6637_v55 = vrot.slane %v6635_v46, 7  ;;  %v6643_v26 = vrot.slane %v6638_v2, 1 }
0x10c1   : > { %v6640_v5 = vor.u32 %v6638_v2, %v6637_v55  ;;  %v6644_v35 = vor.u32 %v6643_v26, %v6635_v46  ;;  %v13853_v46 = vld [vmem:[#allocation17 + $0xb8] sm:$0xff]  }
0x10c2   : > { %v13863_v26 = vld [vmem:[#allocation20 + $0x58] sm:$0xff]  }
0x10c3   : > { %v6642_v4 = vsel %vm16821_vm7, 0, %v6640_v5  ;;  %v6649_v10 = vsel %vm17084_vm15, %v6644_v35, 0  ;;  %v13854_v5 = vld [vmem:[#allocation20 + $0x40] sm:$0xff]   ;;  %v13864_v35 = vld [vmem:[#allocation20 + $0x18] sm:$0xff]  }
0x10c4   : > { %6882 = vmatmul.mubr.bf16.vlgmr.msra.gmra.mrb[92].mxu0 %v6642_v4  ;;  %v13856_v4 = vld [vmem:[#allocation20 + $0x80] sm:$0xff]  }
0x10c5   : > { %12524 = vmatpush3.bf16.msra.mxu0 %v13822_v3  ;;  %12539 = vmatprep.mubr.msk.bf16.mxu0 %vm15247_vm8, %v15246_v31  ;;  %v13855_v3 = vld [vmem:[#allocation20] sm:$0xff]  }
0x10c6   : > { %12525 = vmatprep.subr.bf16.mxu0 %v15246_v31 }
0x10c9   : > { %12526 = vmatpush3.bf16.msra.mxu0 %v13823_v34  ;;  %v13857_v34 = vld [vmem:[#allocation20 + $0x48] sm:$0xff]  }
0x10ca   : > { %12527 = vmatprep.subr.bf16.mxu0 %v15246_v31 }
0x10cd   : > { %12528 = vmatpush3.bf16.msra.mxu0 %v13824_v38  ;;  %v13859_v38 = vld [vmem:[#allocation20 + $0x88] sm:$0xff]  }
0x10ce   : > { %12529 = vmatprep.subr.bf16.mxu0 %v15246_v31 }
0x10d1   : > { %12530 = vmatpush3.bf16.msra.mxu0 %v13825_v59  ;;  %v13858_v59 = vld [vmem:[#allocation20 + $0x8] sm:$0xff]  }
0x10d2   : > { %12531 = vmatprep.subr.bf16.mxu0 %v15246_v31 }
0x10d5   : > { %12532 = vmatpush3.bf16.msra.mxu0 %v13826_v60  ;;  %v13860_v60 = vld [vmem:[#allocation20 + $0x50] sm:$0xff]  }
0x10d6   : > { %12533 = vmatprep.subr.bf16.mxu0 %v15246_v31 }
0x10d9   : > { %12534 = vmatpush3.bf16.msra.mxu0 %v13827_v41  ;;  %v13862_v41 = vld [vmem:[#allocation20 + $0x90] sm:$0xff]  }
0x10da   : > { %12535 = vmatprep.subr.bf16.mxu0 %v15246_v31 }
0x10dd   : > { %12536 = vmatpush3.bf16.msra.mxu0 %v13828_v16  ;;  %v13861_v16 = vld [vmem:[#allocation20 + $0x10] sm:$0xff]  }
0x10de   : > { %12537 = vmatprep.subr.bf16.mxu0 %v15246_v31 }
0x10e1   : > { %12538 = vmatpush3.bf16.msra.mxu0 %v13829_v61  ;;  %v13865_v61 = vld [vmem:[#allocation20 + $0x98] sm:$0xff]  }
0x10e2   : > { %12049 = vmatprep.subr.bf16.mxu0 %v13854_v5 }
0x10e4   : > { %12540 = vmatmul.mubr.bf16.vlgmr.msra.gmra.mrb[68].mxu0 %v6649_v10  ;;  %v13866_v10 = vld [vmem:[#allocation20 + $0x60] sm:$0xff]  }
0x10e5   : > { %12050 = vmatpush3.bf16.msra.mxu0 %v13855_v3 }
0x10e6   : > { %12051 = vmatprep.subr.bf16.mxu0 %v13857_v34 }
0x10e9   : > { %12052 = vmatpush3.bf16.msra.mxu0 %v13858_v59 }
0x10ea   : > { %12053 = vmatprep.subr.bf16.mxu0 %v13860_v60 }
0x10ed   : > { %12054 = vmatpush3.bf16.msra.mxu0 %v13861_v16 }
0x10ee   : > { %12055 = vmatprep.subr.bf16.mxu0 %v13863_v26  ;;  %v7521_v26 = vld [vmem:[#allocation23] sm:$0x3] }
0x10f1   : > { %12056 = vmatpush3.bf16.msra.mxu0 %v13864_v35  ;;  %v13883_v35 = vld [vmem:[#allocation29 + $0x40] sm:$0xff]  }
0x10f2   : > { %12057 = vmatprep.subr.bf16.mxu0 %v13866_v10  ;;  %v7774_v10 = vld [vmem:[#allocation28 + $0x4] sm:$0x3] }
0x10f5   : > { %12058 = vmatpush3.bf16.msra.mxu0 %v13867_v42  ;;  %v13886_v42 = vld [vmem:[#allocation29 + $0x48] sm:$0xff]  }
0x10f6   : > { %12059 = vmatprep.subr.bf16.mxu0 %v13869_v49  ;;  %v13887_v49 = vld [vmem:[#allocation29 + $0x8] sm:$0xff]  }
0x10f9   : > { %12060 = vmatpush3.bf16.msra.mxu0 %v13870_v1  ;;  %v13889_v1 = vld [vmem:[#allocation29 + $0x50] sm:$0xff]  }
0x10fa   : > { %12061 = vmatprep.subr.bf16.mxu0 %v13872_v47  ;;  %v13892_v47 = vld [vmem:[#allocation29 + $0x58] sm:$0xff]  }
0x10fd   : > { %12062 = vmatpush3.bf16.msra.mxu0 %v13873_v37  ;;  %v13893_v37 = vld [vmem:[#allocation29 + $0x18] sm:$0xff]  }
0x10fe   : > { %12063 = vmatprep.subr.bf16.mxu0 %v13875_v6  ;;  %v13896_v6 = vld [vmem:[#allocation29 + $0x20] sm:$0xff]  }
0x1101   : > { %12064 = vmatpush3.bf16.msra.mxu0 %v13876_v63  ;;  %v13898_v63 = vld [vmem:[#allocation29 + $0x68] sm:$0xff]  }
0x1102   : > { %12583 = vmatprep.subr.bf16.mxu0 %v15246_v31 }
0x1197   : > { %v12003_v27 = vpop.f32.mrb[92].mxu0 }
0x1198   : > { %v12004_v28 = vpop.f32.mrb[93].mxu0 }
0x1199   : > { %v12005_v62 = vadd.f32 %v12004_v28, %v12003_v27  ;;  %v12006_v17 = vpop.f32.mrb[94].mxu0  ;;  %v11512_v27 = vld [vmem:[#allocation19] ss:$0 sm:$0xff] }
0x119a   : > { %v12007_v18 = vpop.f32.mrb[95].mxu0 }
0x119b   : > { %v6884_v9 = vadd.f32 %v12005_v62, %v11487_v20 }
0x119d   : > { %v12898_v23 = vadd.f32 %v11448_v57, %v6884_v9 }
0x11b7   : > { %v6923_v50 = vpop.f32.mrb[68].mxu0 }
0x11b8   : > { %v12899_v54 = vadd.f32 %v12898_v23, %v6923_v50  ;;  %v12541_v56 = vpop.f32.mrb[69].mxu0 }
0x11b9   : > { %v6926_v14 = vpop.f32.mrb[70].mxu0 }
0x11ba   : > { %v17091_v21 = vmax.f32 %v12899_v54, 0.0  ;;  %v12542_v45 = vpop.f32.mrb[71].mxu0 }
0x11bc   : > { %v6931_v30 = vpack.c.bf16 %v17091_v21, %v17091_v21 }
0x11be   : > { %v6933_v53 = vshrl.u32 %v6931_v30, 16  ;;  %7176 = vmatprep.mubr.bf16.mxu1 %v6931_v30  ;;  %v6936_v29 = vshll.u32 %v6931_v30, 16 }
0x11c0   : > { %v6935_v0 = vrot.slane %v6933_v53, 7  ;;  %v6941_v44 = vrot.slane %v6936_v29, 1 }
0x11c2   : > { %v6938_v51 = vor.u32 %v6936_v29, %v6935_v0  ;;  %v6942_v2 = vor.u32 %v6941_v44, %v6933_v53  ;;  %v13878_v29 = vld [vmem:[#allocation25] sm:$0xff]  }
0x11c4   : > { %v6940_v48 = vsel %vm16821_vm7, 0, %v6938_v51  ;;  %v6944_v55 = vsel %vm17084_vm15, %v6942_v2, 0  ;;  %v13879_v51 = vld [vmem:[#allocation25 + $0x8] sm:$0xff]  }
0x11c5   : > { %7177 = vmatmul.mubr.bf16.vlgmr.msra.gmra.mrb[40].mxu1 %v6940_v48  ;;  %v13882_v48 = vld [vmem:[#allocation25 + $0x20] sm:$0xff]  }
0x11c6   : > { %12544 = vmatpush3.bf16.msra.mxu1 %v13846_v36  ;;  %12559 = vmatprep.mubr.msk.bf16.mxu1 %vm15247_vm8, %v15246_v31  ;;  %v13880_v36 = vld [vmem:[#allocation25 + $0x10] sm:$0xff]  }
0x11c7   : > { %12545 = vmatprep.subr.bf16.mxu1 %v15246_v31 }
0x11ca   : > { %12546 = vmatpush3.bf16.msra.mxu1 %v13847_v12  ;;  %v13885_v12 = vld [vmem:[#allocation25 + $0x28] sm:$0xff]  }
0x11cb   : > { %12547 = vmatprep.subr.bf16.mxu1 %v15246_v31 }
0x11ce   : > { %12548 = vmatpush3.bf16.msra.mxu1 %v13848_v15  ;;  %v13888_v15 = vld [vmem:[#allocation25 + $0x30] sm:$0xff]  }
0x11cf   : > { %12549 = vmatprep.subr.bf16.mxu1 %v15246_v31 }
0x11d2   : > { %12550 = vmatpush3.bf16.msra.mxu1 %v13849_v8  ;;  %v13891_v8 = vld [vmem:[#allocation25 + $0x38] sm:$0xff]  }
0x11d3   : > { %12551 = vmatprep.subr.bf16.mxu1 %v15246_v31 }
0x11d6   : > { %12552 = vmatpush3.bf16.msra.mxu1 %v13850_v43 }
0x11d7   : > { %12553 = vmatprep.subr.bf16.mxu1 %v15246_v31 }
0x11da   : > { %12554 = vmatpush3.bf16.msra.mxu1 %v13851_v19 }
0x11db   : > { %12555 = vmatprep.subr.bf16.mxu1 %v15246_v31 }
0x11de   : > { %12556 = vmatpush3.bf16.msra.mxu1 %v13852_v39  ;;  %v11537_v39 = vld [vmem:[#allocation22] ss:$0 sm:$0xff] }
0x11df   : > { %12557 = vmatprep.subr.bf16.mxu1 %v15246_v31 }
0x11e2   : > { %12558 = vmatpush3.bf16.msra.mxu1 %v13853_v46 }
0x11e3   : > { %12563 = vmatprep.subr.bf16.mxu1 %v15246_v31 }
0x11e5   : > { %12560 = vmatmul.mubr.bf16.vlgmr.msra.gmra.mrb[44].mxu1 %v6944_v55 }
0x11e6   : > { %12579 = vmatprep.mubr.msk.bf16.mxu1 %vm15247_vm8, %v15246_v31  ;;  %12564 = vmatpush3.bf16.msra.mxu1 %v13856_v4 }
0x11e7   : > { %12565 = vmatprep.subr.bf16.mxu1 %v15246_v31 }
0x11ea   : > { %12566 = vmatpush3.bf16.msra.mxu1 %v13859_v38 }
0x11eb   : > { %12567 = vmatprep.subr.bf16.mxu1 %v15246_v31 }
0x11ee   : > { %12568 = vmatpush3.bf16.msra.mxu1 %v13862_v41 }
0x11ef   : > { %12569 = vmatprep.subr.bf16.mxu1 %v15246_v31 }
0x11f2   : > { %12570 = vmatpush3.bf16.msra.mxu1 %v13865_v61  ;;  %v7682_v61 = vld [vmem:[#allocation28] sm:$0x3] }
0x11f3   : > { %12571 = vmatprep.subr.bf16.mxu1 %v15246_v31 }
0x11f6   : > { %12572 = vmatpush3.bf16.msra.mxu1 %v13868_v32  ;;  %v13884_v32 = vld [vmem:[#allocation29] sm:$0xff]  }
0x11f7   : > { %12573 = vmatprep.subr.bf16.mxu1 %v15246_v31 }
0x11fa   : > { %12574 = vmatpush3.bf16.msra.mxu1 %v13871_v24  ;;  %v13890_v24 = vld [vmem:[#allocation29 + $0x10] sm:$0xff]  }
0x11fb   : > { %12575 = vmatprep.subr.bf16.mxu1 %v15246_v31 }
0x11fe   : > { %12576 = vmatpush3.bf16.msra.mxu1 %v13874_v52  ;;  %v13895_v52 = vld [vmem:[#allocation29 + $0x60] sm:$0xff]  }
0x11ff   : > { %12577 = vmatprep.subr.bf16.mxu1 %v15246_v31 }
0x1202   : > { %12578 = vmatpush3.bf16.msra.mxu1 %v13877_v58  ;;  %v13899_v58 = vld [vmem:[#allocation29 + $0x28] sm:$0xff]  }
0x1203   : > { %12589 = vmatprep.subr.bf16.mxu1 %v15246_v31 }
0x1298   : > { %v12034_v33 = vpop.f32.mrb[40].mxu1 }
0x1299   : > { %v12035_v11 = vpop.f32.mrb[41].mxu1 }
0x129a   : > { %v12036_v25 = vadd.f32 %v12035_v11, %v12034_v33  ;;  %v12037_v40 = vpop.f32.mrb[42].mxu1  ;;  %v13901_v33 = vld [vmem:[#allocation29 + $0x70] sm:$0xff]  }
0x129b   : > { %v12038_v22 = vpop.f32.mrb[43].mxu1  ;;  %v13902_v11 = vld [vmem:[#allocation29 + $0x30] sm:$0xff]   ;;  %v13905_v40 = vld [vmem:[#allocation29 + $0x38] sm:$0xff]  }
0x129c   : > { %v7179_v28 = vadd.f32 %v12036_v25, %v11512_v27  ;;  %v13904_v25 = vld [vmem:[#allocation29 + $0x78] sm:$0xff]   ;;  %v13910_v22 = vld [vmem:[#allocation32 + $0x40] sm:$0xff]  }
0x12b8   : > { %v7218_v62 = vpop.f32.mrb[44].mxu1 }
0x12b9   : > { %v7219_v17 = vadd.f32 %v7218_v62, %v7179_v28  ;;  %v12561_v18 = vpop.f32.mrb[45].mxu1  ;;  %v13894_v28 = vld [vmem:[#allocation29 + $0x80] sm:$0xff]  }
0x12ba   : > { %v7221_v20 = vpop.f32.mrb[46].mxu1 }
0x12bb   : > { %v7224_v9 = vmax.f32 %v7219_v17, 0.0  ;;  %v12562_v57 = vpop.f32.mrb[47].mxu1 }
0x12bc   : > { %v13900_v57 = vld [vmem:[#allocation29 + $0x90] sm:$0xff]  }
0x12bd   : > { %v7225_v23 = vpack.c.bf16 %v7224_v9, %v7224_v9  ;;  %v13897_v9 = vld [vmem:[#allocation29 + $0x88] sm:$0xff]  }
0x12bf   : > { %v7227_v50 = vshrl.u32 %v7225_v23, 16  ;;  %v7230_v54 = vshll.u32 %v7225_v23, 16  ;;  %7470 = vmatprep.mubr.bf16.mxu0 %v7225_v23 }
0x12c1   : > { %v7229_v56 = vrot.slane %v7227_v50, 7  ;;  %v7235_v14 = vrot.slane %v7230_v54, 1 }
0x12c3   : > { %v7232_v45 = vor.u32 %v7230_v54, %v7229_v56  ;;  %v7236_v30 = vor.u32 %v7235_v14, %v7227_v50  ;;  %v13903_v14 = vld [vmem:[#allocation29 + $0x98] sm:$0xff]  }
0x12c5   : > { %v7234_v53 = vsel %vm16821_vm7, 0, %v7232_v45  ;;  %v7238_v0 = vsel %vm17084_vm15, %v7236_v30, 0  ;;  %v13906_v30 = vld [vmem:[#allocation29 + $0xa0] sm:$0xff]  }
0x12c6   : > { %7471 = vmatmul.mubr.bf16.vlgmr.msra.gmra.mrb[96].mxu0 %v7234_v53  ;;  %12580 = vmatmul.mubr.bf16.vlgmr.msra.gmra.mrb[48].mxu1 %v7238_v0 }
0x12c7   : > { %12585 = vmatprep.mubr.msk.bf16.mxu0 %vm15247_vm8, %v15246_v31  ;;  %12605 = vmatprep.mubr.msk.bf16.mxu1 %vm15247_vm8, %v15246_v31 }
0x12c8   : > { %12590 = vmatpush3.bf16.msra.mxu1 %v13878_v29  ;;  %v13911_v29 = vld [vmem:[#allocation32] sm:$0xff]  }
0x12c9   : > { %12591 = vmatprep.subr.bf16.mxu1 %v15246_v31 }
0x12cc   : > { %12592 = vmatpush3.bf16.msra.mxu1 %v13879_v51 }
0x12cd   : > { %12593 = vmatprep.subr.bf16.mxu1 %v15246_v31 }
0x12d0   : > { %12594 = vmatpush3.bf16.msra.mxu1 %v13880_v36 }
0x12d1   : > { %12595 = vmatprep.subr.bf16.mxu1 %v15246_v31 }
0x12d4   : > { %12596 = vmatpush3.bf16.msra.mxu1 %v13881_v7 }
0x12d5   : > { %12597 = vmatprep.subr.bf16.mxu1 %v15246_v31 }
0x12d8   : > { %12598 = vmatpush3.bf16.msra.mxu1 %v13882_v48  ;;  %v13907_v48 = vld [vmem:[#allocation29 + $0xa8] sm:$0xff]  }
0x12d9   : > { %12599 = vmatprep.subr.bf16.mxu1 %v15246_v31 }
0x12dc   : > { %12600 = vmatpush3.bf16.msra.mxu1 %v13885_v12  ;;  %v13908_v12 = vld [vmem:[#allocation29 + $0xb0] sm:$0xff]  }
0x12dd   : > { %12601 = vmatprep.subr.bf16.mxu1 %v15246_v31 }
0x12e0   : > { %12602 = vmatpush3.bf16.msra.mxu1 %v13888_v15 }
0x12e1   : > { %12603 = vmatprep.subr.bf16.mxu1 %v15246_v31 }
0x12e4   : > { %12604 = vmatpush3.bf16.msra.mxu1 %v13891_v8 }
0x12e5   : > { %12627 = vmatprep.subr.bf16.mxu1 %v15246_v31 }
0x1399   : > { %v12065_v43 = vpop.f32.mrb[96].mxu0  ;;  %v7512_v19 = vpop.f32.mrb[48].mxu1 }
0x139a   : > { %v12066_v44 = vpop.f32.mrb[97].mxu0  ;;  %v12581_v46 = vpop.f32.mrb[49].mxu1 }
0x139b   : > { %v12067_v2 = vadd.f32 %v12066_v44, %v12065_v43  ;;  %v12068_v55 = vpop.f32.mrb[98].mxu0  ;;  %v7515_v5 = vpop.f32.mrb[50].mxu1  ;;  %v13912_v46 = vld [vmem:[#allocation32 + $0x80] sm:$0xff]  }
0x139c   : > { %v12069_v3 = vpop.f32.mrb[99].mxu0  ;;  %v12582_v4 = vpop.f32.mrb[51].mxu1  ;;  %v13914_v55 = vld [vmem:[#allocation32 + $0x8] sm:$0xff]  }
0x139d   : > { %v7473_v34 = vadd.f32 %v12067_v2, %v11537_v39  ;;  %v13909_v39 = vld [vmem:[#allocation29 + $0xb8] sm:$0xff]   ;;  %v13913_v2 = vld [vmem:[#allocation32 + $0x48] sm:$0xff]  }
0x139e   : > { %v13915_v5 = vld [vmem:[#allocation32 + $0x88] sm:$0xff]   ;;  %v13916_v3 = vld [vmem:[#allocation32 + $0x50] sm:$0xff]  }
0x139f   : > { %v7513_v38 = vadd.f32 %v7512_v19, %v7473_v34  ;;  %v13917_v4 = vld [vmem:[#allocation32 + $0x10] sm:$0xff]  }
0x13a0   : > { %v13918_v34 = vld [vmem:[#allocation32 + $0x90] sm:$0xff]  }
0x13a1   : > { %v7518_v59 = vadd.f32 %v7513_v38, %v17091_v21  ;;  %v7728_v21 = vld [vmem:[#allocation28 + $0x2] sm:$0x3] }
0x13a2   : > { %v13919_v38 = vld [vmem:[#allocation32 + $0x58] sm:$0xff]  }
0x13a3   : > { %v7519_v60 = vmax.f32 %v7518_v59, 0.0  ;;  %v13920_v59 = vld [vmem:[#allocation32 + $0x18] sm:$0xff]  }
0x13a5   : > { %v7520_v41 = vpack.c.bf16 %v7519_v60, %v7519_v60  ;;  %v13921_v60 = vld [vmem:[#allocation32 + $0x98] sm:$0xff]  }
0x13a7   : > { %v7528_v16 = vsel %vm6646_vm13, %v7520_v41, 0  ;;  %v13922_v41 = vld [vmem:[#allocation32 + $0x60] sm:$0xff]  }
0x13a8   : > { %12584 = vmatpush3.bf16.msra.mxu0 %v7528_v16 }
0x13a9   : > { %12609 = vmatprep.subr.bf16.mxu0 %v15246_v31 }
0x13ab   : > { %12586 = vmatmul.mubr.msk.bf16.vlgmr.msra.gmra.mrb[100].mxu0 %vm7522_vm0, %v7521_v26  ;;  %v13924_v26 = vld [vmem:[#allocation32 + $0xa0] sm:$0xff]  }
0x13ac   : > { %12610 = vmatpush3.bf16.msra.mxu0 %v7528_v16  ;;  %12611 = vmatprep.mubr.msk.bf16.mxu0 %vm15247_vm8, %v15246_v31 }
0x13ad   : > { %12615 = vmatprep.subr.bf16.mxu0 %v15246_v31 }
0x13b3   : > { %12612 = vmatmul.mubr.msk.bf16.vlgmr.msra.gmra.mrb[104].mxu0 %vm7522_vm0, %v7682_v61  ;;  %v13925_v61 = vld [vmem:[#allocation32 + $0x68] sm:$0xff]  }
0x13b4   : > { %12616 = vmatpush3.bf16.msra.mxu0 %v7528_v16  ;;  %12617 = vmatprep.mubr.msk.bf16.mxu0 %vm15247_vm8, %v15246_v31 }
0x13b5   : > { %12621 = vmatprep.subr.bf16.mxu0 %v15246_v31 }
0x13bb   : > { %12618 = vmatmul.mubr.msk.bf16.vlgmr.msra.gmra.mrb[108].mxu0 %vm7522_vm0, %v7728_v21  ;;  %v13926_v21 = vld [vmem:[#allocation32 + $0x28] sm:$0xff]  }
0x13bc   : > { %12622 = vmatpush3.bf16.msra.mxu0 %v7528_v16  ;;  %12623 = vmatprep.mubr.msk.bf16.mxu0 %vm15247_vm8, %v15246_v31  ;;  %v13923_v16 = vld [vmem:[#allocation32 + $0x20] sm:$0xff]  }
0x13bd   : > { %12097 = vmatprep.subr.bf16.mxu0 %v13883_v35  ;;  %v13927_v35 = vld [vmem:[#allocation32 + $0xa8] sm:$0xff]  }
0x13c3   : > { %12624 = vmatmul.mubr.msk.bf16.vlgmr.msra.gmra.mrb[112].mxu0 %vm7522_vm0, %v7774_v10  ;;  %v13928_v10 = vld [vmem:[#allocation32 + $0x70] sm:$0xff]  }
0x13c4   : > { %12098 = vmatpush3.bf16.msra.mxu0 %v13884_v32  ;;  %v13929_v32 = vld [vmem:[#allocation32 + $0x30] sm:$0xff]  }
0x13c5   : > { %12099 = vmatprep.subr.bf16.mxu0 %v13886_v42  ;;  %v13930_v42 = vld [vmem:[#allocation32 + $0xb0] sm:$0xff]  }
0x13c8   : > { %12100 = vmatpush3.bf16.msra.mxu0 %v13887_v49  ;;  %v13931_v49 = vld [vmem:[#allocation32 + $0x78] sm:$0xff]  }
0x13c9   : > { %12101 = vmatprep.subr.bf16.mxu0 %v13889_v1  ;;  %v13932_v1 = vld [vmem:[#allocation32 + $0x38] sm:$0xff]  }
0x13cc   : > { %12102 = vmatpush3.bf16.msra.mxu0 %v13890_v24  ;;  %v13933_v24 = vld [vmem:[#allocation32 + $0xb8] sm:$0xff]  }
0x13cd   : > { %12103 = vmatprep.subr.bf16.mxu0 %v13892_v47  ;;  %v13934_v47 = vld [vmem:[#allocation35 + $0x40] sm:$0xff]  }
0x13d0   : > { %12104 = vmatpush3.bf16.msra.mxu0 %v13893_v37 }
0x13d1   : > { %12105 = vmatprep.subr.bf16.mxu0 %v13895_v52 }
0x13d4   : > { %12106 = vmatpush3.bf16.msra.mxu0 %v13896_v6 }
0x13d5   : > { %12107 = vmatprep.subr.bf16.mxu0 %v13898_v63 }
0x13d8   : > { %12108 = vmatpush3.bf16.msra.mxu0 %v13899_v58 }
0x13d9   : > { %12109 = vmatprep.subr.bf16.mxu0 %v13901_v33  ;;  %v11575_v33 = vld [vmem:[#allocation31] ss:$0 sm:$0xff] }
0x13dc   : > { %12110 = vmatpush3.bf16.msra.mxu0 %v13902_v11 }
0x13dd   : > { %12111 = vmatprep.subr.bf16.mxu0 %v13904_v25 }
0x13e0   : > { %12112 = vmatpush3.bf16.msra.mxu0 %v13905_v40 }
0x13e1   : > { %12128 = vmatprep.subr.bf16.mxu0 %v13910_v22 }
0x147e   : > { %v7564_v27 = vpop.f32.mrb[100].mxu0 }
0x147f   : > { %v7570_v62 = vpack.c.bf16 %v7564_v27, %v7564_v27  ;;  %v12587_v17 = vpop.f32.mrb[101].mxu0 }
0x1480   : > { %v7567_v18 = vpop.f32.mrb[102].mxu0 }
0x1481   : > { %v12588_v20 = vpop.f32.mrb[103].mxu0  ;;  %12606 = vmatmul.mubr.bf16.vlgmr.msra.gmra.mrb[52].mxu1 %v7570_v62 }
0x1482   : > { %12628 = vmatpush3.bf16.msra.mxu1 %v13894_v28  ;;  %12643 = vmatprep.mubr.msk.bf16.mxu1 %vm15247_vm8, %v15246_v31 }
0x1483   : > { %12629 = vmatprep.subr.bf16.mxu1 %v15246_v31 }
0x1486   : > { %12630 = vmatpush3.bf16.msra.mxu1 %v13897_v9  ;;  %v7720_v23 = vpop.f32.mrb[104].mxu0 }
0x1487   : > { %12631 = vmatprep.subr.bf16.mxu1 %v15246_v31  ;;  %v12613_v50 = vpop.f32.mrb[105].mxu0  ;;  %v7726_v51 = vpack.c.bf16 %v7720_v23, %v7720_v23  ;;  %v13985_v23 = vld [vmem:[#allocation43 + $0x18] sm:$0xff]  }
0x1488   : > { %v7723_v54 = vpop.f32.mrb[106].mxu0 }
0x1489   : > { %v12614_v56 = vpop.f32.mrb[107].mxu0 }
0x148a   : > { %12632 = vmatpush3.bf16.msra.mxu1 %v13900_v57  ;;  %v13935_v56 = vld [vmem:[#allocation35] sm:$0xff]  }
0x148b   : > { %12633 = vmatprep.subr.bf16.mxu1 %v15246_v31 }
0x148e   : > { %12634 = vmatpush3.bf16.msra.mxu1 %v13903_v14  ;;  %v7766_v45 = vpop.f32.mrb[108].mxu0  ;;  %v13936_v14 = vld [vmem:[#allocation35 + $0x80] sm:$0xff]  }
0x148f   : > { %v7772_v53 = vpack.c.bf16 %v7766_v45, %v7766_v45  ;;  %12635 = vmatprep.subr.bf16.mxu1 %v15246_v31  ;;  %v12619_v0 = vpop.f32.mrb[109].mxu0  ;;  %v13937_v45 = vld [vmem:[#allocation35 + $0x48] sm:$0xff]  }
0x1490   : > { %v7769_v36 = vpop.f32.mrb[110].mxu0  ;;  %v13938_v0 = vld [vmem:[#allocation35 + $0x8] sm:$0xff]  }
0x1491   : > { %8050 = vmatprep.mubr.bf16.mxu0 %v7772_v53  ;;  %v12620_v7 = vpop.f32.mrb[111].mxu0  ;;  %v13941_v36 = vld [vmem:[#allocation35 + $0x10] sm:$0xff]  }
0x1492   : > { %12636 = vmatpush3.bf16.msra.mxu1 %v13906_v30  ;;  %8051 = vmatmul.mubr.bf16.vlgmr.msra.gmra.mrb[116].mxu0 %v7726_v51  ;;  %v13940_v51 = vld [vmem:[#allocation35 + $0x50] sm:$0xff]  }
0x1493   : > { %12637 = vmatprep.subr.bf16.mxu1 %v15246_v31  ;;  %12129 = vmatpush3.bf16.msra.mxu0 %v13911_v29  ;;  %v13939_v29 = vld [vmem:[#allocation35 + $0x88] sm:$0xff]   ;;  %v13942_v7 = vld [vmem:[#allocation35 + $0x90] sm:$0xff]  }
0x1494   : > { %12130 = vmatprep.subr.bf16.mxu0 %v13913_v2  ;;  %v13952_v2 = vld [vmem:[#allocation35 + $0x70] sm:$0xff]  }
0x1496   : > { %12638 = vmatpush3.bf16.msra.mxu1 %v13907_v48  ;;  %v7812_v15 = vpop.f32.mrb[112].mxu0  ;;  %v13943_v48 = vld [vmem:[#allocation35 + $0x58] sm:$0xff]  }
0x1497   : > { %12639 = vmatprep.subr.bf16.mxu1 %v15246_v31  ;;  %v12625_v8 = vpop.f32.mrb[113].mxu0  ;;  %v7818_v44 = vpack.c.bf16 %v7812_v15, %v7812_v15  ;;  %12131 = vmatpush3.bf16.msra.mxu0 %v13914_v55  ;;  %v13945_v15 = vld [vmem:[#allocation35 + $0x98] sm:$0xff]   ;;  %v13953_v55 = vld [vmem:[#allocation35 + $0x30] sm:$0xff]  }
0x1498   : > { %v7815_v43 = vpop.f32.mrb[114].mxu0  ;;  %12132 = vmatprep.subr.bf16.mxu0 %v13916_v3  ;;  %v13946_v8 = vld [vmem:[#allocation35 + $0x60] sm:$0xff]   ;;  %v13955_v3 = vld [vmem:[#allocation35 + $0x78] sm:$0xff]  }
0x1499   : > { %v12626_v19 = vpop.f32.mrb[115].mxu0  ;;  %v13947_v43 = vld [vmem:[#allocation35 + $0x20] sm:$0xff]  }
0x149a   : > { %12640 = vmatpush3.bf16.msra.mxu1 %v13908_v12  ;;  %v13944_v12 = vld [vmem:[#allocation35 + $0x18] sm:$0xff]   ;;  %v13948_v19 = vld [vmem:[#allocation35 + $0xa0] sm:$0xff]  }
0x149b   : > { %12641 = vmatprep.subr.bf16.mxu1 %v15246_v31  ;;  %12133 = vmatpush3.bf16.msra.mxu0 %v13917_v4  ;;  %v13956_v4 = vld [vmem:[#allocation35 + $0x38] sm:$0xff]  }
0x149c   : > { %12134 = vmatprep.subr.bf16.mxu0 %v13919_v38  ;;  %v13958_v38 = vld [vmem:[#allocation38 + $0x40] sm:$0xff]  }
0x149e   : > { %12642 = vmatpush3.bf16.msra.mxu1 %v13909_v39  ;;  %v13949_v39 = vld [vmem:[#allocation35 + $0x68] sm:$0xff]  }
0x149f   : > { %12647 = vmatprep.subr.bf16.mxu1 %v15246_v31  ;;  %12135 = vmatpush3.bf16.msra.mxu0 %v13920_v59 }
0x14a0   : > { %12136 = vmatprep.subr.bf16.mxu0 %v13922_v41  ;;  %v11600_v41 = vld [vmem:[#allocation34] ss:$0 sm:$0xff] }
0x14a1   : > { %12644 = vmatmul.mubr.bf16.vlgmr.msra.gmra.mrb[56].mxu1 %v7818_v44  ;;  %v13950_v44 = vld [vmem:[#allocation35 + $0x28] sm:$0xff]  }
0x14a2   : > { %12648 = vmatpush3.bf16.msra.mxu1 %v13912_v46  ;;  %12663 = vmatprep.mubr.msk.bf16.mxu1 %vm15247_vm8, %v15246_v31  ;;  %v13951_v46 = vld [vmem:[#allocation35 + $0xa8] sm:$0xff]  }
0x14a3   : > { %12649 = vmatprep.subr.bf16.mxu1 %v15246_v31  ;;  %12137 = vmatpush3.bf16.msra.mxu0 %v13923_v16 }
0x14a4   : > { %12138 = vmatprep.subr.bf16.mxu0 %v13925_v61 }
0x14a6   : > { %12650 = vmatpush3.bf16.msra.mxu1 %v13915_v5  ;;  %v13954_v5 = vld [vmem:[#allocation35 + $0xb0] sm:$0xff]  }
0x14a7   : > { %12651 = vmatprep.subr.bf16.mxu1 %v15246_v31  ;;  %12139 = vmatpush3.bf16.msra.mxu0 %v13926_v21 }
0x14a8   : > { %12140 = vmatprep.subr.bf16.mxu0 %v13928_v10  ;;  %v11563_v10 = vld [vmem:[#allocation26] ss:$0 sm:$0xff] }
0x14aa   : > { %12652 = vmatpush3.bf16.msra.mxu1 %v13918_v34  ;;  %v13957_v34 = vld [vmem:[#allocation35 + $0xb8] sm:$0xff]  }
0x14ab   : > { %12653 = vmatprep.subr.bf16.mxu1 %v15246_v31  ;;  %12141 = vmatpush3.bf16.msra.mxu0 %v13929_v32 }
0x14ac   : > { %12142 = vmatprep.subr.bf16.mxu0 %v13931_v49 }
0x14ae   : > { %12654 = vmatpush3.bf16.msra.mxu1 %v13921_v60 }
0x14af   : > { %12655 = vmatprep.subr.bf16.mxu1 %v15246_v31  ;;  %12143 = vmatpush3.bf16.msra.mxu0 %v13932_v1 }
0x14b0   : > { %12159 = vmatprep.subr.bf16.mxu0 %v13934_v47 }
0x14b2   : > { %12656 = vmatpush3.bf16.msra.mxu1 %v13924_v26 }
0x14b3   : > { %12657 = vmatprep.subr.bf16.mxu1 %v15246_v31 }
0x14b6   : > { %12658 = vmatpush3.bf16.msra.mxu1 %v13927_v35 }
0x14b7   : > { %12659 = vmatprep.subr.bf16.mxu1 %v15246_v31 }
0x14ba   : > { %12660 = vmatpush3.bf16.msra.mxu1 %v13930_v42 }
0x14bb   : > { %12661 = vmatprep.subr.bf16.mxu1 %v15246_v31 }
0x14be   : > { %12662 = vmatpush3.bf16.msra.mxu1 %v13933_v24 }
0x14bf   : > { %12667 = vmatprep.subr.bf16.mxu1 %v15246_v31 }
0x1565   : > { %v12113_v37 = vpop.f32.mrb[116].mxu0 }
0x1566   : > { %v12114_v52 = vpop.f32.mrb[117].mxu0 }
0x1567   : > { %v12115_v6 = vadd.f32 %v12114_v52, %v12113_v37  ;;  %v12116_v63 = vpop.f32.mrb[118].mxu0 }
0x1568   : > { %v12117_v58 = vpop.f32.mrb[119].mxu0 }
0x1569   : > { %v8053_v11 = vadd.f32 %v12115_v6, %v11575_v33 }
0x1574   : > { %v8092_v25 = vpop.f32.mrb[56].mxu1 }
0x1575   : > { %v8093_v40 = vadd.f32 %v8092_v25, %v8053_v11  ;;  %v12645_v22 = vpop.f32.mrb[57].mxu1  ;;  %v13959_v25 = vld [vmem:[#allocation38] sm:$0xff]  }
0x1576   : > { %v8095_v27 = vpop.f32.mrb[58].mxu1  ;;  %v13961_v22 = vld [vmem:[#allocation38 + $0x48] sm:$0xff]  }
0x1577   : > { %v8098_v28 = vmax.f32 %v8093_v40, 0.0  ;;  %v12646_v62 = vpop.f32.mrb[59].mxu1  ;;  %v13960_v40 = vld [vmem:[#allocation38 + $0x80] sm:$0xff]  }
0x1578   : > { %v13962_v62 = vld [vmem:[#allocation38 + $0x8] sm:$0xff]  }
0x1579   : > { %v8099_v17 = vpack.c.bf16 %v8098_v28, %v8098_v28 }
0x157b   : > { %v8101_v18 = vshrl.u32 %v8099_v17, 16  ;;  %v8104_v20 = vshll.u32 %v8099_v17, 16  ;;  %8347 = vmatprep.mubr.bf16.mxu0 %v8099_v17  ;;  %v13963_v17 = vld [vmem:[#allocation38 + $0x88] sm:$0xff]  }
0x157d   : > { %v8103_v9 = vrot.slane %v8101_v18, 7  ;;  %v8109_v57 = vrot.slane %v8104_v20, 1 }
0x157f   : > { %v8106_v50 = vor.u32 %v8104_v20, %v8103_v9  ;;  %v8110_v54 = vor.u32 %v8109_v57, %v8101_v18  ;;  %v13964_v18 = vld [vmem:[#allocation38 + $0x50] sm:$0xff]   ;;  %v13967_v57 = vld [vmem:[#allocation38 + $0x58] sm:$0xff]  }
0x1580   : > { %v13965_v20 = vld [vmem:[#allocation38 + $0x10] sm:$0xff]  }
0x1581   : > { %v8108_v30 = vsel %vm16821_vm7, 0, %v8106_v50  ;;  %v8115_v53 = vsel %vm17172_vm3, %v8110_v54, 0  ;;  %v13966_v9 = vld [vmem:[#allocation38 + $0x90] sm:$0xff]   ;;  %v13968_v50 = vld [vmem:[#allocation38 + $0x18] sm:$0xff]  }
0x1582   : > { %8348 = vmatmul.mubr.bf16.vlgmr.msra.gmra.mrb[120].mxu0 %v8108_v30  ;;  %12664 = vmatmul.mubr.bf16.vlgmr.msra.gmra.mrb[52].mxu1 %v8115_v53  ;;  %v13969_v54 = vld [vmem:[#allocation38 + $0x98] sm:$0xff]   ;;  %v13973_v30 = vld [vmem:[#allocation38 + $0x68] sm:$0xff]  }
0x1583   : > { %12160 = vmatpush3.bf16.msra.mxu0 %v13935_v56  ;;  %12668 = vmatpush3.bf16.msra.mxu1 %v13936_v14  ;;  %v13970_v56 = vld [vmem:[#allocation38 + $0x60] sm:$0xff]   ;;  %v13974_v53 = vld [vmem:[#allocation38 + $0x28] sm:$0xff]  }
0x1584   : > { %12161 = vmatprep.subr.bf16.mxu0 %v13937_v45  ;;  %12669 = vmatprep.subr.bf16.mxu1 %v15246_v31  ;;  %v13971_v14 = vld [vmem:[#allocation38 + $0x20] sm:$0xff]  }
0x1585   : > { %12683 = vmatprep.mubr.msk.bf16.mxu1 %vm15247_vm8, %v15246_v31  ;;  %v13972_v45 = vld [vmem:[#allocation38 + $0xa0] sm:$0xff]  }
0x1587   : > { %12162 = vmatpush3.bf16.msra.mxu0 %v13938_v0  ;;  %12670 = vmatpush3.bf16.msra.mxu1 %v13939_v29  ;;  %v13975_v0 = vld [vmem:[#allocation38 + $0xa8] sm:$0xff]   ;;  %v13976_v29 = vld [vmem:[#allocation38 + $0x70] sm:$0xff]  }
0x1588   : > { %12163 = vmatprep.subr.bf16.mxu0 %v13940_v51  ;;  %12671 = vmatprep.subr.bf16.mxu1 %v15246_v31  ;;  %v13977_v51 = vld [vmem:[#allocation38 + $0x30] sm:$0xff]  }
0x158b   : > { %12164 = vmatpush3.bf16.msra.mxu0 %v13941_v36  ;;  %12672 = vmatpush3.bf16.msra.mxu1 %v13942_v7  ;;  %v13978_v36 = vld [vmem:[#allocation38 + $0xb0] sm:$0xff]   ;;  %v13979_v7 = vld [vmem:[#allocation38 + $0x78] sm:$0xff]  }
0x158c   : > { %12673 = vmatprep.subr.bf16.mxu1 %v15246_v31  ;;  %12165 = vmatprep.subr.bf16.mxu0 %v13943_v48  ;;  %v13980_v48 = vld [vmem:[#allocation38 + $0x38] sm:$0xff]  }
0x158f   : > { %12166 = vmatpush3.bf16.msra.mxu0 %v13944_v12  ;;  %12674 = vmatpush3.bf16.msra.mxu1 %v13945_v15  ;;  %v13981_v12 = vld [vmem:[#allocation38 + $0xb8] sm:$0xff]  }
0x1590   : > { %12675 = vmatprep.subr.bf16.mxu1 %v15246_v31  ;;  %12167 = vmatprep.subr.bf16.mxu0 %v13946_v8 }
0x1593   : > { %12168 = vmatpush3.bf16.msra.mxu0 %v13947_v43  ;;  %12676 = vmatpush3.bf16.msra.mxu1 %v13948_v19  ;;  %v11625_v43 = vld [vmem:[#allocation37] ss:$0 sm:$0xff] }
0x1594   : > { %12169 = vmatprep.subr.bf16.mxu0 %v13949_v39  ;;  %12677 = vmatprep.subr.bf16.mxu1 %v15246_v31 }
0x1597   : > { %12170 = vmatpush3.bf16.msra.mxu0 %v13950_v44  ;;  %12678 = vmatpush3.bf16.msra.mxu1 %v13951_v46 }
0x1598   : > { %12171 = vmatprep.subr.bf16.mxu0 %v13952_v2  ;;  %12679 = vmatprep.subr.bf16.mxu1 %v15246_v31 }
0x159b   : > { %12172 = vmatpush3.bf16.msra.mxu0 %v13953_v55  ;;  %12680 = vmatpush3.bf16.msra.mxu1 %v13954_v5 }
0x159c   : > { %12173 = vmatprep.subr.bf16.mxu0 %v13955_v3  ;;  %12681 = vmatprep.subr.bf16.mxu1 %v15246_v31 }
0x159f   : > { %12174 = vmatpush3.bf16.msra.mxu0 %v13956_v4  ;;  %12682 = vmatpush3.bf16.msra.mxu1 %v13957_v34 }
0x15a0   : > { %12687 = vmatprep.subr.bf16.mxu1 %v15246_v31  ;;  %12190 = vmatprep.subr.bf16.mxu0 %v13958_v38 }
0x1655   : > { %v12144_v59 = vpop.f32.mrb[120].mxu0  ;;  %v8389_v60 = vpop.f32.mrb[52].mxu1 }
0x1656   : > { %v12145_v16 = vpop.f32.mrb[121].mxu0  ;;  %v12665_v26 = vpop.f32.mrb[53].mxu1 }
0x1657   : > { %v12146_v61 = vadd.f32 %v12145_v16, %v12144_v59  ;;  %v12147_v21 = vpop.f32.mrb[122].mxu0  ;;  %v8392_v35 = vpop.f32.mrb[54].mxu1 }
0x1658   : > { %v12148_v32 = vpop.f32.mrb[123].mxu0  ;;  %v12666_v42 = vpop.f32.mrb[55].mxu1 }
0x1659   : > { %v8350_v49 = vadd.f32 %v12146_v61, %v11600_v41  ;;  %v13983_v32 = vld [vmem:[#allocation43 + $0x8] sm:$0xff]   ;;  %v13984_v42 = vld [vmem:[#allocation43 + $0x10] sm:$0xff]  }
0x165b   : > { %v12900_v1 = vadd.f32 %v11563_v10, %v8350_v49  ;;  %v13982_v10 = vld [vmem:[#allocation43] sm:$0xff]  }
0x165c   : > { %v13986_v49 = vld [vmem:[#allocation43 + $0x20] sm:$0xff]  }
0x165d   : > { %v12901_v24 = vadd.f32 %v12900_v1, %v8389_v60  ;;  %v13989_v1 = vld [vmem:[#allocation43 + $0x28] sm:$0xff]  }
0x165f   : > { %v17190_v47 = vmax.f32 %v12901_v24, 0.0  ;;  %v13992_v24 = vld [vmem:[#allocation43 + $0x30] sm:$0xff]  }
0x1661   : > { %v8397_v37 = vpack.c.bf16 %v17190_v47, %v17190_v47 }
0x1663   : > { %v8399_v52 = vshrl.u32 %v8397_v37, 16  ;;  %8642 = vmatprep.mubr.bf16.mxu0 %v8397_v37  ;;  %v8402_v6 = vshll.u32 %v8397_v37, 16  ;;  %v13995_v37 = vld [vmem:[#allocation43 + $0x38] sm:$0xff]  }
0x1665   : > { %v8401_v63 = vrot.slane %v8399_v52, 7  ;;  %v8407_v58 = vrot.slane %v8402_v6, 1 }
0x1667   : > { %v8404_v33 = vor.u32 %v8402_v6, %v8401_v63  ;;  %v8408_v11 = vor.u32 %v8407_v58, %v8399_v52  ;;  %v11650_v63 = vld [vmem:[#allocation40] ss:$0 sm:$0xff] }
0x1669   : > { %v8406_v27 = vsel %vm16821_vm7, 0, %v8404_v33  ;;  %v8410_v28 = vsel %vm17172_vm3, %v8408_v11, 0 }
0x166a   : > { %8643 = vmatmul.mubr.bf16.vlgmr.msra.gmra.mrb[124].mxu0 %v8406_v27  ;;  %12684 = vmatmul.mubr.bf16.vlgmr.msra.gmra.mrb[60].mxu1 %v8410_v28 }
0x166b   : > { %12191 = vmatpush3.bf16.msra.mxu0 %v13959_v25  ;;  %12688 = vmatpush3.bf16.msra.mxu1 %v13960_v40 }
0x166c   : > { %12192 = vmatprep.subr.bf16.mxu0 %v13961_v22  ;;  %12689 = vmatprep.subr.bf16.mxu1 %v15246_v31 }
0x166d   : > { %12703 = vmatprep.mubr.msk.bf16.mxu1 %vm15247_vm8, %v15246_v31 }
0x166f   : > { %12193 = vmatpush3.bf16.msra.mxu0 %v13962_v62  ;;  %12690 = vmatpush3.bf16.msra.mxu1 %v13963_v17 }
0x1670   : > { %12194 = vmatprep.subr.bf16.mxu0 %v13964_v18  ;;  %12691 = vmatprep.subr.bf16.mxu1 %v15246_v31 }
0x1673   : > { %12195 = vmatpush3.bf16.msra.mxu0 %v13965_v20  ;;  %12692 = vmatpush3.bf16.msra.mxu1 %v13966_v9 }
0x1674   : > { %12196 = vmatprep.subr.bf16.mxu0 %v13967_v57  ;;  %12693 = vmatprep.subr.bf16.mxu1 %v15246_v31  ;;  %v8987_v57 = vld [vmem:[#allocation41] sm:$0x1] }
0x1677   : > { %12197 = vmatpush3.bf16.msra.mxu0 %v13968_v50  ;;  %12694 = vmatpush3.bf16.msra.mxu1 %v13969_v54  ;;  %v11686_v50 = vld [vmem:[%s17500_s17 + $0x1] sm:$0x1]  ;;  %v13987_v54 = vld [vmem:[#allocation46 + $0x40] sm:$0xff]  }
0x1678   : > { %12695 = vmatprep.subr.bf16.mxu1 %v15246_v31  ;;  %12198 = vmatprep.subr.bf16.mxu0 %v13970_v56  ;;  %v11688_v56 = vld [vmem:[%s17500_s17 + $0x2] sm:$0x1] }
0x167b   : > { %12199 = vmatpush3.bf16.msra.mxu0 %v13971_v14  ;;  %12696 = vmatpush3.bf16.msra.mxu1 %v13972_v45  ;;  %v13988_v14 = vld [vmem:[#allocation46] sm:$0xff]   ;;  %v13990_v45 = vld [vmem:[#allocation46 + $0x48] sm:$0xff]  }
0x167c   : > { %12697 = vmatprep.subr.bf16.mxu1 %v15246_v31  ;;  %12200 = vmatprep.subr.bf16.mxu0 %v13973_v30  ;;  %v13991_v30 = vld [vmem:[#allocation46 + $0x8] sm:$0xff]  }
0x167f   : > { %12201 = vmatpush3.bf16.msra.mxu0 %v13974_v53  ;;  %12698 = vmatpush3.bf16.msra.mxu1 %v13975_v0  ;;  %v13993_v53 = vld [vmem:[#allocation46 + $0x50] sm:$0xff]  }
0x1680   : > { %12202 = vmatprep.subr.bf16.mxu0 %v13976_v29  ;;  %12699 = vmatprep.subr.bf16.mxu1 %v15246_v31  ;;  %v13994_v0 = vld [vmem:[#allocation46 + $0x10] sm:$0xff]   ;;  %v13996_v29 = vld [vmem:[#allocation46 + $0x58] sm:$0xff]  }
0x1683   : > { %12203 = vmatpush3.bf16.msra.mxu0 %v13977_v51  ;;  %12700 = vmatpush3.bf16.msra.mxu1 %v13978_v36  ;;  %v13997_v51 = vld [vmem:[#allocation46 + $0x18] sm:$0xff]   ;;  %v13999_v36 = vld [vmem:[#allocation46 + $0x60] sm:$0xff]  }
0x1684   : > { %12701 = vmatprep.subr.bf16.mxu1 %v15246_v31  ;;  %12204 = vmatprep.subr.bf16.mxu0 %v13979_v7  ;;  %v14000_v7 = vld [vmem:[#allocation46 + $0x20] sm:$0xff]  }
0x1687   : > { %12205 = vmatpush3.bf16.msra.mxu0 %v13980_v48  ;;  %12702 = vmatpush3.bf16.msra.mxu1 %v13981_v12  ;;  %v14002_v48 = vld [vmem:[#allocation46 + $0x68] sm:$0xff]  }
0x1688   : > { %12707 = vmatprep.subr.bf16.mxu0 %v15246_v31  ;;  %12713 = vmatprep.subr.bf16.mxu1 %v15246_v31  ;;  %v14003_v12 = vld [vmem:[#allocation46 + $0x28] sm:$0xff]  }
0x173d   : > { %v12175_v15 = vpop.f32.mrb[124].mxu0  ;;  %v8684_v8 = vpop.f32.mrb[60].mxu1 }
0x173e   : > { %v12176_v19 = vpop.f32.mrb[125].mxu0  ;;  %v12685_v39 = vpop.f32.mrb[61].mxu1 }
0x173f   : > { %v12177_v44 = vadd.f32 %v12176_v19, %v12175_v15  ;;  %v12178_v46 = vpop.f32.mrb[126].mxu0  ;;  %v8687_v2 = vpop.f32.mrb[62].mxu1  ;;  %v14005_v15 = vld [vmem:[#allocation46 + $0x70] sm:$0xff]   ;;  %v14009_v19 = vld [vmem:[#allocation46 + $0x38] sm:$0xff]   ;;  %v14014_v39 = vld [vmem:[#allocation49 + $0x40] sm:$0xff]  }
0x1740   : > { %v12179_v55 = vpop.f32.mrb[127].mxu0  ;;  %v12686_v5 = vpop.f32.mrb[63].mxu1  ;;  %v13998_v46 = vld [vmem:[#allocation46 + $0x80] sm:$0xff]  }
0x1741   : > { %v8645_v3 = vadd.f32 %v12177_v44, %v11625_v43  ;;  %v14008_v43 = vld [vmem:[#allocation46 + $0x78] sm:$0xff]  }
0x1743   : > { %v8685_v4 = vadd.f32 %v8684_v8, %v8645_v3  ;;  %v14006_v8 = vld [vmem:[#allocation46 + $0x30] sm:$0xff]  }
0x1745   : > { %v8690_v34 = vmax.f32 %v8685_v4, 0.0  ;;  %v14001_v4 = vld [vmem:[#allocation46 + $0x88] sm:$0xff]  }
0x1747   : > { %v8691_v38 = vpack.c.bf16 %v8690_v34, %v8690_v34  ;;  %v14004_v34 = vld [vmem:[#allocation46 + $0x90] sm:$0xff]  }
0x1749   : > { %v8693_v59 = vshrl.u32 %v8691_v38, 16  ;;  %8936 = vmatprep.mubr.bf16.mxu0 %v8691_v38  ;;  %v8696_v60 = vshll.u32 %v8691_v38, 16 }
0x174b   : > { %v8695_v41 = vrot.slane %v8693_v59, 7  ;;  %v8701_v16 = vrot.slane %v8696_v60, 1 }
0x174d   : > { %v8698_v26 = vor.u32 %v8696_v60, %v8695_v41  ;;  %v8702_v61 = vor.u32 %v8701_v16, %v8693_v59  ;;  %v14007_v16 = vld [vmem:[#allocation46 + $0x98] sm:$0xff]  }
0x174f   : > { %v8700_v21 = vsel %vm16821_vm7, 0, %v8698_v26  ;;  %v8704_v35 = vsel %vm17172_vm3, %v8702_v61, 0  ;;  %v14010_v61 = vld [vmem:[#allocation46 + $0xa0] sm:$0xff]  }
0x1750   : > { %8937 = vmatmul.mubr.bf16.vlgmr.msra.gmra.mrb[128].mxu0 %v8700_v21  ;;  %12704 = vmatmul.mubr.bf16.vlgmr.msra.gmra.mrb[64].mxu1 %v8704_v35 }
0x1751   : > { %12709 = vmatprep.mubr.msk.bf16.mxu0 %vm15247_vm8, %v15246_v31  ;;  %12729 = vmatprep.mubr.msk.bf16.mxu1 %vm15247_vm8, %v15246_v31 }
0x1752   : > { %12714 = vmatpush3.bf16.msra.mxu1 %v13982_v10  ;;  %v14015_v10 = vld [vmem:[#allocation49] sm:$0xff]  }
0x1753   : > { %12715 = vmatprep.subr.bf16.mxu1 %v15246_v31 }
0x1756   : > { %12716 = vmatpush3.bf16.msra.mxu1 %v13983_v32 }
0x1757   : > { %12717 = vmatprep.subr.bf16.mxu1 %v15246_v31 }
0x175a   : > { %12718 = vmatpush3.bf16.msra.mxu1 %v13984_v42 }
0x175b   : > { %12719 = vmatprep.subr.bf16.mxu1 %v15246_v31 }
0x175e   : > { %12720 = vmatpush3.bf16.msra.mxu1 %v13985_v23  ;;  %v14017_v23 = vld [vmem:[#allocation49 + $0x48] sm:$0xff]  }
0x175f   : > { %12721 = vmatprep.subr.bf16.mxu1 %v15246_v31 }
0x1762   : > { %12722 = vmatpush3.bf16.msra.mxu1 %v13986_v49 }
0x1763   : > { %12723 = vmatprep.subr.bf16.mxu1 %v15246_v31 }
0x1766   : > { %12724 = vmatpush3.bf16.msra.mxu1 %v13989_v1  ;;  %v14011_v1 = vld [vmem:[#allocation46 + $0xa8] sm:$0xff]  }
0x1767   : > { %12725 = vmatprep.subr.bf16.mxu1 %v15246_v31 }
0x176a   : > { %12726 = vmatpush3.bf16.msra.mxu1 %v13992_v24  ;;  %v14018_v24 = vld [vmem:[#allocation49 + $0x8] sm:$0xff]  }
0x176b   : > { %12727 = vmatprep.subr.bf16.mxu1 %v15246_v31 }
0x176e   : > { %12728 = vmatpush3.bf16.msra.mxu1 %v13995_v37  ;;  %v14012_v37 = vld [vmem:[#allocation46 + $0xb0] sm:$0xff]  }
0x176f   : > { %12751 = vmatprep.subr.bf16.mxu1 %v15246_v31 }
0x1823   : > { %v12206_v52 = vpop.f32.mrb[128].mxu0  ;;  %v8978_v6 = vpop.f32.mrb[64].mxu1 }
0x1824   : > { %v12207_v58 = vpop.f32.mrb[129].mxu0  ;;  %v12705_v33 = vpop.f32.mrb[65].mxu1 }
0x1825   : > { %v12208_v11 = vadd.f32 %v12207_v58, %v12206_v52  ;;  %v12209_v25 = vpop.f32.mrb[130].mxu0  ;;  %v8981_v40 = vpop.f32.mrb[66].mxu1  ;;  %v14013_v33 = vld [vmem:[#allocation46 + $0xb8] sm:$0xff]  }
0x1826   : > { %v12210_v22 = vpop.f32.mrb[131].mxu0  ;;  %v12706_v27 = vpop.f32.mrb[67].mxu1  ;;  %v14016_v25 = vld [vmem:[#allocation49 + $0x80] sm:$0xff]   ;;  %v14019_v40 = vld [vmem:[#allocation49 + $0x88] sm:$0xff]  }
0x1827   : > { %v8939_v28 = vadd.f32 %v12208_v11, %v11650_v63  ;;  %v14020_v22 = vld [vmem:[#allocation49 + $0x50] sm:$0xff]  }
0x1828   : > { %v14021_v27 = vld [vmem:[#allocation49 + $0x10] sm:$0xff]  }
0x1829   : > { %v8979_v62 = vadd.f32 %v8978_v6, %v8939_v28  ;;  %v14022_v28 = vld [vmem:[#allocation49 + $0x90] sm:$0xff]  }
0x182b   : > { %v8984_v17 = vadd.f32 %v8979_v62, %v17190_v47  ;;  %v9148_v47 = vld [vmem:[%s17499_s16] sm:$0x1]  ;;  %v14023_v62 = vld [vmem:[#allocation49 + $0x58] sm:$0xff]  }
0x182d   : > { %v8985_v18 = vmax.f32 %v8984_v17, 0.0  ;;  %v14024_v17 = vld [vmem:[#allocation49 + $0x18] sm:$0xff]  }
0x182f   : > { %v8986_v20 = vpack.c.bf16 %v8985_v18, %v8985_v18  ;;  %v14025_v18 = vld [vmem:[#allocation49 + $0x98] sm:$0xff]  }
0x1831   : > { %v8994_v9 = vsel %vm8112_vm1, %v8986_v20, 0  ;;  %v14026_v20 = vld [vmem:[#allocation49 + $0x60] sm:$0xff]  }
0x1832   : > { %12708 = vmatpush3.bf16.msra.mxu0 %v8994_v9 }
0x1833   : > { %12733 = vmatprep.subr.bf16.mxu0 %v15246_v31 }
0x1835   : > { %12710 = vmatmul.mubr.msk.bf16.vlgmr.msra.gmra.mrb[132].mxu0 %vm8988_vm4, %v8987_v57  ;;  %v14028_v57 = vld [vmem:[#allocation49 + $0xa0] sm:$0xff]  }
0x1836   : > { %12734 = vmatpush3.bf16.msra.mxu0 %v8994_v9  ;;  %12735 = vmatprep.mubr.msk.bf16.mxu0 %vm15247_vm8, %v15246_v31 }
0x1837   : > { %12739 = vmatprep.subr.bf16.mxu0 %v15246_v31 }
0x183d   : > { %12736 = vmatmul.mubr.msk.bf16.vlgmr.msra.gmra.mrb[136].mxu0 %vm8988_vm4, %v9148_v47  ;;  %v14029_v47 = vld [vmem:[#allocation49 + $0x68] sm:$0xff]  }
0x183e   : > { %12740 = vmatpush3.bf16.msra.mxu0 %v8994_v9  ;;  %12741 = vmatprep.mubr.msk.bf16.mxu0 %vm15247_vm8, %v15246_v31 }
0x183f   : > { %12745 = vmatprep.subr.bf16.mxu0 %v15246_v31 }
0x1845   : > { %12742 = vmatmul.mubr.msk.bf16.vlgmr.msra.gmra.mrb[140].mxu0 %vm8988_vm4, %v11686_v50  ;;  %v14030_v50 = vld [vmem:[#allocation49 + $0x28] sm:$0xff]  }
0x1846   : > { %12746 = vmatpush3.bf16.msra.mxu0 %v8994_v9  ;;  %12747 = vmatprep.mubr.msk.bf16.mxu0 %vm15247_vm8, %v15246_v31  ;;  %v14027_v9 = vld [vmem:[#allocation49 + $0x20] sm:$0xff]  }
0x1847   : > { %12238 = vmatprep.subr.bf16.mxu0 %v13987_v54  ;;  %v14031_v54 = vld [vmem:[#allocation49 + $0xa8] sm:$0xff]  }
0x184d   : > { %12748 = vmatmul.mubr.msk.bf16.vlgmr.msra.gmra.mrb[144].mxu0 %vm8988_vm4, %v11688_v56  ;;  %v14032_v56 = vld [vmem:[#allocation49 + $0x70] sm:$0xff]  }
0x184e   : > { %12239 = vmatpush3.bf16.msra.mxu0 %v13988_v14  ;;  %v14033_v14 = vld [vmem:[#allocation49 + $0x30] sm:$0xff]  }
0x184f   : > { %12240 = vmatprep.subr.bf16.mxu0 %v13990_v45  ;;  %v14034_v45 = vld [vmem:[#allocation49 + $0xb0] sm:$0xff]  }
0x1852   : > { %12241 = vmatpush3.bf16.msra.mxu0 %v13991_v30  ;;  %v14035_v30 = vld [vmem:[#allocation49 + $0x78] sm:$0xff]  }
0x1853   : > { %12242 = vmatprep.subr.bf16.mxu0 %v13993_v53  ;;  %v14036_v53 = vld [vmem:[#allocation49 + $0x38] sm:$0xff]  }
0x1856   : > { %12243 = vmatpush3.bf16.msra.mxu0 %v13994_v0  ;;  %v14037_v0 = vld [vmem:[#allocation49 + $0xb8] sm:$0xff]  }
0x1857   : > { %12244 = vmatprep.subr.bf16.mxu0 %v13996_v29  ;;  %v14038_v29 = vld [vmem:[#allocation52 + $0x40] sm:$0xff]  }
0x185a   : > { %12245 = vmatpush3.bf16.msra.mxu0 %v13997_v51 }
0x185b   : > { %12246 = vmatprep.subr.bf16.mxu0 %v13999_v36 }
0x185e   : > { %12247 = vmatpush3.bf16.msra.mxu0 %v14000_v7 }
0x185f   : > { %12248 = vmatprep.subr.bf16.mxu0 %v14002_v48 }
0x1862   : > { %12249 = vmatpush3.bf16.msra.mxu0 %v14003_v12 }
0x1863   : > { %12250 = vmatprep.subr.bf16.mxu0 %v14005_v15  ;;  %v11690_v15 = vld [vmem:[#allocation47] ss:$0 sm:$0xff] }
0x1866   : > { %12251 = vmatpush3.bf16.msra.mxu0 %v14006_v8 }
0x1867   : > { %12252 = vmatprep.subr.bf16.mxu0 %v14008_v43 }
0x186a   : > { %12253 = vmatpush3.bf16.msra.mxu0 %v14009_v19 }
0x186b   : > { %12269 = vmatprep.subr.bf16.mxu0 %v14014_v39 }
0x1908   : > { %v9030_v44 = vpop.f32.mrb[132].mxu0 }
0x1909   : > { %v9036_v2 = vpack.c.bf16 %v9030_v44, %v9030_v44  ;;  %v12711_v55 = vpop.f32.mrb[133].mxu0 }
0x190a   : > { %v9033_v5 = vpop.f32.mrb[134].mxu0 }
0x190b   : > { %12730 = vmatmul.mubr.bf16.vlgmr.msra.gmra.mrb[68].mxu1 %v9036_v2  ;;  %v12712_v3 = vpop.f32.mrb[135].mxu0 }
0x190c   : > { %12752 = vmatpush3.bf16.msra.mxu1 %v13998_v46  ;;  %12767 = vmatprep.mubr.msk.bf16.mxu1 %vm15247_vm8, %v15246_v31 }
0x190d   : > { %12753 = vmatprep.subr.bf16.mxu1 %v15246_v31 }
0x1910   : > { %12754 = vmatpush3.bf16.msra.mxu1 %v14001_v4  ;;  %v9186_v38 = vpop.f32.mrb[136].mxu0  ;;  %v14039_v4 = vld [vmem:[#allocation52] sm:$0xff]  }
0x1911   : > { %12755 = vmatprep.subr.bf16.mxu1 %v15246_v31  ;;  %v12737_v59 = vpop.f32.mrb[137].mxu0  ;;  %v9192_v32 = vpack.c.bf16 %v9186_v38, %v9186_v38  ;;  %v14041_v38 = vld [vmem:[#allocation52 + $0x48] sm:$0xff]  }
0x1912   : > { %v9189_v60 = vpop.f32.mrb[138].mxu0 }
0x1913   : > { %v12738_v41 = vpop.f32.mrb[139].mxu0 }
0x1914   : > { %12756 = vmatpush3.bf16.msra.mxu1 %v14004_v34  ;;  %v14040_v34 = vld [vmem:[#allocation52 + $0x80] sm:$0xff]   ;;  %v14042_v41 = vld [vmem:[#allocation52 + $0x8] sm:$0xff]  }
0x1915   : > { %12757 = vmatprep.subr.bf16.mxu1 %v15246_v31 }
0x1918   : > { %12758 = vmatpush3.bf16.msra.mxu1 %v14007_v16  ;;  %v9232_v26 = vpop.f32.mrb[140].mxu0  ;;  %v14043_v16 = vld [vmem:[#allocation52 + $0x88] sm:$0xff]  }
0x1919   : > { %v9238_v21 = vpack.c.bf16 %v9232_v26, %v9232_v26  ;;  %12759 = vmatprep.subr.bf16.mxu1 %v15246_v31  ;;  %v12743_v35 = vpop.f32.mrb[141].mxu0  ;;  %v14044_v26 = vld [vmem:[#allocation52 + $0x50] sm:$0xff]  }
0x191a   : > { %v9235_v42 = vpop.f32.mrb[142].mxu0  ;;  %v14047_v35 = vld [vmem:[#allocation52 + $0x58] sm:$0xff]  }
0x191b   : > { %9516 = vmatprep.mubr.bf16.mxu0 %v9238_v21  ;;  %v12744_v49 = vpop.f32.mrb[143].mxu0  ;;  %v14046_v21 = vld [vmem:[#allocation52 + $0x90] sm:$0xff]   ;;  %v14050_v42 = vld [vmem:[#allocation52 + $0x60] sm:$0xff]  }
0x191c   : > { %12760 = vmatpush3.bf16.msra.mxu1 %v14010_v61  ;;  %9517 = vmatmul.mubr.bf16.vlgmr.msra.gmra.mrb[148].mxu0 %v9192_v32  ;;  %v14045_v61 = vld [vmem:[#allocation52 + $0x10] sm:$0xff]   ;;  %v14049_v32 = vld [vmem:[#allocation52 + $0x98] sm:$0xff]   ;;  %v14052_v49 = vld [vmem:[#allocation52 + $0xa0] sm:$0xff]  }
0x191d   : > { %12761 = vmatprep.subr.bf16.mxu1 %v15246_v31  ;;  %12270 = vmatpush3.bf16.msra.mxu0 %v14015_v10  ;;  %v14048_v10 = vld [vmem:[#allocation52 + $0x18] sm:$0xff]  }
0x191e   : > { %12271 = vmatprep.subr.bf16.mxu0 %v14017_v23  ;;  %v14051_v23 = vld [vmem:[#allocation52 + $0x20] sm:$0xff]  }
0x1920   : > { %12762 = vmatpush3.bf16.msra.mxu1 %v14011_v1  ;;  %v9278_v52 = vpop.f32.mrb[144].mxu0  ;;  %v14053_v1 = vld [vmem:[#allocation52 + $0x68] sm:$0xff]  }
0x1921   : > { %12763 = vmatprep.subr.bf16.mxu1 %v15246_v31  ;;  %v12749_v6 = vpop.f32.mrb[145].mxu0  ;;  %12272 = vmatpush3.bf16.msra.mxu0 %v14018_v24  ;;  %v9284_v11 = vpack.c.bf16 %v9278_v52, %v9278_v52  ;;  %v14054_v24 = vld [vmem:[#allocation52 + $0x28] sm:$0xff]   ;;  %v14056_v52 = vld [vmem:[#allocation52 + $0x70] sm:$0xff]  }
0x1922   : > { %v9281_v63 = vpop.f32.mrb[146].mxu0  ;;  %12273 = vmatprep.subr.bf16.mxu0 %v14020_v22  ;;  %v14057_v6 = vld [vmem:[#allocation52 + $0x30] sm:$0xff]  }
0x1923   : > { %v12750_v58 = vpop.f32.mrb[147].mxu0  ;;  %v14058_v63 = vld [vmem:[#allocation52 + $0xb0] sm:$0xff]  }
0x1924   : > { %12764 = vmatpush3.bf16.msra.mxu1 %v14012_v37  ;;  %v14055_v37 = vld [vmem:[#allocation52 + $0xa8] sm:$0xff]   ;;  %v14059_v58 = vld [vmem:[#allocation52 + $0x78] sm:$0xff]  }
0x1925   : > { %12765 = vmatprep.subr.bf16.mxu1 %v15246_v31  ;;  %12274 = vmatpush3.bf16.msra.mxu0 %v14021_v27  ;;  %v11715_v27 = vld [vmem:[#allocation50] ss:$0 sm:$0xff] }
0x1926   : > { %12275 = vmatprep.subr.bf16.mxu0 %v14023_v62 }
0x1928   : > { %12766 = vmatpush3.bf16.msra.mxu1 %v14013_v33  ;;  %v14060_v33 = vld [vmem:[#allocation52 + $0x38] sm:$0xff]  }
0x1929   : > { %12771 = vmatprep.subr.bf16.mxu1 %v15246_v31  ;;  %12276 = vmatpush3.bf16.msra.mxu0 %v14024_v17 }
0x192a   : > { %12277 = vmatprep.subr.bf16.mxu0 %v14026_v20 }
0x192b   : > { %12768 = vmatmul.mubr.bf16.vlgmr.msra.gmra.mrb[72].mxu1 %v9284_v11  ;;  %v14061_v11 = vld [vmem:[#allocation52 + $0xb8] sm:$0xff]  }
0x192c   : > { %12772 = vmatpush3.bf16.msra.mxu1 %v14016_v25  ;;  %12787 = vmatprep.mubr.msk.bf16.mxu1 %vm15247_vm8, %v15246_v31  ;;  %v14062_v25 = vld [vmem:[#allocation55 + $0x40] sm:$0xff]  }
0x192d   : > { %12773 = vmatprep.subr.bf16.mxu1 %v15246_v31  ;;  %12278 = vmatpush3.bf16.msra.mxu0 %v14027_v9  ;;  %v11676_v9 = vld [vmem:[#allocation44] ss:$0 sm:$0xff] }
0x192e   : > { %12279 = vmatprep.subr.bf16.mxu0 %v14029_v47 }
0x1930   : > { %12774 = vmatpush3.bf16.msra.mxu1 %v14019_v40 }
0x1931   : > { %12775 = vmatprep.subr.bf16.mxu1 %v15246_v31  ;;  %12280 = vmatpush3.bf16.msra.mxu0 %v14030_v50 }
0x1932   : > { %12281 = vmatprep.subr.bf16.mxu0 %v14032_v56 }
0x1934   : > { %12776 = vmatpush3.bf16.msra.mxu1 %v14022_v28 }
0x1935   : > { %12777 = vmatprep.subr.bf16.mxu1 %v15246_v31  ;;  %12282 = vmatpush3.bf16.msra.mxu0 %v14033_v14 }
0x1936   : > { %12283 = vmatprep.subr.bf16.mxu0 %v14035_v30 }
0x1938   : > { %12778 = vmatpush3.bf16.msra.mxu1 %v14025_v18 }
0x1939   : > { %12779 = vmatprep.subr.bf16.mxu1 %v15246_v31  ;;  %12284 = vmatpush3.bf16.msra.mxu0 %v14036_v53 }
0x193a   : > { %12300 = vmatprep.subr.bf16.mxu0 %v14038_v29  ;;  %v14064_v29 = vld [vmem:[#allocation55 + $0x80] sm:$0xff]  }
0x193c   : > { %12780 = vmatpush3.bf16.msra.mxu1 %v14028_v57 }
0x193d   : > { %12781 = vmatprep.subr.bf16.mxu1 %v15246_v31 }
0x1940   : > { %12782 = vmatpush3.bf16.msra.mxu1 %v14031_v54 }
0x1941   : > { %12783 = vmatprep.subr.bf16.mxu1 %v15246_v31 }
0x1944   : > { %12784 = vmatpush3.bf16.msra.mxu1 %v14034_v45 }
0x1945   : > { %12785 = vmatprep.subr.bf16.mxu1 %v15246_v31 }
0x1948   : > { %12786 = vmatpush3.bf16.msra.mxu1 %v14037_v0  ;;  %v14063_v0 = vld [vmem:[#allocation55] sm:$0xff]  }
0x1949   : > { %12791 = vmatprep.subr.bf16.mxu1 %v15246_v31 }
0x19ef   : > { %v12254_v51 = vpop.f32.mrb[148].mxu0 }
0x19f0   : > { %v12255_v36 = vpop.f32.mrb[149].mxu0 }
0x19f1   : > { %v12256_v7 = vadd.f32 %v12255_v36, %v12254_v51  ;;  %v12257_v48 = vpop.f32.mrb[150].mxu0  ;;  %v14065_v51 = vld [vmem:[#allocation55 + $0x48] sm:$0xff]  }
0x19f2   : > { %v12258_v12 = vpop.f32.mrb[151].mxu0  ;;  %v14066_v48 = vld [vmem:[#allocation55 + $0x8] sm:$0xff]  }
0x19f3   : > { %v9519_v8 = vadd.f32 %v12256_v7, %v11690_v15  ;;  %v14067_v12 = vld [vmem:[#allocation55 + $0x88] sm:$0xff]   ;;  %v14068_v15 = vld [vmem:[#allocation55 + $0x50] sm:$0xff]  }
0x19fe   : > { %v9558_v43 = vpop.f32.mrb[72].mxu1 }
0x19ff   : > { %v9559_v19 = vadd.f32 %v9558_v43, %v9519_v8  ;;  %v12769_v39 = vpop.f32.mrb[73].mxu1  ;;  %v14069_v8 = vld [vmem:[#allocation55 + $0x10] sm:$0xff]  }
0x1a00   : > { %v9561_v44 = vpop.f32.mrb[74].mxu1  ;;  %v14070_v43 = vld [vmem:[#allocation55 + $0x90] sm:$0xff]   ;;  %v14072_v39 = vld [vmem:[#allocation55 + $0x18] sm:$0xff]  }
0x1a01   : > { %v9564_v46 = vmax.f32 %v9559_v19, 0.0  ;;  %v12770_v2 = vpop.f32.mrb[75].mxu1  ;;  %v14071_v19 = vld [vmem:[#allocation55 + $0x58] sm:$0xff]  }
0x1a02   : > { %v14073_v44 = vld [vmem:[#allocation55 + $0x98] sm:$0xff]   ;;  %v14075_v2 = vld [vmem:[#allocation55 + $0x20] sm:$0xff]  }
0x1a03   : > { %v9565_v55 = vpack.c.bf16 %v9564_v46, %v9564_v46  ;;  %v14074_v46 = vld [vmem:[#allocation55 + $0x60] sm:$0xff]  }
0x1a05   : > { %9806 = vmatprep.mubr.bf16.mxu0 %v9565_v55  ;;  %v9567_v5 = vshll.u32 %v9565_v55, 16  ;;  %v9571_v3 = vshrl.u32 %v9565_v55, 16  ;;  %v14076_v55 = vld [vmem:[#allocation55 + $0xa0] sm:$0xff]  }
0x1a07   : > { %v9570_v59 = vsel %vm16821_vm7, 0, %v9567_v5  ;;  %v9574_v60 = vsel %vm16821_vm7, %v9571_v3, 0  ;;  %v14077_v5 = vld [vmem:[#allocation55 + $0x68] sm:$0xff]  }
0x1a08   : > { %9807 = vmatmul.mubr.bf16.vlgmr.msra.gmra.mrb[152].mxu0 %v9570_v59  ;;  %12788 = vmatmul.mubr.bf16.vlgmr.msra.gmra.mrb[68].mxu1 %v9574_v60  ;;  %v14078_v3 = vld [vmem:[#allocation55 + $0x28] sm:$0xff]   ;;  %v14082_v59 = vld [vmem:[#allocation55 + $0xb0] sm:$0xff]   ;;  %v14083_v60 = vld [vmem:[#allocation55 + $0x78] sm:$0xff]  }
0x1a09   : > { %12301 = vmatpush3.bf16.msra.mxu0 %v14039_v4  ;;  %12792 = vmatpush3.bf16.msra.mxu1 %v14040_v34  ;;  %v14079_v4 = vld [vmem:[#allocation55 + $0xa8] sm:$0xff]   ;;  %v14080_v34 = vld [vmem:[#allocation55 + $0x70] sm:$0xff]  }
0x1a0a   : > { %12302 = vmatprep.subr.bf16.mxu0 %v14041_v38  ;;  %12793 = vmatprep.subr.bf16.mxu1 %v15246_v31  ;;  %v14081_v38 = vld [vmem:[#allocation55 + $0x30] sm:$0xff]  }
0x1a0b   : > { %12807 = vmatprep.mubr.msk.bf16.mxu1 %vm15247_vm8, %v15246_v31 }
0x1a0d   : > { %12303 = vmatpush3.bf16.msra.mxu0 %v14042_v41  ;;  %12794 = vmatpush3.bf16.msra.mxu1 %v14043_v16  ;;  %v14084_v41 = vld [vmem:[#allocation55 + $0x38] sm:$0xff]  }
0x1a0e   : > { %12304 = vmatprep.subr.bf16.mxu0 %v14044_v26  ;;  %12795 = vmatprep.subr.bf16.mxu1 %v15246_v31  ;;  %v14085_v16 = vld [vmem:[#allocation55 + $0xb8] sm:$0xff]   ;;  %v15248_v26 = vmov 0.0|0.0  }
0x1a11   : > { %12305 = vmatpush3.bf16.msra.mxu0 %v14045_v61  ;;  %12796 = vmatpush3.bf16.msra.mxu1 %v14046_v21 }
0x1a12   : > { %12306 = vmatprep.subr.bf16.mxu0 %v14047_v35  ;;  %12797 = vmatprep.subr.bf16.mxu1 %v15246_v31  ;;  %v11740_v35 = vld [vmem:[#allocation53] ss:$0 sm:$0xff] }
0x1a15   : > { %12307 = vmatpush3.bf16.msra.mxu0 %v14048_v10  ;;  %12798 = vmatpush3.bf16.msra.mxu1 %v14049_v32 }
0x1a16   : > { %12799 = vmatprep.subr.bf16.mxu1 %v15246_v31  ;;  %12308 = vmatprep.subr.bf16.mxu0 %v14050_v42 }
0x1a19   : > { %12309 = vmatpush3.bf16.msra.mxu0 %v14051_v23  ;;  %12800 = vmatpush3.bf16.msra.mxu1 %v14052_v49 }
0x1a1a   : > { %12801 = vmatprep.subr.bf16.mxu1 %v15246_v31  ;;  %12310 = vmatprep.subr.bf16.mxu0 %v14053_v1 }
0x1a1d   : > { %12311 = vmatpush3.bf16.msra.mxu0 %v14054_v24  ;;  %12802 = vmatpush3.bf16.msra.mxu1 %v14055_v37 }
0x1a1e   : > { %12312 = vmatprep.subr.bf16.mxu0 %v14056_v52  ;;  %12803 = vmatprep.subr.bf16.mxu1 %v15246_v31 }
0x1a21   : > { %12313 = vmatpush3.bf16.msra.mxu0 %v14057_v6  ;;  %12804 = vmatpush3.bf16.msra.mxu1 %v14058_v63  ;;  %v10444_v63 = vld [vmem:[%s15517_s29] sm:$0xff] }
0x1a22   : > { %12314 = vmatprep.subr.bf16.mxu0 %v14059_v58  ;;  %12805 = vmatprep.subr.bf16.mxu1 %v15246_v31  ;;  %v10445_v58 = vld [vmem:[%s15517_s29 + $0x8] sm:$0xff] }
0x1a25   : > { %12315 = vmatpush3.bf16.msra.mxu0 %v14060_v33  ;;  %12806 = vmatpush3.bf16.msra.mxu1 %v14061_v11 }
0x1a26   : > { %12811 = vmatprep.subr.bf16.mxu1 %v15246_v31  ;;  %12331 = vmatprep.subr.bf16.mxu0 %v14062_v25 }
0x1adb   : > { %v12285_v40 = vpop.f32.mrb[152].mxu0  ;;  %v9848_v22 = vpop.f32.mrb[68].mxu1 }
0x1adc   : > { %v12286_v28 = vpop.f32.mrb[153].mxu0  ;;  %v12789_v62 = vpop.f32.mrb[69].mxu1 }
0x1add   : > { %v12287_v17 = vadd.f32 %v12286_v28, %v12285_v40  ;;  %v12288_v18 = vpop.f32.mrb[154].mxu0  ;;  %v9851_v20 = vpop.f32.mrb[70].mxu1  ;;  %v12867_v40 = vpack.c.bf16 %v10445_v58, %v10444_v63 }
0x1ade   : > { %v12289_v57 = vpop.f32.mrb[155].mxu0  ;;  %v12790_v47 = vpop.f32.mrb[71].mxu1  ;;  %v10448_v18 = vld [vmem:[%s15517_s29 + $0x20] sm:$0xff]  ;;  %v10449_v20 = vld [vmem:[%s15517_s29 + $0x28] sm:$0xff] }
0x1adf   : > { %v9809_v50 = vadd.f32 %v12287_v17, %v11715_v27  ;;  %v10447_v27 = vld [vmem:[%s15517_s29 + $0x18] sm:$0xff] }
0x1ae0   : > { %v10451_v57 = vld [vmem:[%s15517_s29 + $0x38] sm:$0xff] }
0x1ae1   : > { %v12902_v54 = vadd.f32 %v11676_v9, %v9809_v50  ;;  %v12873_v9 = vpack.c.bf16 %v10449_v20, %v10448_v18  ;;  %v12876_v47 = vpack.c.bf16 %v10451_v57, %v10450_v13  ;;  %v10453_v50 = vld [vmem:[%s15517_s29 + $0x48] sm:$0xff] }
0x1ae3   : > { %v12903_v56 = vadd.f32 %v12902_v54, %v9848_v22  ;;  %v10446_v22 = vld [vmem:[%s15517_s29 + $0x10] sm:$0xff] }
0x1ae4   : > { %v12870_v17 = vpack.c.bf16 %v10447_v27, %v10446_v22 }
0x1ae5   : > { %v17277_v14 = vmax.f32 %v12903_v56, 0.0  ;;  %v10454_v56 = vld [vmem:[%s15517_s29 + $0x50] sm:$0xff] }
0x1ae7   : > { %v9856_v45 = vpack.c.bf16 %v17277_v14, %v17277_v14 }
0x1ae9   : > { %10097 = vmatprep.mubr.bf16.mxu0 %v9856_v45  ;;  %v9858_v30 = vshll.u32 %v9856_v45, 16  ;;  %v9862_v53 = vshrl.u32 %v9856_v45, 16  ;;  %v10455_v45 = vld [vmem:[%s15517_s29 + $0x58] sm:$0xff] }
0x1aeb   : > { %v9861_v36 = vsel %vm16821_vm7, 0, %v9858_v30  ;;  %v9865_v7 = vsel %vm16821_vm7, %v9862_v53, 0  ;;  %v12882_v30 = vpack.c.bf16 %v10455_v45, %v10454_v56  ;;  %v10456_v53 = vld [vmem:[%s15517_s29 + $0x60] sm:$0xff] }
0x1aec   : > { %10098 = vmatmul.mubr.bf16.vlgmr.msra.gmra.mrb[156].mxu0 %v9861_v36  ;;  %12808 = vmatmul.mubr.bf16.vlgmr.msra.gmra.mrb[76].mxu1 %v9865_v7  ;;  %v10459_v36 = vld [vmem:[%s15517_s29 + $0x78] sm:$0xff] }
0x1aed   : > { %12332 = vmatpush3.bf16.msra.mxu0 %v14063_v0  ;;  %12812 = vmatpush3.bf16.msra.mxu1 %v14064_v29  ;;  %v10457_v0 = vld [vmem:[%s15517_s29 + $0x68] sm:$0xff]  ;;  %v10458_v29 = vld [vmem:[%s15517_s29 + $0x70] sm:$0xff] }
0x1aee   : > { %12333 = vmatprep.subr.bf16.mxu0 %v14065_v51  ;;  %12813 = vmatprep.subr.bf16.mxu1 %v15246_v31  ;;  %v12885_v51 = vpack.c.bf16 %v10457_v0, %v10456_v53  ;;  %v12888_v7 = vpack.c.bf16 %v10459_v36, %v10458_v29 }
0x1aef   : > { %12827 = vmatprep.mubr.msk.bf16.mxu1 %vm15247_vm8, %v15246_v31 }
0x1af1   : > { %12334 = vmatpush3.bf16.msra.mxu0 %v14066_v48  ;;  %12814 = vmatpush3.bf16.msra.mxu1 %v14067_v12 }
0x1af2   : > { %12335 = vmatprep.subr.bf16.mxu0 %v14068_v15  ;;  %12815 = vmatprep.subr.bf16.mxu1 %v15246_v31  ;;  %v11765_v15 = vld [vmem:[#allocation56] ss:$0 sm:$0xff] }
0x1af5   : > { %12336 = vmatpush3.bf16.msra.mxu0 %v14069_v8  ;;  %12816 = vmatpush3.bf16.msra.mxu1 %v14070_v43 }
0x1af6   : > { %12337 = vmatprep.subr.bf16.mxu0 %v14071_v19  ;;  %12817 = vmatprep.subr.bf16.mxu1 %v15246_v31 }
0x1af9   : > { %12338 = vmatpush3.bf16.msra.mxu0 %v14072_v39  ;;  %12818 = vmatpush3.bf16.msra.mxu1 %v14073_v44 }
0x1afa   : > { %12339 = vmatprep.subr.bf16.mxu0 %v14074_v46  ;;  %12819 = vmatprep.subr.bf16.mxu1 %v15246_v31 }
0x1afd   : > { %12340 = vmatpush3.bf16.msra.mxu0 %v14075_v2  ;;  %12820 = vmatpush3.bf16.msra.mxu1 %v14076_v55 }
0x1afe   : > { %12821 = vmatprep.subr.bf16.mxu1 %v15246_v31  ;;  %12341 = vmatprep.subr.bf16.mxu0 %v14077_v5 }
0x1b01   : > { %12342 = vmatpush3.bf16.msra.mxu0 %v14078_v3  ;;  %12822 = vmatpush3.bf16.msra.mxu1 %v14079_v4 }
0x1b02   : > { %12823 = vmatprep.subr.bf16.mxu1 %v15246_v31  ;;  %12343 = vmatprep.subr.bf16.mxu0 %v14080_v34 }
0x1b05   : > { %12344 = vmatpush3.bf16.msra.mxu0 %v14081_v38  ;;  %12824 = vmatpush3.bf16.msra.mxu1 %v14082_v59 }
0x1b06   : > { %12345 = vmatprep.subr.bf16.mxu0 %v14083_v60  ;;  %12825 = vmatprep.subr.bf16.mxu1 %v15246_v31 }
0x1b09   : > { %12346 = vmatpush3.bf16.msra.mxu0 %v14084_v41  ;;  %12826 = vmatpush3.bf16.msra.mxu1 %v14085_v16 }
0x1b0a   : > { %12866 = vmatprep.subr.bf16.mxu0 %v15248_v26 }
0x1bbf   : > { %v12316_v61 = vpop.f32.mrb[156].mxu0  ;;  %v10139_v21 = vpop.f32.mrb[76].mxu1 }
0x1bc0   : > { %v12317_v10 = vpop.f32.mrb[157].mxu0  ;;  %v12809_v32 = vpop.f32.mrb[77].mxu1 }
0x1bc1   : > { %v12318_v42 = vadd.f32 %v12317_v10, %v12316_v61  ;;  %v12319_v23 = vpop.f32.mrb[158].mxu0  ;;  %v10142_v49 = vpop.f32.mrb[78].mxu1  ;;  %v10460_v61 = vld [vmem:[#allocation58] sm:$0x1] }
0x1bc2   : > { %v12320_v1 = vpop.f32.mrb[159].mxu0  ;;  %v12810_v24 = vpop.f32.mrb[79].mxu1 }
0x1bc3   : > { %v10100_v37 = vadd.f32 %v12318_v42, %v11740_v35 }
0x1bc5   : > { %v10140_v52 = vadd.f32 %v10139_v21, %v10100_v37 }
0x1bc7   : > { %v10145_v6 = vmax.f32 %v10140_v52, 0.0 }
0x1bc9   : > { %v10146_v33 = vpack.c.bf16 %v10145_v6, %v10145_v6 }
0x1bcb   : > { %10387 = vmatprep.mubr.bf16.mxu0 %v10146_v33  ;;  %v10148_v11 = vshll.u32 %v10146_v33, 16  ;;  %v10152_v25 = vshrl.u32 %v10146_v33, 16 }
0x1bcd   : > { %v10151_v28 = vsel %vm16821_vm7, 0, %v10148_v11  ;;  %v10155_v62 = vsel %vm16821_vm7, %v10152_v25, 0 }
0x1bce   : > { %10388 = vmatmul.mubr.bf16.vlgmr.msra.gmra.mrb[160].mxu0 %v10151_v28  ;;  %12828 = vmatmul.mubr.bf16.vlgmr.msra.gmra.mrb[80].mxu1 %v10155_v62 }
0x1bcf   : > { %12868 = vmatpush3.bf16.msra.mxu0 %v12867_v40  ;;  %12863 = vmatprep.mubr.msk.f32.mxu0 %vm15247_vm8, %v15246_v31  ;;  %v10452_v31 = vld [vmem:[%s15517_s29 + $0x40] sm:$0xff] }
0x1bd0   : > { %12869 = vmatprep.subr.bf16.mxu0 %v15248_v26  ;;  %v12879_v54 = vpack.c.bf16 %v10453_v50, %v10452_v31 }
0x1bd3   : > { %12871 = vmatpush3.bf16.msra.mxu0 %v12870_v17 }
0x1bd4   : > { %12872 = vmatprep.subr.bf16.mxu0 %v15248_v26 }
0x1bd7   : > { %12874 = vmatpush3.bf16.msra.mxu0 %v12873_v9 }
0x1bd8   : > { %12875 = vmatprep.subr.bf16.mxu0 %v15248_v26 }
0x1bdb   : > { %12877 = vmatpush3.bf16.msra.mxu0 %v12876_v47 }
0x1bdc   : > { %12878 = vmatprep.subr.bf16.mxu0 %v15248_v26 }
0x1bdf   : > { %12880 = vmatpush3.bf16.msra.mxu0 %v12879_v54 }
0x1be0   : > { %12881 = vmatprep.subr.bf16.mxu0 %v15248_v26 }
0x1be3   : > { %12883 = vmatpush3.bf16.msra.mxu0 %v12882_v30 }
0x1be4   : > { %12884 = vmatprep.subr.bf16.mxu0 %v15248_v26 }
0x1be7   : > { %12886 = vmatpush3.bf16.msra.mxu0 %v12885_v51 }
0x1be8   : > { %12887 = vmatprep.subr.bf16.mxu0 %v15248_v26 }
0x1beb   : > { %12889 = vmatpush3.bf16.msra.mxu0 %v12888_v7 }
0x1ca1   : > { %v12347_v48 = vpop.f32.mrb[160].mxu0  ;;  %v10429_v12 = vpop.f32.mrb[80].mxu1 }
0x1ca2   : > { %v12348_v8 = vpop.f32.mrb[161].mxu0  ;;  %v12829_v43 = vpop.f32.mrb[81].mxu1 }
0x1ca3   : > { %v12349_v19 = vadd.f32 %v12348_v8, %v12347_v48  ;;  %v12350_v39 = vpop.f32.mrb[162].mxu0  ;;  %v10432_v44 = vpop.f32.mrb[82].mxu1 }
0x1ca4   : > { %v12351_v46 = vpop.f32.mrb[163].mxu0  ;;  %v12830_v2 = vpop.f32.mrb[83].mxu1 }
0x1ca5   : > { %v10390_v55 = vadd.f32 %v12349_v19, %v11765_v15 }
0x1ca7   : > { %v10430_v5 = vadd.f32 %v10429_v12, %v10390_v55 }
0x1ca9   : > { %v10435_v3 = vadd.f32 %v10430_v5, %v17277_v14 }
0x1cab   : > { %v10436_v4 = vmax.f32 %v10435_v3, 0.0 }
0x1cad   : > { %v10437_v34 = vsel %vm8112_vm1, %v10436_v4, 0.0 }
0x1cae   : > { %v10438_v38 = vrot.slane %v10437_v34, 4 }
0x1cb0   : > { %v10439_v59 = vadd.f32 %v10438_v38, %v10437_v34 }
0x1cb2   : > { %v10440_v60 = vrot.slane %v10439_v59, 2 }
0x1cb4   : > { %v10441_v41 = vadd.f32 %v10440_v60, %v10439_v59 }
0x1cb6   : > { %v10442_v16 = vrot.slane %v10441_v41, 1 }
0x1cb8   : > { %v10443_v26 = vadd.f32 %v10442_v16, %v10441_v41 }
0x1cba   : > { %12864 = vmatmul.mubr.f32.vlgmr.msra.gmra.mrb[164].mxu0 %v10443_v26 }
0x1d8d   : > { %v10527_v21 = vpop.f32.mrb[164].mxu0 }
0x1d8e   : > { %v10528_v35 = vadd.f32 %v10527_v21, %v10460_v61  ;;  %v12865_v10 = vpop.f32.mrb[165].mxu0 }
0x1d90   : > { %10532 = vst.msk [vmem:[%s2142_s0] sm:$0x1] %vm10531_vm5, %v10528_v35 }
0x1d91 PF: > { %s17501_s8 = sld [smem:[#allocation124_spill]]  ;;  %p135_p10 = scmp.ge.s32.totalorder %s15548_s22, 4  }
0x1d92   : > { %s17502_s0 = smov %s15142_s15  ;;  %s17504_s16 = smov %s15548_s22 }
0x1d93   :  { %137 = sbr.rel (!%p135_p10) target bundleno = 124 (0x7c), region = 509 }
0x1d97   : > { %s17503_s15 = smov %s17501_s8 }
0x1d9a   :  { %10550 = vsyncpa [#allocation4], 1 }
0x1d9b   :  { %10552 = vsyncpa [#allocation4 + $0x1], 1 }
0x1d9c   :  { %10553 = vsyncpa [#allocation6], 1 }
0x1d9d   :  { %10554 = vsyncpa [#allocation9], 1 }
0x1d9e   :  { %10555 = vsyncpa [#allocation12], 1 }
0x1d9f   :  { %10556 = vsyncpa [#allocation15], 1 }
0x1da0   :  { %10557 = vsyncpa [#allocation18], 1 }
0x1da1   :  { %10558 = vsyncpa [#allocation21], 1 }
0x1da2   :  { %10559 = vsyncpa [#allocation24], 1 }
0x1da3   :  { %10560 = vsyncpa [#allocation27], 1 }
0x1da4   :  { %10561 = vsyncpa [#allocation30], 1 }
0x1da5   :  { %10562 = vsyncpa [#allocation33], 1 }
0x1da6   :  { %10563 = vsyncpa [#allocation36], 1 }
0x1da7   :  { %10564 = vsyncpa [#allocation39], 1 }
0x1da8   :  { %10565 = vsyncpa [#allocation42], 1 }
0x1da9   :  { %10566 = vsyncpa [#allocation45], 1 }
0x1daa   :  { %10567 = vsyncpa [#allocation48], 1 }
0x1dab   :  { %10568 = vsyncpa [#allocation51], 1 }
0x1dac   :  { %10569 = vsyncpa [#allocation54], 1 }
0x1dad   :  { %10570 = vsyncpa [#allocation57], 1 }

</bundles_post_ra>
